<compile_context>
chip_gen: v5e
topology: v5e:2x2
jax: 0.10.0
libtpu: 0.0.40
codegen_flags: <defaults>
</compile_context>

<pallas_src>
import numpy as np
import jax
import jax.numpy as jnp
from jax import lax
from jax.experimental import pallas as pl
from jax.experimental.pallas import tpu as pltpu

WORD_VEC_DIM = 100
HIDDEN = 100
SEQ = 8
BATCH = 2

INP = 128          # padded input dim
HP = 128           # padded hidden dim
GP = 4 * HP        # packed gate dim, order (i, f, o, g)
BP = 8             # padded batch (sublane-aligned per-step slices)
F1P = 128          # padded fc1 out (true 64)
F2P = 128          # padded fc2 out (true 32)
NCLS = 4

IFOG = (0, 1, 3, 2)  # reorder PyTorch gate order (i, f, g, o) -> packed (i, f, o, g)


def lstm_mlp_kernel(x_ref,                            # (S*BP, INP)  bf16
                    wih1_ref, whh1_ref, b1_ref,       # (INP,GP) bf16, (HP,GP) bf16, (1,GP) f32
                    wih2_ref, whh2_ref, b2_ref,       # (HP,GP) bf16, (HP,GP) bf16, (1,GP) f32
                    w_fc1_ref, b_fc1_ref,             # (HP,F1P) f32, (1,F1P) f32
                    w_fc2_ref, b_fc2_ref,             # (F1P,F2P) f32, (1,F2P) f32
                    w_fc3_ref, b_fc3_ref,             # (F2P,NCLS) f32, (1,NCLS) f32
                    out_ref):                         # (BP, NCLS) f32
    f32 = jnp.float32
    bf16 = jnp.bfloat16
    SB = x_ref.shape[0]
    S = SB // BP

    # Hoisted, time-invariant layer-1 input projection (bias folded in): ONE matmul
    # replaces 4*S tiny per-step matmuls and removes them from the serial chain.
    xp1 = (jnp.dot(x_ref[...], wih1_ref[...], preferred_element_type=f32)
           + jnp.broadcast_to(b1_ref[...], (SB, GP)))          # (S*BP, GP) f32

    # Hoist weight loads / bias broadcast out of the unrolled recurrence
    # (JAX does not CSE broadcast_in_dim inside the loop).
    whh1 = whh1_ref[...]
    wih2 = wih2_ref[...]
    whh2 = whh2_ref[...]
    b2_full = jnp.broadcast_to(b2_ref[...], (BP, GP))

    h1 = jnp.zeros((BP, HP), f32)
    c1 = jnp.zeros((BP, HP), f32)
    h2 = jnp.zeros((BP, HP), f32)
    c2 = jnp.zeros((BP, HP), f32)

    def lstm_update(pre, c_prev):
        # pre: (BP, 4*HP) packed as [i | f | o | g]
        ifo = jax.nn.sigmoid(pre[:, :3 * HP])                  # one EUP slab
        g = jnp.tanh(pre[:, 3 * HP:])                          # one EUP slab
        i = ifo[:, 0:HP]
        f = ifo[:, HP:2 * HP]
        o = ifo[:, 2 * HP:3 * HP]
        c_new = f * c_prev + i * g
        h_new = o * jnp.tanh(c_new)
        return h_new, c_new

    # seq is small & static -> fully unrolled straight-line recurrence; the LLO
    # scheduler overlaps the whh2 term (depends only on h2(t-1)) with layer-1 of
    # step t automatically.
    for t in range(S):
        # Off-critical-path term: only depends on the previous step's h2.
        rec2 = jnp.dot(h2.astype(bf16), whh2, preferred_element_type=f32)

        pre1 = xp1[t * BP:(t + 1) * BP, :] + jnp.dot(
            h1.astype(bf16), whh1, preferred_element_type=f32)
        h1, c1 = lstm_update(pre1, c1)

        pre2 = jnp.dot(h1.astype(bf16), wih2, preferred_element_type=f32) + rec2 + b2_full
        h2, c2 = lstm_update(pre2, c2)

    # z[-1][1] == final cell state of the last LSTM layer
    feat = c2                                                  # (BP, HP)

    hi = lax.Precision.HIGHEST   # pin head precision explicitly (tiny, off the chain)
    y = jnp.dot(feat, w_fc1_ref[...], preferred_element_type=f32, precision=hi) + b_fc1_ref[...]
    y = jnp.maximum(y, 0.0)
    y = jnp.dot(y, w_fc2_ref[...], preferred_element_type=f32, precision=hi) + b_fc2_ref[...]
    y = jnp.maximum(y, 0.0)
    logits = jnp.dot(y, w_fc3_ref[...], preferred_element_type=f32, precision=hi) + b_fc3_ref[...]

    # softmax over the class dim (F.softmax default dim=1 for 2-D input); exact divide.
    m = jnp.max(logits, axis=-1, keepdims=True)
    e = jnp.exp(logits - m)
    out_ref[...] = e / jnp.sum(e, axis=-1, keepdims=True)


def _pad_to(a, shape):
    out = jnp.zeros(shape, jnp.float32)
    return out.at[tuple(slice(0, s) for s in a.shape)].set(a)


def pack_params(p):
    """Pack/pad logical (PyTorch-shaped) params into lane-aligned kernel params.

    LSTM weights are stored bf16 (exact, since the logical params are already
    bf16-representable); biases and the MLP head stay f32.
    """
    def pack_w(w4, rows):   # (4, in, H) -> (rows, 4*HP), gate order (i, f, o, g)
        return jnp.concatenate([_pad_to(w4[g], (rows, HP)) for g in IFOG], axis=1)

    def pack_b(b4):         # (4, 1, H) -> (1, 4*HP)
        return jnp.concatenate([_pad_to(b4[g], (1, HP)) for g in IFOG], axis=1)

    return {
        "wih1": pack_w(p["wih1"], INP).astype(jnp.bfloat16),
        "whh1": pack_w(p["whh1"], HP).astype(jnp.bfloat16),
        "b1": pack_b(p["b1"]),
        "wih2": pack_w(p["wih2"], HP).astype(jnp.bfloat16),
        "whh2": pack_w(p["whh2"], HP).astype(jnp.bfloat16),
        "b2": pack_b(p["b2"]),
        "w_fc1": _pad_to(p["w_fc1"], (HP, F1P)),
        "b_fc1": _pad_to(p["b_fc1"], (1, F1P)),
        "w_fc2": _pad_to(p["w_fc2"], (F1P, F2P)),
        "b_fc2": _pad_to(p["b_fc2"], (1, F2P)),
        "w_fc3": _pad_to(p["w_fc3"], (F2P, NCLS)),
        "b_fc3": _pad_to(p["b_fc3"], (1, NCLS)),
    }


@jax.jit
def model_forward(x, kp):
    """x: (S, B, WORD_VEC_DIM) time-major float32 -> (B, 4) class probabilities."""
    S, B, _ = x.shape
    # Pad batch 2 -> 8 and features 100 -> 128; each time step is then an
    # 8-sublane-aligned row block of the flattened (S*BP, INP) input.
    xp = jnp.zeros((S, BP, INP), jnp.float32).at[:, :B, :WORD_VEC_DIM].set(x)
    x2d = xp.reshape(S * BP, INP).astype(jnp.bfloat16)

    vm = pl.BlockSpec(memory_space=pltpu.MemorySpace.VMEM)
    args = (x2d,
            kp["wih1"], kp["whh1"], kp["b1"],
            kp["wih2"], kp["whh2"], kp["b2"],
            kp["w_fc1"], kp["b_fc1"],
            kp["w_fc2"], kp["b_fc2"],
            kp["w_fc3"], kp["b_fc3"])
    out = pl.pallas_call(
        lstm_mlp_kernel,
        out_shape=jax.ShapeDtypeStruct((BP, NCLS), jnp.float32),
        in_specs=[vm] * len(args),
        out_specs=vm,
    )(*args)
    return out[:B]


def init_params(key):
    """Deterministic init mimicking PyTorch shapes (uniform(-k, k), k=1/sqrt(H))."""
    ks = jax.random.split(key, 16)
    k_lstm = 1.0 / np.sqrt(HIDDEN)

    def u(k, shape, bound):
        return jax.random.uniform(k, shape, jnp.float32, -bound, bound)

    p = {
        # layer 0: input_size = WORD_VEC_DIM, gate order (i, f, g, o) like PyTorch
        "wih1": u(ks[0], (4, WORD_VEC_DIM, HIDDEN), k_lstm),
        "whh1": u(ks[1], (4, HIDDEN, HIDDEN), k_lstm),
        "b1":   u(ks[2], (4, 1, HIDDEN), k_lstm) + u(ks[3], (4, 1, HIDDEN), k_lstm),
        # layer 1: input_size = HIDDEN
        "wih2": u(ks[4], (4, HIDDEN, HIDDEN), k_lstm),
        "whh2": u(ks[5], (4, HIDDEN, HIDDEN), k_lstm),
        "b2":   u(ks[6], (4, 1, HIDDEN), k_lstm) + u(ks[7], (4, 1, HIDDEN), k_lstm),
        # MLP head (stored transposed: (in, out))
        "w_fc1": u(ks[8],  (HIDDEN, 64), 1.0 / np.sqrt(HIDDEN)),
        "b_fc1": u(ks[9],  (1, 64),      1.0 / np.sqrt(HIDDEN)),
        "w_fc2": u(ks[10], (64, 32),     1.0 / np.sqrt(64)),
        "b_fc2": u(ks[11], (1, 32),      1.0 / np.sqrt(64)),
        "w_fc3": u(ks[12], (32, 4),      1.0 / np.sqrt(32)),
        "b_fc3": u(ks[13], (1, 4),       1.0 / np.sqrt(32)),
    }
    # Round LSTM weights to bf16-representable values so the bf16-stored kernel
    # weights and the f32 reference use IDENTICAL parameters.
    for name in ("wih1", "whh1", "wih2", "whh2"):
        p[name] = p[name].astype(jnp.bfloat16).astype(jnp.float32)
    return p


def reference(x, p):
    """Pure-JAX f32 reference of the same forward pass (unpadded, PyTorch gate order)."""
    B = x.shape[1]
    hi = lax.Precision.HIGHEST

    def mm(a, b):
        return jnp.dot(a, b, precision=hi)

    h1 = jnp.zeros((B, HIDDEN), jnp.float32)
    c1 = jnp.zeros((B, HIDDEN), jnp.float32)
    h2 = jnp.zeros((B, HIDDEN), jnp.float32)
    c2 = jnp.zeros((B, HIDDEN), jnp.float32)

    def cell(x_t, h, c, wih, whh, b):
        i = jax.nn.sigmoid(mm(x_t, wih[0]) + mm(h, whh[0]) + b[0])
        f = jax.nn.sigmoid(mm(x_t, wih[1]) + mm(h, whh[1]) + b[1])
        g = jnp.tanh(mm(x_t, wih[2]) + mm(h, whh[2]) + b[2])
        o = jax.nn.sigmoid(mm(x_t, wih[3]) + mm(h, whh[3]) + b[3])
        c = f * c + i * g
        h = o * jnp.tanh(c)
        return h, c

    for t in range(x.shape[0]):
        h1, c1 = cell(x[t], h1, c1, p["wih1"], p["whh1"], p["b1"])
        h2, c2 = cell(h1, h2, c2, p["wih2"], p["whh2"], p["b2"])

    y = jax.nn.relu(mm(c2, p["w_fc1"]) + p["b_fc1"])
    y = jax.nn.relu(mm(y, p["w_fc2"]) + p["b_fc2"])
    return jax.nn.softmax(mm(y, p["w_fc3"]) + p["b_fc3"], axis=-1)


if __name__ == "__main__":
    key = jax.random.PRNGKey(0)
    k_x, k_p = jax.random.split(key)
    x = jax.random.normal(k_x, (SEQ, BATCH, WORD_VEC_DIM), jnp.float32)
    params = init_params(k_p)
    kernel_params = pack_params(params)   # packed once, reused (jit-cached wrapper)

    out = model_forward(x, kernel_params)
    out = jax.block_until_ready(out)

    ref = jax.block_until_ready(reference(x, params))
    assert out.shape == (BATCH, 4)
    # Kernel runs the LSTM with single-pass bf16-input / f32-accumulate matmuls;
    # tolerance reflects bf16 activation rounding vs. the full-f32 reference.
    np.testing.assert_allclose(np.asarray(out), np.asarray(ref), rtol=2e-2, atol=3e-3)
    np.testing.assert_allclose(np.asarray(out).sum(axis=-1), 1.0, rtol=1e-5)

    print("KERNEL_OK")
</pallas_src>

<mosaic_0001>
module attributes {stable_mosaic.version = 11 : i64} {
  func.func @lstm_mlp_kernel(%arg0: memref<64x128xbf16, #tpu.memory_space<vmem>>, %arg1: memref<128x512xbf16, #tpu.memory_space<vmem>>, %arg2: memref<128x512xbf16, #tpu.memory_space<vmem>>, %arg3: memref<1x512xf32, #tpu.memory_space<vmem>>, %arg4: memref<128x512xbf16, #tpu.memory_space<vmem>>, %arg5: memref<128x512xbf16, #tpu.memory_space<vmem>>, %arg6: memref<1x512xf32, #tpu.memory_space<vmem>>, %arg7: memref<128x128xf32, #tpu.memory_space<vmem>>, %arg8: memref<1x128xf32, #tpu.memory_space<vmem>>, %arg9: memref<128x128xf32, #tpu.memory_space<vmem>>, %arg10: memref<1x128xf32, #tpu.memory_space<vmem>>, %arg11: memref<128x4xf32, #tpu.memory_space<vmem>>, %arg12: memref<1x4xf32, #tpu.memory_space<vmem>>, %arg13: memref<8x4xf32, #tpu.memory_space<vmem>>) attributes {dimension_semantics = [], scalar_prefetch = 0 : i64, scratch_operands = 0 : i64, tpu.core_type = #tpu.core_type<tc>} {
    %c0 = arith.constant 0 : index
    %c0_0 = arith.constant 0 : index
    %0 = vector.load %arg0[%c0, %c0_0] : memref<64x128xbf16, #tpu.memory_space<vmem>>, vector<64x128xbf16>
    %c0_1 = arith.constant 0 : index
    %c0_2 = arith.constant 0 : index
    %1 = vector.load %arg1[%c0_1, %c0_2] : memref<128x512xbf16, #tpu.memory_space<vmem>>, vector<128x512xbf16>
    %cst = arith.constant dense<0.000000e+00> : vector<64x512xf32>
    %2 = tpu.matmul %0, %1, %cst {dimension_numbers = #tpu.dot_dimension_numbers<[1], [0], [0], [1], [0, 0, 1, 1], [], []>} : vector<64x128xbf16>, vector<128x512xbf16>, vector<64x512xf32> -> vector<64x512xf32>
    %c0_3 = arith.constant 0 : index
    %c0_4 = arith.constant 0 : index
    %3 = vector.load %arg3[%c0_3, %c0_4] : memref<1x512xf32, #tpu.memory_space<vmem>>, vector<1x512xf32>
    %4 = vector.shape_cast %3 : vector<1x512xf32> to vector<1x512xf32>
    %5 = vector.broadcast %4 : vector<1x512xf32> to vector<64x512xf32>
    %6 = arith.addf %2, %5 : vector<64x512xf32>
    %c0_5 = arith.constant 0 : index
    %c0_6 = arith.constant 0 : index
    %7 = vector.load %arg2[%c0_5, %c0_6] : memref<128x512xbf16, #tpu.memory_space<vmem>>, vector<128x512xbf16>
    %c0_7 = arith.constant 0 : index
    %c0_8 = arith.constant 0 : index
    %8 = vector.load %arg4[%c0_7, %c0_8] : memref<128x512xbf16, #tpu.memory_space<vmem>>, vector<128x512xbf16>
    %c0_9 = arith.constant 0 : index
    %c0_10 = arith.constant 0 : index
    %9 = vector.load %arg5[%c0_9, %c0_10] : memref<128x512xbf16, #tpu.memory_space<vmem>>, vector<128x512xbf16>
    %c0_11 = arith.constant 0 : index
    %c0_12 = arith.constant 0 : index
    %10 = vector.load %arg6[%c0_11, %c0_12] : memref<1x512xf32, #tpu.memory_space<vmem>>, vector<1x512xf32>
    %11 = vector.shape_cast %10 : vector<1x512xf32> to vector<1x512xf32>
    %12 = vector.broadcast %11 : vector<1x512xf32> to vector<8x512xf32>
    %cst_13 = arith.constant 0.000000e+00 : f32
    %13 = vector.broadcast %cst_13 : f32 to vector<8x128xf32>
    %cst_14 = arith.constant 0.000000e+00 : f32
    %14 = vector.broadcast %cst_14 : f32 to vector<8x128xf32>
    %cst_15 = arith.constant 0.000000e+00 : f32
    %15 = vector.broadcast %cst_15 : f32 to vector<8x128xf32>
    %cst_16 = arith.constant 0.000000e+00 : f32
    %16 = vector.broadcast %cst_16 : f32 to vector<8x128xf32>
    %17 = arith.truncf %15 : vector<8x128xf32> to vector<8x128xbf16>
    %cst_17 = arith.constant dense<0.000000e+00> : vector<8x512xf32>
    %18 = tpu.matmul %17, %9, %cst_17 {dimension_numbers = #tpu.dot_dimension_numbers<[1], [0], [0], [1], [0, 0, 1, 1], [], []>} : vector<8x128xbf16>, vector<128x512xbf16>, vector<8x512xf32> -> vector<8x512xf32>
    %19 = vector.extract_strided_slice %6 {offsets = [0, 0], sizes = [8, 512], strides = [1, 1]} : vector<64x512xf32> to vector<8x512xf32>
    %20 = arith.truncf %13 : vector<8x128xf32> to vector<8x128xbf16>
    %cst_18 = arith.constant dense<0.000000e+00> : vector<8x512xf32>
    %21 = tpu.matmul %20, %7, %cst_18 {dimension_numbers = #tpu.dot_dimension_numbers<[1], [0], [0], [1], [0, 0, 1, 1], [], []>} : vector<8x128xbf16>, vector<128x512xbf16>, vector<8x512xf32> -> vector<8x512xf32>
    %22 = arith.addf %19, %21 : vector<8x512xf32>
    %23 = vector.extract_strided_slice %22 {offsets = [0, 0], sizes = [8, 384], strides = [1, 1]} : vector<8x512xf32> to vector<8x384xf32>
    %24 = arith.negf %23 : vector<8x384xf32>
    %25 = math.exp %24 : vector<8x384xf32>
    %cst_19 = arith.constant 1.000000e+00 : f32
    %26 = vector.broadcast %cst_19 : f32 to vector<8x384xf32>
    %27 = arith.addf %26, %25 : vector<8x384xf32>
    %28 = arith.divf %26, %27 : vector<8x384xf32>
    %29 = vector.extract_strided_slice %22 {offsets = [0, 384], sizes = [8, 128], strides = [1, 1]} : vector<8x512xf32> to vector<8x128xf32>
    %30 = math.tanh %29 : vector<8x128xf32>
    %31 = vector.extract_strided_slice %28 {offsets = [0, 0], sizes = [8, 128], strides = [1, 1]} : vector<8x384xf32> to vector<8x128xf32>
    %32 = vector.extract_strided_slice %28 {offsets = [0, 128], sizes = [8, 128], strides = [1, 1]} : vector<8x384xf32> to vector<8x128xf32>
    %33 = vector.extract_strided_slice %28 {offsets = [0, 256], sizes = [8, 128], strides = [1, 1]} : vector<8x384xf32> to vector<8x128xf32>
    %34 = arith.mulf %32, %14 : vector<8x128xf32>
    %35 = arith.mulf %31, %30 : vector<8x128xf32>
    %36 = arith.addf %34, %35 : vector<8x128xf32>
    %37 = math.tanh %36 : vector<8x128xf32>
    %38 = arith.mulf %33, %37 : vector<8x128xf32>
    %39 = arith.truncf %38 : vector<8x128xf32> to vector<8x128xbf16>
    %cst_20 = arith.constant dense<0.000000e+00> : vector<8x512xf32>
    %40 = tpu.matmul %39, %8, %cst_20 {dimension_numbers = #tpu.dot_dimension_numbers<[1], [0], [0], [1], [0, 0, 1, 1], [], []>} : vector<8x128xbf16>, vector<128x512xbf16>, vector<8x512xf32> -> vector<8x512xf32>
    %41 = arith.addf %40, %18 : vector<8x512xf32>
    %42 = arith.addf %41, %12 : vector<8x512xf32>
    %43 = vector.extract_strided_slice %42 {offsets = [0, 0], sizes = [8, 384], strides = [1, 1]} : vector<8x512xf32> to vector<8x384xf32>
    %44 = arith.negf %43 : vector<8x384xf32>
    %45 = math.exp %44 : vector<8x384xf32>
    %cst_21 = arith.constant 1.000000e+00 : f32
    %46 = vector.broadcast %cst_21 : f32 to vector<8x384xf32>
    %47 = arith.addf %46, %45 : vector<8x384xf32>
    %48 = arith.divf %46, %47 : vector<8x384xf32>
    %49 = vector.extract_strided_slice %42 {offsets = [0, 384], sizes = [8, 128], strides = [1, 1]} : vector<8x512xf32> to vector<8x128xf32>
    %50 = math.tanh %49 : vector<8x128xf32>
    %51 = vector.extract_strided_slice %48 {offsets = [0, 0], sizes = [8, 128], strides = [1, 1]} : vector<8x384xf32> to vector<8x128xf32>
    %52 = vector.extract_strided_slice %48 {offsets = [0, 128], sizes = [8, 128], strides = [1, 1]} : vector<8x384xf32> to vector<8x128xf32>
    %53 = vector.extract_strided_slice %48 {offsets = [0, 256], sizes = [8, 128], strides = [1, 1]} : vector<8x384xf32> to vector<8x128xf32>
    %54 = arith.mulf %52, %16 : vector<8x128xf32>
    %55 = arith.mulf %51, %50 : vector<8x128xf32>
    %56 = arith.addf %54, %55 : vector<8x128xf32>
    %57 = math.tanh %56 : vector<8x128xf32>
    %58 = arith.mulf %53, %57 : vector<8x128xf32>
    %59 = arith.truncf %58 : vector<8x128xf32> to vector<8x128xbf16>
    %cst_22 = arith.constant dense<0.000000e+00> : vector<8x512xf32>
    %60 = tpu.matmul %59, %9, %cst_22 {dimension_numbers = #tpu.dot_dimension_numbers<[1], [0], [0], [1], [0, 0, 1, 1], [], []>} : vector<8x128xbf16>, vector<128x512xbf16>, vector<8x512xf32> -> vector<8x512xf32>
    %61 = vector.extract_strided_slice %6 {offsets = [8, 0], sizes = [8, 512], strides = [1, 1]} : vector<64x512xf32> to vector<8x512xf32>
    %62 = arith.truncf %38 : vector<8x128xf32> to vector<8x128xbf16>
    %cst_23 = arith.constant dense<0.000000e+00> : vector<8x512xf32>
    %63 = tpu.matmul %62, %7, %cst_23 {dimension_numbers = #tpu.dot_dimension_numbers<[1], [0], [0], [1], [0, 0, 1, 1], [], []>} : vector<8x128xbf16>, vector<128x512xbf16>, vector<8x512xf32> -> vector<8x512xf32>
    %64 = arith.addf %61, %63 : vector<8x512xf32>
    %65 = vector.extract_strided_slice %64 {offsets = [0, 0], sizes = [8, 384], strides = [1, 1]} : vector<8x512xf32> to vector<8x384xf32>
    %66 = arith.negf %65 : vector<8x384xf32>
    %67 = math.exp %66 : vector<8x384xf32>
    %cst_24 = arith.constant 1.000000e+00 : f32
    %68 = vector.broadcast %cst_24 : f32 to vector<8x384xf32>
    %69 = arith.addf %68, %67 : vector<8x384xf32>
    %70 = arith.divf %68, %69 : vector<8x384xf32>
    %71 = vector.extract_strided_slice %64 {offsets = [0, 384], sizes = [8, 128], strides = [1, 1]} : vector<8x512xf32> to vector<8x128xf32>
    %72 = math.tanh %71 : vector<8x128xf32>
    %73 = vector.extract_strided_slice %70 {offsets = [0, 0], sizes = [8, 128], strides = [1, 1]} : vector<8x384xf32> to vector<8x128xf32>
    %74 = vector.extract_strided_slice %70 {offsets = [0, 128], sizes = [8, 128], strides = [1, 1]} : vector<8x384xf32> to vector<8x128xf32>
    %75 = vector.extract_strided_slice %70 {offsets = [0, 256], sizes = [8, 128], strides = [1, 1]} : vector<8x384xf32> to vector<8x128xf32>
    %76 = arith.mulf %74, %36 : vector<8x128xf32>
    %77 = arith.mulf %73, %72 : vector<8x128xf32>
    %78 = arith.addf %76, %77 : vector<8x128xf32>
    %79 = math.tanh %78 : vector<8x128xf32>
    %80 = arith.mulf %75, %79 : vector<8x128xf32>
    %81 = arith.truncf %80 : vector<8x128xf32> to vector<8x128xbf16>
    %cst_25 = arith.constant dense<0.000000e+00> : vector<8x512xf32>
    %82 = tpu.matmul %81, %8, %cst_25 {dimension_numbers = #tpu.dot_dimension_numbers<[1], [0], [0], [1], [0, 0, 1, 1], [], []>} : vector<8x128xbf16>, vector<128x512xbf16>, vector<8x512xf32> -> vector<8x512xf32>
    %83 = arith.addf %82, %60 : vector<8x512xf32>
    %84 = arith.addf %83, %12 : vector<8x512xf32>
    %85 = vector.extract_strided_slice %84 {offsets = [0, 0], sizes = [8, 384], strides = [1, 1]} : vector<8x512xf32> to vector<8x384xf32>
    %86 = arith.negf %85 : vector<8x384xf32>
    %87 = math.exp %86 : vector<8x384xf32>
    %cst_26 = arith.constant 1.000000e+00 : f32
    %88 = vector.broadcast %cst_26 : f32 to vector<8x384xf32>
    %89 = arith.addf %88, %87 : vector<8x384xf32>
    %90 = arith.divf %88, %89 : vector<8x384xf32>
    %91 = vector.extract_strided_slice %84 {offsets = [0, 384], sizes = [8, 128], strides = [1, 1]} : vector<8x512xf32> to vector<8x128xf32>
    %92 = math.tanh %91 : vector<8x128xf32>
    %93 = vector.extract_strided_slice %90 {offsets = [0, 0], sizes = [8, 128], strides = [1, 1]} : vector<8x384xf32> to vector<8x128xf32>
    %94 = vector.extract_strided_slice %90 {offsets = [0, 128], sizes = [8, 128], strides = [1, 1]} : vector<8x384xf32> to vector<8x128xf32>
    %95 = vector.extract_strided_slice %90 {offsets = [0, 256], sizes = [8, 128], strides = [1, 1]} : vector<8x384xf32> to vector<8x128xf32>
    %96 = arith.mulf %94, %56 : vector<8x128xf32>
    %97 = arith.mulf %93, %92 : vector<8x128xf32>
    %98 = arith.addf %96, %97 : vector<8x128xf32>
    %99 = math.tanh %98 : vector<8x128xf32>
    %100 = arith.mulf %95, %99 : vector<8x128xf32>
    %101 = arith.truncf %100 : vector<8x128xf32> to vector<8x128xbf16>
    %cst_27 = arith.constant dense<0.000000e+00> : vector<8x512xf32>
    %102 = tpu.matmul %101, %9, %cst_27 {dimension_numbers = #tpu.dot_dimension_numbers<[1], [0], [0], [1], [0, 0, 1, 1], [], []>} : vector<8x128xbf16>, vector<128x512xbf16>, vector<8x512xf32> -> vector<8x512xf32>
    %103 = vector.extract_strided_slice %6 {offsets = [16, 0], sizes = [8, 512], strides = [1, 1]} : vector<64x512xf32> to vector<8x512xf32>
    %104 = arith.truncf %80 : vector<8x128xf32> to vector<8x128xbf16>
    %cst_28 = arith.constant dense<0.000000e+00> : vector<8x512xf32>
    %105 = tpu.matmul %104, %7, %cst_28 {dimension_numbers = #tpu.dot_dimension_numbers<[1], [0], [0], [1], [0, 0, 1, 1], [], []>} : vector<8x128xbf16>, vector<128x512xbf16>, vector<8x512xf32> -> vector<8x512xf32>
    %106 = arith.addf %103, %105 : vector<8x512xf32>
    %107 = vector.extract_strided_slice %106 {offsets = [0, 0], sizes = [8, 384], strides = [1, 1]} : vector<8x512xf32> to vector<8x384xf32>
    %108 = arith.negf %107 : vector<8x384xf32>
    %109 = math.exp %108 : vector<8x384xf32>
    %cst_29 = arith.constant 1.000000e+00 : f32
    %110 = vector.broadcast %cst_29 : f32 to vector<8x384xf32>
    %111 = arith.addf %110, %109 : vector<8x384xf32>
    %112 = arith.divf %110, %111 : vector<8x384xf32>
    %113 = vector.extract_strided_slice %106 {offsets = [0, 384], sizes = [8, 128], strides = [1, 1]} : vector<8x512xf32> to vector<8x128xf32>
    %114 = math.tanh %113 : vector<8x128xf32>
    %115 = vector.extract_strided_slice %112 {offsets = [0, 0], sizes = [8, 128], strides = [1, 1]} : vector<8x384xf32> to vector<8x128xf32>
    %116 = vector.extract_strided_slice %112 {offsets = [0, 128], sizes = [8, 128], strides = [1, 1]} : vector<8x384xf32> to vector<8x128xf32>
    %117 = vector.extract_strided_slice %112 {offsets = [0, 256], sizes = [8, 128], strides = [1, 1]} : vector<8x384xf32> to vector<8x128xf32>
    %118 = arith.mulf %116, %78 : vector<8x128xf32>
    %119 = arith.mulf %115, %114 : vector<8x128xf32>
    %120 = arith.addf %118, %119 : vector<8x128xf32>
    %121 = math.tanh %120 : vector<8x128xf32>
    %122 = arith.mulf %117, %121 : vector<8x128xf32>
    %123 = arith.truncf %122 : vector<8x128xf32> to vector<8x128xbf16>
    %cst_30 = arith.constant dense<0.000000e+00> : vector<8x512xf32>
    %124 = tpu.matmul %123, %8, %cst_30 {dimension_numbers = #tpu.dot_dimension_numbers<[1], [0], [0], [1], [0, 0, 1, 1], [], []>} : vector<8x128xbf16>, vector<128x512xbf16>, vector<8x512xf32> -> vector<8x512xf32>
    %125 = arith.addf %124, %102 : vector<8x512xf32>
    %126 = arith.addf %125, %12 : vector<8x512xf32>
    %127 = vector.extract_strided_slice %126 {offsets = [0, 0], sizes = [8, 384], strides = [1, 1]} : vector<8x512xf32> to vector<8x384xf32>
    %128 = arith.negf %127 : vector<8x384xf32>
    %129 = math.exp %128 : vector<8x384xf32>
    %cst_31 = arith.constant 1.000000e+00 : f32
    %130 = vector.broadcast %cst_31 : f32 to vector<8x384xf32>
    %131 = arith.addf %130, %129 : vector<8x384xf32>
    %132 = arith.divf %130, %131 : vector<8x384xf32>
    %133 = vector.extract_strided_slice %126 {offsets = [0, 384], sizes = [8, 128], strides = [1, 1]} : vector<8x512xf32> to vector<8x128xf32>
    %134 = math.tanh %133 : vector<8x128xf32>
    %135 = vector.extract_strided_slice %132 {offsets = [0, 0], sizes = [8, 128], strides = [1, 1]} : vector<8x384xf32> to vector<8x128xf32>
    %136 = vector.extract_strided_slice %132 {offsets = [0, 128], sizes = [8, 128], strides = [1, 1]} : vector<8x384xf32> to vector<8x128xf32>
    %137 = vector.extract_strided_slice %132 {offsets = [0, 256], sizes = [8, 128], strides = [1, 1]} : vector<8x384xf32> to vector<8x128xf32>
    %138 = arith.mulf %136, %98 : vector<8x128xf32>
    %139 = arith.mulf %135, %134 : vector<8x128xf32>
    %140 = arith.addf %138, %139 : vector<8x128xf32>
    %141 = math.tanh %140 : vector<8x128xf32>
    %142 = arith.mulf %137, %141 : vector<8x128xf32>
    %143 = arith.truncf %142 : vector<8x128xf32> to vector<8x128xbf16>
    %cst_32 = arith.constant dense<0.000000e+00> : vector<8x512xf32>
    %144 = tpu.matmul %143, %9, %cst_32 {dimension_numbers = #tpu.dot_dimension_numbers<[1], [0], [0], [1], [0, 0, 1, 1], [], []>} : vector<8x128xbf16>, vector<128x512xbf16>, vector<8x512xf32> -> vector<8x512xf32>
    %145 = vector.extract_strided_slice %6 {offsets = [24, 0], sizes = [8, 512], strides = [1, 1]} : vector<64x512xf32> to vector<8x512xf32>
    %146 = arith.truncf %122 : vector<8x128xf32> to vector<8x128xbf16>
    %cst_33 = arith.constant dense<0.000000e+00> : vector<8x512xf32>
    %147 = tpu.matmul %146, %7, %cst_33 {dimension_numbers = #tpu.dot_dimension_numbers<[1], [0], [0], [1], [0, 0, 1, 1], [], []>} : vector<8x128xbf16>, vector<128x512xbf16>, vector<8x512xf32> -> vector<8x512xf32>
    %148 = arith.addf %145, %147 : vector<8x512xf32>
    %149 = vector.extract_strided_slice %148 {offsets = [0, 0], sizes = [8, 384], strides = [1, 1]} : vector<8x512xf32> to vector<8x384xf32>
    %150 = arith.negf %149 : vector<8x384xf32>
    %151 = math.exp %150 : vector<8x384xf32>
    %cst_34 = arith.constant 1.000000e+00 : f32
    %152 = vector.broadcast %cst_34 : f32 to vector<8x384xf32>
    %153 = arith.addf %152, %151 : vector<8x384xf32>
    %154 = arith.divf %152, %153 : vector<8x384xf32>
    %155 = vector.extract_strided_slice %148 {offsets = [0, 384], sizes = [8, 128], strides = [1, 1]} : vector<8x512xf32> to vector<8x128xf32>
    %156 = math.tanh %155 : vector<8x128xf32>
    %157 = vector.extract_strided_slice %154 {offsets = [0, 0], sizes = [8, 128], strides = [1, 1]} : vector<8x384xf32> to vector<8x128xf32>
    %158 = vector.extract_strided_slice %154 {offsets = [0, 128], sizes = [8, 128], strides = [1, 1]} : vector<8x384xf32> to vector<8x128xf32>
    %159 = vector.extract_strided_slice %154 {offsets = [0, 256], sizes = [8, 128], strides = [1, 1]} : vector<8x384xf32> to vector<8x128xf32>
    %160 = arith.mulf %158, %120 : vector<8x128xf32>
    %161 = arith.mulf %157, %156 : vector<8x128xf32>
    %162 = arith.addf %160, %161 : vector<8x128xf32>
    %163 = math.tanh %162 : vector<8x128xf32>
    %164 = arith.mulf %159, %163 : vector<8x128xf32>
    %165 = arith.truncf %164 : vector<8x128xf32> to vector<8x128xbf16>
    %cst_35 = arith.constant dense<0.000000e+00> : vector<8x512xf32>
    %166 = tpu.matmul %165, %8, %cst_35 {dimension_numbers = #tpu.dot_dimension_numbers<[1], [0], [0], [1], [0, 0, 1, 1], [], []>} : vector<8x128xbf16>, vector<128x512xbf16>, vector<8x512xf32> -> vector<8x512xf32>
    %167 = arith.addf %166, %144 : vector<8x512xf32>
    %168 = arith.addf %167, %12 : vector<8x512xf32>
    %169 = vector.extract_strided_slice %168 {offsets = [0, 0], sizes = [8, 384], strides = [1, 1]} : vector<8x512xf32> to vector<8x384xf32>
    %170 = arith.negf %169 : vector<8x384xf32>
    %171 = math.exp %170 : vector<8x384xf32>
    %cst_36 = arith.constant 1.000000e+00 : f32
    %172 = vector.broadcast %cst_36 : f32 to vector<8x384xf32>
    %173 = arith.addf %172, %171 : vector<8x384xf32>
    %174 = arith.divf %172, %173 : vector<8x384xf32>
    %175 = vector.extract_strided_slice %168 {offsets = [0, 384], sizes = [8, 128], strides = [1, 1]} : vector<8x512xf32> to vector<8x128xf32>
    %176 = math.tanh %175 : vector<8x128xf32>
    %177 = vector.extract_strided_slice %174 {offsets = [0, 0], sizes = [8, 128], strides = [1, 1]} : vector<8x384xf32> to vector<8x128xf32>
    %178 = vector.extract_strided_slice %174 {offsets = [0, 128], sizes = [8, 128], strides = [1, 1]} : vector<8x384xf32> to vector<8x128xf32>
    %179 = vector.extract_strided_slice %174 {offsets = [0, 256], sizes = [8, 128], strides = [1, 1]} : vector<8x384xf32> to vector<8x128xf32>
    %180 = arith.mulf %178, %140 : vector<8x128xf32>
    %181 = arith.mulf %177, %176 : vector<8x128xf32>
    %182 = arith.addf %180, %181 : vector<8x128xf32>
    %183 = math.tanh %182 : vector<8x128xf32>
    %184 = arith.mulf %179, %183 : vector<8x128xf32>
    %185 = arith.truncf %184 : vector<8x128xf32> to vector<8x128xbf16>
    %cst_37 = arith.constant dense<0.000000e+00> : vector<8x512xf32>
    %186 = tpu.matmul %185, %9, %cst_37 {dimension_numbers = #tpu.dot_dimension_numbers<[1], [0], [0], [1], [0, 0, 1, 1], [], []>} : vector<8x128xbf16>, vector<128x512xbf16>, vector<8x512xf32> -> vector<8x512xf32>
    %187 = vector.extract_strided_slice %6 {offsets = [32, 0], sizes = [8, 512], strides = [1, 1]} : vector<64x512xf32> to vector<8x512xf32>
    %188 = arith.truncf %164 : vector<8x128xf32> to vector<8x128xbf16>
    %cst_38 = arith.constant dense<0.000000e+00> : vector<8x512xf32>
    %189 = tpu.matmul %188, %7, %cst_38 {dimension_numbers = #tpu.dot_dimension_numbers<[1], [0], [0], [1], [0, 0, 1, 1], [], []>} : vector<8x128xbf16>, vector<128x512xbf16>, vector<8x512xf32> -> vector<8x512xf32>
    %190 = arith.addf %187, %189 : vector<8x512xf32>
    %191 = vector.extract_strided_slice %190 {offsets = [0, 0], sizes = [8, 384], strides = [1, 1]} : vector<8x512xf32> to vector<8x384xf32>
    %192 = arith.negf %191 : vector<8x384xf32>
    %193 = math.exp %192 : vector<8x384xf32>
    %cst_39 = arith.constant 1.000000e+00 : f32
    %194 = vector.broadcast %cst_39 : f32 to vector<8x384xf32>
    %195 = arith.addf %194, %193 : vector<8x384xf32>
    %196 = arith.divf %194, %195 : vector<8x384xf32>
    %197 = vector.extract_strided_slice %190 {offsets = [0, 384], sizes = [8, 128], strides = [1, 1]} : vector<8x512xf32> to vector<8x128xf32>
    %198 = math.tanh %197 : vector<8x128xf32>
    %199 = vector.extract_strided_slice %196 {offsets = [0, 0], sizes = [8, 128], strides = [1, 1]} : vector<8x384xf32> to vector<8x128xf32>
    %200 = vector.extract_strided_slice %196 {offsets = [0, 128], sizes = [8, 128], strides = [1, 1]} : vector<8x384xf32> to vector<8x128xf32>
    %201 = vector.extract_strided_slice %196 {offsets = [0, 256], sizes = [8, 128], strides = [1, 1]} : vector<8x384xf32> to vector<8x128xf32>
    %202 = arith.mulf %200, %162 : vector<8x128xf32>
    %203 = arith.mulf %199, %198 : vector<8x128xf32>
    %204 = arith.addf %202, %203 : vector<8x128xf32>
    %205 = math.tanh %204 : vector<8x128xf32>
    %206 = arith.mulf %201, %205 : vector<8x128xf32>
    %207 = arith.truncf %206 : vector<8x128xf32> to vector<8x128xbf16>
    %cst_40 = arith.constant dense<0.000000e+00> : vector<8x512xf32>
    %208 = tpu.matmul %207, %8, %cst_40 {dimension_numbers = #tpu.dot_dimension_numbers<[1], [0], [0], [1], [0, 0, 1, 1], [], []>} : vector<8x128xbf16>, vector<128x512xbf16>, vector<8x512xf32> -> vector<8x512xf32>
    %209 = arith.addf %208, %186 : vector<8x512xf32>
    %210 = arith.addf %209, %12 : vector<8x512xf32>
    %211 = vector.extract_strided_slice %210 {offsets = [0, 0], sizes = [8, 384], strides = [1, 1]} : vector<8x512xf32> to vector<8x384xf32>
    %212 = arith.negf %211 : vector<8x384xf32>
    %213 = math.exp %212 : vector<8x384xf32>
    %cst_41 = arith.constant 1.000000e+00 : f32
    %214 = vector.broadcast %cst_41 : f32 to vector<8x384xf32>
    %215 = arith.addf %214, %213 : vector<8x384xf32>
    %216 = arith.divf %214, %215 : vector<8x384xf32>
    %217 = vector.extract_strided_slice %210 {offsets = [0, 384], sizes = [8, 128], strides = [1, 1]} : vector<8x512xf32> to vector<8x128xf32>
    %218 = math.tanh %217 : vector<8x128xf32>
    %219 = vector.extract_strided_slice %216 {offsets = [0, 0], sizes = [8, 128], strides = [1, 1]} : vector<8x384xf32> to vector<8x128xf32>
    %220 = vector.extract_strided_slice %216 {offsets = [0, 128], sizes = [8, 128], strides = [1, 1]} : vector<8x384xf32> to vector<8x128xf32>
    %221 = vector.extract_strided_slice %216 {offsets = [0, 256], sizes = [8, 128], strides = [1, 1]} : vector<8x384xf32> to vector<8x128xf32>
    %222 = arith.mulf %220, %182 : vector<8x128xf32>
    %223 = arith.mulf %219, %218 : vector<8x128xf32>
    %224 = arith.addf %222, %223 : vector<8x128xf32>
    %225 = math.tanh %224 : vector<8x128xf32>
    %226 = arith.mulf %221, %225 : vector<8x128xf32>
    %227 = arith.truncf %226 : vector<8x128xf32> to vector<8x128xbf16>
    %cst_42 = arith.constant dense<0.000000e+00> : vector<8x512xf32>
    %228 = tpu.matmul %227, %9, %cst_42 {dimension_numbers = #tpu.dot_dimension_numbers<[1], [0], [0], [1], [0, 0, 1, 1], [], []>} : vector<8x128xbf16>, vector<128x512xbf16>, vector<8x512xf32> -> vector<8x512xf32>
    %229 = vector.extract_strided_slice %6 {offsets = [40, 0], sizes = [8, 512], strides = [1, 1]} : vector<64x512xf32> to vector<8x512xf32>
    %230 = arith.truncf %206 : vector<8x128xf32> to vector<8x128xbf16>
    %cst_43 = arith.constant dense<0.000000e+00> : vector<8x512xf32>
    %231 = tpu.matmul %230, %7, %cst_43 {dimension_numbers = #tpu.dot_dimension_numbers<[1], [0], [0], [1], [0, 0, 1, 1], [], []>} : vector<8x128xbf16>, vector<128x512xbf16>, vector<8x512xf32> -> vector<8x512xf32>
    %232 = arith.addf %229, %231 : vector<8x512xf32>
    %233 = vector.extract_strided_slice %232 {offsets = [0, 0], sizes = [8, 384], strides = [1, 1]} : vector<8x512xf32> to vector<8x384xf32>
    %234 = arith.negf %233 : vector<8x384xf32>
    %235 = math.exp %234 : vector<8x384xf32>
    %cst_44 = arith.constant 1.000000e+00 : f32
    %236 = vector.broadcast %cst_44 : f32 to vector<8x384xf32>
    %237 = arith.addf %236, %235 : vector<8x384xf32>
    %238 = arith.divf %236, %237 : vector<8x384xf32>
    %239 = vector.extract_strided_slice %232 {offsets = [0, 384], sizes = [8, 128], strides = [1, 1]} : vector<8x512xf32> to vector<8x128xf32>
    %240 = math.tanh %239 : vector<8x128xf32>
    %241 = vector.extract_strided_slice %238 {offsets = [0, 0], sizes = [8, 128], strides = [1, 1]} : vector<8x384xf32> to vector<8x128xf32>
    %242 = vector.extract_strided_slice %238 {offsets = [0, 128], sizes = [8, 128], strides = [1, 1]} : vector<8x384xf32> to vector<8x128xf32>
    %243 = vector.extract_strided_slice %238 {offsets = [0, 256], sizes = [8, 128], strides = [1, 1]} : vector<8x384xf32> to vector<8x128xf32>
    %244 = arith.mulf %242, %204 : vector<8x128xf32>
    %245 = arith.mulf %241, %240 : vector<8x128xf32>
    %246 = arith.addf %244, %245 : vector<8x128xf32>
    %247 = math.tanh %246 : vector<8x128xf32>
    %248 = arith.mulf %243, %247 : vector<8x128xf32>
    %249 = arith.truncf %248 : vector<8x128xf32> to vector<8x128xbf16>
    %cst_45 = arith.constant dense<0.000000e+00> : vector<8x512xf32>
    %250 = tpu.matmul %249, %8, %cst_45 {dimension_numbers = #tpu.dot_dimension_numbers<[1], [0], [0], [1], [0, 0, 1, 1], [], []>} : vector<8x128xbf16>, vector<128x512xbf16>, vector<8x512xf32> -> vector<8x512xf32>
    %251 = arith.addf %250, %228 : vector<8x512xf32>
    %252 = arith.addf %251, %12 : vector<8x512xf32>
    %253 = vector.extract_strided_slice %252 {offsets = [0, 0], sizes = [8, 384], strides = [1, 1]} : vector<8x512xf32> to vector<8x384xf32>
    %254 = arith.negf %253 : vector<8x384xf32>
    %255 = math.exp %254 : vector<8x384xf32>
    %cst_46 = arith.constant 1.000000e+00 : f32
    %256 = vector.broadcast %cst_46 : f32 to vector<8x384xf32>
    %257 = arith.addf %256, %255 : vector<8x384xf32>
    %258 = arith.divf %256, %257 : vector<8x384xf32>
    %259 = vector.extract_strided_slice %252 {offsets = [0, 384], sizes = [8, 128], strides = [1, 1]} : vector<8x512xf32> to vector<8x128xf32>
    %260 = math.tanh %259 : vector<8x128xf32>
    %261 = vector.extract_strided_slice %258 {offsets = [0, 0], sizes = [8, 128], strides = [1, 1]} : vector<8x384xf32> to vector<8x128xf32>
    %262 = vector.extract_strided_slice %258 {offsets = [0, 128], sizes = [8, 128], strides = [1, 1]} : vector<8x384xf32> to vector<8x128xf32>
    %263 = vector.extract_strided_slice %258 {offsets = [0, 256], sizes = [8, 128], strides = [1, 1]} : vector<8x384xf32> to vector<8x128xf32>
    %264 = arith.mulf %262, %224 : vector<8x128xf32>
    %265 = arith.mulf %261, %260 : vector<8x128xf32>
    %266 = arith.addf %264, %265 : vector<8x128xf32>
    %267 = math.tanh %266 : vector<8x128xf32>
    %268 = arith.mulf %263, %267 : vector<8x128xf32>
    %269 = arith.truncf %268 : vector<8x128xf32> to vector<8x128xbf16>
    %cst_47 = arith.constant dense<0.000000e+00> : vector<8x512xf32>
    %270 = tpu.matmul %269, %9, %cst_47 {dimension_numbers = #tpu.dot_dimension_numbers<[1], [0], [0], [1], [0, 0, 1, 1], [], []>} : vector<8x128xbf16>, vector<128x512xbf16>, vector<8x512xf32> -> vector<8x512xf32>
    %271 = vector.extract_strided_slice %6 {offsets = [48, 0], sizes = [8, 512], strides = [1, 1]} : vector<64x512xf32> to vector<8x512xf32>
    %272 = arith.truncf %248 : vector<8x128xf32> to vector<8x128xbf16>
    %cst_48 = arith.constant dense<0.000000e+00> : vector<8x512xf32>
    %273 = tpu.matmul %272, %7, %cst_48 {dimension_numbers = #tpu.dot_dimension_numbers<[1], [0], [0], [1], [0, 0, 1, 1], [], []>} : vector<8x128xbf16>, vector<128x512xbf16>, vector<8x512xf32> -> vector<8x512xf32>
    %274 = arith.addf %271, %273 : vector<8x512xf32>
    %275 = vector.extract_strided_slice %274 {offsets = [0, 0], sizes = [8, 384], strides = [1, 1]} : vector<8x512xf32> to vector<8x384xf32>
    %276 = arith.negf %275 : vector<8x384xf32>
    %277 = math.exp %276 : vector<8x384xf32>
    %cst_49 = arith.constant 1.000000e+00 : f32
    %278 = vector.broadcast %cst_49 : f32 to vector<8x384xf32>
    %279 = arith.addf %278, %277 : vector<8x384xf32>
    %280 = arith.divf %278, %279 : vector<8x384xf32>
    %281 = vector.extract_strided_slice %274 {offsets = [0, 384], sizes = [8, 128], strides = [1, 1]} : vector<8x512xf32> to vector<8x128xf32>
    %282 = math.tanh %281 : vector<8x128xf32>
    %283 = vector.extract_strided_slice %280 {offsets = [0, 0], sizes = [8, 128], strides = [1, 1]} : vector<8x384xf32> to vector<8x128xf32>
    %284 = vector.extract_strided_slice %280 {offsets = [0, 128], sizes = [8, 128], strides = [1, 1]} : vector<8x384xf32> to vector<8x128xf32>
    %285 = vector.extract_strided_slice %280 {offsets = [0, 256], sizes = [8, 128], strides = [1, 1]} : vector<8x384xf32> to vector<8x128xf32>
    %286 = arith.mulf %284, %246 : vector<8x128xf32>
    %287 = arith.mulf %283, %282 : vector<8x128xf32>
    %288 = arith.addf %286, %287 : vector<8x128xf32>
    %289 = math.tanh %288 : vector<8x128xf32>
    %290 = arith.mulf %285, %289 : vector<8x128xf32>
    %291 = arith.truncf %290 : vector<8x128xf32> to vector<8x128xbf16>
    %cst_50 = arith.constant dense<0.000000e+00> : vector<8x512xf32>
    %292 = tpu.matmul %291, %8, %cst_50 {dimension_numbers = #tpu.dot_dimension_numbers<[1], [0], [0], [1], [0, 0, 1, 1], [], []>} : vector<8x128xbf16>, vector<128x512xbf16>, vector<8x512xf32> -> vector<8x512xf32>
    %293 = arith.addf %292, %270 : vector<8x512xf32>
    %294 = arith.addf %293, %12 : vector<8x512xf32>
    %295 = vector.extract_strided_slice %294 {offsets = [0, 0], sizes = [8, 384], strides = [1, 1]} : vector<8x512xf32> to vector<8x384xf32>
    %296 = arith.negf %295 : vector<8x384xf32>
    %297 = math.exp %296 : vector<8x384xf32>
    %cst_51 = arith.constant 1.000000e+00 : f32
    %298 = vector.broadcast %cst_51 : f32 to vector<8x384xf32>
    %299 = arith.addf %298, %297 : vector<8x384xf32>
    %300 = arith.divf %298, %299 : vector<8x384xf32>
    %301 = vector.extract_strided_slice %294 {offsets = [0, 384], sizes = [8, 128], strides = [1, 1]} : vector<8x512xf32> to vector<8x128xf32>
    %302 = math.tanh %301 : vector<8x128xf32>
    %303 = vector.extract_strided_slice %300 {offsets = [0, 0], sizes = [8, 128], strides = [1, 1]} : vector<8x384xf32> to vector<8x128xf32>
    %304 = vector.extract_strided_slice %300 {offsets = [0, 128], sizes = [8, 128], strides = [1, 1]} : vector<8x384xf32> to vector<8x128xf32>
    %305 = vector.extract_strided_slice %300 {offsets = [0, 256], sizes = [8, 128], strides = [1, 1]} : vector<8x384xf32> to vector<8x128xf32>
    %306 = arith.mulf %304, %266 : vector<8x128xf32>
    %307 = arith.mulf %303, %302 : vector<8x128xf32>
    %308 = arith.addf %306, %307 : vector<8x128xf32>
    %309 = math.tanh %308 : vector<8x128xf32>
    %310 = arith.mulf %305, %309 : vector<8x128xf32>
    %311 = arith.truncf %310 : vector<8x128xf32> to vector<8x128xbf16>
    %cst_52 = arith.constant dense<0.000000e+00> : vector<8x512xf32>
    %312 = tpu.matmul %311, %9, %cst_52 {dimension_numbers = #tpu.dot_dimension_numbers<[1], [0], [0], [1], [0, 0, 1, 1], [], []>} : vector<8x128xbf16>, vector<128x512xbf16>, vector<8x512xf32> -> vector<8x512xf32>
    %313 = vector.extract_strided_slice %6 {offsets = [56, 0], sizes = [8, 512], strides = [1, 1]} : vector<64x512xf32> to vector<8x512xf32>
    %314 = arith.truncf %290 : vector<8x128xf32> to vector<8x128xbf16>
    %cst_53 = arith.constant dense<0.000000e+00> : vector<8x512xf32>
    %315 = tpu.matmul %314, %7, %cst_53 {dimension_numbers = #tpu.dot_dimension_numbers<[1], [0], [0], [1], [0, 0, 1, 1], [], []>} : vector<8x128xbf16>, vector<128x512xbf16>, vector<8x512xf32> -> vector<8x512xf32>
    %316 = arith.addf %313, %315 : vector<8x512xf32>
    %317 = vector.extract_strided_slice %316 {offsets = [0, 0], sizes = [8, 384], strides = [1, 1]} : vector<8x512xf32> to vector<8x384xf32>
    %318 = arith.negf %317 : vector<8x384xf32>
    %319 = math.exp %318 : vector<8x384xf32>
    %cst_54 = arith.constant 1.000000e+00 : f32
    %320 = vector.broadcast %cst_54 : f32 to vector<8x384xf32>
    %321 = arith.addf %320, %319 : vector<8x384xf32>
    %322 = arith.divf %320, %321 : vector<8x384xf32>
    %323 = vector.extract_strided_slice %316 {offsets = [0, 384], sizes = [8, 128], strides = [1, 1]} : vector<8x512xf32> to vector<8x128xf32>
    %324 = math.tanh %323 : vector<8x128xf32>
    %325 = vector.extract_strided_slice %322 {offsets = [0, 0], sizes = [8, 128], strides = [1, 1]} : vector<8x384xf32> to vector<8x128xf32>
    %326 = vector.extract_strided_slice %322 {offsets = [0, 128], sizes = [8, 128], strides = [1, 1]} : vector<8x384xf32> to vector<8x128xf32>
    %327 = vector.extract_strided_slice %322 {offsets = [0, 256], sizes = [8, 128], strides = [1, 1]} : vector<8x384xf32> to vector<8x128xf32>
    %328 = arith.mulf %326, %288 : vector<8x128xf32>
    %329 = arith.mulf %325, %324 : vector<8x128xf32>
    %330 = arith.addf %328, %329 : vector<8x128xf32>
    %331 = math.tanh %330 : vector<8x128xf32>
    %332 = arith.mulf %327, %331 : vector<8x128xf32>
    %333 = arith.truncf %332 : vector<8x128xf32> to vector<8x128xbf16>
    %cst_55 = arith.constant dense<0.000000e+00> : vector<8x512xf32>
    %334 = tpu.matmul %333, %8, %cst_55 {dimension_numbers = #tpu.dot_dimension_numbers<[1], [0], [0], [1], [0, 0, 1, 1], [], []>} : vector<8x128xbf16>, vector<128x512xbf16>, vector<8x512xf32> -> vector<8x512xf32>
    %335 = arith.addf %334, %312 : vector<8x512xf32>
    %336 = arith.addf %335, %12 : vector<8x512xf32>
    %337 = vector.extract_strided_slice %336 {offsets = [0, 0], sizes = [8, 384], strides = [1, 1]} : vector<8x512xf32> to vector<8x384xf32>
    %338 = arith.negf %337 : vector<8x384xf32>
    %339 = math.exp %338 : vector<8x384xf32>
    %cst_56 = arith.constant 1.000000e+00 : f32
    %340 = vector.broadcast %cst_56 : f32 to vector<8x384xf32>
    %341 = arith.addf %340, %339 : vector<8x384xf32>
    %342 = arith.divf %340, %341 : vector<8x384xf32>
    %343 = vector.extract_strided_slice %336 {offsets = [0, 384], sizes = [8, 128], strides = [1, 1]} : vector<8x512xf32> to vector<8x128xf32>
    %344 = math.tanh %343 : vector<8x128xf32>
    %345 = vector.extract_strided_slice %342 {offsets = [0, 0], sizes = [8, 128], strides = [1, 1]} : vector<8x384xf32> to vector<8x128xf32>
    %346 = vector.extract_strided_slice %342 {offsets = [0, 128], sizes = [8, 128], strides = [1, 1]} : vector<8x384xf32> to vector<8x128xf32>
    %347 = arith.mulf %346, %308 : vector<8x128xf32>
    %348 = arith.mulf %345, %344 : vector<8x128xf32>
    %349 = arith.addf %347, %348 : vector<8x128xf32>
    %c0_57 = arith.constant 0 : index
    %c0_58 = arith.constant 0 : index
    %350 = vector.load %arg7[%c0_57, %c0_58] : memref<128x128xf32, #tpu.memory_space<vmem>>, vector<128x128xf32>
    %cst_59 = arith.constant dense<0.000000e+00> : vector<8x128xf32>
    %351 = tpu.matmul %349, %350, %cst_59 {dimension_numbers = #tpu.dot_dimension_numbers<[1], [0], [0], [1], [0, 0, 1, 1], [], []>, precision = #tpu.contract_precision<fp32>} : vector<8x128xf32>, vector<128x128xf32>, vector<8x128xf32> -> vector<8x128xf32>
    %c0_60 = arith.constant 0 : index
    %c0_61 = arith.constant 0 : index
    %352 = vector.load %arg8[%c0_60, %c0_61] : memref<1x128xf32, #tpu.memory_space<vmem>>, vector<1x128xf32>
    %353 = vector.broadcast %352 : vector<1x128xf32> to vector<8x128xf32>
    %354 = arith.addf %351, %353 : vector<8x128xf32>
    %cst_62 = arith.constant 0.000000e+00 : f32
    %355 = vector.broadcast %cst_62 : f32 to vector<8x128xf32>
    %356 = arith.maximumf %354, %355 : vector<8x128xf32>
    %c0_63 = arith.constant 0 : index
    %c0_64 = arith.constant 0 : index
    %357 = vector.load %arg9[%c0_63, %c0_64] : memref<128x128xf32, #tpu.memory_space<vmem>>, vector<128x128xf32>
    %cst_65 = arith.constant dense<0.000000e+00> : vector<8x128xf32>
    %358 = tpu.matmul %356, %357, %cst_65 {dimension_numbers = #tpu.dot_dimension_numbers<[1], [0], [0], [1], [0, 0, 1, 1], [], []>, precision = #tpu.contract_precision<fp32>} : vector<8x128xf32>, vector<128x128xf32>, vector<8x128xf32> -> vector<8x128xf32>
    %c0_66 = arith.constant 0 : index
    %c0_67 = arith.constant 0 : index
    %359 = vector.load %arg10[%c0_66, %c0_67] : memref<1x128xf32, #tpu.memory_space<vmem>>, vector<1x128xf32>
    %360 = vector.broadcast %359 : vector<1x128xf32> to vector<8x128xf32>
    %361 = arith.addf %358, %360 : vector<8x128xf32>
    %cst_68 = arith.constant 0.000000e+00 : f32
    %362 = vector.broadcast %cst_68 : f32 to vector<8x128xf32>
    %363 = arith.maximumf %361, %362 : vector<8x128xf32>
    %c0_69 = arith.constant 0 : index
    %c0_70 = arith.constant 0 : index
    %364 = vector.load %arg11[%c0_69, %c0_70] : memref<128x4xf32, #tpu.memory_space<vmem>>, vector<128x4xf32>
    %cst_71 = arith.constant dense<0.000000e+00> : vector<8x4xf32>
    %365 = tpu.matmul %363, %364, %cst_71 {dimension_numbers = #tpu.dot_dimension_numbers<[1], [0], [0], [1], [0, 0, 1, 1], [], []>, precision = #tpu.contract_precision<fp32>} : vector<8x128xf32>, vector<128x4xf32>, vector<8x4xf32> -> vector<8x4xf32>
    %c0_72 = arith.constant 0 : index
    %c0_73 = arith.constant 0 : index
    %366 = vector.load %arg12[%c0_72, %c0_73] : memref<1x4xf32, #tpu.memory_space<vmem>>, vector<1x4xf32>
    %367 = vector.broadcast %366 : vector<1x4xf32> to vector<8x4xf32>
    %368 = arith.addf %365, %367 : vector<8x4xf32>
    %cst_74 = arith.constant dense<0xFF800000> : vector<8xf32>
    %369 = vector.multi_reduction <maximumf>, %368, %cst_74 [1] : vector<8x4xf32> to vector<8xf32>
    %370 = vector.shape_cast %369 : vector<8xf32> to vector<8x1xf32>
    %371 = vector.broadcast %370 : vector<8x1xf32> to vector<8x4xf32>
    %372 = arith.subf %368, %371 : vector<8x4xf32>
    %373 = math.exp %372 : vector<8x4xf32>
    %cst_75 = arith.constant dense<0.000000e+00> : vector<8xf32>
    %374 = vector.multi_reduction <add>, %373, %cst_75 [1] : vector<8x4xf32> to vector<8xf32>
    %375 = vector.shape_cast %374 : vector<8xf32> to vector<8x1xf32>
    %376 = vector.broadcast %375 : vector<8x1xf32> to vector<8x4xf32>
    %377 = arith.divf %373, %376 : vector<8x4xf32>
    %c0_76 = arith.constant 0 : index
    %c0_77 = arith.constant 0 : index
    %378 = vector.load %arg13[%c0_76, %c0_77] : memref<8x4xf32, #tpu.memory_space<vmem>>, vector<8x4xf32>
    tpu.vector_store %arg13[%c0_76, %c0_77], %377 {strides = array<i32>} : memref<8x4xf32, #tpu.memory_space<vmem>>, vector<8x4xf32>,
    return
  }
}

</mosaic_0001>

<bundles_post_ra>
// kernel: model_forward.1
= control target key start
LH: loop header
LB: loop body
LE: loop exit
PB: predicated region body
PF: predicated region fallthrough
CT: control target
= control target key end

     0   :  { %18 = vsyncpa [#allocation3], 0  ;;  %s7831_s0 = inlined_call_operand.vmem [shape: bf16[64,128], index: 0, kind: input, shape index: {}]   ;;  %s7832_s1 = inlined_call_operand.hbm [shape: bf16[128,512], index: 1, kind: input, shape index: {}]   ;;  %s7833_s2 = inlined_call_operand.hbm [shape: bf16[128,512], index: 2, kind: input, shape index: {}]   ;;  %s7834_s3 = inlined_call_operand.vmem [shape: f32[1,512], index: 3, kind: input, shape index: {}]   ;;  %s7835_s4 = inlined_call_operand.hbm [shape: bf16[128,512], index: 4, kind: input, shape index: {}]   ;;  %s7836_s5 = inlined_call_operand.hbm [shape: bf16[128,512], index: 5, kind: input, shape index: {}]   ;;  %s7837_s6 = inlined_call_operand.vmem [shape: f32[1,512], index: 6, kind: input, shape index: {}]   ;;  %s7838_s7 = inlined_call_operand.vmem [shape: f32[128,128], index: 7, kind: input, shape index: {}]   ;;  %s7839_s8 = inlined_call_operand.vmem [shape: f32[1,128], index: 8, kind: input, shape index: {}]   ;;  %s7840_s9 = inlined_call_operand.hbm [shape: f32[128,128], index: 9, kind: input, shape index: {}]   ;;  %s7841_s10 = inlined_call_operand.vmem [shape: f32[1,128], index: 10, kind: input, shape index: {}]   ;;  %s7842_s11 = inlined_call_operand.vmem [shape: f32[128,4], index: 11, kind: input, shape index: {}]   ;;  %s7843_s12 = inlined_call_operand.vmem [shape: f32[1,4], index: 12, kind: input, shape index: {}]   ;;  %s7844_s13 = inlined_call_operand.vmem [shape: f32[8,4], index: 13, kind: output, shape index: {}]  }
   0x1   :  { %19 = vsyncpa [#allocation5], 0 }
   0x2   :  { %20 = vsyncpa [#allocation8], 0  ;;  %s40_s27 = sshll.u32 %s7833_s2, 4  ;;  %s5564_s28 = smov [#allocation4]   ;;  %s41_s27 = int_to_ptr.hbm [resolvable:$true] %s40_s27 }
   0x3   :  { %s42_s29 = sshll.u32 %s5564_s28, 4  ;;  %s68_s15 = sshll.u32 %s7836_s5, 4  ;;  %s43_s29 = int_to_ptr.vmem [resolvable:$true] %s42_s29  ;;  %s69_s15 = int_to_ptr.hbm [resolvable:$true] %s68_s15 }
   0x4   :  { %s5565_s16 = smov 256   ;;  %s5566_s17 = smov 16  }
   0x5   :  { %48 = dma.hbm_to_vmem [thread:$0]  %s41_s27, 4096, %s43_s29, [#allocation5], %s5565_s16, %s5565_s16, %s5566_s17  }
   0x6   :  { %s5567_s18 = smov [#allocation7]   ;;  %s27_s22 = sshll.u32 %s7832_s1, 4  ;;  %s28_s22 = int_to_ptr.hbm [resolvable:$true] %s27_s22 }
   0x7   :  { %s70_s19 = sshll.u32 %s5567_s18, 4  ;;  %s55_s24 = sshll.u32 %s7835_s4, 4  ;;  %s71_s19 = int_to_ptr.vmem [resolvable:$true] %s70_s19  ;;  %s56_s24 = int_to_ptr.hbm [resolvable:$true] %s55_s24 }
   0x8   :  { %76 = dma.hbm_to_vmem [thread:$0]  %s69_s15, 4096, %s71_s19, [#allocation8], %s5565_s16, %s5565_s16, %s5566_s17  }
   0x9   :  { %s5568_s25 = smov [#allocation2]   ;;  %s5569_s5 = smov [#allocation6]  }
   0xa   :  { %s29_s26 = sshll.u32 %s5568_s25, 4  ;;  %s57_s27 = sshll.u32 %s5569_s5, 4  ;;  %s30_s26 = int_to_ptr.vmem [resolvable:$true] %s29_s26  ;;  %s58_s27 = int_to_ptr.vmem [resolvable:$true] %s57_s27 }
   0xb   :  { %35 = dma.hbm_to_vmem [thread:$0]  %s28_s22, 4096, %s30_s26, [#allocation3], %s5565_s16, %s5565_s16, %s5566_s17  }
   0xc   :  { %s87_s30 = sshll.u32 %s7840_s9, 4  ;;  %s5570_s1 = smov [#allocation9]   ;;  %s88_s30 = int_to_ptr.hbm [resolvable:$true] %s87_s30 }
   0xd   :  { %63 = dma.hbm_to_vmem [thread:$0]  %s56_s24, 4096, %s58_s27, [#allocation5], %s5565_s16, %s5565_s16, %s5566_s17  }
   0xe   :  { %s89_s14 = sshll.u32 %s5570_s1, 4  ;;  %s5571_s15 = smov 128   ;;  %s90_s14 = int_to_ptr.vmem [resolvable:$true] %s89_s14 }
   0xf   :  { %s5572_s18 = smov 8  }
  0x10   :  { %95 = dma.hbm_to_vmem [thread:$0]  %s88_s30, 2048, %s90_s14, [#allocation8], %s5571_s15, %s5571_s15, %s5572_s18  }
  0x11   :  { %5558 = dma.done.wait [#allocation3], 4096  }
  0x12   :  { %5559 = vsyncadd [#allocation3], 4294963200 }
  0x13   :  { %5560 = dma.done.wait [#allocation5], 8192  }
  0x14   :  { %5561 = vsyncadd [#allocation5], 4294959104 }
  0x15   :  { %5562 = dma.done.wait [#allocation8], 6144  }
  0x16   :  { %5563 = vsyncadd [#allocation8], 4294961152  ;;  %v4594_v0 = vld [vmem:[#allocation2 + $0xe0] sm:$0xf]  ;;  %v5073_v1 = vld [vmem:[#allocation2 + $0xec] sm:$0xf0] }
  0x17   :  { %v5071_v2 = vld [vmem:[#allocation2 + $0xe4] sm:$0xf]  ;;  %v4595_v3 = vor.u32 %v5073_v1, %v4594_v0  ;;  %v4596_v4 = vld [vmem:[#allocation2 + $0xf0] sm:$0xf0]  ;;  %v4602_v5 = vld [vmem:[#allocation2 + $0xe8] sm:$0xf] }
  0x18   :  { %v5074_v6 = vld [vmem:[#allocation2 + $0xf4] sm:$0xf0]  ;;  %v4599_v7 = vor.u32 %v5071_v2, %v4596_v4  ;;  %v5072_v9 = vld [vmem:[#allocation2 + $0xec] sm:$0xf]  ;;  %v4604_v10 = vld [vmem:[#allocation2 + $0xf8] sm:$0xf0] }
  0x19   :  { %v4603_v8 = vor.u32 %v5074_v6, %v4602_v5  ;;  %v4578_v11 = vld [vmem:[#allocation2 + $0xc0] sm:$0xf]  ;;  %357 = vmatpush.bf16.msra.mxu0 %v4595_v3  ;;  %v4607_v12 = vor.u32 %v5072_v9, %v4604_v10  ;;  %v5069_v13 = vld [vmem:[#allocation2 + $0xcc] sm:$0xf0]  ;;  %v5067_v14 = vld [vmem:[#allocation2 + $0xc4] sm:$0xf] }
  0x1a   :  { %v4580_v15 = vld [vmem:[#allocation2 + $0xd0] sm:$0xf0]  ;;  %386 = vmatpush.bf16.msra.mxu1 %v4599_v7  ;;  %v4579_v16 = vor.u32 %v5069_v13, %v4578_v11  ;;  %v4586_v18 = vld [vmem:[#allocation2 + $0xc8] sm:$0xf]  ;;  %v5070_v19 = vld [vmem:[#allocation2 + $0xd4] sm:$0xf0] }
  0x1b   :  { %415 = vmatpush.bf16.msra.mxu2 %v4603_v8  ;;  %v4583_v17 = vor.u32 %v5067_v14, %v4580_v15  ;;  %v5068_v20 = vld [vmem:[#allocation2 + $0xcc] sm:$0xf]  ;;  %444 = vmatpush.bf16.msra.mxu3 %v4607_v12  ;;  %v4587_v21 = vor.u32 %v5070_v19, %v4586_v18  ;;  %v4588_v22 = vld [vmem:[#allocation2 + $0xd8] sm:$0xf0]  ;;  %v4562_v23 = vld [vmem:[#allocation2 + $0xa0] sm:$0xf] }
  0x1c   :  { %v5065_v24 = vld [vmem:[#allocation2 + $0xac] sm:$0xf0]  ;;  %v4591_v25 = vor.u32 %v5068_v20, %v4588_v22  ;;  %v5063_v26 = vld [vmem:[#allocation2 + $0xa4] sm:$0xf]  ;;  %v4564_v27 = vld [vmem:[#allocation2 + $0xb0] sm:$0xf0] }
  0x1d   :  { %v4570_v28 = vld [vmem:[#allocation2 + $0xa8] sm:$0xf]  ;;  %358 = vmatpush.bf16.msra.mxu0 %v4579_v16  ;;  %v4563_v29 = vor.u32 %v5065_v24, %v4562_v23  ;;  %v5066_v30 = vld [vmem:[#allocation2 + $0xb4] sm:$0xf0]  ;;  %v5064_v31 = vld [vmem:[#allocation2 + $0xac] sm:$0xf]  ;;  %v4567_v33 = vor.u32 %v5063_v26, %v4564_v27 }
  0x1e   :  { %v4572_v32 = vld [vmem:[#allocation2 + $0xb8] sm:$0xf0]  ;;  %387 = vmatpush.bf16.msra.mxu1 %v4583_v17  ;;  %v4571_v34 = vor.u32 %v5066_v30, %v4570_v28  ;;  %v4546_v35 = vld [vmem:[#allocation2 + $0x80] sm:$0xf]  ;;  %v5061_v36 = vld [vmem:[#allocation2 + $0x8c] sm:$0xf0] }
  0x1f   :  { %416 = vmatpush.bf16.msra.mxu2 %v4587_v21  ;;  %v5059_v37 = vld [vmem:[#allocation2 + $0x84] sm:$0xf]  ;;  %445 = vmatpush.bf16.msra.mxu3 %v4591_v25  ;;  %v4575_v38 = vor.u32 %v5064_v31, %v4572_v32  ;;  %v4548_v39 = vld [vmem:[#allocation2 + $0x90] sm:$0xf0]  ;;  %v4554_v40 = vld [vmem:[#allocation2 + $0x88] sm:$0xf]  ;;  %v4547_v44 = vor.u32 %v5061_v36, %v4546_v35 }
  0x20   :  { %v5062_v41 = vld [vmem:[#allocation2 + $0x94] sm:$0xf0]  ;;  %v5060_v42 = vld [vmem:[#allocation2 + $0x8c] sm:$0xf]  ;;  %v4556_v43 = vld [vmem:[#allocation2 + $0x98] sm:$0xf0]  ;;  %v4551_v45 = vor.u32 %v5059_v37, %v4548_v39 }
  0x21   :  { %359 = vmatpush.bf16.msra.mxu0 %v4563_v29  ;;  %v4555_v46 = vor.u32 %v5062_v41, %v4554_v40  ;;  %v4530_v47 = vld [vmem:[#allocation2 + $0x60] sm:$0xf]  ;;  %v5057_v48 = vld [vmem:[#allocation2 + $0x6c] sm:$0xf0]  ;;  %v5055_v49 = vld [vmem:[#allocation2 + $0x64] sm:$0xf]  ;;  %v4559_v50 = vor.u32 %v5060_v42, %v4556_v43 }
  0x22   :  { %388 = vmatpush.bf16.msra.mxu1 %v4567_v33  ;;  %v4532_v51 = vld [vmem:[#allocation2 + $0x70] sm:$0xf0]  ;;  %v4538_v52 = vld [vmem:[#allocation2 + $0x68] sm:$0xf]  ;;  %v5058_v53 = vld [vmem:[#allocation2 + $0x74] sm:$0xf0]  ;;  %v4531_v56 = vor.u32 %v5057_v48, %v4530_v47 }
  0x23   :  { %417 = vmatpush.bf16.msra.mxu2 %v4571_v34  ;;  %446 = vmatpush.bf16.msra.mxu3 %v4575_v38  ;;  %v5056_v54 = vld [vmem:[#allocation2 + $0x6c] sm:$0xf]  ;;  %v4540_v55 = vld [vmem:[#allocation2 + $0x78] sm:$0xf0]  ;;  %v4535_v57 = vor.u32 %v5055_v49, %v4532_v51  ;;  %v4539_v58 = vor.u32 %v5058_v53, %v4538_v52  ;;  %v4514_v59 = vld [vmem:[#allocation2 + $0x40] sm:$0xf] }
  0x24   :  { %v5053_v60 = vld [vmem:[#allocation2 + $0x4c] sm:$0xf0]  ;;  %v5051_v61 = vld [vmem:[#allocation2 + $0x44] sm:$0xf]  ;;  %v4543_v62 = vor.u32 %v5056_v54, %v4540_v55  ;;  %v4516_v63 = vld [vmem:[#allocation2 + $0x50] sm:$0xf0] }
  0x25   :  { %360 = vmatpush.bf16.msra.mxu0 %v4547_v44  ;;  %v4522_v0 = vld [vmem:[#allocation2 + $0x48] sm:$0xf]  ;;  %v5054_v1 = vld [vmem:[#allocation2 + $0x54] sm:$0xf0]  ;;  %v5052_v2 = vld [vmem:[#allocation2 + $0x4c] sm:$0xf]  ;;  %v4515_v4 = vor.u32 %v5053_v60, %v4514_v59  ;;  %v4519_v5 = vor.u32 %v5051_v61, %v4516_v63 }
  0x26   :  { %389 = vmatpush.bf16.msra.mxu1 %v4551_v45  ;;  %v4524_v3 = vld [vmem:[#allocation2 + $0x58] sm:$0xf0]  ;;  %v4523_v6 = vor.u32 %v5054_v1, %v4522_v0  ;;  %v4498_v7 = vld [vmem:[#allocation2 + $0x20] sm:$0xf]  ;;  %v5049_v8 = vld [vmem:[#allocation2 + $0x2c] sm:$0xf0] }
  0x27   :  { %418 = vmatpush.bf16.msra.mxu2 %v4555_v46  ;;  %447 = vmatpush.bf16.msra.mxu3 %v4559_v50  ;;  %v5047_v9 = vld [vmem:[#allocation2 + $0x24] sm:$0xf]  ;;  %v4527_v10 = vor.u32 %v5052_v2, %v4524_v3  ;;  %v4500_v11 = vld [vmem:[#allocation2 + $0x30] sm:$0xf0]  ;;  %v4506_v12 = vld [vmem:[#allocation2 + $0x28] sm:$0xf]  ;;  %v4499_v16 = vor.u32 %v5049_v8, %v4498_v7 }
  0x28   :  { %v5050_v13 = vld [vmem:[#allocation2 + $0x34] sm:$0xf0]  ;;  %v5048_v14 = vld [vmem:[#allocation2 + $0x2c] sm:$0xf]  ;;  %v4508_v15 = vld [vmem:[#allocation2 + $0x38] sm:$0xf0]  ;;  %v4503_v18 = vor.u32 %v5047_v9, %v4500_v11 }
  0x29   :  { %361 = vmatpush.bf16.msra.mxu0 %v4531_v56  ;;  %v4482_v17 = vld [vmem:[#allocation2] sm:$0xf]  ;;  %v4507_v19 = vor.u32 %v5050_v13, %v4506_v12  ;;  %v5045_v20 = vld [vmem:[#allocation2 + $0xc] sm:$0xf0]  ;;  %v5043_v21 = vld [vmem:[#allocation2 + $0x4] sm:$0xf]  ;;  %v4511_v23 = vor.u32 %v5048_v14, %v4508_v15 }
  0x2a   :  { %390 = vmatpush.bf16.msra.mxu1 %v4535_v57  ;;  %v4484_v22 = vld [vmem:[#allocation2 + $0x10] sm:$0xf0]  ;;  %v4490_v24 = vld [vmem:[#allocation2 + $0x8] sm:$0xf]  ;;  %v5046_v25 = vld [vmem:[#allocation2 + $0x14] sm:$0xf0]  ;;  %v4483_v30 = vor.u32 %v5045_v20, %v4482_v17 }
  0x2b   :  { %419 = vmatpush.bf16.msra.mxu2 %v4539_v58  ;;  %448 = vmatpush.bf16.msra.mxu3 %v4543_v62  ;;  %v5044_v26 = vld [vmem:[#allocation2 + $0xc] sm:$0xf]  ;;  %v4492_v27 = vld [vmem:[#allocation2 + $0x18] sm:$0xf0]  ;;  %v4722_v28 = vld [vmem:[#allocation7 + $0xe0] sm:$0xf]  ;;  %v4487_v33 = vor.u32 %v5043_v21, %v4484_v22  ;;  %v4491_v34 = vor.u32 %v5046_v25, %v4490_v24 }
  0x2c   :  { %v5169_v29 = vld [vmem:[#allocation7 + $0xec] sm:$0xf0]  ;;  %v5167_v31 = vld [vmem:[#allocation7 + $0xe4] sm:$0xf]  ;;  %v4724_v32 = vld [vmem:[#allocation7 + $0xf0] sm:$0xf0]  ;;  %v4495_v36 = vor.u32 %v5044_v26, %v4492_v27 }
  0x2d   :  { %362 = vmatpush.bf16.msra.mxu0 %v4515_v4  ;;  %v5039_v35 = vld [vmem:[%s7831_s0] sm:$0xff]  ;;  %v5662_v37 = vor.u32 %v5169_v29, %v4722_v28  ;;  %v4730_v38 = vld [vmem:[#allocation7 + $0xe8] sm:$0xf]  ;;  %v5170_v39 = vld [vmem:[#allocation7 + $0xf4] sm:$0xf0]  ;;  %v5664_v41 = vor.u32 %v5167_v31, %v4724_v32 }
  0x2e   :  { %391 = vmatpush.bf16.msra.mxu1 %v4519_v5  ;;  %v4706_v40 = vld [vmem:[#allocation7 + $0xc0] sm:$0xf]  ;;  %v5165_v42 = vld [vmem:[#allocation7 + $0xcc] sm:$0xf0]  ;;  %v5168_v43 = vld [vmem:[#allocation7 + $0xec] sm:$0xf]  ;;  %v5666_v47 = vor.u32 %v5170_v39, %v4730_v38 }
  0x2f   :  { %420 = vmatpush.bf16.msra.mxu2 %v4523_v6  ;;  %449 = vmatpush.bf16.msra.mxu3 %v4527_v10  ;;  %8051 = vst [vmem:[#allocation13_spill] sm:$0xff] %v5662_v37  ;;  %v4732_v44 = vld [vmem:[#allocation7 + $0xf8] sm:$0xf0]  ;;  %v5163_v45 = vld [vmem:[#allocation7 + $0xc4] sm:$0xf]  ;;  %v5669_v49 = vor.u32 %v5165_v42, %v4706_v40 }
  0x30   :  { %8052 = vst [vmem:[#allocation14_spill] sm:$0xff] %v5664_v41  ;;  %v4708_v46 = vld [vmem:[#allocation7 + $0xd0] sm:$0xf0]  ;;  %v4714_v48 = vld [vmem:[#allocation7 + $0xc8] sm:$0xf]  ;;  %v5671_v51 = vor.u32 %v5168_v43, %v4732_v44 }
  0x31   :  { %363 = vmatpush.bf16.msra.mxu0 %v4499_v16  ;;  %8053 = vst [vmem:[#allocation15_spill] sm:$0xff] %v5666_v47  ;;  %v5166_v50 = vld [vmem:[#allocation7 + $0xd4] sm:$0xf0]  ;;  %v4690_v52 = vld [vmem:[#allocation7 + $0xa0] sm:$0xf]  ;;  %v5674_v53 = vor.u32 %v5163_v45, %v4708_v46 }
  0x32   :  { %392 = vmatpush.bf16.msra.mxu1 %v4503_v18  ;;  %8054 = vst [vmem:[#allocation16_spill] sm:$0xff] %v5669_v49  ;;  %v5161_v54 = vld [vmem:[#allocation7 + $0xac] sm:$0xf0]  ;;  %v5164_v55 = vld [vmem:[#allocation7 + $0xcc] sm:$0xf]  ;;  %v5677_v59 = vor.u32 %v5166_v50, %v4714_v48 }
  0x33   :  { %421 = vmatpush.bf16.msra.mxu2 %v4507_v19  ;;  %450 = vmatpush.bf16.msra.mxu3 %v4511_v23  ;;  %8055 = vst [vmem:[#allocation17_spill] sm:$0xff] %v5671_v51  ;;  %v4716_v56 = vld [vmem:[#allocation7 + $0xd8] sm:$0xf0]  ;;  %v5159_v57 = vld [vmem:[#allocation7 + $0xa4] sm:$0xf]  ;;  %v5681_v60 = vor.u32 %v5161_v54, %v4690_v52  ;;  %v5040_v19 = vld [vmem:[%s7831_s0 + $0x8] sm:$0xff] }
  0x34   :  { %8056 = vst [vmem:[#allocation18_spill] sm:$0xff] %v5674_v53  ;;  %v4692_v58 = vld [vmem:[#allocation7 + $0xb0] sm:$0xf0]  ;;  %v4698_v61 = vld [vmem:[#allocation7 + $0xa8] sm:$0xf]  ;;  %v5683_v63 = vor.u32 %v5164_v55, %v4716_v56 }
  0x35   :  { %364 = vmatpush.bf16.msra.mxu0 %v4483_v30  ;;  %8057 = vst [vmem:[#allocation19_spill] sm:$0xff] %v5677_v59  ;;  %v5162_v62 = vld [vmem:[#allocation7 + $0xb4] sm:$0xf0]  ;;  %v4674_v0 = vld [vmem:[#allocation7 + $0x80] sm:$0xf]  ;;  %v5686_v1 = vor.u32 %v5159_v57, %v4692_v58 }
  0x36   :  { %393 = vmatpush.bf16.msra.mxu1 %v4487_v33  ;;  %8058 = vst [vmem:[#allocation20_spill] sm:$0xff] %v5681_v60  ;;  %v5157_v2 = vld [vmem:[#allocation7 + $0x8c] sm:$0xf0]  ;;  %v5160_v3 = vld [vmem:[#allocation7 + $0xac] sm:$0xf]  ;;  %v5689_v7 = vor.u32 %v5162_v62, %v4698_v61 }
  0x37   :  { %422 = vmatpush.bf16.msra.mxu2 %v4491_v34  ;;  %451 = vmatpush.bf16.msra.mxu3 %v4495_v36  ;;  %8059 = vst [vmem:[#allocation21_spill] sm:$0xff] %v5683_v63  ;;  %v4700_v4 = vld [vmem:[#allocation7 + $0xb8] sm:$0xf0]  ;;  %v5155_v5 = vld [vmem:[#allocation7 + $0x84] sm:$0xf]  ;;  %v5693_v8 = vor.u32 %v5157_v2, %v4674_v0 }
  0x38   :  { %365 = vmatmul.bf16.vlgmr.msra.gmra.mxu0 %v5039_v35  ;;  %8060 = vst [vmem:[#allocation22_spill] sm:$0xff] %v5686_v1  ;;  %v4676_v6 = vld [vmem:[#allocation7 + $0x90] sm:$0xf0]  ;;  %v5695_v9 = vor.u32 %v5160_v3, %v4700_v4  ;;  %v4682_v10 = vld [vmem:[#allocation7 + $0x88] sm:$0xf] }
  0x39   :  { %739 = vmatpush.bf16.msrb.mxu0 %v5662_v37  ;;  %394 = vmatmul.bf16.vlgmr.msra.gmra.mxu1 %v5039_v35  ;;  %8061 = vst [vmem:[#allocation23_spill] sm:$0xff] %v5689_v7  ;;  %v5158_v11 = vld [vmem:[#allocation7 + $0x94] sm:$0xf0]  ;;  %v5156_v12 = vld [vmem:[#allocation7 + $0x8c] sm:$0xf]  ;;  %v5698_v13 = vor.u32 %v5155_v5, %v4676_v6 }
  0x3a   :  { %752 = vmatpush.bf16.msrb.mxu1 %v5664_v41  ;;  %423 = vmatmul.bf16.vlgmr.msra.gmra.mxu2 %v5039_v35  ;;  %8062 = vst [vmem:[#allocation24_spill] sm:$0xff] %v5693_v8  ;;  %v4658_v14 = vld [vmem:[#allocation7 + $0x60] sm:$0xf]  ;;  %v5153_v15 = vld [vmem:[#allocation7 + $0x6c] sm:$0xf0]  ;;  %v5704_v20 = vor.u32 %v5158_v11, %v4682_v10 }
  0x3b   :  { %452 = vmatmul.bf16.vlgmr.msra.gmra.mxu3 %v5039_v35  ;;  %765 = vmatpush.bf16.msrb.mxu2 %v5666_v47  ;;  %8063 = vst [vmem:[#allocation25_spill] sm:$0xff] %v5695_v9  ;;  %v4684_v16 = vld [vmem:[#allocation7 + $0x98] sm:$0xf0]  ;;  %v5151_v17 = vld [vmem:[#allocation7 + $0x64] sm:$0xf]  ;;  %v5708_v21 = vor.u32 %v5153_v15, %v4658_v14 }
  0x3c   :  { %778 = vmatpush.bf16.msrb.mxu3 %v5671_v51  ;;  %8064 = vst [vmem:[#allocation26_spill] sm:$0xff] %v5698_v13  ;;  %v4660_v18 = vld [vmem:[#allocation7 + $0x70] sm:$0xf0]  ;;  %v5710_v22 = vor.u32 %v5156_v12, %v4684_v16  ;;  %v4666_v23 = vld [vmem:[#allocation7 + $0x68] sm:$0xf] }
  0x3d   :  { %740 = vmatpush.bf16.msrb.mxu0 %v5669_v49  ;;  %8065 = vst [vmem:[#allocation27_spill] sm:$0xff] %v5704_v20  ;;  %v5154_v24 = vld [vmem:[#allocation7 + $0x74] sm:$0xf0]  ;;  %v5152_v25 = vld [vmem:[#allocation7 + $0x6c] sm:$0xf]  ;;  %v5713_v26 = vor.u32 %v5151_v17, %v4660_v18 }
  0x3e   :  { %753 = vmatpush.bf16.msrb.mxu1 %v5674_v53  ;;  %8066 = vst [vmem:[#allocation28_spill] sm:$0xff] %v5708_v21  ;;  %v4668_v27 = vld [vmem:[#allocation7 + $0x78] sm:$0xf0]  ;;  %v4642_v28 = vld [vmem:[#allocation7 + $0x40] sm:$0xf]  ;;  %v5716_v32 = vor.u32 %v5154_v24, %v4666_v23 }
  0x3f   :  { %766 = vmatpush.bf16.msrb.mxu2 %v5677_v59  ;;  %8067 = vst [vmem:[#allocation29_spill] sm:$0xff] %v5710_v22  ;;  %v5149_v29 = vld [vmem:[#allocation7 + $0x4c] sm:$0xf0]  ;;  %v5147_v30 = vld [vmem:[#allocation7 + $0x44] sm:$0xf]  ;;  %v5720_v33 = vor.u32 %v5152_v25, %v4668_v27 }
  0x40   :  { %779 = vmatpush.bf16.msrb.mxu3 %v5683_v63  ;;  %8068 = vst [vmem:[#allocation30_spill] sm:$0xff] %v5713_v26  ;;  %v4644_v31 = vld [vmem:[#allocation7 + $0x50] sm:$0xf0]  ;;  %v5722_v34 = vor.u32 %v5149_v29, %v4642_v28  ;;  %v4650_v35 = vld [vmem:[#allocation7 + $0x48] sm:$0xf] }
  0x41   :  { %741 = vmatpush.bf16.msrb.mxu0 %v5681_v60  ;;  %8069 = vst [vmem:[#allocation31_spill] sm:$0xff] %v5716_v32  ;;  %v5150_v36 = vld [vmem:[#allocation7 + $0x54] sm:$0xf0]  ;;  %v5148_v38 = vld [vmem:[#allocation7 + $0x4c] sm:$0xf]  ;;  %v5725_v39 = vor.u32 %v5147_v30, %v4644_v31  ;;  %v5041_v28 = vld [vmem:[%s7831_s0 + $0x10] sm:$0xff] }
  0x42   :  { %754 = vmatpush.bf16.msrb.mxu1 %v5686_v1  ;;  %8070 = vst [vmem:[#allocation32_spill] sm:$0xff] %v5720_v33  ;;  %v4652_v40 = vld [vmem:[#allocation7 + $0x58] sm:$0xf0]  ;;  %v4626_v42 = vld [vmem:[#allocation7 + $0x20] sm:$0xf]  ;;  %v5728_v46 = vor.u32 %v5150_v36, %v4650_v35 }
  0x43   :  { %767 = vmatpush.bf16.msrb.mxu2 %v5689_v7  ;;  %8071 = vst [vmem:[#allocation33_spill] sm:$0xff] %v5722_v34  ;;  %v5145_v43 = vld [vmem:[#allocation7 + $0x2c] sm:$0xf0]  ;;  %v5143_v44 = vld [vmem:[#allocation7 + $0x24] sm:$0xf]  ;;  %v5732_v50 = vor.u32 %v5148_v38, %v4652_v40 }
  0x44   :  { %780 = vmatpush.bf16.msrb.mxu3 %v5695_v9  ;;  %8072 = vst [vmem:[#allocation34_spill] sm:$0xff] %v5725_v39  ;;  %v4628_v45 = vld [vmem:[#allocation7 + $0x30] sm:$0xf0]  ;;  %v4634_v48 = vld [vmem:[#allocation7 + $0x28] sm:$0xf]  ;;  %v5734_v52 = vor.u32 %v5145_v43, %v4626_v42 }
  0x45   :  { %742 = vmatpush.bf16.msrb.mxu0 %v5693_v8  ;;  %8073 = vst [vmem:[#allocation35_spill] sm:$0xff] %v5728_v46  ;;  %v5146_v54 = vld [vmem:[#allocation7 + $0x34] sm:$0xf0]  ;;  %v5144_v55 = vld [vmem:[#allocation7 + $0x2c] sm:$0xf]  ;;  %v5737_v57 = vor.u32 %v5143_v44, %v4628_v45 }
  0x46   :  { %755 = vmatpush.bf16.msrb.mxu1 %v5698_v13  ;;  %8074 = vst [vmem:[#allocation36_spill] sm:$0xff] %v5732_v50  ;;  %v4636_v56 = vld [vmem:[#allocation7 + $0x38] sm:$0xf0]  ;;  %v4610_v58 = vld [vmem:[#allocation7] sm:$0xf]  ;;  %v5740_v4 = vor.u32 %v5146_v54, %v4634_v48 }
  0x47   :  { %768 = vmatpush.bf16.msrb.mxu2 %v5704_v20  ;;  %8075 = vst [vmem:[#allocation37_spill] sm:$0xff] %v5734_v52  ;;  %v5141_v61 = vld [vmem:[#allocation7 + $0xc] sm:$0xf0]  ;;  %v5139_v62 = vld [vmem:[#allocation7 + $0x4] sm:$0xf]  ;;  %v5744_v10 = vor.u32 %v5144_v55, %v4636_v56 }
  0x48   :  { %781 = vmatpush.bf16.msrb.mxu3 %v5710_v22  ;;  %370 = vmatmul.bf16.gmra.mxu0 %v5040_v19  ;;  %8076 = vst [vmem:[#allocation38_spill] sm:$0xff] %v5737_v57  ;;  %v4612_v0 = vld [vmem:[#allocation7 + $0x10] sm:$0xf0]  ;;  %v4850_v2 = vld [vmem:[#allocation4 + $0xe0] sm:$0xf]  ;;  %v5746_v11 = vor.u32 %v5141_v61, %v4610_v58 }
  0x49   :  { %743 = vmatpush.bf16.msrb.mxu0 %v5708_v21  ;;  %399 = vmatmul.bf16.gmra.mxu1 %v5040_v19  ;;  %v5105_v3 = vld [vmem:[#allocation4 + $0xec] sm:$0xf0]  ;;  %8077 = vst [vmem:[#allocation39_spill] sm:$0xff] %v5740_v4  ;;  %v5103_v5 = vld [vmem:[#allocation4 + $0xe4] sm:$0xf]  ;;  %v5749_v16 = vor.u32 %v5139_v62, %v4612_v0 }
  0x4a   :  { %756 = vmatpush.bf16.msrb.mxu1 %v5713_v26  ;;  %428 = vmatmul.bf16.gmra.mxu2 %v5040_v19  ;;  %v4852_v6 = vld [vmem:[#allocation4 + $0xf0] sm:$0xf0]  ;;  %8078 = vst [vmem:[#allocation40_spill] sm:$0xff] %v5744_v10  ;;  %v4618_v12 = vld [vmem:[#allocation7 + $0x8] sm:$0xf]  ;;  %v5751_v18 = vor.u32 %v5105_v3, %v4850_v2 }
  0x4b   :  { %457 = vmatmul.bf16.gmra.mxu3 %v5040_v19  ;;  %769 = vmatpush.bf16.msrb.mxu2 %v5716_v32  ;;  %8079 = vst [vmem:[#allocation41_spill] sm:$0xff] %v5746_v11  ;;  %v5142_v14 = vld [vmem:[#allocation7 + $0x14] sm:$0xf0]  ;;  %v5140_v15 = vld [vmem:[#allocation7 + $0xc] sm:$0xf]  ;;  %v5753_v24 = vor.u32 %v5103_v5, %v4852_v6 }
  0x4c   :  { %782 = vmatpush.bf16.msrb.mxu3 %v5720_v33  ;;  %8080 = vst [vmem:[#allocation42_spill] sm:$0xff] %v5749_v16  ;;  %v4620_v17 = vld [vmem:[#allocation7 + $0x18] sm:$0xf0]  ;;  %v4858_v19 = vld [vmem:[#allocation4 + $0xe8] sm:$0xf]  ;;  %v5759_v29 = vor.u32 %v5142_v14, %v4618_v12 }
  0x4d   :  { %744 = vmatpush.bf16.msrb.mxu0 %v5722_v34  ;;  %8081 = vst [vmem:[#allocation43_spill] sm:$0xff] %v5751_v18  ;;  %v5106_v23 = vld [vmem:[#allocation4 + $0xf4] sm:$0xf0]  ;;  %v5104_v25 = vld [vmem:[#allocation4 + $0xec] sm:$0xf]  ;;  %v5763_v30 = vor.u32 %v5140_v15, %v4620_v17 }
  0x4e   :  { %757 = vmatpush.bf16.msrb.mxu1 %v5725_v39  ;;  %8082 = vst [vmem:[#allocation44_spill] sm:$0xff] %v5753_v24  ;;  %v4860_v27 = vld [vmem:[#allocation4 + $0xf8] sm:$0xf0]  ;;  %v5765_v31 = vor.u32 %v5106_v23, %v4858_v19  ;;  %v4834_v35 = vld [vmem:[#allocation4 + $0xc0] sm:$0xf] }
  0x4f   :  { %770 = vmatpush.bf16.msrb.mxu2 %v5728_v46  ;;  %8083 = vst [vmem:[#allocation45_spill] sm:$0xff] %v5759_v29  ;;  %v5101_v36 = vld [vmem:[#allocation4 + $0xcc] sm:$0xf0]  ;;  %v5099_v38 = vld [vmem:[#allocation4 + $0xc4] sm:$0xf]  ;;  %v5769_v40 = vor.u32 %v5104_v25, %v4860_v27 }
  0x50   :  { %783 = vmatpush.bf16.msrb.mxu3 %v5732_v50  ;;  %8084 = vst [vmem:[#allocation46_spill] sm:$0xff] %v5763_v30  ;;  %v4836_v42 = vld [vmem:[#allocation4 + $0xd0] sm:$0xf0]  ;;  %v4842_v43 = vld [vmem:[#allocation4 + $0xc8] sm:$0xf]  ;;  %v5773_v54 = vor.u32 %v5101_v36, %v4834_v35 }
  0x51   :  { %745 = vmatpush.bf16.msrb.mxu0 %v5734_v52  ;;  %8085 = vst [vmem:[#allocation47_spill] sm:$0xff] %v5765_v31  ;;  %v5102_v44 = vld [vmem:[#allocation4 + $0xd4] sm:$0xf0]  ;;  %v5100_v45 = vld [vmem:[#allocation4 + $0xcc] sm:$0xf]  ;;  %v5777_v55 = vor.u32 %v5099_v38, %v4836_v42 }
  0x52   :  { %758 = vmatpush.bf16.msrb.mxu1 %v5737_v57  ;;  %8086 = vst [vmem:[#allocation48_spill] sm:$0xff] %v5769_v40  ;;  %v4844_v48 = vld [vmem:[#allocation4 + $0xd8] sm:$0xf0]  ;;  %v5779_v56 = vor.u32 %v5102_v44, %v4842_v43  ;;  %v4818_v58 = vld [vmem:[#allocation4 + $0xa0] sm:$0xf] }
  0x53   :  { %771 = vmatpush.bf16.msrb.mxu2 %v5740_v4  ;;  %8087 = vst [vmem:[#allocation49_spill] sm:$0xff] %v5773_v54  ;;  %v5097_v61 = vld [vmem:[#allocation4 + $0xac] sm:$0xf0]  ;;  %v5095_v62 = vld [vmem:[#allocation4 + $0xa4] sm:$0xf]  ;;  %v5782_v0 = vor.u32 %v5100_v45, %v4844_v48 }
  0x54   :  { %784 = vmatpush.bf16.msrb.mxu3 %v5744_v10  ;;  %8088 = vst [vmem:[#allocation50_spill] sm:$0xff] %v5777_v55  ;;  %v4820_v2 = vld [vmem:[#allocation4 + $0xb0] sm:$0xf0]  ;;  %v4826_v3 = vld [vmem:[#allocation4 + $0xa8] sm:$0xf]  ;;  %v5785_v14 = vor.u32 %v5097_v61, %v4818_v58 }
  0x55   :  { %746 = vmatpush.bf16.msrb.mxu0 %v5746_v11  ;;  %8089 = vst [vmem:[#allocation51_spill] sm:$0xff] %v5779_v56  ;;  %v5098_v5 = vld [vmem:[#allocation4 + $0xb4] sm:$0xf0]  ;;  %v5096_v6 = vld [vmem:[#allocation4 + $0xac] sm:$0xf]  ;;  %v5789_v15 = vor.u32 %v5095_v62, %v4820_v2 }
  0x56   :  { %759 = vmatpush.bf16.msrb.mxu1 %v5749_v16  ;;  %8090 = vst [vmem:[#allocation52_spill] sm:$0xff] %v5782_v0  ;;  %v4828_v12 = vld [vmem:[#allocation4 + $0xb8] sm:$0xf0]  ;;  %v5791_v17 = vor.u32 %v5098_v5, %v4826_v3  ;;  %v4802_v19 = vld [vmem:[#allocation4 + $0x80] sm:$0xf] }
  0x57   :  { %772 = vmatpush.bf16.msrb.mxu2 %v5759_v29  ;;  %8091 = vst [vmem:[#allocation53_spill] sm:$0xff] %v5785_v14  ;;  %v5093_v23 = vld [vmem:[#allocation4 + $0x8c] sm:$0xf0]  ;;  %v5091_v25 = vld [vmem:[#allocation4 + $0x84] sm:$0xf]  ;;  %v5794_v27 = vor.u32 %v5096_v6, %v4828_v12 }
  0x58   :  { %785 = vmatpush.bf16.msrb.mxu3 %v5763_v30  ;;  %375 = vmatmul.bf16.gmra.mxu0 %v5041_v28  ;;  %8092 = vst [vmem:[#allocation54_spill] sm:$0xff] %v5789_v15  ;;  %v4810_v35 = vld [vmem:[#allocation4 + $0x88] sm:$0xf]  ;;  %v5094_v36 = vld [vmem:[#allocation4 + $0x94] sm:$0xf0]  ;;  %v5797_v43 = vor.u32 %v5093_v23, %v4802_v19 }
  0x59   :  { %951 = vmatpush.bf16.msra.mxu0 %v5751_v18  ;;  %404 = vmatmul.bf16.gmra.mxu1 %v5041_v28  ;;  %8093 = vst [vmem:[#allocation55_spill] sm:$0xff] %v5791_v17  ;;  %v5092_v38 = vld [vmem:[#allocation4 + $0x8c] sm:$0xf]  ;;  %v4812_v42 = vld [vmem:[#allocation4 + $0x98] sm:$0xf0]  ;;  %v5803_v45 = vor.u32 %v5094_v36, %v4810_v35 }
  0x5a   :  { %964 = vmatpush.bf16.msra.mxu1 %v5753_v24  ;;  %433 = vmatmul.bf16.gmra.mxu2 %v5041_v28  ;;  %8094 = vst [vmem:[#allocation56_spill] sm:$0xff] %v5794_v27  ;;  %v4786_v48 = vld [vmem:[#allocation4 + $0x60] sm:$0xf]  ;;  %v5089_v58 = vld [vmem:[#allocation4 + $0x6c] sm:$0xf0]  ;;  %v5806_v62 = vor.u32 %v5092_v38, %v4812_v42  ;;  %v5042_v19 = vld [vmem:[%s7831_s0 + $0x18] sm:$0xff] }
  0x5b   :  { %977 = vmatpush.bf16.msra.mxu2 %v5765_v31  ;;  %462 = vmatmul.bf16.gmra.mxu3 %v5041_v28  ;;  %v4804_v28 = vld [vmem:[#allocation4 + $0x90] sm:$0xf0]  ;;  %8095 = vst [vmem:[#allocation57_spill] sm:$0xff] %v5797_v43  ;;  %v5087_v61 = vld [vmem:[#allocation4 + $0x64] sm:$0xf]  ;;  %v5812_v23 = vor.u32 %v5089_v58, %v4786_v48 }
  0x5c   :  { %990 = vmatpush.bf16.msra.mxu3 %v5769_v40  ;;  %v5801_v44 = vor.u32 %v5091_v25, %v4804_v28  ;;  %8097 = vst [vmem:[#allocation59_spill] sm:$0xff] %v5803_v45  ;;  %v4788_v2 = vld [vmem:[#allocation4 + $0x70] sm:$0xf0]  ;;  %v4794_v3 = vld [vmem:[#allocation4 + $0x68] sm:$0xf] }
  0x5d   :  { %952 = vmatpush.bf16.msra.mxu0 %v5773_v54  ;;  %8098 = vst [vmem:[#allocation60_spill] sm:$0xff] %v5806_v62  ;;  %v5090_v5 = vld [vmem:[#allocation4 + $0x74] sm:$0xf0]  ;;  %v5088_v6 = vld [vmem:[#allocation4 + $0x6c] sm:$0xf]  ;;  %v5816_v25 = vor.u32 %v5087_v61, %v4788_v2 }
  0x5e   :  { %965 = vmatpush.bf16.msra.mxu1 %v5777_v55  ;;  %8096 = vst [vmem:[#allocation58_spill] sm:$0xff] %v5801_v44  ;;  %v4796_v12 = vld [vmem:[#allocation4 + $0x78] sm:$0xf0]  ;;  %v5818_v28 = vor.u32 %v5090_v5, %v4794_v3  ;;  %v4770_v35 = vld [vmem:[#allocation4 + $0x40] sm:$0xf] }
  0x5f   :  { %978 = vmatpush.bf16.msra.mxu2 %v5779_v56  ;;  %8099 = vst [vmem:[#allocation61_spill] sm:$0xff] %v5812_v23  ;;  %v5085_v36 = vld [vmem:[#allocation4 + $0x4c] sm:$0xf0]  ;;  %v5083_v38 = vld [vmem:[#allocation4 + $0x44] sm:$0xf]  ;;  %v5821_v42 = vor.u32 %v5088_v6, %v4796_v12 }
  0x60   :  { %991 = vmatpush.bf16.msra.mxu3 %v5782_v0  ;;  %8100 = vst [vmem:[#allocation62_spill] sm:$0xff] %v5816_v25  ;;  %v5084_v48 = vld [vmem:[#allocation4 + $0x4c] sm:$0xf]  ;;  %v4780_v58 = vld [vmem:[#allocation4 + $0x58] sm:$0xf0] }
  0x61   :  { %953 = vmatpush.bf16.msra.mxu0 %v5785_v14  ;;  %8101 = vst [vmem:[#allocation63_spill] sm:$0xff] %v5818_v28  ;;  %v4754_v3 = vld [vmem:[#allocation4 + $0x20] sm:$0xf]  ;;  %v5081_v5 = vld [vmem:[#allocation4 + $0x2c] sm:$0xf0]  ;;  %v5833_v12 = vor.u32 %v5084_v48, %v4780_v58 }
  0x62   :  { %966 = vmatpush.bf16.msra.mxu1 %v5789_v15  ;;  %8102 = vst [vmem:[#allocation64_spill] sm:$0xff] %v5821_v42  ;;  %v5079_v6 = vld [vmem:[#allocation4 + $0x24] sm:$0xf]  ;;  %v5077_v48 = vld [vmem:[#allocation4 + $0xc] sm:$0xf0] }
  0x63   :  { %979 = vmatpush.bf16.msra.mxu2 %v5791_v17  ;;  %v4778_v17 = vld [vmem:[#allocation4 + $0x48] sm:$0xf]  ;;  %8106 = vst [vmem:[#allocation68_spill] sm:$0xff] %v5833_v12  ;;  %v5075_v58 = vld [vmem:[#allocation4 + $0x4] sm:$0xf] }
  0x64   :  { %992 = vmatpush.bf16.msra.mxu3 %v5794_v27  ;;  %v4772_v27 = vld [vmem:[#allocation4 + $0x50] sm:$0xf0]  ;;  %v4927_v0 = vld [vmem:[#allocation6 + $0x78] sm:$0xf0] }
  0x65   :  { %954 = vmatpush.bf16.msra.mxu0 %v5797_v43  ;;  %v5086_v43 = vld [vmem:[#allocation4 + $0x54] sm:$0xf0]  ;;  %v5828_v61 = vor.u32 %v5083_v38, %v4772_v27  ;;  %v4738_v38 = vld [vmem:[#allocation4] sm:$0xf] }
  0x66   :  { %967 = vmatpush.bf16.msra.mxu1 %v5801_v44  ;;  %v5824_v44 = vor.u32 %v5085_v36, %v4770_v35  ;;  %v5830_v2 = vor.u32 %v5086_v43, %v4778_v17  ;;  %v5082_v35 = vld [vmem:[#allocation4 + $0x34] sm:$0xf0]  ;;  %v5080_v36 = vld [vmem:[#allocation4 + $0x2c] sm:$0xf]  ;;  %v5836_v17 = vor.u32 %v5081_v5, %v4754_v3  ;;  %v4748_v5 = vld [vmem:[#allocation4 + $0x18] sm:$0xf0] }
  0x67   :  { %980 = vmatpush.bf16.msra.mxu2 %v5803_v45  ;;  %8104 = vst [vmem:[#allocation66_spill] sm:$0xff] %v5828_v61  ;;  %v5076_v3 = vld [vmem:[#allocation4 + $0xc] sm:$0xf]  ;;  %v5138_v45 = vld [vmem:[#allocation6 + $0xf4] sm:$0xf0] }
  0x68   :  { %993 = vmatpush.bf16.msra.mxu3 %v5806_v62  ;;  %8103 = vst [vmem:[#allocation65_spill] sm:$0xff] %v5824_v44  ;;  %380 = vmatmul.bf16.gmra.mxu0 %v5042_v19  ;;  %v4756_v62 = vld [vmem:[#allocation4 + $0x30] sm:$0xf0] }
  0x69   :  { %955 = vmatpush.bf16.msra.mxu0 %v5812_v23  ;;  %8105 = vst [vmem:[#allocation67_spill] sm:$0xff] %v5830_v2  ;;  %v4762_v23 = vld [vmem:[#allocation4 + $0x28] sm:$0xf]  ;;  %409 = vmatmul.bf16.gmra.mxu1 %v5042_v19  ;;  %v5840_v27 = vor.u32 %v5079_v6, %v4756_v62  ;;  %v5573_v6 = vmov 0  }
  0x6a   :  { %968 = vmatpush.bf16.msra.mxu1 %v5816_v25  ;;  %438 = vmatmul.bf16.gmra.mxu2 %v5042_v19  ;;  %v4764_v25 = vld [vmem:[#allocation4 + $0x38] sm:$0xf0]  ;;  %8107 = vst [vmem:[#allocation69_spill] sm:$0xff] %v5836_v17  ;;  %v5842_v43 = vor.u32 %v5082_v35, %v4762_v23 }
  0x6b   :  { %981 = vmatpush.bf16.msra.mxu2 %v5818_v28  ;;  %467 = vmatmul.bf16.gmra.mxu3 %v5042_v19  ;;  %8108 = vst [vmem:[#allocation70_spill] sm:$0xff] %v5840_v27  ;;  %v4740_v19 = vld [vmem:[#allocation4 + $0x10] sm:$0xf0]  ;;  %v4746_v28 = vld [vmem:[#allocation4 + $0x8] sm:$0xf] }
  0x6c   :  { %994 = vmatpush.bf16.msra.mxu3 %v5821_v42  ;;  %8109 = vst [vmem:[#allocation71_spill] sm:$0xff] %v5842_v43  ;;  %v5845_v42 = vor.u32 %v5080_v36, %v4764_v25  ;;  %v5852_v62 = vor.u32 %v5075_v58, %v4740_v19  ;;  %v5857_v25 = vor.u32 %v5076_v3, %v4748_v5  ;;  %v163_v58 = vld [vmem:[%s7834_s3] sm:$0xf] }
  0x6d   :  { %956 = vmatpush.bf16.msra.mxu0 %v5824_v44  ;;  %v5078_v44 = vld [vmem:[#allocation4 + $0x14] sm:$0xf0]  ;;  %v5878_v19 = vperm.slane %v163_v58, 0  ;;  %v5882_v5 = vperm.slane %v163_v58, 1 }
  0x6e   :  { %969 = vmatpush.bf16.msra.mxu1 %v5828_v61  ;;  %8110 = vst [vmem:[#allocation72_spill] sm:$0xff] %v5845_v42  ;;  %v5848_v61 = vor.u32 %v5077_v48, %v4738_v38  ;;  %v5854_v23 = vor.u32 %v5078_v44, %v4746_v28 }
  0x6f   :  { %982 = vmatpush.bf16.msra.mxu2 %v5830_v2  ;;  %8112 = vst [vmem:[#allocation74_spill] sm:$0xff] %v5852_v62 }
  0x70   :  { %995 = vmatpush.bf16.msra.mxu3 %v5833_v12  ;;  %8111 = vst [vmem:[#allocation73_spill] sm:$0xff] %v5848_v61  ;;  %v5137_v12 = vld [vmem:[#allocation6 + $0xec] sm:$0xf0] }
  0x71   :  { %957 = vmatpush.bf16.msra.mxu0 %v5836_v17  ;;  %8113 = vst [vmem:[#allocation75_spill] sm:$0xff] %v5854_v23 }
  0x72   :  { %970 = vmatpush.bf16.msra.mxu1 %v5840_v27  ;;  %8114 = vst [vmem:[#allocation76_spill] sm:$0xff] %v5857_v25 }
  0x73   :  { %983 = vmatpush.bf16.msra.mxu2 %v5842_v43  ;;  %8117 = vst [vmem:[#allocation79_spill] sm:$0xff] %v5878_v19 }
  0x74   :  { %996 = vmatpush.bf16.msra.mxu3 %v5845_v42  ;;  %8119 = vst [vmem:[#allocation81_spill] sm:$0xff] %v5882_v5 }
  0x75   :  { %958 = vmatpush.bf16.msra.mxu0 %v5848_v61  ;;  %v5894_v61 = vperm.slane %v163_v58, 3 }
  0x76   :  { %971 = vmatpush.bf16.msra.mxu1 %v5852_v62 }
  0x77   :  { %984 = vmatpush.bf16.msra.mxu2 %v5854_v23  ;;  %8124 = vst [vmem:[#allocation86_spill] sm:$0xff] %v5894_v61 }
  0x78   :  { %997 = vmatpush.bf16.msra.mxu3 %v5857_v25  ;;  %747 = vmatmul.bf16.vlgmr.msrb.gmra.mxu0 %v5573_v6 }
  0x79   :  { %760 = vmatmul.bf16.vlgmr.msrb.gmra.mxu1 %v5573_v6 }
  0x7a   :  { %773 = vmatmul.bf16.vlgmr.msrb.gmra.mxu2 %v5573_v6 }
  0x7b   :  { %786 = vmatmul.bf16.vlgmr.msrb.gmra.mxu3 %v5573_v6 }
  0x88   :  { %959 = vmatmul.bf16.vlgmr.msra.gmra.mxu0 %v5573_v6 }
  0x89   :  { %972 = vmatmul.bf16.vlgmr.msra.gmra.mxu1 %v5573_v6 }
  0x8a   :  { %985 = vmatmul.bf16.vlgmr.msra.gmra.mxu2 %v5573_v6 }
  0x8b   :  { %998 = vmatmul.bf16.vlgmr.msra.gmra.mxu3 %v5573_v6 }
  0xb5   :  { %v5863_v44 = vpop.f32.mrf.mxu0 }
  0xb6   :  { %v5865_v28 = vpop.f32.mrf.mxu1 }
  0xbd   :  { %v5867_v35 = vpop.f32.mrf.mxu2  ;;  %v5871_v38 = vpop.f32.mrf.mxu0 }
  0xbe   :  { %v5869_v36 = vpop.f32.mrf.mxu3  ;;  %8115 = vst [vmem:[#allocation77_spill] sm:$0xff] %v5871_v38  ;;  %v5873_v48 = vpop.f32.mrf.mxu1 }
  0xbf   :  { %8116 = vst [vmem:[#allocation78_spill] sm:$0xff] %v5873_v48  ;;  %v5892_v48 = vperm.slane %v163_v58, 2 }
  0xc1   :  { %8123 = vst [vmem:[#allocation85_spill] sm:$0xff] %v5892_v48 }
  0xc5   :  { %v5880_v3 = vpop.f32.mrf.mxu2  ;;  %v371_v25 = vpop.f32.mrf.mxu0 }
  0xc6   :  { %8118 = vst [vmem:[#allocation80_spill] sm:$0xff] %v5880_v3  ;;  %v5884_v6 = vpop.f32.mrf.mxu3  ;;  %v5887_v23 = vadd.f32 %v371_v25, %v5878_v19  ;;  %v400_v62 = vpop.f32.mrf.mxu1 }
  0xc7   :  { %8120 = vst [vmem:[#allocation82_spill] sm:$0xff] %v5884_v6  ;;  %v5890_v38 = vadd.f32 %v400_v62, %v5882_v5 }
  0xc8   :  { %8121 = vst [vmem:[#allocation83_spill] sm:$0xff] %v5887_v23 }
  0xc9   :  { %8122 = vst [vmem:[#allocation84_spill] sm:$0xff] %v5890_v38 }
  0xcd   :  { %v429_v42 = vpop.f32.mrf.mxu2  ;;  %v5899_v27 = vpop.f32.mrf.mxu0 }
  0xce   :  { %v5897_v43 = vadd.f32 %v429_v42, %v5892_v48  ;;  %v458_v3 = vpop.f32.mrf.mxu3  ;;  %8126 = vst [vmem:[#allocation88_spill] sm:$0xff] %v5899_v27  ;;  %v5904_v25 = vpop.f32.mrf.mxu1 }
  0xcf   :  { %v5902_v6 = vadd.f32 %v458_v3, %v5894_v61  ;;  %8128 = vst [vmem:[#allocation90_spill] sm:$0xff] %v5904_v25 }
  0xd0   :  { %8125 = vst [vmem:[#allocation87_spill] sm:$0xff] %v5897_v43 }
  0xd1   :  { %8127 = vst [vmem:[#allocation89_spill] sm:$0xff] %v5902_v6 }
  0xd5   :  { %v5906_v23 = vpop.f32.mrf.mxu2  ;;  %v376_v38 = vpop.f32.mrf.mxu0 }
  0xd6   :  { %8129 = vst [vmem:[#allocation91_spill] sm:$0xff] %v5906_v23  ;;  %v5908_v62 = vpop.f32.mrf.mxu3  ;;  %v5911_v58 = vadd.f32 %v376_v38, %v5878_v19  ;;  %v405_v17 = vpop.f32.mrf.mxu1 }
  0xd7   :  { %8130 = vst [vmem:[#allocation92_spill] sm:$0xff] %v5908_v62  ;;  %v5914_v42 = vadd.f32 %v405_v17, %v5882_v5 }
  0xd8   :  { %8131 = vst [vmem:[#allocation93_spill] sm:$0xff] %v5911_v58 }
  0xd9   :  { %8132 = vst [vmem:[#allocation94_spill] sm:$0xff] %v5914_v42 }
  0xdd   :  { %v434_v43 = vpop.f32.mrf.mxu2  ;;  %v5919_v6 = vpop.f32.mrf.mxu0 }
  0xde   :  { %v5917_v27 = vadd.f32 %v434_v43, %v5892_v48  ;;  %v463_v3 = vpop.f32.mrf.mxu3  ;;  %8134 = vst [vmem:[#allocation96_spill] sm:$0xff] %v5919_v6  ;;  %v5924_v23 = vpop.f32.mrf.mxu1 }
  0xdf   :  { %v5922_v25 = vadd.f32 %v463_v3, %v5894_v61  ;;  %8136 = vst [vmem:[#allocation98_spill] sm:$0xff] %v5924_v23 }
  0xe0   :  { %8133 = vst [vmem:[#allocation95_spill] sm:$0xff] %v5917_v27 }
  0xe1   :  { %8135 = vst [vmem:[#allocation97_spill] sm:$0xff] %v5922_v25 }
  0xe5   :  { %v5926_v62 = vpop.f32.mrf.mxu2  ;;  %v381_v58 = vpop.f32.mrf.mxu0 }
  0xe6   :  { %8137 = vst [vmem:[#allocation99_spill] sm:$0xff] %v5926_v62  ;;  %v5928_v38 = vpop.f32.mrf.mxu3  ;;  %v5931_v17 = vadd.f32 %v381_v58, %v5878_v19  ;;  %v410_v42 = vpop.f32.mrf.mxu1  ;;  %v5135_v58 = vld [vmem:[#allocation6 + $0xe4] sm:$0xf] }
  0xe7   :  { %8138 = vst [vmem:[#allocation100_spill] sm:$0xff] %v5928_v38  ;;  %v5934_v43 = vadd.f32 %v410_v42, %v5882_v5  ;;  %v4981_v38 = vld [vmem:[#allocation6 + $0xe0] sm:$0xf]  ;;  %v4983_v42 = vld [vmem:[#allocation6 + $0xf0] sm:$0xf0] }
  0xe8   :  { %8139 = vst [vmem:[#allocation101_spill] sm:$0xff] %v5931_v17  ;;  %v5948_v2 = vor.u32 %v5137_v12, %v4981_v38  ;;  %v4965_v12 = vld [vmem:[#allocation6 + $0xc0] sm:$0xf]  ;;  %v5133_v38 = vld [vmem:[#allocation6 + $0xcc] sm:$0xf0] }
  0xe9   :  { %8140 = vst [vmem:[#allocation102_spill] sm:$0xff] %v5934_v43  ;;  %v4989_v43 = vld [vmem:[#allocation6 + $0xe8] sm:$0xf] }
  0xea   :  { %8146 = vst [vmem:[#allocation108_spill] sm:$0xff] %v5948_v2  ;;  %1231 = vmatpush.bf16.msrb.mxu0 %v5948_v2 }
  0xed   :  { %v439_v27 = vpop.f32.mrf.mxu2  ;;  %v5939_v25 = vpop.f32.mrf.mxu0 }
  0xee   :  { %v5937_v6 = vadd.f32 %v439_v27, %v5892_v48  ;;  %v468_v3 = vpop.f32.mrf.mxu3  ;;  %8142 = vst [vmem:[#allocation104_spill] sm:$0xff] %v5939_v25  ;;  %v5944_v62 = vpop.f32.mrf.mxu1  ;;  %v5954_v25 = vor.u32 %v5135_v58, %v4983_v42  ;;  %v5966_v58 = vor.u32 %v5133_v38, %v4965_v12  ;;  %v5134_v42 = vld [vmem:[#allocation6 + $0xd4] sm:$0xf0]  ;;  %v5129_v12 = vld [vmem:[#allocation6 + $0xac] sm:$0xf0] }
  0xef   :  { %v5942_v23 = vadd.f32 %v468_v3, %v5894_v61  ;;  %8144 = vst [vmem:[#allocation106_spill] sm:$0xff] %v5944_v62  ;;  %v5956_v3 = vor.u32 %v5138_v45, %v4989_v43  ;;  %v4991_v62 = vld [vmem:[#allocation6 + $0xf8] sm:$0xf0]  ;;  %v4967_v45 = vld [vmem:[#allocation6 + $0xd0] sm:$0xf0] }
  0xf0   :  { %8141 = vst [vmem:[#allocation103_spill] sm:$0xff] %v5937_v6  ;;  %1244 = vmatpush.bf16.msrb.mxu1 %v5954_v25  ;;  %v4973_v43 = vld [vmem:[#allocation6 + $0xc8] sm:$0xf]  ;;  %1232 = vmatpush.bf16.msrb.mxu0 %v5966_v58  ;;  %v5127_v38 = vld [vmem:[#allocation6 + $0xa4] sm:$0xf] }
  0xf1   :  { %8143 = vst [vmem:[#allocation105_spill] sm:$0xff] %v5942_v23  ;;  %v5136_v23 = vld [vmem:[#allocation6 + $0xec] sm:$0xf]  ;;  %1257 = vmatpush.bf16.msrb.mxu2 %v5956_v3 }
  0xf2   :  { %8149 = vst [vmem:[#allocation111_spill] sm:$0xff] %v5954_v25 }
  0xf3   :  { %8150 = vst [vmem:[#allocation112_spill] sm:$0xff] %v5956_v3 }
  0xf4   :  { %8153 = vst [vmem:[#allocation115_spill] sm:$0xff] %v5966_v58  ;;  %v4959_v58 = vld [vmem:[#allocation6 + $0xb8] sm:$0xf0] }
  0xf5   :  { %v5946_v17 = vpop.f32.mrf.mxu2  ;;  %v5952_v6 = vpop.f32.mrf.mxu0 }
  0xf6   :  { %8145 = vst [vmem:[#allocation107_spill] sm:$0xff] %v5946_v17  ;;  %v5950_v27 = vpop.f32.mrf.mxu3  ;;  %v5958_v15 = vpop.f32.mrf.mxu1  ;;  %v5961_v17 = vor.u32 %v5136_v23, %v4991_v62  ;;  %v5132_v23 = vld [vmem:[#allocation6 + $0xcc] sm:$0xf]  ;;  %v4975_v62 = vld [vmem:[#allocation6 + $0xd8] sm:$0xf0] }
  0xf7   :  { %8147 = vst [vmem:[#allocation109_spill] sm:$0xff] %v5950_v27  ;;  %v5131_v27 = vld [vmem:[#allocation6 + $0xc4] sm:$0xf]  ;;  %v5973_v25 = vor.u32 %v5132_v23, %v4975_v62 }
  0xf8   :  { %8148 = vst [vmem:[#allocation110_spill] sm:$0xff] %v5952_v6  ;;  %1270 = vmatpush.bf16.msrb.mxu3 %v5961_v17  ;;  %v5968_v6 = vor.u32 %v5131_v27, %v4967_v45  ;;  %v4951_v45 = vld [vmem:[#allocation6 + $0xb0] sm:$0xf0] }
  0xf9   :  { %8151 = vst [vmem:[#allocation113_spill] sm:$0xff] %v5958_v15  ;;  %v5970_v15 = vor.u32 %v5134_v42, %v4973_v43  ;;  %v4957_v43 = vld [vmem:[#allocation6 + $0xa8] sm:$0xf]  ;;  %v5130_v42 = vld [vmem:[#allocation6 + $0xb4] sm:$0xf0]  ;;  %v5984_v62 = vor.u32 %v5127_v38, %v4951_v45 }
  0xfa   :  { %8152 = vst [vmem:[#allocation114_spill] sm:$0xff] %v5961_v17  ;;  %1245 = vmatpush.bf16.msrb.mxu1 %v5968_v6  ;;  %v4949_v17 = vld [vmem:[#allocation6 + $0xa0] sm:$0xf]  ;;  %v4935_v45 = vld [vmem:[#allocation6 + $0x90] sm:$0xf0] }
  0xfb   :  { %8154 = vst [vmem:[#allocation116_spill] sm:$0xff] %v5968_v6  ;;  %1258 = vmatpush.bf16.msrb.mxu2 %v5970_v15  ;;  %v5980_v27 = vor.u32 %v5129_v12, %v4949_v17  ;;  %v5986_v6 = vor.u32 %v5130_v42, %v4957_v43  ;;  %v4933_v17 = vld [vmem:[#allocation6 + $0x80] sm:$0xf]  ;;  %v5125_v12 = vld [vmem:[#allocation6 + $0x8c] sm:$0xf0] }
  0xfc   :  { %8155 = vst [vmem:[#allocation117_spill] sm:$0xff] %v5970_v15  ;;  %1271 = vmatpush.bf16.msrb.mxu3 %v5973_v25  ;;  %v5128_v15 = vld [vmem:[#allocation6 + $0xac] sm:$0xf]  ;;  %v5994_v38 = vor.u32 %v5125_v12, %v4933_v17  ;;  %v4941_v43 = vld [vmem:[#allocation6 + $0x88] sm:$0xf] }
  0xfd   :  { %8156 = vst [vmem:[#allocation118_spill] sm:$0xff] %v5973_v25  ;;  %v5977_v3 = vpop.f32.mrf.mxu2  ;;  %v750_v23 = vpop.f32.mrf.mxu0  ;;  %1233 = vmatpush.bf16.msrb.mxu0 %v5980_v27  ;;  %v5123_v25 = vld [vmem:[#allocation6 + $0x84] sm:$0xf]  ;;  %v5126_v42 = vld [vmem:[#allocation6 + $0x94] sm:$0xf0] }
  0xfe   :  { %8157 = vst [vmem:[#allocation119_spill] sm:$0xff] %v5977_v3  ;;  %v5982_v2 = vpop.f32.mrf.mxu3  ;;  %v763_v14 = vpop.f32.mrf.mxu1  ;;  %v5989_v3 = vor.u32 %v5128_v15, %v4959_v58  ;;  %1246 = vmatpush.bf16.msrb.mxu1 %v5984_v62  ;;  %v5996_v23 = vor.u32 %v5123_v25, %v4935_v45  ;;  %v5124_v15 = vld [vmem:[#allocation6 + $0x8c] sm:$0xf]  ;;  %v4943_v58 = vld [vmem:[#allocation6 + $0x98] sm:$0xf0] }
  0xff   :  { %8158 = vst [vmem:[#allocation120_spill] sm:$0xff] %v5980_v27  ;;  %1259 = vmatpush.bf16.msrb.mxu2 %v5986_v6  ;;  %v5998_v14 = vor.u32 %v5126_v42, %v4941_v43  ;;  %v5121_v17 = vld [vmem:[#allocation6 + $0x6c] sm:$0xf0]  ;;  %v5119_v12 = vld [vmem:[#allocation6 + $0x64] sm:$0xf] }
 0x100   :  { %8159 = vst [vmem:[#allocation121_spill] sm:$0xff] %v5982_v2  ;;  %1272 = vmatpush.bf16.msrb.mxu3 %v5989_v3  ;;  %v4919_v43 = vld [vmem:[#allocation6 + $0x70] sm:$0xf0]  ;;  %v4925_v42 = vld [vmem:[#allocation6 + $0x68] sm:$0xf] }
 0x101   :  { %8160 = vst [vmem:[#allocation122_spill] sm:$0xff] %v5984_v62  ;;  %1234 = vmatpush.bf16.msrb.mxu0 %v5994_v38  ;;  %v6001_v62 = vor.u32 %v5124_v15, %v4943_v58  ;;  %v396_v15 = vadd.f32 %v5865_v28, %v5882_v5  ;;  %v5120_v2 = vld [vmem:[#allocation6 + $0x6c] sm:$0xf]  ;;  %v4901_v28 = vld [vmem:[#allocation6 + $0x40] sm:$0xf] }
 0x102   :  { %8161 = vst [vmem:[#allocation123_spill] sm:$0xff] %v5986_v6  ;;  %1247 = vmatpush.bf16.msrb.mxu1 %v5996_v23  ;;  %v367_v6 = vadd.f32 %v5863_v44, %v5878_v19  ;;  %v5115_v5 = vld [vmem:[#allocation6 + $0x44] sm:$0xf]  ;;  %v4887_v19 = vld [vmem:[#allocation6 + $0x30] sm:$0xf0] }
 0x103   :  { %8162 = vst [vmem:[#allocation124_spill] sm:$0xff] %v5989_v3  ;;  %1260 = vmatpush.bf16.msrb.mxu2 %v5998_v14  ;;  %v4917_v3 = vld [vmem:[#allocation6 + $0x60] sm:$0xf] }
 0x104   :  { %8163 = vst [vmem:[#allocation125_spill] sm:$0xff] %v5994_v38  ;;  %1273 = vmatpush.bf16.msrb.mxu3 %v6001_v62  ;;  %v6008_v45 = vor.u32 %v5121_v17, %v4917_v3  ;;  %v5122_v38 = vld [vmem:[#allocation6 + $0x74] sm:$0xf0]  ;;  %v6017_v3 = vor.u32 %v5120_v2, %v4927_v0  ;;  %v5116_v2 = vld [vmem:[#allocation6 + $0x4c] sm:$0xf] }
 0x105   :  { %8164 = vst [vmem:[#allocation126_spill] sm:$0xff] %v5996_v23  ;;  %v776_v25 = vpop.f32.mrf.mxu2  ;;  %v960_v23 = vpop.f32.mrf.mxu0  ;;  %v6014_v27 = vor.u32 %v5122_v38, %v4925_v42  ;;  %v5118_v0 = vld [vmem:[#allocation6 + $0x54] sm:$0xf0] }
 0x106   :  { %8165 = vst [vmem:[#allocation127_spill] sm:$0xff] %v5998_v14  ;;  %v789_v58 = vpop.f32.mrf.mxu3  ;;  %v6012_v14 = vor.u32 %v5119_v12, %v4919_v43  ;;  %v1003_v44 = vadd.f32 %v960_v23, %v367_v6  ;;  %v973_v25 = vpop.f32.mrf.mxu1  ;;  %1235 = vmatpush.bf16.msrb.mxu0 %v6008_v45  ;;  %v4903_v43 = vld [vmem:[#allocation6 + $0x50] sm:$0xf0]  ;;  %v4909_v6 = vld [vmem:[#allocation6 + $0x48] sm:$0xf] }
 0x107   :  { %8166 = vst [vmem:[#allocation128_spill] sm:$0xff] %v6014_v27  ;;  %v1004_v17 = vadd.f32 %v973_v25, %v396_v15  ;;  %1261 = vmatpush.bf16.msrb.mxu2 %v6014_v27  ;;  %v5117_v58 = vld [vmem:[#allocation6 + $0x4c] sm:$0xf0]  ;;  %v6024_v42 = vor.u32 %v5115_v5, %v4903_v43  ;;  %v6027_v15 = vor.u32 %v5118_v0, %v4909_v6  ;;  %v4911_v25 = vld [vmem:[#allocation6 + $0x58] sm:$0xf0] }
 0x108   :  { %8167 = vst [vmem:[#allocation129_spill] sm:$0xff] %v6017_v3  ;;  %1248 = vmatpush.bf16.msrb.mxu1 %v6012_v14  ;;  %v4864_v12 = vmul.f32 -1.442695, %v1003_v44  ;;  %1274 = vmatpush.bf16.msrb.mxu3 %v6017_v3  ;;  %v6022_v38 = vor.u32 %v5117_v58, %v4901_v28  ;;  %v425_v44 = vadd.f32 %v5867_v35, %v5892_v48  ;;  %v4885_v58 = vld [vmem:[#allocation6 + $0x20] sm:$0xf] }
 0x109   :  { %v4865_v23 = vmul.f32 -1.442695, %v1004_v17  ;;  %8169 = vst [vmem:[#allocation131_spill] sm:$0xff] %v6024_v42  ;;  %v6032_v28 = vor.u32 %v5116_v2, %v4911_v25  ;;  %v5113_v17 = vld [vmem:[#allocation6 + $0x2c] sm:$0xf0] }
 0x10a   :  { %8168 = vst [vmem:[#allocation130_spill] sm:$0xff] %v6022_v38  ;;  %5184 = vpow2.f32 %v4864_v12  ;;  %1236 = vmatpush.bf16.msrb.mxu0 %v6022_v38  ;;  %v5111_v5 = vld [vmem:[#allocation6 + $0x24] sm:$0xf]  ;;  %v6035_v12 = vor.u32 %v5113_v17, %v4885_v58  ;;  %v4893_v6 = vld [vmem:[#allocation6 + $0x28] sm:$0xf] }
 0x10b   :  { %8170 = vst [vmem:[#allocation132_spill] sm:$0xff] %v6027_v15  ;;  %5186 = vpow2.f32 %v4865_v23  ;;  %1262 = vmatpush.bf16.msrb.mxu2 %v6027_v15  ;;  %v5114_v0 = vld [vmem:[#allocation6 + $0x34] sm:$0xf0]  ;;  %v6038_v35 = vor.u32 %v5111_v5, %v4887_v19  ;;  %v5112_v2 = vld [vmem:[#allocation6 + $0x2c] sm:$0xf] }
 0x10c   :  { %1249 = vmatpush.bf16.msrb.mxu1 %v6024_v42  ;;  %8171 = vst [vmem:[#allocation133_spill] sm:$0xff] %v6032_v28  ;;  %1275 = vmatpush.bf16.msrb.mxu3 %v6032_v28  ;;  %v6040_v23 = vor.u32 %v5114_v0, %v4893_v6  ;;  %v4895_v25 = vld [vmem:[#allocation6 + $0x38] sm:$0xf0]  ;;  %v4869_v17 = vld [vmem:[#allocation6] sm:$0xf] }
 0x10d   :  { %v986_v43 = vpop.f32.mrf.mxu2  ;;  %8172 = vst [vmem:[#allocation134_spill] sm:$0xff] %v6035_v12  ;;  %v962_v27 = vpop.f32.mrf.mxu0  ;;  %v6043_v15 = vor.u32 %v5112_v2, %v4895_v25  ;;  %v5107_v19 = vld [vmem:[#allocation6 + $0x4] sm:$0xf]  ;;  %v4871_v5 = vld [vmem:[#allocation6 + $0x10] sm:$0xf0] }
 0x10e   :  { %v1005_v38 = vadd.f32 %v986_v43, %v425_v44  ;;  %v999_v3 = vpop.f32.mrf.mxu3  ;;  %8173 = vst [vmem:[#allocation135_spill] sm:$0xff] %v6038_v35  ;;  %v975_v48 = vpop.f32.mrf.mxu1  ;;  %1237 = vmatpush.bf16.msrb.mxu0 %v6035_v12  ;;  %v5109_v44 = vld [vmem:[#allocation6 + $0xc] sm:$0xf0]  ;;  %v4877_v6 = vld [vmem:[#allocation6 + $0x8] sm:$0xf] }
 0x10f   :  { %8174 = vst [vmem:[#allocation136_spill] sm:$0xff] %v6040_v23  ;;  %1263 = vmatpush.bf16.msrb.mxu2 %v6040_v23  ;;  %v6047_v27 = vor.u32 %v5109_v44, %v4869_v17  ;;  %v6052_v48 = vor.u32 %v5107_v19, %v4871_v5  ;;  %v5108_v17 = vld [vmem:[#allocation6 + $0xc] sm:$0xf]  ;;  %v4879_v44 = vld [vmem:[#allocation6 + $0x18] sm:$0xf0] }
 0x110   :  { %8175 = vst [vmem:[#allocation137_spill] sm:$0xff] %v6043_v15  ;;  %v4866_v58 = vmul.f32 -1.442695, %v1005_v38  ;;  %1250 = vmatpush.bf16.msrb.mxu1 %v6038_v35  ;;  %v5185_v43 = vpop.eup %5184  ;;  %1276 = vmatpush.bf16.msrb.mxu3 %v6043_v15  ;;  %v5110_v38 = vld [vmem:[#allocation6 + $0x14] sm:$0xf0]  ;;  %v6065_v19 = vor.u32 %v5108_v17, %v4879_v44 }
 0x111   :  { %8176 = vst [vmem:[#allocation138_spill] sm:$0xff] %v6047_v27  ;;  %v5187_v0 = vpop.eup %5186  ;;  %v6049_v28 = vadd.f32 1.0, %v5185_v43  ;;  %v6057_v25 = vor.u32 %v5110_v38, %v4877_v6  ;;  %v454_v6 = vadd.f32 %v5869_v36, %v5894_v61 }
 0x112   :  { %5188 = vpow2.f32 %v4866_v58  ;;  %8177 = vst [vmem:[#allocation139_spill] sm:$0xff] %v6052_v48  ;;  %v6054_v2 = vadd.f32 1.0, %v5187_v0  ;;  %1238 = vmatpush.bf16.msrb.mxu0 %v6047_v27 }
 0x113   :  { %8178 = vst [vmem:[#allocation140_spill] sm:$0xff] %v6057_v25  ;;  %5190 = vrcp.f32 %v6049_v28  ;;  %1264 = vmatpush.bf16.msrb.mxu2 %v6057_v25  ;;  %v1030_v61 = vand.u32 2147483648, %v6049_v28  ;;  %vm1024_vm2 = vweird.f32 %v6049_v28 }
 0x114   :  { %1251 = vmatpush.bf16.msrb.mxu1 %v6052_v48  ;;  %5192 = vrcp.f32 %v6054_v2  ;;  %8179 = vst [vmem:[#allocation141_spill] sm:$0xff] %v6065_v19  ;;  %1277 = vmatpush.bf16.msrb.mxu3 %v6065_v19  ;;  %vm1039_vm3 = vweird.f32 %v6054_v2 }
 0x115   :  { %v988_v58 = vpop.f32.mrf.mxu2 }
 0x116   :  { %1351 = vmatpush.bf16.msra.mxu0 %v5662_v37  ;;  %v1001_v43 = vpop.f32.mrf.mxu3  ;;  %v1006_v58 = vadd.f32 %v999_v3, %v454_v6  ;;  %v1045_v3 = vand.u32 2147483648, %v6054_v2 }
 0x117   :  { %1377 = vmatpush.bf16.msra.mxu2 %v5666_v47 }
 0x118   :  { %1364 = vmatpush.bf16.msra.mxu1 %v5664_v41  ;;  %v5189_v5 = vpop.eup %5188  ;;  %1390 = vmatpush.bf16.msra.mxu3 %v5671_v51 }
 0x119   :  { %v6072_v0 = vadd.f32 1.0, %v5189_v5  ;;  %v5191_v38 = vpop.eup %5190 }
 0x11a   :  { %1352 = vmatpush.bf16.msra.mxu0 %v5669_v49  ;;  %v5193_v17 = vpop.eup %5192  ;;  %v1020_v44 = vmul.f32 %v5191_v38, %v6049_v28  ;;  %vm1025_vm0 = vweird.f32 %v5191_v38 }
 0x11b   :  { %1378 = vmatpush.bf16.msra.mxu2 %v5677_v59  ;;  %5194 = vrcp.f32 %v6072_v0  ;;  %v1035_v36 = vmul.f32 %v5193_v17, %v6054_v2  ;;  %v1028_v59 = vand.u32 2147483647, %v6049_v28  ;;  %vm1040_vm1 = vweird.f32 %v5193_v17  ;;  %vm1026_vm4 = vmor %vm1024_vm2, %vm1025_vm0 }
 0x11c   :  { %1365 = vmatpush.bf16.msra.mxu1 %v5674_v53  ;;  %v1021_v43 = vsub.f32 1.0, %v1020_v44  ;;  %1391 = vmatpush.bf16.msra.mxu3 %v5683_v63  ;;  %5196 = vtanh.f32 %v1006_v58  ;;  %v1043_v44 = vand.u32 2147483647, %v6054_v2  ;;  %vm1041_vm6 = vmor %vm1039_vm3, %vm1040_vm1  ;;  %vm1054_vm9 = vweird.f32 %v6072_v0 }
 0x11d   :  { %v1036_v5 = vsub.f32 1.0, %v1035_v36  ;;  %v1031_v36 = vor.u32 1.1754944e-38, %v1030_v61  ;;  %vm1029_vm5 = vcmp.eq.f32.partialorder %v1028_v59, 8.507059e+37 }
 0x11e   :  { %1353 = vmatpush.bf16.msra.mxu0 %v5681_v60  ;;  %v1022_v6 = vmul.f32 %v5191_v38, %v1021_v43  ;;  %vm1044_vm7 = vcmp.eq.f32.partialorder %v1043_v44, 8.507059e+37  ;;  %v8181_v44 = vld [vmem:[#allocation53_spill] sm:$0xff] }
 0x11f   :  { %1379 = vmatpush.bf16.msra.mxu2 %v5689_v7  ;;  %v1037_v53 = vmul.f32 %v5193_v17, %v1036_v5  ;;  %v1046_v5 = vor.u32 1.1754944e-38, %v1045_v3 }
 0x120   :  { %1366 = vmatpush.bf16.msra.mxu1 %v5686_v1  ;;  %v1023_v1 = vadd.f32 %v5191_v38, %v1022_v6  ;;  %1392 = vmatpush.bf16.msra.mxu3 %v5695_v9 }
 0x121   :  { %v5195_v60 = vpop.eup %5194  ;;  %v1038_v43 = vadd.f32 %v5193_v17, %v1037_v53 }
 0x122   :  { %1354 = vmatpush.bf16.msra.mxu0 %v5693_v8  ;;  %v1050_v58 = vmul.f32 %v5195_v60, %v6072_v0  ;;  %v1027_v7 = vsel %vm1026_vm4, %v5191_v38, %v1023_v1  ;;  %v5197_v6 = vpop.eup %5196  ;;  %vm1055_vm8 = vweird.f32 %v5195_v60 }
 0x123   :  { %1380 = vmatpush.bf16.msra.mxu2 %v5704_v20  ;;  %v1032_v8 = vsel %vm1029_vm5, %v1031_v36, %v1027_v7  ;;  %v1042_v9 = vsel %vm1041_vm6, %v5193_v17, %v1038_v43  ;;  %v1060_v7 = vand.u32 2147483648, %v6072_v0  ;;  %vm1056_vm10 = vmor %vm1054_vm9, %vm1055_vm8  ;;  %v8183_v36 = vld [vmem:[#allocation55_spill] sm:$0xff]  ;;  %v8184_v43 = vld [vmem:[#allocation56_spill] sm:$0xff] }
 0x124   :  { %1367 = vmatpush.bf16.msra.mxu1 %v5698_v13  ;;  %v1051_v28 = vsub.f32 1.0, %v1050_v58  ;;  %v1047_v2 = vsel %vm1044_vm7, %v1046_v5, %v1042_v9  ;;  %v1066_v13 = vmul.f32 %v5197_v6, %v1032_v8  ;;  %1393 = vmatpush.bf16.msra.mxu3 %v5710_v22  ;;  %v1058_v8 = vand.u32 2147483647, %v6072_v0  ;;  %v8180_v0 = vld [vmem:[#allocation52_spill] sm:$0xff]  ;;  %v8182_v58 = vld [vmem:[#allocation54_spill] sm:$0xff]  ;;  %v8185_v5 = vld [vmem:[#allocation57_spill] sm:$0xff] }
 0x125   :  { %v1065_v61 = vmul.f32 0.0, %v1047_v2  ;;  %v8186_v6 = vld [vmem:[#allocation58_spill] sm:$0xff]  ;;  %v8188_v2 = vld [vmem:[#allocation60_spill] sm:$0xff] }
 0x126   :  { %1355 = vmatpush.bf16.msra.mxu0 %v5708_v21  ;;  %v1052_v53 = vmul.f32 %v5195_v60, %v1051_v28  ;;  %vm1059_vm11 = vcmp.eq.f32.partialorder %v1058_v8, 8.507059e+37  ;;  %v8187_v28 = vld [vmem:[#allocation59_spill] sm:$0xff]  ;;  %v8193_v8 = vld [vmem:[#allocation65_spill] sm:$0xff] }
 0x127   :  { %1381 = vmatpush.bf16.msra.mxu2 %v5716_v32  ;;  %v6100_v59 = vadd.f32 %v1066_v13, %v1065_v61  ;;  %v1061_v13 = vor.u32 1.1754944e-38, %v1060_v7  ;;  %v8190_v61 = vld [vmem:[#allocation62_spill] sm:$0xff]  ;;  %v8192_v7 = vld [vmem:[#allocation64_spill] sm:$0xff] }
 0x128   :  { %1368 = vmatpush.bf16.msra.mxu1 %v5713_v26  ;;  %v1053_v1 = vadd.f32 %v5195_v60, %v1052_v53  ;;  %1394 = vmatpush.bf16.msra.mxu3 %v5720_v33  ;;  %v8189_v53 = vld [vmem:[#allocation61_spill] sm:$0xff] }
 0x129   :  { %5198 = vtanh.f32 %v6100_v59 }
 0x12a   :  { %1356 = vmatpush.bf16.msra.mxu0 %v5722_v34  ;;  %v1057_v9 = vsel %vm1056_vm10, %v5195_v60, %v1053_v1  ;;  %v8191_v1 = vld [vmem:[#allocation63_spill] sm:$0xff] }
 0x12b   :  { %1382 = vmatpush.bf16.msra.mxu2 %v5728_v46  ;;  %v1062_v17 = vsel %vm1059_vm11, %v1061_v13, %v1057_v9  ;;  %v8194_v9 = vld [vmem:[#allocation66_spill] sm:$0xff]  ;;  %v8195_v13 = vld [vmem:[#allocation67_spill] sm:$0xff] }
 0x12c   :  { %1369 = vmatpush.bf16.msra.mxu1 %v5725_v39  ;;  %1395 = vmatpush.bf16.msra.mxu3 %v5732_v50 }
 0x12e   :  { %1357 = vmatpush.bf16.msra.mxu0 %v5734_v52 }
 0x12f   :  { %1383 = vmatpush.bf16.msra.mxu2 %v5740_v4  ;;  %v5199_v38 = vpop.eup %5198 }
 0x130   :  { %1370 = vmatpush.bf16.msra.mxu1 %v5737_v57  ;;  %v1069_v3 = vmul.f32 %v5199_v38, %v1062_v17  ;;  %1396 = vmatpush.bf16.msra.mxu3 %v5744_v10  ;;  %v8196_v38 = vld [vmem:[#allocation68_spill] sm:$0xff]  ;;  %v8197_v17 = vld [vmem:[#allocation69_spill] sm:$0xff] }
 0x132   :  { %1358 = vmatpush.bf16.msra.mxu0 %v5746_v11  ;;  %v6118_v60 = vpack.c.bf16 %v1069_v3, %v1069_v3  ;;  %v8198_v3 = vld [vmem:[#allocation70_spill] sm:$0xff] }
 0x133   :  { %1384 = vmatpush.bf16.msra.mxu2 %v5759_v29 }
 0x134   :  { %1371 = vmatpush.bf16.msra.mxu1 %v5749_v16  ;;  %1239 = vmatmul.bf16.vlgmr.msrb.gmra.mxu0 %v6118_v60 }
 0x135   :  { %1252 = vmatmul.bf16.vlgmr.msrb.gmra.mxu1 %v6118_v60  ;;  %1265 = vmatmul.bf16.vlgmr.msrb.gmra.mxu2 %v6118_v60 }
 0x136   :  { %1278 = vmatmul.bf16.vlgmr.msrb.gmra.mxu3 %v6118_v60  ;;  %1403 = vmatpush.bf16.msrb.mxu0 %v5751_v18 }
 0x137   :  { %1397 = vmatpush.bf16.msra.mxu3 %v5763_v30  ;;  %1429 = vmatpush.bf16.msrb.mxu2 %v5765_v31 }
 0x138   :  { %1416 = vmatpush.bf16.msrb.mxu1 %v5753_v24 }
 0x13a   :  { %1404 = vmatpush.bf16.msrb.mxu0 %v5773_v54 }
 0x13b   :  { %1442 = vmatpush.bf16.msrb.mxu3 %v5769_v40  ;;  %1430 = vmatpush.bf16.msrb.mxu2 %v5779_v56 }
 0x13c   :  { %1417 = vmatpush.bf16.msrb.mxu1 %v5777_v55 }
 0x13e   :  { %1405 = vmatpush.bf16.msrb.mxu0 %v8181_v44 }
 0x13f   :  { %1443 = vmatpush.bf16.msrb.mxu3 %v8180_v0  ;;  %1431 = vmatpush.bf16.msrb.mxu2 %v8183_v36 }
 0x140   :  { %1418 = vmatpush.bf16.msrb.mxu1 %v8182_v58  ;;  %v8210_v58 = vld [vmem:[#allocation119_spill] sm:$0xff] }
 0x142   :  { %1406 = vmatpush.bf16.msrb.mxu0 %v8185_v5 }
 0x143   :  { %1444 = vmatpush.bf16.msrb.mxu3 %v8184_v43  ;;  %1432 = vmatpush.bf16.msrb.mxu2 %v8187_v28  ;;  %v8208_v28 = vld [vmem:[#allocation113_spill] sm:$0xff] }
 0x144   :  { %1419 = vmatpush.bf16.msrb.mxu1 %v8186_v6 }
 0x146   :  { %1407 = vmatpush.bf16.msrb.mxu0 %v8189_v53  ;;  %v8200_v53 = vld [vmem:[#allocation72_spill] sm:$0xff] }
 0x147   :  { %1445 = vmatpush.bf16.msrb.mxu3 %v8188_v2  ;;  %1433 = vmatpush.bf16.msrb.mxu2 %v8191_v1  ;;  %v8199_v2 = vld [vmem:[#allocation71_spill] sm:$0xff]  ;;  %v8202_v1 = vld [vmem:[#allocation74_spill] sm:$0xff] }
 0x148   :  { %1420 = vmatpush.bf16.msrb.mxu1 %v8190_v61  ;;  %v8201_v61 = vld [vmem:[#allocation73_spill] sm:$0xff] }
 0x14a   :  { %1408 = vmatpush.bf16.msrb.mxu0 %v8193_v8  ;;  %v8204_v8 = vld [vmem:[#allocation76_spill] sm:$0xff] }
 0x14b   :  { %1446 = vmatpush.bf16.msrb.mxu3 %v8192_v7  ;;  %1434 = vmatpush.bf16.msrb.mxu2 %v8195_v13  ;;  %v8203_v7 = vld [vmem:[#allocation75_spill] sm:$0xff] }
 0x14c   :  { %1421 = vmatpush.bf16.msrb.mxu1 %v8194_v9  ;;  %v8207_v9 = vld [vmem:[#allocation110_spill] sm:$0xff] }
 0x14e   :  { %1409 = vmatpush.bf16.msrb.mxu0 %v8197_v17 }
 0x14f   :  { %1447 = vmatpush.bf16.msrb.mxu3 %v8196_v38  ;;  %1435 = vmatpush.bf16.msrb.mxu2 %v8199_v2  ;;  %v569_v38 = vld [vmem:[%s7837_s6] sm:$0xf] }
 0x150   :  { %1422 = vmatpush.bf16.msrb.mxu1 %v8198_v3  ;;  %v6160_v13 = vperm.slane %v569_v38, 0  ;;  %v6162_v17 = vperm.slane %v569_v38, 1  ;;  %v6168_v5 = vperm.slane %v569_v38, 2 }
 0x152   :  { %1410 = vmatpush.bf16.msrb.mxu0 %v8201_v61  ;;  %8205 = vst [vmem:[#allocation142_spill] sm:$0xff] %v6160_v13 }
 0x153   :  { %1448 = vmatpush.bf16.msrb.mxu3 %v8200_v53  ;;  %1436 = vmatpush.bf16.msrb.mxu2 %v8203_v7  ;;  %8206 = vst [vmem:[#allocation143_spill] sm:$0xff] %v6162_v17 }
 0x154   :  { %1423 = vmatpush.bf16.msrb.mxu1 %v8202_v1  ;;  %8209 = vst [vmem:[#allocation110_spill] sm:$0xff] %v6168_v5 }
 0x157   :  { %1449 = vmatpush.bf16.msrb.mxu3 %v8204_v8 }
 0x1b1   :  { %v1240_v3 = vpop.f32.mrf.mxu0 }
 0x1b2   :  { %v1253_v2 = vpop.f32.mrf.mxu1  ;;  %v1241_v53 = vadd.f32 %v1240_v3, %v8207_v9 }
 0x1b3   :  { %v1254_v61 = vadd.f32 %v1253_v2, %v8208_v28 }
 0x1b4   :  { %v1283_v1 = vadd.f32 %v1241_v53, %v6160_v13 }
 0x1b5   :  { %v1284_v7 = vadd.f32 %v1254_v61, %v6162_v17  ;;  %v8212_v17 = vld [vmem:[#allocation121_spill] sm:$0xff] }
 0x1b6   :  { %v4995_v6 = vmul.f32 -1.442695, %v1283_v1 }
 0x1b7   :  { %v4996_v8 = vmul.f32 -1.442695, %v1284_v7 }
 0x1b8   :  { %5200 = vpow2.f32 %v4995_v6  ;;  %v1266_v43 = vpop.f32.mrf.mxu2  ;;  %v6172_v6 = vperm.slane %v569_v38, 3 }
 0x1b9   :  { %v1279_v36 = vpop.f32.mrf.mxu3  ;;  %5202 = vpow2.f32 %v4996_v8  ;;  %v1267_v44 = vadd.f32 %v1266_v43, %v8210_v58  ;;  %v1242_v0 = vpop.f32.mrf.mxu0 }
 0x1ba   :  { %v1255_v56 = vpop.f32.mrf.mxu1  ;;  %8211 = vst [vmem:[#allocation113_spill] sm:$0xff] %v6172_v6  ;;  %v1280_v8 = vadd.f32 %v1279_v36, %v8212_v17 }
 0x1bb   :  { %v1285_v9 = vadd.f32 %v1267_v44, %v6168_v5 }
 0x1bc   :  { %v1286_v56 = vadd.f32 %v1280_v8, %v6172_v6 }
 0x1bd   :  { %v4997_v3 = vmul.f32 -1.442695, %v1285_v9 }
 0x1be   :  { %v5201_v28 = vpop.eup %5200 }
 0x1bf   :  { %v5203_v2 = vpop.eup %5202  ;;  %v1296_v53 = vadd.f32 1.0, %v5201_v28  ;;  %5204 = vpow2.f32 %v4997_v3 }
 0x1c0   :  { %v1297_v61 = vadd.f32 1.0, %v5203_v2  ;;  %v1268_v1 = vpop.f32.mrf.mxu2 }
 0x1c1   :  { %v1281_v7 = vpop.f32.mrf.mxu3  ;;  %5206 = vrcp.f32 %v1296_v53  ;;  %v1310_v2 = vand.u32 2147483648, %v1296_v53  ;;  %v1308_v38 = vand.u32 2147483647, %v1296_v53  ;;  %vm1304_vm14 = vweird.f32 %v1296_v53 }
 0x1c2   :  { %5208 = vrcp.f32 %v1297_v61  ;;  %v1325_v1 = vand.u32 2147483648, %v1297_v61  ;;  %v1323_v36 = vand.u32 2147483647, %v1297_v61  ;;  %vm1319_vm15 = vweird.f32 %v1297_v61 }
 0x1c3   :  { %v1311_v6 = vor.u32 1.1754944e-38, %v1310_v2  ;;  %vm1309_vm1 = vcmp.eq.f32.partialorder %v1308_v38, 8.507059e+37  ;;  %v8219_v38 = vld [vmem:[#allocation117_spill] sm:$0xff] }
 0x1c4   :  { %v1326_v54 = vor.u32 1.1754944e-38, %v1325_v1  ;;  %vm1324_vm3 = vcmp.eq.f32.partialorder %v1323_v36, 8.507059e+37  ;;  %v8218_v1 = vld [vmem:[#allocation116_spill] sm:$0xff]  ;;  %v8220_v36 = vld [vmem:[#allocation118_spill] sm:$0xff] }
 0x1c5   :  { %v5205_v13 = vpop.eup %5204 }
 0x1c6   :  { %v1298_v58 = vadd.f32 1.0, %v5205_v13 }
 0x1c7   :  { %v5207_v0 = vpop.eup %5206 }
 0x1c8   :  { %v5209_v44 = vpop.eup %5208  ;;  %v1300_v43 = vmul.f32 %v5207_v0, %v1296_v53  ;;  %5210 = vrcp.f32 %v1298_v58  ;;  %vm1305_vm12 = vweird.f32 %v5207_v0  ;;  %vm1334_vm5 = vweird.f32 %v1298_v58 }
 0x1c9   :  { %v1315_v9 = vmul.f32 %v5209_v44, %v1297_v61  ;;  %5212 = vtanh.f32 %v1286_v56  ;;  %vm1320_vm13 = vweird.f32 %v5209_v44  ;;  %vm1306_vm0 = vmor %vm1304_vm14, %vm1305_vm12  ;;  %v1338_v61 = vand.u32 2147483647, %v1298_v58 }
 0x1ca   :  { %v1301_v28 = vsub.f32 1.0, %v1300_v43  ;;  %vm1321_vm2 = vmor %vm1319_vm15, %vm1320_vm13 }
 0x1cb   :  { %v1316_v3 = vsub.f32 1.0, %v1315_v9  ;;  %vm1339_vm7 = vcmp.eq.f32.partialorder %v1338_v61, 8.507059e+37  ;;  %v8231_v61 = vld [vmem:[#allocation132_spill] sm:$0xff] }
 0x1cc   :  { %v1302_v7 = vmul.f32 %v5207_v0, %v1301_v28 }
 0x1cd   :  { %v1317_v5 = vmul.f32 %v5209_v44, %v1316_v3 }
 0x1ce   :  { %v5211_v17 = vpop.eup %5210  ;;  %v1303_v13 = vadd.f32 %v5207_v0, %v1302_v7 }
 0x1cf   :  { %v1330_v8 = vmul.f32 %v5211_v17, %v1298_v58  ;;  %v1318_v55 = vadd.f32 %v5209_v44, %v1317_v5  ;;  %v5213_v56 = vpop.eup %5212  ;;  %vm1335_vm4 = vweird.f32 %v5211_v17  ;;  %v1340_v5 = vand.u32 2147483648, %v1298_v58  ;;  %v8217_v58 = vld [vmem:[#allocation115_spill] sm:$0xff] }
 0x1d0   :  { %v1307_v43 = vsel %vm1306_vm0, %v5207_v0, %v1303_v13  ;;  %vm1336_vm6 = vmor %vm1334_vm5, %vm1335_vm4  ;;  %v8222_v13 = vld [vmem:[#allocation122_spill] sm:$0xff] }
 0x1d1   :  { %v1331_v9 = vsub.f32 1.0, %v1330_v8  ;;  %v1312_v28 = vsel %vm1309_vm1, %v1311_v6, %v1307_v43  ;;  %v1322_v40 = vsel %vm1321_vm2, %v5209_v44, %v1318_v55  ;;  %v1341_v2 = vor.u32 1.1754944e-38, %v1340_v5  ;;  %v8223_v8 = vld [vmem:[#allocation123_spill] sm:$0xff]  ;;  %v8224_v43 = vld [vmem:[#allocation124_spill] sm:$0xff]  ;;  %v8230_v5 = vld [vmem:[#allocation130_spill] sm:$0xff] }
 0x1d2   :  { %v1327_v3 = vsel %vm1324_vm3, %v1326_v54, %v1322_v40  ;;  %v1346_v31 = vmul.f32 %v5213_v56, %v1312_v28  ;;  %v8216_v54 = vld [vmem:[#allocation114_spill] sm:$0xff]  ;;  %v8225_v56 = vld [vmem:[#allocation125_spill] sm:$0xff]  ;;  %v8227_v28 = vld [vmem:[#allocation127_spill] sm:$0xff] }
 0x1d3   :  { %v1345_v24 = vmul.f32 0.0, %v1327_v3  ;;  %v1332_v18 = vmul.f32 %v5211_v17, %v1331_v9  ;;  %v8226_v9 = vld [vmem:[#allocation126_spill] sm:$0xff]  ;;  %v8228_v3 = vld [vmem:[#allocation128_spill] sm:$0xff] }
 0x1d5   :  { %v6176_v7 = vadd.f32 %v1346_v31, %v1345_v24  ;;  %v1333_v53 = vadd.f32 %v5211_v17, %v1332_v18  ;;  %v8213_v24 = vld [vmem:[#allocation108_spill] sm:$0xff]  ;;  %v8214_v18 = vld [vmem:[#allocation111_spill] sm:$0xff] }
 0x1d6   :  { %v8215_v31 = vld [vmem:[#allocation112_spill] sm:$0xff] }
 0x1d7   :  { %5214 = vtanh.f32 %v6176_v7  ;;  %v1337_v0 = vsel %vm1336_vm6, %v5211_v17, %v1333_v53  ;;  %v8221_v17 = vld [vmem:[#allocation120_spill] sm:$0xff]  ;;  %v8229_v53 = vld [vmem:[#allocation129_spill] sm:$0xff] }
 0x1d8   :  { %v1342_v55 = vsel %vm1339_vm7, %v1341_v2, %v1337_v0  ;;  %v8232_v0 = vld [vmem:[#allocation133_spill] sm:$0xff]  ;;  %v8234_v2 = vld [vmem:[#allocation19_spill] sm:$0xff] }
 0x1dd   :  { %v5215_v6 = vpop.eup %5214 }
 0x1de   :  { %v1349_v44 = vmul.f32 %v5215_v6, %v1342_v55  ;;  %v8235_v6 = vld [vmem:[#allocation20_spill] sm:$0xff]  ;;  %v8236_v55 = vld [vmem:[#allocation22_spill] sm:$0xff] }
 0x1e0   :  { %v1350_v40 = vpack.c.bf16 %v1349_v44, %v1349_v44  ;;  %v8237_v44 = vld [vmem:[#allocation23_spill] sm:$0xff] }
 0x1e2   :  { %1359 = vmatmul.bf16.vlgmr.msra.gmra.mxu0 %v1350_v40  ;;  %1372 = vmatmul.bf16.vlgmr.msra.gmra.mxu1 %v1350_v40 }
 0x1e3   :  { %1385 = vmatmul.bf16.vlgmr.msra.gmra.mxu2 %v1350_v40  ;;  %1398 = vmatmul.bf16.vlgmr.msra.gmra.mxu3 %v1350_v40  ;;  %v8238_v40 = vld [vmem:[#allocation25_spill] sm:$0xff] }
 0x1e4   :  { %1523 = vmatpush.bf16.msra.mxu0 %v8213_v24  ;;  %1536 = vmatpush.bf16.msra.mxu1 %v8214_v18 }
 0x1e5   :  { %1549 = vmatpush.bf16.msra.mxu2 %v8215_v31  ;;  %1562 = vmatpush.bf16.msra.mxu3 %v8216_v54 }
 0x1e8   :  { %1524 = vmatpush.bf16.msra.mxu0 %v8217_v58  ;;  %1537 = vmatpush.bf16.msra.mxu1 %v8218_v1 }
 0x1e9   :  { %1550 = vmatpush.bf16.msra.mxu2 %v8219_v38  ;;  %1563 = vmatpush.bf16.msra.mxu3 %v8220_v36 }
 0x1ec   :  { %1525 = vmatpush.bf16.msra.mxu0 %v8221_v17  ;;  %1538 = vmatpush.bf16.msra.mxu1 %v8222_v13 }
 0x1ed   :  { %1551 = vmatpush.bf16.msra.mxu2 %v8223_v8  ;;  %1564 = vmatpush.bf16.msra.mxu3 %v8224_v43 }
 0x1f0   :  { %1526 = vmatpush.bf16.msra.mxu0 %v8225_v56  ;;  %1539 = vmatpush.bf16.msra.mxu1 %v8226_v9 }
 0x1f1   :  { %1552 = vmatpush.bf16.msra.mxu2 %v8227_v28  ;;  %1565 = vmatpush.bf16.msra.mxu3 %v6001_v62 }
 0x1f2   :  { %1411 = vmatmul.bf16.vlgmr.msrb.gmra.mxu0 %v6118_v60  ;;  %1424 = vmatmul.bf16.vlgmr.msrb.gmra.mxu1 %v6118_v60 }
 0x1f3   :  { %1437 = vmatmul.bf16.vlgmr.msrb.gmra.mxu2 %v6118_v60  ;;  %1450 = vmatmul.bf16.vlgmr.msrb.gmra.mxu3 %v6118_v60  ;;  %v8233_v60 = vld [vmem:[#allocation18_spill] sm:$0xff] }
 0x1f4   :  { %1527 = vmatpush.bf16.msra.mxu0 %v6008_v45  ;;  %1540 = vmatpush.bf16.msra.mxu1 %v6012_v14 }
 0x1f5   :  { %1553 = vmatpush.bf16.msra.mxu2 %v8228_v3  ;;  %1566 = vmatpush.bf16.msra.mxu3 %v8229_v53 }
 0x1f8   :  { %1528 = vmatpush.bf16.msra.mxu0 %v8230_v5  ;;  %1541 = vmatpush.bf16.msra.mxu1 %v6024_v42 }
 0x1f9   :  { %1554 = vmatpush.bf16.msra.mxu2 %v8231_v61  ;;  %1567 = vmatpush.bf16.msra.mxu3 %v8232_v0 }
 0x1fc   :  { %1529 = vmatpush.bf16.msra.mxu0 %v6035_v12  ;;  %1542 = vmatpush.bf16.msra.mxu1 %v6038_v35 }
 0x1fd   :  { %1555 = vmatpush.bf16.msra.mxu2 %v6040_v23  ;;  %1568 = vmatpush.bf16.msra.mxu3 %v6043_v15 }
 0x200   :  { %1530 = vmatpush.bf16.msra.mxu0 %v6047_v27  ;;  %1543 = vmatpush.bf16.msra.mxu1 %v6052_v48 }
 0x201   :  { %1556 = vmatpush.bf16.msra.mxu2 %v6057_v25  ;;  %1569 = vmatpush.bf16.msra.mxu3 %v6065_v19 }
 0x204   :  { %1643 = vmatpush.bf16.msrb.mxu0 %v5662_v37  ;;  %1656 = vmatpush.bf16.msrb.mxu1 %v5664_v41  ;;  %v8239_v41 = vld [vmem:[#allocation24_spill] sm:$0xff] }
 0x205   :  { %1669 = vmatpush.bf16.msrb.mxu2 %v5666_v47  ;;  %1682 = vmatpush.bf16.msrb.mxu3 %v5671_v51  ;;  %v8240_v47 = vld [vmem:[#allocation26_spill] sm:$0xff] }
 0x208   :  { %1644 = vmatpush.bf16.msrb.mxu0 %v5669_v49  ;;  %1657 = vmatpush.bf16.msrb.mxu1 %v8233_v60 }
 0x209   :  { %1670 = vmatpush.bf16.msrb.mxu2 %v8234_v2  ;;  %1683 = vmatpush.bf16.msrb.mxu3 %v5683_v63 }
 0x20c   :  { %1645 = vmatpush.bf16.msrb.mxu0 %v8235_v6  ;;  %1658 = vmatpush.bf16.msrb.mxu1 %v8236_v55 }
 0x20d   :  { %1671 = vmatpush.bf16.msrb.mxu2 %v8237_v44  ;;  %1684 = vmatpush.bf16.msrb.mxu3 %v8238_v40  ;;  %v8245_v40 = vld [vmem:[#allocation85_spill] sm:$0xff]  ;;  %v8246_v44 = vld [vmem:[#allocation80_spill] sm:$0xff] }
 0x20e   :  { %v427_v55 = vadd.f32 %v8246_v44, %v8245_v40 }
 0x210   :  { %1646 = vmatpush.bf16.msrb.mxu0 %v8239_v41  ;;  %1659 = vmatpush.bf16.msrb.mxu1 %v8240_v47 }
 0x211   :  { %1672 = vmatpush.bf16.msrb.mxu2 %v5704_v20  ;;  %1685 = vmatpush.bf16.msrb.mxu3 %v5710_v22 }
 0x214   :  { %1647 = vmatpush.bf16.msrb.mxu0 %v5708_v21  ;;  %1660 = vmatpush.bf16.msrb.mxu1 %v5713_v26 }
 0x215   :  { %1673 = vmatpush.bf16.msrb.mxu2 %v5716_v32  ;;  %1686 = vmatpush.bf16.msrb.mxu3 %v5720_v33  ;;  %v8244_v32 = vld [vmem:[#allocation78_spill] sm:$0xff] }
 0x218   :  { %1648 = vmatpush.bf16.msrb.mxu0 %v5722_v34  ;;  %1661 = vmatpush.bf16.msrb.mxu1 %v5725_v39  ;;  %v8241_v34 = vld [vmem:[#allocation79_spill] sm:$0xff] }
 0x219   :  { %1674 = vmatpush.bf16.msrb.mxu2 %v5728_v46  ;;  %1687 = vmatpush.bf16.msrb.mxu3 %v5732_v50 }
 0x21c   :  { %1649 = vmatpush.bf16.msrb.mxu0 %v5734_v52  ;;  %1662 = vmatpush.bf16.msrb.mxu1 %v5737_v57 }
 0x21d   :  { %1675 = vmatpush.bf16.msrb.mxu2 %v5740_v4  ;;  %1688 = vmatpush.bf16.msrb.mxu3 %v5744_v10  ;;  %v8242_v10 = vld [vmem:[#allocation77_spill] sm:$0xff] }
 0x21e   :  { %v369_v33 = vadd.f32 %v8242_v10, %v8241_v34 }
 0x220   :  { %1650 = vmatpush.bf16.msrb.mxu0 %v5746_v11  ;;  %1663 = vmatpush.bf16.msrb.mxu1 %v5749_v16  ;;  %v8243_v11 = vld [vmem:[#allocation81_spill] sm:$0xff] }
 0x221   :  { %1676 = vmatpush.bf16.msrb.mxu2 %v5759_v29  ;;  %1689 = vmatpush.bf16.msrb.mxu3 %v5763_v30  ;;  %v398_v16 = vadd.f32 %v8244_v32, %v8243_v11 }
 0x25f   :  { %v6247_v39 = vpop.f32.mrf.mxu0  ;;  %v6249_v46 = vpop.f32.mrf.mxu1 }
 0x266   :  { %v6251_v50 = vpop.f32.mrf.mxu2  ;;  %v6253_v52 = vpop.f32.mrf.mxu3 }
 0x267   :  { %v1362_v57 = vpop.f32.mrf.mxu0  ;;  %v1375_v4 = vpop.f32.mrf.mxu1 }
 0x26e   :  { %v1388_v26 = vpop.f32.mrf.mxu2  ;;  %v1401_v29 = vpop.f32.mrf.mxu3 }
 0x26f   :  { %v1412_v21 = vpop.f32.mrf.mxu0  ;;  %v1425_v30 = vpop.f32.mrf.mxu1 }
 0x270   :  { %v1455_v22 = vadd.f32 %v1412_v21, %v369_v33  ;;  %v1456_v20 = vadd.f32 %v1425_v30, %v398_v16  ;;  %v8248_v33 = vld [vmem:[#allocation82_spill] sm:$0xff] }
 0x272   :  { %v4998_v47 = vmul.f32 -1.442695, %v1455_v22  ;;  %v4999_v41 = vmul.f32 -1.442695, %v1456_v20  ;;  %v8247_v22 = vld [vmem:[#allocation86_spill] sm:$0xff] }
 0x273   :  { %v456_v16 = vadd.f32 %v8248_v33, %v8247_v22 }
 0x274   :  { %5216 = vpow2.f32 %v4998_v47 }
 0x275   :  { %5218 = vpow2.f32 %v4999_v41 }
 0x276   :  { %v1438_v57 = vpop.f32.mrf.mxu2  ;;  %v1451_v4 = vpop.f32.mrf.mxu3 }
 0x277   :  { %v1457_v6 = vadd.f32 %v1438_v57, %v427_v55  ;;  %v1414_v10 = vpop.f32.mrf.mxu0  ;;  %v1427_v34 = vpop.f32.mrf.mxu1  ;;  %v1458_v44 = vadd.f32 %v1451_v4, %v456_v16 }
 0x279   :  { %v5000_v63 = vmul.f32 -1.442695, %v1457_v6 }
 0x27a   :  { %v5217_v32 = vpop.eup %5216 }
 0x27b   :  { %v5219_v26 = vpop.eup %5218  ;;  %v1468_v29 = vadd.f32 1.0, %v5217_v32  ;;  %5220 = vpow2.f32 %v5000_v63 }
 0x27c   :  { %v1469_v11 = vadd.f32 1.0, %v5219_v26 }
 0x27d   :  { %5222 = vrcp.f32 %v1468_v29  ;;  %v1482_v32 = vand.u32 2147483648, %v1468_v29  ;;  %vm1476_vm10 = vweird.f32 %v1468_v29 }
 0x27e   :  { %5224 = vrcp.f32 %v1469_v11  ;;  %v1440_v21 = vpop.f32.mrf.mxu2  ;;  %v1453_v20 = vpop.f32.mrf.mxu3  ;;  %v1497_v63 = vand.u32 2147483648, %v1469_v11  ;;  %v1495_v40 = vand.u32 2147483647, %v1469_v11  ;;  %vm1491_vm11 = vweird.f32 %v1469_v11 }
 0x27f   :  { %v1480_v21 = vand.u32 2147483647, %v1468_v29 }
 0x280   :  { %vm1496_vm15 = vcmp.eq.f32.partialorder %v1495_v40, 8.507059e+37 }
 0x281   :  { %v5221_v47 = vpop.eup %5220  ;;  %vm1481_vm14 = vcmp.eq.f32.partialorder %v1480_v21, 8.507059e+37 }
 0x282   :  { %v1470_v41 = vadd.f32 1.0, %v5221_v47  ;;  %v1483_v47 = vor.u32 1.1754944e-38, %v1482_v32 }
 0x283   :  { %v5223_v30 = vpop.eup %5222 }
 0x284   :  { %v5225_v55 = vpop.eup %5224  ;;  %v1472_v57 = vmul.f32 %v5223_v30, %v1468_v29  ;;  %5226 = vrcp.f32 %v1470_v41  ;;  %vm1477_vm8 = vweird.f32 %v5223_v30  ;;  %v1512_v32 = vand.u32 2147483648, %v1470_v41 }
 0x285   :  { %v1487_v34 = vmul.f32 %v5225_v55, %v1469_v11  ;;  %5228 = vtanh.f32 %v1458_v44  ;;  %vm1492_vm9 = vweird.f32 %v5225_v55  ;;  %vm1478_vm12 = vmor %vm1476_vm10, %vm1477_vm8  ;;  %vm1506_vm1 = vweird.f32 %v1470_v41 }
 0x286   :  { %v1473_v6 = vsub.f32 1.0, %v1472_v57  ;;  %vm1493_vm13 = vmor %vm1491_vm11, %vm1492_vm9  ;;  %v1498_v57 = vor.u32 1.1754944e-38, %v1497_v63  ;;  %v1513_v21 = vor.u32 1.1754944e-38, %v1512_v32  ;;  %v8266_v32 = vld [vmem:[#allocation62_spill] sm:$0xff] }
 0x287   :  { %v1488_v10 = vsub.f32 1.0, %v1487_v34 }
 0x288   :  { %v1474_v26 = vmul.f32 %v5223_v30, %v1473_v6 }
 0x289   :  { %v1489_v20 = vmul.f32 %v5225_v55, %v1488_v10 }
 0x28a   :  { %v5227_v2 = vpop.eup %5226  ;;  %v1475_v33 = vadd.f32 %v5223_v30, %v1474_v26 }
 0x28b   :  { %v1502_v4 = vmul.f32 %v5227_v2, %v1470_v41  ;;  %v1490_v16 = vadd.f32 %v5225_v55, %v1489_v20  ;;  %v5229_v44 = vpop.eup %5228  ;;  %vm1507_vm0 = vweird.f32 %v5227_v2 }
 0x28c   :  { %v1479_v34 = vsel %vm1478_vm12, %v5223_v30, %v1475_v33  ;;  %v1510_v30 = vand.u32 2147483647, %v1470_v41  ;;  %vm1508_vm2 = vmor %vm1506_vm1, %vm1507_vm0  ;;  %v8254_v41 = vld [vmem:[#allocation50_spill] sm:$0xff]  ;;  %v8255_v33 = vld [vmem:[#allocation51_spill] sm:$0xff] }
 0x28d   :  { %v1503_v22 = vsub.f32 1.0, %v1502_v4  ;;  %v1484_v6 = vsel %vm1481_vm14, %v1483_v47, %v1479_v34  ;;  %v1494_v60 = vsel %vm1493_vm13, %v5225_v55, %v1490_v16  ;;  %v8256_v4 = vld [vmem:[#allocation52_spill] sm:$0xff]  ;;  %v8257_v47 = vld [vmem:[#allocation53_spill] sm:$0xff]  ;;  %v8258_v16 = vld [vmem:[#allocation54_spill] sm:$0xff] }
 0x28e   :  { %v1499_v10 = vsel %vm1496_vm15, %v1498_v57, %v1494_v60  ;;  %v1518_v49 = vmul.f32 %v5229_v44, %v1484_v6  ;;  %vm1511_vm3 = vcmp.eq.f32.partialorder %v1510_v30, 8.507059e+37  ;;  %v8259_v57 = vld [vmem:[#allocation55_spill] sm:$0xff]  ;;  %v8260_v34 = vld [vmem:[#allocation56_spill] sm:$0xff]  ;;  %v8261_v44 = vld [vmem:[#allocation57_spill] sm:$0xff] }
 0x28f   :  { %v1504_v51 = vmul.f32 %v5227_v2, %v1503_v22  ;;  %v1517_v26 = vmul.f32 %v1499_v10, %v6100_v59  ;;  %v8251_v59 = vld [vmem:[#allocation47_spill] sm:$0xff]  ;;  %v8253_v22 = vld [vmem:[#allocation49_spill] sm:$0xff]  ;;  %v8262_v6 = vld [vmem:[#allocation58_spill] sm:$0xff] }
 0x290   :  { %v8263_v10 = vld [vmem:[#allocation59_spill] sm:$0xff] }
 0x291   :  { %v6264_v29 = vadd.f32 %v1518_v49, %v1517_v26  ;;  %v1505_v11 = vadd.f32 %v5227_v2, %v1504_v51  ;;  %v8249_v49 = vld [vmem:[#allocation43_spill] sm:$0xff]  ;;  %v8250_v51 = vld [vmem:[#allocation44_spill] sm:$0xff] }
 0x292   :  { %v8264_v26 = vld [vmem:[#allocation60_spill] sm:$0xff]  ;;  %v8267_v30 = vld [vmem:[#allocation63_spill] sm:$0xff] }
 0x293   :  { %5230 = vtanh.f32 %v6264_v29  ;;  %v1509_v63 = vsel %vm1508_vm2, %v5227_v2, %v1505_v11  ;;  %v8252_v2 = vld [vmem:[#allocation48_spill] sm:$0xff]  ;;  %v8265_v11 = vld [vmem:[#allocation61_spill] sm:$0xff] }
 0x294   :  { %v1514_v40 = vsel %vm1511_vm3, %v1513_v21, %v1509_v63  ;;  %v8268_v63 = vld [vmem:[#allocation64_spill] sm:$0xff]  ;;  %v8269_v21 = vld [vmem:[#allocation65_spill] sm:$0xff] }
 0x299   :  { %v5231_v55 = vpop.eup %5230 }
 0x29a   :  { %v1521_v60 = vmul.f32 %v5231_v55, %v1514_v40  ;;  %v8270_v55 = vld [vmem:[#allocation66_spill] sm:$0xff]  ;;  %v8271_v40 = vld [vmem:[#allocation67_spill] sm:$0xff] }
 0x29c   :  { %v6267_v20 = vpack.c.bf16 %v1521_v60, %v1521_v60  ;;  %v8272_v60 = vld [vmem:[#allocation68_spill] sm:$0xff] }
 0x29e   :  { %1531 = vmatmul.bf16.vlgmr.msra.gmra.mxu0 %v6267_v20  ;;  %1544 = vmatmul.bf16.vlgmr.msra.gmra.mxu1 %v6267_v20 }
 0x29f   :  { %1557 = vmatmul.bf16.vlgmr.msra.gmra.mxu2 %v6267_v20  ;;  %1570 = vmatmul.bf16.vlgmr.msra.gmra.mxu3 %v6267_v20 }
 0x2a0   :  { %1695 = vmatpush.bf16.msra.mxu0 %v8249_v49  ;;  %1708 = vmatpush.bf16.msra.mxu1 %v8250_v51 }
 0x2a1   :  { %1721 = vmatpush.bf16.msra.mxu2 %v8251_v59  ;;  %1734 = vmatpush.bf16.msra.mxu3 %v8252_v2 }
 0x2a4   :  { %1696 = vmatpush.bf16.msra.mxu0 %v8253_v22  ;;  %1709 = vmatpush.bf16.msra.mxu1 %v8254_v41 }
 0x2a5   :  { %1722 = vmatpush.bf16.msra.mxu2 %v8255_v33  ;;  %1735 = vmatpush.bf16.msra.mxu3 %v8256_v4 }
 0x2a8   :  { %1697 = vmatpush.bf16.msra.mxu0 %v8257_v47  ;;  %1710 = vmatpush.bf16.msra.mxu1 %v8258_v16  ;;  %v8283_v47 = vld [vmem:[#allocation110_spill] sm:$0xff] }
 0x2a9   :  { %1723 = vmatpush.bf16.msra.mxu2 %v8259_v57  ;;  %1736 = vmatpush.bf16.msra.mxu3 %v8260_v34  ;;  %v8282_v34 = vld [vmem:[#allocation143_spill] sm:$0xff] }
 0x2ac   :  { %1698 = vmatpush.bf16.msra.mxu0 %v8261_v44  ;;  %1711 = vmatpush.bf16.msra.mxu1 %v8262_v6  ;;  %v8273_v6 = vld [vmem:[#allocation69_spill] sm:$0xff]  ;;  %v8281_v44 = vld [vmem:[#allocation142_spill] sm:$0xff] }
 0x2ad   :  { %1724 = vmatpush.bf16.msra.mxu2 %v8263_v10  ;;  %1737 = vmatpush.bf16.msra.mxu3 %v8264_v26  ;;  %v8274_v10 = vld [vmem:[#allocation70_spill] sm:$0xff]  ;;  %v8275_v26 = vld [vmem:[#allocation71_spill] sm:$0xff] }
 0x2b0   :  { %1699 = vmatpush.bf16.msra.mxu0 %v8265_v11  ;;  %1712 = vmatpush.bf16.msra.mxu1 %v8266_v32  ;;  %v8276_v11 = vld [vmem:[#allocation72_spill] sm:$0xff]  ;;  %v8277_v32 = vld [vmem:[#allocation73_spill] sm:$0xff] }
 0x2b1   :  { %1725 = vmatpush.bf16.msra.mxu2 %v8267_v30  ;;  %1738 = vmatpush.bf16.msra.mxu3 %v8268_v63  ;;  %v8278_v30 = vld [vmem:[#allocation74_spill] sm:$0xff]  ;;  %v8279_v63 = vld [vmem:[#allocation75_spill] sm:$0xff] }
 0x2b4   :  { %1700 = vmatpush.bf16.msra.mxu0 %v8269_v21  ;;  %1713 = vmatpush.bf16.msra.mxu1 %v8270_v55  ;;  %v8280_v21 = vld [vmem:[#allocation76_spill] sm:$0xff] }
 0x2b5   :  { %1726 = vmatpush.bf16.msra.mxu2 %v8271_v40  ;;  %1739 = vmatpush.bf16.msra.mxu3 %v8272_v60 }
 0x2b8   :  { %1701 = vmatpush.bf16.msra.mxu0 %v8273_v6  ;;  %1714 = vmatpush.bf16.msra.mxu1 %v8274_v10 }
 0x2b9   :  { %1727 = vmatpush.bf16.msra.mxu2 %v8275_v26  ;;  %1740 = vmatpush.bf16.msra.mxu3 %v8276_v11 }
 0x2bc   :  { %1702 = vmatpush.bf16.msra.mxu0 %v8277_v32  ;;  %1715 = vmatpush.bf16.msra.mxu1 %v8278_v30 }
 0x2bd   :  { %1728 = vmatpush.bf16.msra.mxu2 %v8279_v63  ;;  %1741 = vmatpush.bf16.msra.mxu3 %v8280_v21 }
 0x31b   :  { %v1532_v55 = vpop.f32.mrf.mxu0  ;;  %v1545_v40 = vpop.f32.mrf.mxu1 }
 0x31c   :  { %v1533_v60 = vadd.f32 %v1532_v55, %v6247_v39  ;;  %v1546_v6 = vadd.f32 %v1545_v40, %v6249_v46 }
 0x31e   :  { %v1575_v10 = vadd.f32 %v1533_v60, %v8281_v44  ;;  %v1576_v26 = vadd.f32 %v1546_v6, %v8282_v34 }
 0x320   :  { %v5001_v57 = vmul.f32 -1.442695, %v1575_v10  ;;  %v5002_v11 = vmul.f32 -1.442695, %v1576_v26 }
 0x322   :  { %5232 = vpow2.f32 %v5001_v57  ;;  %v1558_v32 = vpop.f32.mrf.mxu2  ;;  %v1571_v16 = vpop.f32.mrf.mxu3 }
 0x323   :  { %5234 = vpow2.f32 %v5002_v11  ;;  %v1559_v63 = vadd.f32 %v1558_v32, %v6251_v50  ;;  %v1534_v30 = vpop.f32.mrf.mxu0  ;;  %v1547_v21 = vpop.f32.mrf.mxu1  ;;  %v1572_v57 = vadd.f32 %v1571_v16, %v6253_v52  ;;  %v8284_v50 = vld [vmem:[#allocation113_spill] sm:$0xff] }
 0x325   :  { %v1577_v4 = vadd.f32 %v1559_v63, %v8283_v47  ;;  %v1578_v32 = vadd.f32 %v1572_v57, %v8284_v50 }
 0x327   :  { %v5003_v33 = vmul.f32 -1.442695, %v1577_v4 }
 0x328   :  { %v5233_v39 = vpop.eup %5232 }
 0x329   :  { %v5235_v55 = vpop.eup %5234  ;;  %v1588_v46 = vadd.f32 1.0, %v5233_v39  ;;  %5236 = vpow2.f32 %v5003_v33 }
 0x32a   :  { %v1589_v40 = vadd.f32 1.0, %v5235_v55  ;;  %v1560_v60 = vpop.f32.mrf.mxu2  ;;  %v1573_v6 = vpop.f32.mrf.mxu3 }
 0x32b   :  { %5238 = vrcp.f32 %v1588_v46  ;;  %v1602_v39 = vand.u32 2147483648, %v1588_v46  ;;  %v1600_v60 = vand.u32 2147483647, %v1588_v46  ;;  %vm1596_vm6 = vweird.f32 %v1588_v46 }
 0x32c   :  { %5240 = vrcp.f32 %v1589_v40  ;;  %v1617_v33 = vand.u32 2147483648, %v1589_v40  ;;  %v1615_v52 = vand.u32 2147483647, %v1589_v40  ;;  %vm1611_vm7 = vweird.f32 %v1589_v40 }
 0x32d   :  { %v1603_v50 = vor.u32 1.1754944e-38, %v1602_v39  ;;  %vm1601_vm10 = vcmp.eq.f32.partialorder %v1600_v60, 8.507059e+37 }
 0x32e   :  { %vm1616_vm11 = vcmp.eq.f32.partialorder %v1615_v52, 8.507059e+37  ;;  %v8292_v52 = vld [vmem:[#allocation20_spill] sm:$0xff] }
 0x32f   :  { %v5237_v10 = vpop.eup %5236 }
 0x330   :  { %v1590_v26 = vadd.f32 1.0, %v5237_v10 }
 0x331   :  { %v5239_v11 = vpop.eup %5238 }
 0x332   :  { %v5241_v30 = vpop.eup %5240  ;;  %v1592_v21 = vmul.f32 %v5239_v11, %v1588_v46  ;;  %5242 = vrcp.f32 %v1590_v26  ;;  %vm1597_vm4 = vweird.f32 %v5239_v11  ;;  %v1632_v39 = vand.u32 2147483648, %v1590_v26 }
 0x333   :  { %v1607_v4 = vmul.f32 %v5241_v30, %v1589_v40  ;;  %5244 = vtanh.f32 %v1578_v32  ;;  %vm1612_vm5 = vweird.f32 %v5241_v30  ;;  %vm1598_vm8 = vmor %vm1596_vm6, %vm1597_vm4  ;;  %vm1626_vm13 = vweird.f32 %v1590_v26 }
 0x334   :  { %v1593_v63 = vsub.f32 1.0, %v1592_v21  ;;  %vm1613_vm9 = vmor %vm1611_vm7, %vm1612_vm5  ;;  %v1618_v21 = vor.u32 1.1754944e-38, %v1617_v33  ;;  %v1633_v60 = vor.u32 1.1754944e-38, %v1632_v39  ;;  %v8303_v39 = vld [vmem:[#allocation32_spill] sm:$0xff] }
 0x335   :  { %v1608_v47 = vsub.f32 1.0, %v1607_v4 }
 0x336   :  { %v1594_v55 = vmul.f32 %v5239_v11, %v1593_v63 }
 0x337   :  { %v1609_v6 = vmul.f32 %v5241_v30, %v1608_v47 }
 0x338   :  { %v5243_v16 = vpop.eup %5242  ;;  %v1595_v10 = vadd.f32 %v5239_v11, %v1594_v55 }
 0x339   :  { %v1622_v57 = vmul.f32 %v5243_v16, %v1590_v26  ;;  %v1610_v34 = vadd.f32 %v5241_v30, %v1609_v6  ;;  %v5245_v32 = vpop.eup %5244  ;;  %vm1627_vm12 = vweird.f32 %v5243_v16  ;;  %v8291_v6 = vld [vmem:[#allocation21_spill] sm:$0xff] }
 0x33a   :  { %v1599_v4 = vsel %vm1598_vm8, %v5239_v11, %v1595_v10  ;;  %v1630_v11 = vand.u32 2147483647, %v1590_v26  ;;  %vm1628_vm14 = vmor %vm1626_vm13, %vm1627_vm12  ;;  %v8290_v26 = vld [vmem:[#allocation19_spill] sm:$0xff] }
 0x33b   :  { %v1623_v44 = vsub.f32 1.0, %v1622_v57  ;;  %v1604_v63 = vsel %vm1601_vm10, %v1603_v50, %v1599_v4  ;;  %v1614_v41 = vsel %vm1613_vm9, %v5241_v30, %v1610_v34  ;;  %v8294_v10 = vld [vmem:[#allocation23_spill] sm:$0xff]  ;;  %v8295_v57 = vld [vmem:[#allocation25_spill] sm:$0xff]  ;;  %v8297_v4 = vld [vmem:[#allocation26_spill] sm:$0xff] }
 0x33c   :  { %v1619_v47 = vsel %vm1616_vm11, %v1618_v21, %v1614_v41  ;;  %v1638_v22 = vmul.f32 %v5245_v32, %v1604_v63  ;;  %vm1631_vm15 = vcmp.eq.f32.partialorder %v1630_v11, 8.507059e+37  ;;  %v8296_v21 = vld [vmem:[#allocation24_spill] sm:$0xff]  ;;  %v8298_v32 = vld [vmem:[#allocation27_spill] sm:$0xff]  ;;  %v8299_v63 = vld [vmem:[#allocation29_spill] sm:$0xff] }
 0x33d   :  { %v1637_v2 = vmul.f32 %v1619_v47, %v6176_v7  ;;  %v1624_v55 = vmul.f32 %v5243_v16, %v1623_v44  ;;  %v8285_v7 = vld [vmem:[#allocation14_spill] sm:$0xff]  ;;  %v8300_v47 = vld [vmem:[#allocation28_spill] sm:$0xff]  ;;  %v8304_v11 = vld [vmem:[#allocation33_spill] sm:$0xff] }
 0x33e   :  { %v8289_v44 = vld [vmem:[#allocation18_spill] sm:$0xff] }
 0x33f   :  { %v6314_v46 = vadd.f32 %v1638_v22, %v1637_v2  ;;  %v1625_v40 = vadd.f32 %v5243_v16, %v1624_v55  ;;  %v8287_v2 = vld [vmem:[#allocation17_spill] sm:$0xff]  ;;  %v8288_v22 = vld [vmem:[#allocation16_spill] sm:$0xff]  ;;  %v8301_v55 = vld [vmem:[#allocation30_spill] sm:$0xff] }
 0x341   :  { %5246 = vtanh.f32 %v6314_v46  ;;  %v1629_v33 = vsel %vm1628_vm14, %v5243_v16, %v1625_v40  ;;  %v8293_v16 = vld [vmem:[#allocation22_spill] sm:$0xff]  ;;  %v8302_v40 = vld [vmem:[#allocation31_spill] sm:$0xff] }
 0x342   :  { %v1634_v50 = vsel %vm1631_vm15, %v1633_v60, %v1629_v33  ;;  %v8305_v33 = vld [vmem:[#allocation34_spill] sm:$0xff]  ;;  %v8306_v60 = vld [vmem:[#allocation35_spill] sm:$0xff] }
 0x347   :  { %v5247_v34 = vpop.eup %5246 }
 0x348   :  { %v1641_v41 = vmul.f32 %v5247_v34, %v1634_v50  ;;  %v8307_v34 = vld [vmem:[#allocation36_spill] sm:$0xff]  ;;  %v8308_v50 = vld [vmem:[#allocation37_spill] sm:$0xff] }
 0x34a   :  { %v1642_v30 = vpack.c.bf16 %v1641_v41, %v1641_v41  ;;  %v8309_v41 = vld [vmem:[#allocation38_spill] sm:$0xff] }
 0x34c   :  { %1651 = vmatmul.bf16.vlgmr.msrb.gmra.mxu0 %v1642_v30  ;;  %1664 = vmatmul.bf16.vlgmr.msrb.gmra.mxu1 %v1642_v30 }
 0x34d   :  { %1677 = vmatmul.bf16.vlgmr.msrb.gmra.mxu2 %v1642_v30  ;;  %1690 = vmatmul.bf16.vlgmr.msrb.gmra.mxu3 %v1642_v30  ;;  %v8310_v30 = vld [vmem:[#allocation39_spill] sm:$0xff] }
 0x34e   :  { %1815 = vmatpush.bf16.msrb.mxu0 %v8213_v24  ;;  %1828 = vmatpush.bf16.msrb.mxu1 %v8214_v18 }
 0x34f   :  { %1841 = vmatpush.bf16.msrb.mxu2 %v8215_v31  ;;  %1854 = vmatpush.bf16.msrb.mxu3 %v8216_v54 }
 0x352   :  { %1816 = vmatpush.bf16.msrb.mxu0 %v8217_v58  ;;  %1829 = vmatpush.bf16.msrb.mxu1 %v8218_v1 }
 0x353   :  { %1842 = vmatpush.bf16.msrb.mxu2 %v8219_v38  ;;  %1855 = vmatpush.bf16.msrb.mxu3 %v8220_v36 }
 0x356   :  { %1817 = vmatpush.bf16.msrb.mxu0 %v8221_v17  ;;  %1830 = vmatpush.bf16.msrb.mxu1 %v8222_v13 }
 0x357   :  { %1843 = vmatpush.bf16.msrb.mxu2 %v8223_v8  ;;  %1856 = vmatpush.bf16.msrb.mxu3 %v8224_v43 }
 0x35a   :  { %1818 = vmatpush.bf16.msrb.mxu0 %v8225_v56  ;;  %1831 = vmatpush.bf16.msrb.mxu1 %v8226_v9 }
 0x35b   :  { %1844 = vmatpush.bf16.msrb.mxu2 %v8227_v28  ;;  %1857 = vmatpush.bf16.msrb.mxu3 %v6001_v62 }
 0x35c   :  { %1703 = vmatmul.bf16.vlgmr.msra.gmra.mxu0 %v6267_v20  ;;  %1716 = vmatmul.bf16.vlgmr.msra.gmra.mxu1 %v6267_v20 }
 0x35d   :  { %1729 = vmatmul.bf16.vlgmr.msra.gmra.mxu2 %v6267_v20  ;;  %1742 = vmatmul.bf16.vlgmr.msra.gmra.mxu3 %v6267_v20  ;;  %v8286_v20 = vld [vmem:[#allocation15_spill] sm:$0xff] }
 0x35e   :  { %1819 = vmatpush.bf16.msrb.mxu0 %v6008_v45  ;;  %1832 = vmatpush.bf16.msrb.mxu1 %v6012_v14 }
 0x35f   :  { %1845 = vmatpush.bf16.msrb.mxu2 %v8228_v3  ;;  %1858 = vmatpush.bf16.msrb.mxu3 %v8229_v53 }
 0x362   :  { %1820 = vmatpush.bf16.msrb.mxu0 %v8230_v5  ;;  %1833 = vmatpush.bf16.msrb.mxu1 %v6024_v42 }
 0x363   :  { %1846 = vmatpush.bf16.msrb.mxu2 %v8231_v61  ;;  %1859 = vmatpush.bf16.msrb.mxu3 %v8232_v0 }
 0x366   :  { %1821 = vmatpush.bf16.msrb.mxu0 %v6035_v12  ;;  %1834 = vmatpush.bf16.msrb.mxu1 %v6038_v35 }
 0x367   :  { %1847 = vmatpush.bf16.msrb.mxu2 %v6040_v23  ;;  %1860 = vmatpush.bf16.msrb.mxu3 %v6043_v15 }
 0x36a   :  { %1822 = vmatpush.bf16.msrb.mxu0 %v6047_v27  ;;  %1835 = vmatpush.bf16.msrb.mxu1 %v6052_v48 }
 0x36b   :  { %1848 = vmatpush.bf16.msrb.mxu2 %v6057_v25  ;;  %1861 = vmatpush.bf16.msrb.mxu3 %v6065_v19 }
 0x36e   :  { %1935 = vmatpush.bf16.msra.mxu0 %v5662_v37  ;;  %1948 = vmatpush.bf16.msra.mxu1 %v8285_v7 }
 0x36f   :  { %1961 = vmatpush.bf16.msra.mxu2 %v8286_v20  ;;  %1974 = vmatpush.bf16.msra.mxu3 %v8287_v2 }
 0x372   :  { %1936 = vmatpush.bf16.msra.mxu0 %v8288_v22  ;;  %1949 = vmatpush.bf16.msra.mxu1 %v8289_v44 }
 0x373   :  { %1962 = vmatpush.bf16.msra.mxu2 %v8290_v26  ;;  %1975 = vmatpush.bf16.msra.mxu3 %v8291_v6 }
 0x376   :  { %1937 = vmatpush.bf16.msra.mxu0 %v8292_v52  ;;  %1950 = vmatpush.bf16.msra.mxu1 %v8293_v16  ;;  %v8318_v52 = vld [vmem:[#allocation87_spill] sm:$0xff] }
 0x377   :  { %1963 = vmatpush.bf16.msra.mxu2 %v8294_v10  ;;  %1976 = vmatpush.bf16.msra.mxu3 %v8295_v57 }
 0x37a   :  { %1938 = vmatpush.bf16.msra.mxu0 %v8296_v21  ;;  %1951 = vmatpush.bf16.msra.mxu1 %v8297_v4  ;;  %v8316_v4 = vld [vmem:[#allocation83_spill] sm:$0xff]  ;;  %v8317_v21 = vld [vmem:[#allocation84_spill] sm:$0xff] }
 0x37b   :  { %1964 = vmatpush.bf16.msra.mxu2 %v8298_v32  ;;  %1977 = vmatpush.bf16.msra.mxu3 %v8299_v63 }
 0x37e   :  { %1939 = vmatpush.bf16.msra.mxu0 %v8300_v47  ;;  %1952 = vmatpush.bf16.msra.mxu1 %v8301_v55  ;;  %v8311_v47 = vld [vmem:[#allocation40_spill] sm:$0xff]  ;;  %v8312_v55 = vld [vmem:[#allocation41_spill] sm:$0xff] }
 0x37f   :  { %1965 = vmatpush.bf16.msra.mxu2 %v8302_v40  ;;  %1978 = vmatpush.bf16.msra.mxu3 %v8303_v39  ;;  %v8313_v40 = vld [vmem:[#allocation42_spill] sm:$0xff]  ;;  %v8314_v39 = vld [vmem:[#allocation45_spill] sm:$0xff] }
 0x382   :  { %1940 = vmatpush.bf16.msra.mxu0 %v8304_v11  ;;  %1953 = vmatpush.bf16.msra.mxu1 %v8305_v33  ;;  %v8315_v11 = vld [vmem:[#allocation46_spill] sm:$0xff] }
 0x383   :  { %1966 = vmatpush.bf16.msra.mxu2 %v8306_v60  ;;  %1979 = vmatpush.bf16.msra.mxu3 %v8307_v34 }
 0x386   :  { %1941 = vmatpush.bf16.msra.mxu0 %v8308_v50  ;;  %1954 = vmatpush.bf16.msra.mxu1 %v8309_v41 }
 0x387   :  { %1967 = vmatpush.bf16.msra.mxu2 %v8310_v30  ;;  %1980 = vmatpush.bf16.msra.mxu3 %v8311_v47 }
 0x38a   :  { %1942 = vmatpush.bf16.msra.mxu0 %v8312_v55  ;;  %1955 = vmatpush.bf16.msra.mxu1 %v8313_v40 }
 0x38b   :  { %1968 = vmatpush.bf16.msra.mxu2 %v8314_v39  ;;  %1981 = vmatpush.bf16.msra.mxu3 %v8315_v11 }
 0x3c9   :  { %v6385_v33 = vpop.f32.mrf.mxu0  ;;  %v6387_v60 = vpop.f32.mrf.mxu1 }
 0x3d0   :  { %v6389_v34 = vpop.f32.mrf.mxu2  ;;  %v6391_v50 = vpop.f32.mrf.mxu3 }
 0x3d1   :  { %v1654_v41 = vpop.f32.mrf.mxu0  ;;  %v1667_v30 = vpop.f32.mrf.mxu1 }
 0x3d8   :  { %v1680_v63 = vpop.f32.mrf.mxu2  ;;  %v1693_v47 = vpop.f32.mrf.mxu3 }
 0x3d9   :  { %v1704_v32 = vpop.f32.mrf.mxu0  ;;  %v1717_v55 = vpop.f32.mrf.mxu1 }
 0x3da   :  { %v1747_v40 = vadd.f32 %v1704_v32, %v8316_v4  ;;  %v1748_v39 = vadd.f32 %v1717_v55, %v8317_v21 }
 0x3dc   :  { %v5004_v57 = vmul.f32 -1.442695, %v1747_v40  ;;  %v5005_v11 = vmul.f32 -1.442695, %v1748_v39  ;;  %v8319_v40 = vld [vmem:[#allocation89_spill] sm:$0xff] }
 0x3de   :  { %5248 = vpow2.f32 %v5004_v57 }
 0x3df   :  { %5250 = vpow2.f32 %v5005_v11 }
 0x3e0   :  { %v1730_v10 = vpop.f32.mrf.mxu2  ;;  %v1743_v16 = vpop.f32.mrf.mxu3 }
 0x3e1   :  { %v1749_v6 = vadd.f32 %v1730_v10, %v8318_v52  ;;  %v1706_v26 = vpop.f32.mrf.mxu0  ;;  %v1719_v44 = vpop.f32.mrf.mxu1  ;;  %v1750_v39 = vadd.f32 %v1743_v16, %v8319_v40 }
 0x3e3   :  { %v5006_v41 = vmul.f32 -1.442695, %v1749_v6 }
 0x3e4   :  { %v5249_v30 = vpop.eup %5248 }
 0x3e5   :  { %v5251_v63 = vpop.eup %5250  ;;  %v1760_v47 = vadd.f32 1.0, %v5249_v30  ;;  %5252 = vpow2.f32 %v5006_v41 }
 0x3e6   :  { %v1761_v22 = vadd.f32 1.0, %v5251_v63 }
 0x3e7   :  { %5254 = vrcp.f32 %v1760_v47  ;;  %v1774_v52 = vand.u32 2147483648, %v1760_v47  ;;  %v1772_v30 = vand.u32 2147483647, %v1760_v47  ;;  %vm1768_vm2 = vweird.f32 %v1760_v47 }
 0x3e8   :  { %5256 = vrcp.f32 %v1761_v22  ;;  %v1732_v4 = vpop.f32.mrf.mxu2  ;;  %v1745_v21 = vpop.f32.mrf.mxu3  ;;  %v1789_v10 = vand.u32 2147483648, %v1761_v22  ;;  %vm1783_vm3 = vweird.f32 %v1761_v22 }
 0x3e9   :  { %v1787_v4 = vand.u32 2147483647, %v1761_v22  ;;  %v1775_v40 = vor.u32 1.1754944e-38, %v1774_v52  ;;  %vm1773_vm6 = vcmp.eq.f32.partialorder %v1772_v30, 8.507059e+37 }
 0x3eb   :  { %v5253_v32 = vpop.eup %5252  ;;  %vm1788_vm7 = vcmp.eq.f32.partialorder %v1787_v4, 8.507059e+37  ;;  %v8325_v4 = vld [vmem:[#allocation53_spill] sm:$0xff] }
 0x3ec   :  { %v1762_v55 = vadd.f32 1.0, %v5253_v32 }
 0x3ed   :  { %v5255_v57 = vpop.eup %5254 }
 0x3ee   :  { %v5257_v11 = vpop.eup %5256  ;;  %v1764_v2 = vmul.f32 %v5255_v57, %v1760_v47  ;;  %5258 = vrcp.f32 %v1762_v55  ;;  %vm1769_vm0 = vweird.f32 %v5255_v57  ;;  %v1804_v52 = vand.u32 2147483648, %v1762_v55 }
 0x3ef   :  { %v1779_v26 = vmul.f32 %v5257_v11, %v1761_v22  ;;  %5260 = vtanh.f32 %v1750_v39  ;;  %vm1784_vm1 = vweird.f32 %v5257_v11  ;;  %vm1770_vm4 = vmor %vm1768_vm2, %vm1769_vm0  ;;  %vm1798_vm9 = vweird.f32 %v1762_v55 }
 0x3f0   :  { %v1765_v44 = vsub.f32 1.0, %v1764_v2  ;;  %vm1785_vm5 = vmor %vm1783_vm3, %vm1784_vm1  ;;  %v1790_v2 = vor.u32 1.1754944e-38, %v1789_v10  ;;  %v1805_v30 = vor.u32 1.1754944e-38, %v1804_v52  ;;  %v8337_v52 = vld [vmem:[#allocation65_spill] sm:$0xff] }
 0x3f1   :  { %v1780_v6 = vsub.f32 1.0, %v1779_v26 }
 0x3f2   :  { %v1766_v41 = vmul.f32 %v5255_v57, %v1765_v44 }
 0x3f3   :  { %v1781_v63 = vmul.f32 %v5257_v11, %v1780_v6 }
 0x3f4   :  { %v5259_v21 = vpop.eup %5258  ;;  %v1767_v32 = vadd.f32 %v5255_v57, %v1766_v41 }
 0x3f5   :  { %v1794_v16 = vmul.f32 %v5259_v21, %v1762_v55  ;;  %v1782_v20 = vadd.f32 %v5257_v11, %v1781_v63  ;;  %v5261_v39 = vpop.eup %5260  ;;  %vm1799_vm8 = vweird.f32 %v5259_v21 }
 0x3f6   :  { %v1771_v26 = vsel %vm1770_vm4, %v5255_v57, %v1767_v32  ;;  %v1802_v57 = vand.u32 2147483647, %v1762_v55  ;;  %vm1800_vm10 = vmor %vm1798_vm9, %vm1799_vm8  ;;  %v8324_v55 = vld [vmem:[#allocation52_spill] sm:$0xff]  ;;  %v8327_v32 = vld [vmem:[#allocation55_spill] sm:$0xff] }
 0x3f7   :  { %v1795_v7 = vsub.f32 1.0, %v1794_v16  ;;  %v1776_v44 = vsel %vm1773_vm6, %v1775_v40, %v1771_v26  ;;  %v1786_v37 = vsel %vm1785_vm5, %v5257_v11, %v1782_v20  ;;  %v8328_v16 = vld [vmem:[#allocation56_spill] sm:$0xff]  ;;  %v8329_v40 = vld [vmem:[#allocation57_spill] sm:$0xff]  ;;  %v8331_v26 = vld [vmem:[#allocation59_spill] sm:$0xff] }
 0x3f8   :  { %v1791_v6 = vsel %vm1788_vm7, %v1790_v2, %v1786_v37  ;;  %v1810_v19 = vmul.f32 %v5261_v39, %v1776_v44  ;;  %vm1803_vm11 = vcmp.eq.f32.partialorder %v1802_v57, 8.507059e+37  ;;  %v8330_v2 = vld [vmem:[#allocation58_spill] sm:$0xff]  ;;  %v8332_v39 = vld [vmem:[#allocation60_spill] sm:$0xff]  ;;  %v8333_v44 = vld [vmem:[#allocation61_spill] sm:$0xff] }
 0x3f9   :  { %v1796_v25 = vmul.f32 %v5259_v21, %v1795_v7  ;;  %v1809_v41 = vmul.f32 %v1791_v6, %v6264_v29  ;;  %v8322_v29 = vld [vmem:[#allocation50_spill] sm:$0xff]  ;;  %v8323_v7 = vld [vmem:[#allocation51_spill] sm:$0xff] }
 0x3fa   :  { %v8334_v6 = vld [vmem:[#allocation62_spill] sm:$0xff] }
 0x3fb   :  { %v6398_v47 = vadd.f32 %v1810_v19, %v1809_v41  ;;  %v1797_v22 = vadd.f32 %v5259_v21, %v1796_v25  ;;  %v8320_v25 = vld [vmem:[#allocation48_spill] sm:$0xff]  ;;  %v8321_v19 = vld [vmem:[#allocation49_spill] sm:$0xff]  ;;  %v8335_v41 = vld [vmem:[#allocation63_spill] sm:$0xff] }
 0x3fc   :  { %v8338_v57 = vld [vmem:[#allocation66_spill] sm:$0xff] }
 0x3fd   :  { %5262 = vtanh.f32 %v6398_v47  ;;  %v1801_v10 = vsel %vm1800_vm10, %v5259_v21, %v1797_v22  ;;  %v8326_v21 = vld [vmem:[#allocation54_spill] sm:$0xff]  ;;  %v8336_v22 = vld [vmem:[#allocation64_spill] sm:$0xff] }
 0x3fe   :  { %v1806_v11 = vsel %vm1803_vm11, %v1805_v30, %v1801_v10  ;;  %v8339_v10 = vld [vmem:[#allocation67_spill] sm:$0xff]  ;;  %v8340_v30 = vld [vmem:[#allocation68_spill] sm:$0xff] }
 0x403   :  { %v5263_v20 = vpop.eup %5262 }
 0x404   :  { %v1813_v37 = vmul.f32 %v5263_v20, %v1806_v11  ;;  %v8341_v20 = vld [vmem:[#allocation69_spill] sm:$0xff]  ;;  %v8342_v11 = vld [vmem:[#allocation70_spill] sm:$0xff] }
 0x406   :  { %v6401_v63 = vpack.c.bf16 %v1813_v37, %v1813_v37  ;;  %v8343_v37 = vld [vmem:[#allocation71_spill] sm:$0xff] }
 0x408   :  { %1823 = vmatmul.bf16.vlgmr.msrb.gmra.mxu0 %v6401_v63  ;;  %1836 = vmatmul.bf16.vlgmr.msrb.gmra.mxu1 %v6401_v63 }
 0x409   :  { %1849 = vmatmul.bf16.vlgmr.msrb.gmra.mxu2 %v6401_v63  ;;  %1862 = vmatmul.bf16.vlgmr.msrb.gmra.mxu3 %v6401_v63 }
 0x40a   :  { %1987 = vmatpush.bf16.msrb.mxu0 %v8249_v49  ;;  %2000 = vmatpush.bf16.msrb.mxu1 %v8250_v51 }
 0x40b   :  { %2013 = vmatpush.bf16.msrb.mxu2 %v8251_v59  ;;  %2026 = vmatpush.bf16.msrb.mxu3 %v8320_v25 }
 0x40e   :  { %1988 = vmatpush.bf16.msrb.mxu0 %v8321_v19  ;;  %2001 = vmatpush.bf16.msrb.mxu1 %v8322_v29 }
 0x40f   :  { %2014 = vmatpush.bf16.msrb.mxu2 %v8323_v7  ;;  %2027 = vmatpush.bf16.msrb.mxu3 %v8324_v55 }
 0x412   :  { %1989 = vmatpush.bf16.msrb.mxu0 %v8325_v4  ;;  %2002 = vmatpush.bf16.msrb.mxu1 %v8326_v21 }
 0x413   :  { %2015 = vmatpush.bf16.msrb.mxu2 %v8327_v32  ;;  %2028 = vmatpush.bf16.msrb.mxu3 %v8328_v16  ;;  %v8351_v16 = vld [vmem:[#allocation110_spill] sm:$0xff] }
 0x416   :  { %1990 = vmatpush.bf16.msrb.mxu0 %v8329_v40  ;;  %2003 = vmatpush.bf16.msrb.mxu1 %v8330_v2 }
 0x417   :  { %2016 = vmatpush.bf16.msrb.mxu2 %v8331_v26  ;;  %2029 = vmatpush.bf16.msrb.mxu3 %v8332_v39  ;;  %v8349_v39 = vld [vmem:[#allocation142_spill] sm:$0xff]  ;;  %v8350_v26 = vld [vmem:[#allocation143_spill] sm:$0xff] }
 0x41a   :  { %1991 = vmatpush.bf16.msrb.mxu0 %v8333_v44  ;;  %2004 = vmatpush.bf16.msrb.mxu1 %v8334_v6  ;;  %v8344_v44 = vld [vmem:[#allocation72_spill] sm:$0xff]  ;;  %v8345_v6 = vld [vmem:[#allocation73_spill] sm:$0xff] }
 0x41b   :  { %2017 = vmatpush.bf16.msrb.mxu2 %v8335_v41  ;;  %2030 = vmatpush.bf16.msrb.mxu3 %v8336_v22  ;;  %v8346_v41 = vld [vmem:[#allocation74_spill] sm:$0xff]  ;;  %v8347_v22 = vld [vmem:[#allocation75_spill] sm:$0xff] }
 0x41e   :  { %1992 = vmatpush.bf16.msrb.mxu0 %v8337_v52  ;;  %2005 = vmatpush.bf16.msrb.mxu1 %v8338_v57  ;;  %v8348_v52 = vld [vmem:[#allocation76_spill] sm:$0xff] }
 0x41f   :  { %2018 = vmatpush.bf16.msrb.mxu2 %v8339_v10  ;;  %2031 = vmatpush.bf16.msrb.mxu3 %v8340_v30 }
 0x422   :  { %1993 = vmatpush.bf16.msrb.mxu0 %v8341_v20  ;;  %2006 = vmatpush.bf16.msrb.mxu1 %v8342_v11 }
 0x423   :  { %2019 = vmatpush.bf16.msrb.mxu2 %v8343_v37  ;;  %2032 = vmatpush.bf16.msrb.mxu3 %v8344_v44 }
 0x426   :  { %1994 = vmatpush.bf16.msrb.mxu0 %v8345_v6  ;;  %2007 = vmatpush.bf16.msrb.mxu1 %v8346_v41 }
 0x427   :  { %2020 = vmatpush.bf16.msrb.mxu2 %v8347_v22  ;;  %2033 = vmatpush.bf16.msrb.mxu3 %v8348_v52 }
 0x485   :  { %v1824_v57 = vpop.f32.mrf.mxu0  ;;  %v1837_v10 = vpop.f32.mrf.mxu1 }
 0x486   :  { %v1825_v30 = vadd.f32 %v1824_v57, %v6385_v33  ;;  %v1838_v20 = vadd.f32 %v1837_v10, %v6387_v60 }
 0x488   :  { %v1867_v11 = vadd.f32 %v1825_v30, %v8349_v39  ;;  %v1868_v37 = vadd.f32 %v1838_v20, %v8350_v26 }
 0x48a   :  { %v5007_v2 = vmul.f32 -1.442695, %v1867_v11  ;;  %v5008_v44 = vmul.f32 -1.442695, %v1868_v37 }
 0x48c   :  { %5264 = vpow2.f32 %v5007_v2  ;;  %v1850_v6 = vpop.f32.mrf.mxu2  ;;  %v1863_v40 = vpop.f32.mrf.mxu3 }
 0x48d   :  { %5266 = vpow2.f32 %v5008_v44  ;;  %v1851_v22 = vadd.f32 %v1850_v6, %v6389_v34  ;;  %v1826_v41 = vpop.f32.mrf.mxu0  ;;  %v1839_v52 = vpop.f32.mrf.mxu1  ;;  %v1864_v2 = vadd.f32 %v1863_v40, %v6391_v50  ;;  %v8352_v34 = vld [vmem:[#allocation113_spill] sm:$0xff] }
 0x48f   :  { %v1869_v32 = vadd.f32 %v1851_v22, %v8351_v16  ;;  %v1870_v6 = vadd.f32 %v1864_v2, %v8352_v34 }
 0x491   :  { %v5009_v21 = vmul.f32 -1.442695, %v1869_v32 }
 0x492   :  { %v5265_v33 = vpop.eup %5264 }
 0x493   :  { %v5267_v57 = vpop.eup %5266  ;;  %v1880_v60 = vadd.f32 1.0, %v5265_v33  ;;  %5268 = vpow2.f32 %v5009_v21 }
 0x494   :  { %v1881_v10 = vadd.f32 1.0, %v5267_v57  ;;  %v1852_v30 = vpop.f32.mrf.mxu2  ;;  %v1865_v20 = vpop.f32.mrf.mxu3 }
 0x495   :  { %5270 = vrcp.f32 %v1880_v60  ;;  %v1894_v33 = vand.u32 2147483648, %v1880_v60  ;;  %v1892_v30 = vand.u32 2147483647, %v1880_v60  ;;  %vm1888_vm14 = vweird.f32 %v1880_v60 }
 0x496   :  { %5272 = vrcp.f32 %v1881_v10  ;;  %v1909_v21 = vand.u32 2147483648, %v1881_v10  ;;  %v1907_v50 = vand.u32 2147483647, %v1881_v10  ;;  %vm1903_vm15 = vweird.f32 %v1881_v10 }
 0x497   :  { %v1895_v34 = vor.u32 1.1754944e-38, %v1894_v33  ;;  %vm1893_vm2 = vcmp.eq.f32.partialorder %v1892_v30, 8.507059e+37 }
 0x498   :  { %vm1908_vm3 = vcmp.eq.f32.partialorder %v1907_v50, 8.507059e+37  ;;  %v8360_v50 = vld [vmem:[#allocation18_spill] sm:$0xff] }
 0x499   :  { %v5269_v11 = vpop.eup %5268 }
 0x49a   :  { %v1882_v44 = vadd.f32 1.0, %v5269_v11 }
 0x49b   :  { %v5271_v37 = vpop.eup %5270 }
 0x49c   :  { %v5273_v41 = vpop.eup %5272  ;;  %v1884_v52 = vmul.f32 %v5271_v37, %v1880_v60  ;;  %5274 = vrcp.f32 %v1882_v44  ;;  %vm1889_vm12 = vweird.f32 %v5271_v37  ;;  %v1924_v33 = vand.u32 2147483648, %v1882_v44 }
 0x49d   :  { %v1899_v32 = vmul.f32 %v5273_v41, %v1881_v10  ;;  %5276 = vtanh.f32 %v1870_v6  ;;  %vm1904_vm13 = vweird.f32 %v5273_v41  ;;  %vm1890_vm0 = vmor %vm1888_vm14, %vm1889_vm12  ;;  %vm1918_vm5 = vweird.f32 %v1882_v44 }
 0x49e   :  { %v1885_v22 = vsub.f32 1.0, %v1884_v52  ;;  %vm1905_vm1 = vmor %vm1903_vm15, %vm1904_vm13  ;;  %v1910_v52 = vor.u32 1.1754944e-38, %v1909_v21  ;;  %v1925_v30 = vor.u32 1.1754944e-38, %v1924_v33  ;;  %v8371_v33 = vld [vmem:[#allocation28_spill] sm:$0xff] }
 0x49f   :  { %v1900_v16 = vsub.f32 1.0, %v1899_v32 }
 0x4a0   :  { %v1886_v57 = vmul.f32 %v5271_v37, %v1885_v22 }
 0x4a1   :  { %v1901_v20 = vmul.f32 %v5273_v41, %v1900_v16 }
 0x4a2   :  { %v5275_v40 = vpop.eup %5274  ;;  %v1887_v11 = vadd.f32 %v5271_v37, %v1886_v57 }
 0x4a3   :  { %v1914_v2 = vmul.f32 %v5275_v40, %v1882_v44  ;;  %v1902_v26 = vadd.f32 %v5273_v41, %v1901_v20  ;;  %v5277_v6 = vpop.eup %5276  ;;  %vm1919_vm4 = vweird.f32 %v5275_v40  ;;  %v8359_v20 = vld [vmem:[#allocation16_spill] sm:$0xff] }
 0x4a4   :  { %v1891_v32 = vsel %vm1890_vm0, %v5271_v37, %v1887_v11  ;;  %v1922_v37 = vand.u32 2147483647, %v1882_v44  ;;  %vm1920_vm6 = vmor %vm1918_vm5, %vm1919_vm4  ;;  %v8358_v44 = vld [vmem:[#allocation17_spill] sm:$0xff] }
 0x4a5   :  { %v1915_v39 = vsub.f32 1.0, %v1914_v2  ;;  %v1896_v22 = vsel %vm1893_vm2, %v1895_v34, %v1891_v32  ;;  %v1906_v4 = vsel %vm1905_vm1, %v5273_v41, %v1902_v26  ;;  %v8362_v11 = vld [vmem:[#allocation21_spill] sm:$0xff]  ;;  %v8363_v2 = vld [vmem:[#allocation20_spill] sm:$0xff]  ;;  %v8365_v32 = vld [vmem:[#allocation23_spill] sm:$0xff] }
 0x4a6   :  { %v1911_v16 = vsel %vm1908_vm3, %v1910_v52, %v1906_v4  ;;  %v1930_v55 = vmul.f32 %v5277_v6, %v1896_v22  ;;  %vm1923_vm7 = vcmp.eq.f32.partialorder %v1922_v37, 8.507059e+37  ;;  %v8364_v52 = vld [vmem:[#allocation22_spill] sm:$0xff]  ;;  %v8366_v6 = vld [vmem:[#allocation25_spill] sm:$0xff]  ;;  %v8367_v22 = vld [vmem:[#allocation24_spill] sm:$0xff] }
 0x4a7   :  { %v1916_v7 = vmul.f32 %v5275_v40, %v1915_v39  ;;  %v1929_v57 = vmul.f32 %v1911_v16, %v6314_v46  ;;  %v8353_v46 = vld [vmem:[#allocation140_spill] sm:$0xff]  ;;  %v8357_v39 = vld [vmem:[#allocation15_spill] sm:$0xff]  ;;  %v8368_v16 = vld [vmem:[#allocation26_spill] sm:$0xff] }
 0x4a8   :  { %v8372_v37 = vld [vmem:[#allocation30_spill] sm:$0xff] }
 0x4a9   :  { %v6448_v60 = vadd.f32 %v1930_v55, %v1929_v57  ;;  %v1917_v10 = vadd.f32 %v5275_v40, %v1916_v7  ;;  %v8355_v7 = vld [vmem:[#allocation13_spill] sm:$0xff]  ;;  %v8356_v55 = vld [vmem:[#allocation14_spill] sm:$0xff]  ;;  %v8369_v57 = vld [vmem:[#allocation27_spill] sm:$0xff] }
 0x4ab   :  { %5278 = vtanh.f32 %v6448_v60  ;;  %v1921_v21 = vsel %vm1920_vm6, %v5275_v40, %v1917_v10  ;;  %v8361_v40 = vld [vmem:[#allocation19_spill] sm:$0xff]  ;;  %v8370_v10 = vld [vmem:[#allocation29_spill] sm:$0xff] }
 0x4ac   :  { %v1926_v34 = vsel %vm1923_vm7, %v1925_v30, %v1921_v21  ;;  %v8373_v21 = vld [vmem:[#allocation31_spill] sm:$0xff]  ;;  %v8374_v30 = vld [vmem:[#allocation32_spill] sm:$0xff] }
 0x4b1   :  { %v5279_v26 = vpop.eup %5278 }
 0x4b2   :  { %v1933_v4 = vmul.f32 %v5279_v26, %v1926_v34  ;;  %v8375_v26 = vld [vmem:[#allocation33_spill] sm:$0xff]  ;;  %v8376_v34 = vld [vmem:[#allocation34_spill] sm:$0xff] }
 0x4b4   :  { %v1934_v41 = vpack.c.bf16 %v1933_v4, %v1933_v4  ;;  %v8377_v4 = vld [vmem:[#allocation35_spill] sm:$0xff] }
 0x4b6   :  { %1943 = vmatmul.bf16.vlgmr.msra.gmra.mxu0 %v1934_v41  ;;  %1956 = vmatmul.bf16.vlgmr.msra.gmra.mxu1 %v1934_v41 }
 0x4b7   :  { %1969 = vmatmul.bf16.vlgmr.msra.gmra.mxu2 %v1934_v41  ;;  %1982 = vmatmul.bf16.vlgmr.msra.gmra.mxu3 %v1934_v41  ;;  %v8378_v41 = vld [vmem:[#allocation36_spill] sm:$0xff] }
 0x4b8   :  { %2107 = vmatpush.bf16.msra.mxu0 %v8213_v24  ;;  %2120 = vmatpush.bf16.msra.mxu1 %v8214_v18 }
 0x4b9   :  { %2133 = vmatpush.bf16.msra.mxu2 %v8215_v31  ;;  %2146 = vmatpush.bf16.msra.mxu3 %v8216_v54 }
 0x4bc   :  { %2108 = vmatpush.bf16.msra.mxu0 %v8217_v58  ;;  %2121 = vmatpush.bf16.msra.mxu1 %v8218_v1 }
 0x4bd   :  { %2134 = vmatpush.bf16.msra.mxu2 %v8219_v38  ;;  %2147 = vmatpush.bf16.msra.mxu3 %v8220_v36 }
 0x4c0   :  { %2109 = vmatpush.bf16.msra.mxu0 %v8221_v17  ;;  %2122 = vmatpush.bf16.msra.mxu1 %v8222_v13 }
 0x4c1   :  { %2135 = vmatpush.bf16.msra.mxu2 %v8223_v8  ;;  %2148 = vmatpush.bf16.msra.mxu3 %v8224_v43 }
 0x4c4   :  { %2110 = vmatpush.bf16.msra.mxu0 %v8225_v56  ;;  %2123 = vmatpush.bf16.msra.mxu1 %v8226_v9 }
 0x4c5   :  { %2136 = vmatpush.bf16.msra.mxu2 %v8227_v28  ;;  %2149 = vmatpush.bf16.msra.mxu3 %v6001_v62 }
 0x4c6   :  { %1995 = vmatmul.bf16.vlgmr.msrb.gmra.mxu0 %v6401_v63  ;;  %2008 = vmatmul.bf16.vlgmr.msrb.gmra.mxu1 %v6401_v63 }
 0x4c7   :  { %2021 = vmatmul.bf16.vlgmr.msrb.gmra.mxu2 %v6401_v63  ;;  %2034 = vmatmul.bf16.vlgmr.msrb.gmra.mxu3 %v6401_v63  ;;  %v8354_v63 = vld [vmem:[#allocation141_spill] sm:$0xff] }
 0x4c8   :  { %2111 = vmatpush.bf16.msra.mxu0 %v6008_v45  ;;  %2124 = vmatpush.bf16.msra.mxu1 %v6012_v14 }
 0x4c9   :  { %2137 = vmatpush.bf16.msra.mxu2 %v8228_v3  ;;  %2150 = vmatpush.bf16.msra.mxu3 %v8229_v53 }
 0x4cc   :  { %2112 = vmatpush.bf16.msra.mxu0 %v8230_v5  ;;  %2125 = vmatpush.bf16.msra.mxu1 %v6024_v42 }
 0x4cd   :  { %2138 = vmatpush.bf16.msra.mxu2 %v8231_v61  ;;  %2151 = vmatpush.bf16.msra.mxu3 %v8232_v0 }
 0x4d0   :  { %2113 = vmatpush.bf16.msra.mxu0 %v6035_v12  ;;  %2126 = vmatpush.bf16.msra.mxu1 %v6038_v35 }
 0x4d1   :  { %2139 = vmatpush.bf16.msra.mxu2 %v6040_v23  ;;  %2152 = vmatpush.bf16.msra.mxu3 %v6043_v15 }
 0x4d4   :  { %2114 = vmatpush.bf16.msra.mxu0 %v6047_v27  ;;  %2127 = vmatpush.bf16.msra.mxu1 %v6052_v48 }
 0x4d5   :  { %2140 = vmatpush.bf16.msra.mxu2 %v8353_v46  ;;  %2153 = vmatpush.bf16.msra.mxu3 %v8354_v63 }
 0x4d8   :  { %2227 = vmatpush.bf16.msrb.mxu0 %v8355_v7  ;;  %2240 = vmatpush.bf16.msrb.mxu1 %v8356_v55 }
 0x4d9   :  { %2253 = vmatpush.bf16.msrb.mxu2 %v8357_v39  ;;  %2266 = vmatpush.bf16.msrb.mxu3 %v8358_v44  ;;  %v8391_v44 = vld [vmem:[#allocation85_spill] sm:$0xff]  ;;  %v8392_v39 = vld [vmem:[#allocation91_spill] sm:$0xff] }
 0x4da   :  { %v432_v55 = vadd.f32 %v8392_v39, %v8391_v44 }
 0x4dc   :  { %2228 = vmatpush.bf16.msrb.mxu0 %v8359_v20  ;;  %2241 = vmatpush.bf16.msrb.mxu1 %v8360_v50 }
 0x4dd   :  { %2254 = vmatpush.bf16.msrb.mxu2 %v8361_v40  ;;  %2267 = vmatpush.bf16.msrb.mxu3 %v8362_v11 }
 0x4e0   :  { %2229 = vmatpush.bf16.msrb.mxu0 %v8363_v2  ;;  %2242 = vmatpush.bf16.msrb.mxu1 %v8364_v52 }
 0x4e1   :  { %2255 = vmatpush.bf16.msrb.mxu2 %v8365_v32  ;;  %2268 = vmatpush.bf16.msrb.mxu3 %v8366_v6  ;;  %v8390_v32 = vld [vmem:[#allocation90_spill] sm:$0xff] }
 0x4e4   :  { %2230 = vmatpush.bf16.msrb.mxu0 %v8367_v22  ;;  %2243 = vmatpush.bf16.msrb.mxu1 %v8368_v16  ;;  %v8379_v16 = vld [vmem:[#allocation37_spill] sm:$0xff]  ;;  %v8387_v22 = vld [vmem:[#allocation79_spill] sm:$0xff] }
 0x4e5   :  { %2256 = vmatpush.bf16.msrb.mxu2 %v8369_v57  ;;  %2269 = vmatpush.bf16.msrb.mxu3 %v8370_v10  ;;  %v8380_v57 = vld [vmem:[#allocation38_spill] sm:$0xff]  ;;  %v8381_v10 = vld [vmem:[#allocation39_spill] sm:$0xff] }
 0x4e8   :  { %2231 = vmatpush.bf16.msrb.mxu0 %v8371_v33  ;;  %2244 = vmatpush.bf16.msrb.mxu1 %v8372_v37  ;;  %v8382_v33 = vld [vmem:[#allocation40_spill] sm:$0xff]  ;;  %v8383_v37 = vld [vmem:[#allocation41_spill] sm:$0xff] }
 0x4e9   :  { %2257 = vmatpush.bf16.msrb.mxu2 %v8373_v21  ;;  %2270 = vmatpush.bf16.msrb.mxu3 %v8374_v30  ;;  %v8384_v21 = vld [vmem:[#allocation42_spill] sm:$0xff]  ;;  %v8385_v30 = vld [vmem:[#allocation45_spill] sm:$0xff] }
 0x4ec   :  { %2232 = vmatpush.bf16.msrb.mxu0 %v8375_v26  ;;  %2245 = vmatpush.bf16.msrb.mxu1 %v8376_v34  ;;  %v8386_v26 = vld [vmem:[#allocation46_spill] sm:$0xff] }
 0x4ed   :  { %2258 = vmatpush.bf16.msrb.mxu2 %v8377_v4  ;;  %2271 = vmatpush.bf16.msrb.mxu3 %v8378_v41 }
 0x4f0   :  { %2233 = vmatpush.bf16.msrb.mxu0 %v8379_v16  ;;  %2246 = vmatpush.bf16.msrb.mxu1 %v8380_v57 }
 0x4f1   :  { %2259 = vmatpush.bf16.msrb.mxu2 %v8381_v10  ;;  %2272 = vmatpush.bf16.msrb.mxu3 %v8382_v33  ;;  %v8388_v33 = vld [vmem:[#allocation88_spill] sm:$0xff] }
 0x4f2   :  { %v374_v6 = vadd.f32 %v8388_v33, %v8387_v22 }
 0x4f4   :  { %2234 = vmatpush.bf16.msrb.mxu0 %v8383_v37  ;;  %2247 = vmatpush.bf16.msrb.mxu1 %v8384_v21  ;;  %v8389_v37 = vld [vmem:[#allocation81_spill] sm:$0xff] }
 0x4f5   :  { %2260 = vmatpush.bf16.msrb.mxu2 %v8385_v30  ;;  %2273 = vmatpush.bf16.msrb.mxu3 %v8386_v26  ;;  %v403_v21 = vadd.f32 %v8390_v32, %v8389_v37 }
 0x533   :  { %v6519_v34 = vpop.f32.mrf.mxu0  ;;  %v6521_v4 = vpop.f32.mrf.mxu1 }
 0x53a   :  { %v6523_v41 = vpop.f32.mrf.mxu2  ;;  %v6525_v16 = vpop.f32.mrf.mxu3 }
 0x53b   :  { %v1946_v57 = vpop.f32.mrf.mxu0  ;;  %v1959_v10 = vpop.f32.mrf.mxu1 }
 0x542   :  { %v1972_v52 = vpop.f32.mrf.mxu2  ;;  %v1985_v30 = vpop.f32.mrf.mxu3 }
 0x543   :  { %v1996_v2 = vpop.f32.mrf.mxu0  ;;  %v2009_v26 = vpop.f32.mrf.mxu1 }
 0x544   :  { %v2039_v11 = vadd.f32 %v1996_v2, %v374_v6  ;;  %v2040_v40 = vadd.f32 %v2009_v26, %v403_v21  ;;  %v8393_v2 = vld [vmem:[#allocation86_spill] sm:$0xff]  ;;  %v8394_v6 = vld [vmem:[#allocation92_spill] sm:$0xff] }
 0x545   :  { %v461_v39 = vadd.f32 %v8394_v6, %v8393_v2 }
 0x546   :  { %v5010_v50 = vmul.f32 -1.442695, %v2039_v11  ;;  %v5011_v20 = vmul.f32 -1.442695, %v2040_v40 }
 0x548   :  { %5280 = vpow2.f32 %v5010_v50 }
 0x549   :  { %5282 = vpow2.f32 %v5011_v20 }
 0x54a   :  { %v2022_v57 = vpop.f32.mrf.mxu2  ;;  %v2035_v10 = vpop.f32.mrf.mxu3 }
 0x54b   :  { %v2041_v7 = vadd.f32 %v2022_v57, %v432_v55  ;;  %v1998_v33 = vpop.f32.mrf.mxu0  ;;  %v2011_v22 = vpop.f32.mrf.mxu1  ;;  %v2042_v26 = vadd.f32 %v2035_v10, %v461_v39 }
 0x54d   :  { %v5012_v63 = vmul.f32 -1.442695, %v2041_v7 }
 0x54e   :  { %v5281_v32 = vpop.eup %5280 }
 0x54f   :  { %v5283_v52 = vpop.eup %5282  ;;  %v2052_v30 = vadd.f32 1.0, %v5281_v32  ;;  %5284 = vpow2.f32 %v5012_v63 }
 0x550   :  { %v2053_v37 = vadd.f32 1.0, %v5283_v52 }
 0x551   :  { %5286 = vrcp.f32 %v2052_v30  ;;  %v2066_v32 = vand.u32 2147483648, %v2052_v30  ;;  %vm2060_vm10 = vweird.f32 %v2052_v30 }
 0x552   :  { %5288 = vrcp.f32 %v2053_v37  ;;  %v2024_v11 = vpop.f32.mrf.mxu2  ;;  %v2037_v40 = vpop.f32.mrf.mxu3  ;;  %v2081_v63 = vand.u32 2147483648, %v2053_v37  ;;  %v2079_v44 = vand.u32 2147483647, %v2053_v37  ;;  %vm2075_vm11 = vweird.f32 %v2053_v37 }
 0x553   :  { %v2064_v11 = vand.u32 2147483647, %v2052_v30 }
 0x554   :  { %vm2080_vm15 = vcmp.eq.f32.partialorder %v2079_v44, 8.507059e+37 }
 0x555   :  { %v5285_v50 = vpop.eup %5284  ;;  %vm2065_vm14 = vcmp.eq.f32.partialorder %v2064_v11, 8.507059e+37 }
 0x556   :  { %v2054_v20 = vadd.f32 1.0, %v5285_v50  ;;  %v2067_v50 = vor.u32 1.1754944e-38, %v2066_v32 }
 0x557   :  { %v5287_v21 = vpop.eup %5286 }
 0x558   :  { %v5289_v55 = vpop.eup %5288  ;;  %v2056_v57 = vmul.f32 %v5287_v21, %v2052_v30  ;;  %5290 = vrcp.f32 %v2054_v20  ;;  %vm2061_vm8 = vweird.f32 %v5287_v21  ;;  %v2096_v32 = vand.u32 2147483648, %v2054_v20 }
 0x559   :  { %v2071_v7 = vmul.f32 %v5289_v55, %v2053_v37  ;;  %5292 = vtanh.f32 %v2042_v26  ;;  %vm2076_vm9 = vweird.f32 %v5289_v55  ;;  %vm2062_vm12 = vmor %vm2060_vm10, %vm2061_vm8  ;;  %vm2090_vm1 = vweird.f32 %v2054_v20 }
 0x55a   :  { %v2057_v22 = vsub.f32 1.0, %v2056_v57  ;;  %vm2077_vm13 = vmor %vm2075_vm11, %vm2076_vm9  ;;  %v2082_v57 = vor.u32 1.1754944e-38, %v2081_v63  ;;  %v2097_v11 = vor.u32 1.1754944e-38, %v2096_v32  ;;  %v8412_v32 = vld [vmem:[#allocation68_spill] sm:$0xff] }
 0x55b   :  { %v2072_v33 = vsub.f32 1.0, %v2071_v7 }
 0x55c   :  { %v2058_v52 = vmul.f32 %v5287_v21, %v2057_v22 }
 0x55d   :  { %v2073_v40 = vmul.f32 %v5289_v55, %v2072_v33 }
 0x55e   :  { %v5291_v46 = vpop.eup %5290  ;;  %v2059_v6 = vadd.f32 %v5287_v21, %v2058_v52 }
 0x55f   :  { %v2086_v10 = vmul.f32 %v5291_v46, %v2054_v20  ;;  %v2074_v39 = vadd.f32 %v5289_v55, %v2073_v40  ;;  %v5293_v26 = vpop.eup %5292  ;;  %vm2091_vm0 = vweird.f32 %v5291_v46 }
 0x560   :  { %v2063_v7 = vsel %vm2062_vm12, %v5287_v21, %v2059_v6  ;;  %v2094_v21 = vand.u32 2147483647, %v2054_v20  ;;  %vm2092_vm2 = vmor %vm2090_vm1, %vm2091_vm0  ;;  %v8400_v20 = vld [vmem:[#allocation56_spill] sm:$0xff]  ;;  %v8401_v6 = vld [vmem:[#allocation57_spill] sm:$0xff] }
 0x561   :  { %v2087_v2 = vsub.f32 1.0, %v2086_v10  ;;  %v2068_v22 = vsel %vm2065_vm14, %v2067_v50, %v2063_v7  ;;  %v2078_v48 = vsel %vm2077_vm13, %v5289_v55, %v2074_v39  ;;  %v8402_v10 = vld [vmem:[#allocation58_spill] sm:$0xff]  ;;  %v8403_v50 = vld [vmem:[#allocation59_spill] sm:$0xff]  ;;  %v8404_v39 = vld [vmem:[#allocation60_spill] sm:$0xff] }
 0x562   :  { %v2083_v33 = vsel %vm2080_vm15, %v2082_v57, %v2078_v48  ;;  %v2102_v27 = vmul.f32 %v5293_v26, %v2068_v22  ;;  %vm2095_vm3 = vcmp.eq.f32.partialorder %v2094_v21, 8.507059e+37  ;;  %v8405_v57 = vld [vmem:[#allocation61_spill] sm:$0xff]  ;;  %v8406_v7 = vld [vmem:[#allocation62_spill] sm:$0xff]  ;;  %v8407_v26 = vld [vmem:[#allocation63_spill] sm:$0xff] }
 0x563   :  { %v2088_v15 = vmul.f32 %v5291_v46, %v2087_v2  ;;  %v2101_v52 = vmul.f32 %v2083_v33, %v6398_v47  ;;  %v8397_v47 = vld [vmem:[#allocation53_spill] sm:$0xff]  ;;  %v8399_v2 = vld [vmem:[#allocation55_spill] sm:$0xff]  ;;  %v8408_v22 = vld [vmem:[#allocation64_spill] sm:$0xff] }
 0x564   :  { %v8409_v33 = vld [vmem:[#allocation65_spill] sm:$0xff] }
 0x565   :  { %v6536_v30 = vadd.f32 %v2102_v27, %v2101_v52  ;;  %v2089_v37 = vadd.f32 %v5291_v46, %v2088_v15  ;;  %v8395_v15 = vld [vmem:[#allocation51_spill] sm:$0xff]  ;;  %v8396_v27 = vld [vmem:[#allocation52_spill] sm:$0xff]  ;;  %v8410_v52 = vld [vmem:[#allocation66_spill] sm:$0xff] }
 0x566   :  { %v8413_v21 = vld [vmem:[#allocation69_spill] sm:$0xff] }
 0x567   :  { %5294 = vtanh.f32 %v6536_v30  ;;  %v2093_v63 = vsel %vm2092_vm2, %v5291_v46, %v2089_v37  ;;  %v8398_v46 = vld [vmem:[#allocation54_spill] sm:$0xff]  ;;  %v8411_v37 = vld [vmem:[#allocation67_spill] sm:$0xff] }
 0x568   :  { %v2098_v44 = vsel %vm2095_vm3, %v2097_v11, %v2093_v63  ;;  %v8414_v63 = vld [vmem:[#allocation70_spill] sm:$0xff]  ;;  %v8415_v11 = vld [vmem:[#allocation71_spill] sm:$0xff] }
 0x56d   :  { %v5295_v55 = vpop.eup %5294 }
 0x56e   :  { %v2105_v48 = vmul.f32 %v5295_v55, %v2098_v44  ;;  %v8416_v55 = vld [vmem:[#allocation72_spill] sm:$0xff]  ;;  %v8417_v44 = vld [vmem:[#allocation73_spill] sm:$0xff] }
 0x570   :  { %v6539_v40 = vpack.c.bf16 %v2105_v48, %v2105_v48  ;;  %v8418_v48 = vld [vmem:[#allocation74_spill] sm:$0xff] }
 0x572   :  { %2115 = vmatmul.bf16.vlgmr.msra.gmra.mxu0 %v6539_v40  ;;  %2128 = vmatmul.bf16.vlgmr.msra.gmra.mxu1 %v6539_v40 }
 0x573   :  { %2141 = vmatmul.bf16.vlgmr.msra.gmra.mxu2 %v6539_v40  ;;  %2154 = vmatmul.bf16.vlgmr.msra.gmra.mxu3 %v6539_v40 }
 0x574   :  { %2279 = vmatpush.bf16.msra.mxu0 %v8249_v49  ;;  %2292 = vmatpush.bf16.msra.mxu1 %v8250_v51 }
 0x575   :  { %2305 = vmatpush.bf16.msra.mxu2 %v8251_v59  ;;  %2318 = vmatpush.bf16.msra.mxu3 %v8320_v25 }
 0x578   :  { %2280 = vmatpush.bf16.msra.mxu0 %v8321_v19  ;;  %2293 = vmatpush.bf16.msra.mxu1 %v8322_v29 }
 0x579   :  { %2306 = vmatpush.bf16.msra.mxu2 %v8395_v15  ;;  %2319 = vmatpush.bf16.msra.mxu3 %v8396_v27 }
 0x57c   :  { %2281 = vmatpush.bf16.msra.mxu0 %v8397_v47  ;;  %2294 = vmatpush.bf16.msra.mxu1 %v8398_v46 }
 0x57d   :  { %2307 = vmatpush.bf16.msra.mxu2 %v8399_v2  ;;  %2320 = vmatpush.bf16.msra.mxu3 %v8400_v20 }
 0x580   :  { %2282 = vmatpush.bf16.msra.mxu0 %v8401_v6  ;;  %2295 = vmatpush.bf16.msra.mxu1 %v8402_v10 }
 0x581   :  { %2308 = vmatpush.bf16.msra.mxu2 %v8403_v50  ;;  %2321 = vmatpush.bf16.msra.mxu3 %v8404_v39  ;;  %v8423_v50 = vld [vmem:[#allocation110_spill] sm:$0xff] }
 0x584   :  { %2283 = vmatpush.bf16.msra.mxu0 %v8405_v57  ;;  %2296 = vmatpush.bf16.msra.mxu1 %v8406_v7  ;;  %v8422_v7 = vld [vmem:[#allocation143_spill] sm:$0xff] }
 0x585   :  { %2309 = vmatpush.bf16.msra.mxu2 %v8407_v26  ;;  %2322 = vmatpush.bf16.msra.mxu3 %v8408_v22  ;;  %v8419_v22 = vld [vmem:[#allocation75_spill] sm:$0xff]  ;;  %v8421_v26 = vld [vmem:[#allocation142_spill] sm:$0xff] }
 0x588   :  { %2284 = vmatpush.bf16.msra.mxu0 %v8409_v33  ;;  %2297 = vmatpush.bf16.msra.mxu1 %v8410_v52  ;;  %v8420_v33 = vld [vmem:[#allocation76_spill] sm:$0xff] }
 0x589   :  { %2310 = vmatpush.bf16.msra.mxu2 %v8411_v37  ;;  %2323 = vmatpush.bf16.msra.mxu3 %v8412_v32 }
 0x58c   :  { %2285 = vmatpush.bf16.msra.mxu0 %v8413_v21  ;;  %2298 = vmatpush.bf16.msra.mxu1 %v8414_v63 }
 0x58d   :  { %2311 = vmatpush.bf16.msra.mxu2 %v8415_v11  ;;  %2324 = vmatpush.bf16.msra.mxu3 %v8416_v55 }
 0x590   :  { %2286 = vmatpush.bf16.msra.mxu0 %v8417_v44  ;;  %2299 = vmatpush.bf16.msra.mxu1 %v8418_v48 }
 0x591   :  { %2312 = vmatpush.bf16.msra.mxu2 %v8419_v22  ;;  %2325 = vmatpush.bf16.msra.mxu3 %v8420_v33 }
 0x5ef   :  { %v2116_v52 = vpop.f32.mrf.mxu0  ;;  %v2129_v37 = vpop.f32.mrf.mxu1 }
 0x5f0   :  { %v2117_v32 = vadd.f32 %v2116_v52, %v6519_v34  ;;  %v2130_v21 = vadd.f32 %v2129_v37, %v6521_v4 }
 0x5f2   :  { %v2159_v63 = vadd.f32 %v2117_v32, %v8421_v26  ;;  %v2160_v11 = vadd.f32 %v2130_v21, %v8422_v7 }
 0x5f4   :  { %v5013_v57 = vmul.f32 -1.442695, %v2159_v63  ;;  %v5014_v55 = vmul.f32 -1.442695, %v2160_v11 }
 0x5f6   :  { %5296 = vpow2.f32 %v5013_v57  ;;  %v2142_v44 = vpop.f32.mrf.mxu2  ;;  %v2155_v39 = vpop.f32.mrf.mxu3 }
 0x5f7   :  { %5298 = vpow2.f32 %v5014_v55  ;;  %v2143_v22 = vadd.f32 %v2142_v44, %v6523_v41  ;;  %v2118_v48 = vpop.f32.mrf.mxu0  ;;  %v2131_v33 = vpop.f32.mrf.mxu1  ;;  %v2156_v57 = vadd.f32 %v2155_v39, %v6525_v16  ;;  %v8424_v41 = vld [vmem:[#allocation113_spill] sm:$0xff] }
 0x5f9   :  { %v2161_v10 = vadd.f32 %v2143_v22, %v8423_v50  ;;  %v2162_v44 = vadd.f32 %v2156_v57, %v8424_v41 }
 0x5fb   :  { %v5015_v6 = vmul.f32 -1.442695, %v2161_v10 }
 0x5fc   :  { %v5297_v34 = vpop.eup %5296 }
 0x5fd   :  { %v5299_v52 = vpop.eup %5298  ;;  %v2172_v4 = vadd.f32 1.0, %v5297_v34  ;;  %5300 = vpow2.f32 %v5015_v6 }
 0x5fe   :  { %v2173_v37 = vadd.f32 1.0, %v5299_v52  ;;  %v2144_v32 = vpop.f32.mrf.mxu2  ;;  %v2157_v21 = vpop.f32.mrf.mxu3 }
 0x5ff   :  { %5302 = vrcp.f32 %v2172_v4  ;;  %v2186_v34 = vand.u32 2147483648, %v2172_v4  ;;  %v2184_v32 = vand.u32 2147483647, %v2172_v4  ;;  %vm2180_vm6 = vweird.f32 %v2172_v4 }
 0x600   :  { %5304 = vrcp.f32 %v2173_v37  ;;  %v2201_v52 = vand.u32 2147483648, %v2173_v37  ;;  %v2199_v16 = vand.u32 2147483647, %v2173_v37  ;;  %vm2195_vm7 = vweird.f32 %v2173_v37 }
 0x601   :  { %v2187_v41 = vor.u32 1.1754944e-38, %v2186_v34  ;;  %vm2185_vm10 = vcmp.eq.f32.partialorder %v2184_v32, 8.507059e+37 }
 0x602   :  { %vm2200_vm11 = vcmp.eq.f32.partialorder %v2199_v16, 8.507059e+37  ;;  %v8432_v16 = vld [vmem:[#allocation15_spill] sm:$0xff] }
 0x603   :  { %v5301_v63 = vpop.eup %5300 }
 0x604   :  { %v2174_v11 = vadd.f32 1.0, %v5301_v63 }
 0x605   :  { %v5303_v55 = vpop.eup %5302 }
 0x606   :  { %v5305_v33 = vpop.eup %5304  ;;  %v2176_v48 = vmul.f32 %v5303_v55, %v2172_v4  ;;  %5306 = vrcp.f32 %v2174_v11  ;;  %vm2181_vm4 = vweird.f32 %v5303_v55  ;;  %v2216_v34 = vand.u32 2147483648, %v2174_v11 }
 0x607   :  { %v2191_v10 = vmul.f32 %v5305_v33, %v2173_v37  ;;  %5308 = vtanh.f32 %v2162_v44  ;;  %vm2196_vm5 = vweird.f32 %v5305_v33  ;;  %vm2182_vm8 = vmor %vm2180_vm6, %vm2181_vm4  ;;  %vm2210_vm13 = vweird.f32 %v2174_v11 }
 0x608   :  { %v2177_v22 = vsub.f32 1.0, %v2176_v48  ;;  %vm2197_vm9 = vmor %vm2195_vm7, %vm2196_vm5  ;;  %v2202_v48 = vor.u32 1.1754944e-38, %v2201_v52  ;;  %v2217_v32 = vor.u32 1.1754944e-38, %v2216_v34  ;;  %v8443_v34 = vld [vmem:[#allocation26_spill] sm:$0xff] }
 0x609   :  { %v2192_v50 = vsub.f32 1.0, %v2191_v10 }
 0x60a   :  { %v2178_v6 = vmul.f32 %v5303_v55, %v2177_v22 }
 0x60b   :  { %v2193_v21 = vmul.f32 %v5305_v33, %v2192_v50 }
 0x60c   :  { %v5307_v39 = vpop.eup %5306  ;;  %v2179_v63 = vadd.f32 %v5303_v55, %v2178_v6 }
 0x60d   :  { %v2194_v7 = vadd.f32 %v5305_v33, %v2193_v21  ;;  %v2206_v57 = vmul.f32 %v5307_v39, %v2174_v11  ;;  %v5309_v44 = vpop.eup %5308  ;;  %vm2211_vm12 = vweird.f32 %v5307_v39  ;;  %v8431_v21 = vld [vmem:[#allocation14_spill] sm:$0xff] }
 0x60e   :  { %v2183_v10 = vsel %vm2182_vm8, %v5303_v55, %v2179_v63  ;;  %v2214_v55 = vand.u32 2147483647, %v2174_v11  ;;  %vm2212_vm14 = vmor %vm2210_vm13, %vm2211_vm12  ;;  %v8429_v11 = vld [vmem:[#allocation141_spill] sm:$0xff]  ;;  %v8434_v63 = vld [vmem:[#allocation16_spill] sm:$0xff] }
 0x60f   :  { %v2207_v22 = vsub.f32 1.0, %v2206_v57  ;;  %v2188_v26 = vsel %vm2185_vm10, %v2187_v41, %v2183_v10  ;;  %v2198_v20 = vsel %vm2197_vm9, %v5305_v33, %v2194_v7  ;;  %v8430_v33 = vld [vmem:[#allocation13_spill] sm:$0xff]  ;;  %v8435_v57 = vld [vmem:[#allocation18_spill] sm:$0xff] }
 0x610   :  { %v2203_v50 = vsel %vm2200_vm11, %v2202_v48, %v2198_v20  ;;  %v2222_v2 = vmul.f32 %v5309_v44, %v2188_v26  ;;  %vm2215_vm15 = vcmp.eq.f32.partialorder %v2214_v55, 8.507059e+37  ;;  %v8436_v48 = vld [vmem:[#allocation19_spill] sm:$0xff]  ;;  %v8437_v10 = vld [vmem:[#allocation21_spill] sm:$0xff]  ;;  %v8438_v44 = vld [vmem:[#allocation20_spill] sm:$0xff] }
 0x611   :  { %v2208_v46 = vmul.f32 %v5307_v39, %v2207_v22  ;;  %v2221_v6 = vmul.f32 %v2203_v50, %v6448_v60  ;;  %v8425_v60 = vld [vmem:[#allocation137_spill] sm:$0xff]  ;;  %v8439_v22 = vld [vmem:[#allocation22_spill] sm:$0xff]  ;;  %v8440_v50 = vld [vmem:[#allocation23_spill] sm:$0xff] }
 0x612   :  { %v8444_v55 = vld [vmem:[#allocation27_spill] sm:$0xff] }
 0x613   :  { %v6586_v4 = vadd.f32 %v2222_v2, %v2221_v6  ;;  %v2209_v37 = vadd.f32 %v5307_v39, %v2208_v46  ;;  %v8427_v46 = vld [vmem:[#allocation139_spill] sm:$0xff]  ;;  %v8428_v2 = vld [vmem:[#allocation140_spill] sm:$0xff]  ;;  %v8441_v6 = vld [vmem:[#allocation25_spill] sm:$0xff] }
 0x615   :  { %5310 = vtanh.f32 %v6586_v4  ;;  %v2213_v52 = vsel %vm2212_vm14, %v5307_v39, %v2209_v37  ;;  %v8433_v39 = vld [vmem:[#allocation17_spill] sm:$0xff]  ;;  %v8442_v37 = vld [vmem:[#allocation24_spill] sm:$0xff] }
 0x616   :  { %v2218_v7 = vsel %vm2215_vm15, %v2217_v32, %v2213_v52  ;;  %v8445_v52 = vld [vmem:[#allocation29_spill] sm:$0xff]  ;;  %v8446_v32 = vld [vmem:[#allocation28_spill] sm:$0xff] }
 0x61b   :  { %v5311_v41 = vpop.eup %5310 }
 0x61c   :  { %v2225_v20 = vmul.f32 %v5311_v41, %v2218_v7  ;;  %v8447_v41 = vld [vmem:[#allocation30_spill] sm:$0xff]  ;;  %v8448_v7 = vld [vmem:[#allocation31_spill] sm:$0xff] }
 0x61e   :  { %v2226_v26 = vpack.c.bf16 %v2225_v20, %v2225_v20  ;;  %v8449_v20 = vld [vmem:[#allocation32_spill] sm:$0xff] }
 0x620   :  { %2235 = vmatmul.bf16.vlgmr.msrb.gmra.mxu0 %v2226_v26  ;;  %2248 = vmatmul.bf16.vlgmr.msrb.gmra.mxu1 %v2226_v26 }
 0x621   :  { %2261 = vmatmul.bf16.vlgmr.msrb.gmra.mxu2 %v2226_v26  ;;  %2274 = vmatmul.bf16.vlgmr.msrb.gmra.mxu3 %v2226_v26  ;;  %v8450_v26 = vld [vmem:[#allocation33_spill] sm:$0xff] }
 0x622   :  { %2399 = vmatpush.bf16.msrb.mxu0 %v8213_v24  ;;  %2412 = vmatpush.bf16.msrb.mxu1 %v8214_v18 }
 0x623   :  { %2425 = vmatpush.bf16.msrb.mxu2 %v8215_v31  ;;  %2438 = vmatpush.bf16.msrb.mxu3 %v8216_v54 }
 0x626   :  { %2400 = vmatpush.bf16.msrb.mxu0 %v8217_v58  ;;  %2413 = vmatpush.bf16.msrb.mxu1 %v8218_v1 }
 0x627   :  { %2426 = vmatpush.bf16.msrb.mxu2 %v8219_v38  ;;  %2439 = vmatpush.bf16.msrb.mxu3 %v8220_v36 }
 0x62a   :  { %2401 = vmatpush.bf16.msrb.mxu0 %v8221_v17  ;;  %2414 = vmatpush.bf16.msrb.mxu1 %v8222_v13 }
 0x62b   :  { %2427 = vmatpush.bf16.msrb.mxu2 %v8223_v8  ;;  %2440 = vmatpush.bf16.msrb.mxu3 %v8224_v43 }
 0x62e   :  { %2402 = vmatpush.bf16.msrb.mxu0 %v8225_v56  ;;  %2415 = vmatpush.bf16.msrb.mxu1 %v8226_v9 }
 0x62f   :  { %2428 = vmatpush.bf16.msrb.mxu2 %v8227_v28  ;;  %2441 = vmatpush.bf16.msrb.mxu3 %v6001_v62 }
 0x630   :  { %2287 = vmatmul.bf16.vlgmr.msra.gmra.mxu0 %v6539_v40  ;;  %2300 = vmatmul.bf16.vlgmr.msra.gmra.mxu1 %v6539_v40 }
 0x631   :  { %2313 = vmatmul.bf16.vlgmr.msra.gmra.mxu2 %v6539_v40  ;;  %2326 = vmatmul.bf16.vlgmr.msra.gmra.mxu3 %v6539_v40  ;;  %v8426_v40 = vld [vmem:[#allocation138_spill] sm:$0xff] }
 0x632   :  { %2403 = vmatpush.bf16.msrb.mxu0 %v6008_v45  ;;  %2416 = vmatpush.bf16.msrb.mxu1 %v6012_v14 }
 0x633   :  { %2429 = vmatpush.bf16.msrb.mxu2 %v8228_v3  ;;  %2442 = vmatpush.bf16.msrb.mxu3 %v8229_v53 }
 0x636   :  { %2404 = vmatpush.bf16.msrb.mxu0 %v8230_v5  ;;  %2417 = vmatpush.bf16.msrb.mxu1 %v6024_v42 }
 0x637   :  { %2430 = vmatpush.bf16.msrb.mxu2 %v8231_v61  ;;  %2443 = vmatpush.bf16.msrb.mxu3 %v8232_v0 }
 0x63a   :  { %2405 = vmatpush.bf16.msrb.mxu0 %v6035_v12  ;;  %2418 = vmatpush.bf16.msrb.mxu1 %v6038_v35 }
 0x63b   :  { %2431 = vmatpush.bf16.msrb.mxu2 %v6040_v23  ;;  %2444 = vmatpush.bf16.msrb.mxu3 %v8425_v60 }
 0x63e   :  { %2406 = vmatpush.bf16.msrb.mxu0 %v8426_v40  ;;  %2419 = vmatpush.bf16.msrb.mxu1 %v8427_v46 }
 0x63f   :  { %2432 = vmatpush.bf16.msrb.mxu2 %v8428_v2  ;;  %2445 = vmatpush.bf16.msrb.mxu3 %v8429_v11 }
 0x642   :  { %2519 = vmatpush.bf16.msra.mxu0 %v8430_v33  ;;  %2532 = vmatpush.bf16.msra.mxu1 %v8431_v21 }
 0x643   :  { %2545 = vmatpush.bf16.msra.mxu2 %v8432_v16  ;;  %2558 = vmatpush.bf16.msra.mxu3 %v8433_v39  ;;  %v8464_v16 = vld [vmem:[#allocation95_spill] sm:$0xff] }
 0x646   :  { %2520 = vmatpush.bf16.msra.mxu0 %v8434_v63  ;;  %2533 = vmatpush.bf16.msra.mxu1 %v8435_v57 }
 0x647   :  { %2546 = vmatpush.bf16.msra.mxu2 %v8436_v48  ;;  %2559 = vmatpush.bf16.msra.mxu3 %v8437_v10  ;;  %v8462_v10 = vld [vmem:[#allocation93_spill] sm:$0xff]  ;;  %v8463_v48 = vld [vmem:[#allocation94_spill] sm:$0xff] }
 0x64a   :  { %2521 = vmatpush.bf16.msra.mxu0 %v8438_v44  ;;  %2534 = vmatpush.bf16.msra.mxu1 %v8439_v22 }
 0x64b   :  { %2547 = vmatpush.bf16.msra.mxu2 %v8440_v50  ;;  %2560 = vmatpush.bf16.msra.mxu3 %v8441_v6  ;;  %v8451_v50 = vld [vmem:[#allocation34_spill] sm:$0xff]  ;;  %v8452_v6 = vld [vmem:[#allocation35_spill] sm:$0xff] }
 0x64e   :  { %2522 = vmatpush.bf16.msra.mxu0 %v8442_v37  ;;  %2535 = vmatpush.bf16.msra.mxu1 %v8443_v34  ;;  %v8453_v37 = vld [vmem:[#allocation36_spill] sm:$0xff]  ;;  %v8454_v34 = vld [vmem:[#allocation37_spill] sm:$0xff] }
 0x64f   :  { %2548 = vmatpush.bf16.msra.mxu2 %v8444_v55  ;;  %2561 = vmatpush.bf16.msra.mxu3 %v8445_v52  ;;  %v8455_v55 = vld [vmem:[#allocation38_spill] sm:$0xff]  ;;  %v8456_v52 = vld [vmem:[#allocation39_spill] sm:$0xff] }
 0x652   :  { %2523 = vmatpush.bf16.msra.mxu0 %v8446_v32  ;;  %2536 = vmatpush.bf16.msra.mxu1 %v8447_v41  ;;  %v8457_v32 = vld [vmem:[#allocation40_spill] sm:$0xff]  ;;  %v8458_v41 = vld [vmem:[#allocation41_spill] sm:$0xff] }
 0x653   :  { %2549 = vmatpush.bf16.msra.mxu2 %v8448_v7  ;;  %2562 = vmatpush.bf16.msra.mxu3 %v8449_v20  ;;  %v8459_v7 = vld [vmem:[#allocation42_spill] sm:$0xff]  ;;  %v8460_v20 = vld [vmem:[#allocation45_spill] sm:$0xff] }
 0x656   :  { %2524 = vmatpush.bf16.msra.mxu0 %v8450_v26  ;;  %2537 = vmatpush.bf16.msra.mxu1 %v8451_v50  ;;  %v8461_v26 = vld [vmem:[#allocation46_spill] sm:$0xff] }
 0x657   :  { %2550 = vmatpush.bf16.msra.mxu2 %v8452_v6  ;;  %2563 = vmatpush.bf16.msra.mxu3 %v8453_v37 }
 0x65a   :  { %2525 = vmatpush.bf16.msra.mxu0 %v8454_v34  ;;  %2538 = vmatpush.bf16.msra.mxu1 %v8455_v55 }
 0x65b   :  { %2551 = vmatpush.bf16.msra.mxu2 %v8456_v52  ;;  %2564 = vmatpush.bf16.msra.mxu3 %v8457_v32 }
 0x65e   :  { %2526 = vmatpush.bf16.msra.mxu0 %v8458_v41  ;;  %2539 = vmatpush.bf16.msra.mxu1 %v8459_v7 }
 0x65f   :  { %2552 = vmatpush.bf16.msra.mxu2 %v8460_v20  ;;  %2565 = vmatpush.bf16.msra.mxu3 %v8461_v26 }
 0x69d   :  { %v6657_v50 = vpop.f32.mrf.mxu0  ;;  %v6659_v6 = vpop.f32.mrf.mxu1 }
 0x6a4   :  { %v6661_v37 = vpop.f32.mrf.mxu2  ;;  %v6663_v34 = vpop.f32.mrf.mxu3 }
 0x6a5   :  { %v2238_v55 = vpop.f32.mrf.mxu0  ;;  %v2251_v52 = vpop.f32.mrf.mxu1 }
 0x6ac   :  { %v2264_v22 = vpop.f32.mrf.mxu2  ;;  %v2277_v32 = vpop.f32.mrf.mxu3 }
 0x6ad   :  { %v2288_v44 = vpop.f32.mrf.mxu0  ;;  %v2301_v41 = vpop.f32.mrf.mxu1 }
 0x6ae   :  { %v2331_v7 = vadd.f32 %v2288_v44, %v8462_v10  ;;  %v2332_v20 = vadd.f32 %v2301_v41, %v8463_v48 }
 0x6b0   :  { %v5016_v57 = vmul.f32 -1.442695, %v2331_v7  ;;  %v5017_v26 = vmul.f32 -1.442695, %v2332_v20  ;;  %v8465_v7 = vld [vmem:[#allocation97_spill] sm:$0xff] }
 0x6b2   :  { %5312 = vpow2.f32 %v5016_v57 }
 0x6b3   :  { %5314 = vpow2.f32 %v5017_v26 }
 0x6b4   :  { %v2314_v63 = vpop.f32.mrf.mxu2  ;;  %v2327_v39 = vpop.f32.mrf.mxu3 }
 0x6b5   :  { %v2333_v21 = vadd.f32 %v2314_v63, %v8464_v16  ;;  %v2290_v33 = vpop.f32.mrf.mxu0  ;;  %v2303_v11 = vpop.f32.mrf.mxu1  ;;  %v2334_v20 = vadd.f32 %v2327_v39, %v8465_v7 }
 0x6b7   :  { %v5018_v55 = vmul.f32 -1.442695, %v2333_v21 }
 0x6b8   :  { %v5313_v52 = vpop.eup %5312 }
 0x6b9   :  { %v5315_v22 = vpop.eup %5314  ;;  %v2344_v32 = vadd.f32 1.0, %v5313_v52  ;;  %5316 = vpow2.f32 %v5018_v55 }
 0x6ba   :  { %v2345_v2 = vadd.f32 1.0, %v5315_v22 }
 0x6bb   :  { %5318 = vrcp.f32 %v2344_v32  ;;  %v2358_v16 = vand.u32 2147483648, %v2344_v32  ;;  %v2356_v52 = vand.u32 2147483647, %v2344_v32  ;;  %vm2352_vm2 = vweird.f32 %v2344_v32 }
 0x6bc   :  { %5320 = vrcp.f32 %v2345_v2  ;;  %v2316_v10 = vpop.f32.mrf.mxu2  ;;  %v2329_v48 = vpop.f32.mrf.mxu3  ;;  %v2373_v63 = vand.u32 2147483648, %v2345_v2  ;;  %vm2367_vm3 = vweird.f32 %v2345_v2 }
 0x6bd   :  { %v2371_v10 = vand.u32 2147483647, %v2345_v2  ;;  %v2359_v7 = vor.u32 1.1754944e-38, %v2358_v16  ;;  %vm2357_vm6 = vcmp.eq.f32.partialorder %v2356_v52, 8.507059e+37 }
 0x6bf   :  { %v5317_v44 = vpop.eup %5316  ;;  %vm2372_vm7 = vcmp.eq.f32.partialorder %v2371_v10, 8.507059e+37  ;;  %v8471_v10 = vld [vmem:[#allocation59_spill] sm:$0xff] }
 0x6c0   :  { %v2346_v41 = vadd.f32 1.0, %v5317_v44 }
 0x6c1   :  { %v5319_v57 = vpop.eup %5318 }
 0x6c2   :  { %v5321_v26 = vpop.eup %5320  ;;  %v2348_v46 = vmul.f32 %v5319_v57, %v2344_v32  ;;  %5322 = vrcp.f32 %v2346_v41  ;;  %vm2353_vm0 = vweird.f32 %v5319_v57  ;;  %v2388_v16 = vand.u32 2147483648, %v2346_v41 }
 0x6c3   :  { %v2363_v33 = vmul.f32 %v5321_v26, %v2345_v2  ;;  %5324 = vtanh.f32 %v2334_v20  ;;  %vm2368_vm1 = vweird.f32 %v5321_v26  ;;  %vm2354_vm4 = vmor %vm2352_vm2, %vm2353_vm0  ;;  %vm2382_vm9 = vweird.f32 %v2346_v41 }
 0x6c4   :  { %v2349_v11 = vsub.f32 1.0, %v2348_v46  ;;  %vm2369_vm5 = vmor %vm2367_vm3, %vm2368_vm1  ;;  %v2374_v46 = vor.u32 1.1754944e-38, %v2373_v63  ;;  %v2389_v52 = vor.u32 1.1754944e-38, %v2388_v16  ;;  %v8483_v16 = vld [vmem:[#allocation71_spill] sm:$0xff] }
 0x6c5   :  { %v2364_v21 = vsub.f32 1.0, %v2363_v33 }
 0x6c6   :  { %v2350_v55 = vmul.f32 %v5319_v57, %v2349_v11 }
 0x6c7   :  { %v2365_v22 = vmul.f32 %v5321_v26, %v2364_v21 }
 0x6c8   :  { %v5323_v48 = vpop.eup %5322  ;;  %v2351_v44 = vadd.f32 %v5319_v57, %v2350_v55 }
 0x6c9   :  { %v2378_v39 = vmul.f32 %v5323_v48, %v2346_v41  ;;  %v2366_v40 = vadd.f32 %v5321_v26, %v2365_v22  ;;  %v5325_v20 = vpop.eup %5324  ;;  %vm2383_vm8 = vweird.f32 %v5323_v48 }
 0x6ca   :  { %v2355_v33 = vsel %vm2354_vm4, %v5319_v57, %v2351_v44  ;;  %v2386_v57 = vand.u32 2147483647, %v2346_v41  ;;  %vm2384_vm10 = vmor %vm2382_vm9, %vm2383_vm8  ;;  %v8470_v41 = vld [vmem:[#allocation58_spill] sm:$0xff]  ;;  %v8473_v44 = vld [vmem:[#allocation61_spill] sm:$0xff] }
 0x6cb   :  { %v2379_v60 = vsub.f32 1.0, %v2378_v39  ;;  %v2360_v11 = vsel %vm2357_vm6, %v2359_v7, %v2355_v33  ;;  %v2370_v23 = vsel %vm2369_vm5, %v5321_v26, %v2366_v40  ;;  %v8474_v39 = vld [vmem:[#allocation62_spill] sm:$0xff]  ;;  %v8475_v7 = vld [vmem:[#allocation63_spill] sm:$0xff]  ;;  %v8477_v33 = vld [vmem:[#allocation65_spill] sm:$0xff] }
 0x6cc   :  { %v2375_v21 = vsel %vm2372_vm7, %v2374_v46, %v2370_v23  ;;  %v2394_v35 = vmul.f32 %v5325_v20, %v2360_v11  ;;  %vm2387_vm11 = vcmp.eq.f32.partialorder %v2386_v57, 8.507059e+37  ;;  %v8476_v46 = vld [vmem:[#allocation64_spill] sm:$0xff]  ;;  %v8478_v20 = vld [vmem:[#allocation66_spill] sm:$0xff]  ;;  %v8479_v11 = vld [vmem:[#allocation67_spill] sm:$0xff] }
 0x6cd   :  { %v2380_v12 = vmul.f32 %v5323_v48, %v2379_v60  ;;  %v2393_v55 = vmul.f32 %v2375_v21, %v6536_v30  ;;  %v8468_v30 = vld [vmem:[#allocation56_spill] sm:$0xff]  ;;  %v8469_v60 = vld [vmem:[#allocation57_spill] sm:$0xff] }
 0x6ce   :  { %v8480_v21 = vld [vmem:[#allocation68_spill] sm:$0xff] }
 0x6cf   :  { %v6670_v32 = vadd.f32 %v2394_v35, %v2393_v55  ;;  %v2381_v2 = vadd.f32 %v5323_v48, %v2380_v12  ;;  %v8466_v12 = vld [vmem:[#allocation54_spill] sm:$0xff]  ;;  %v8467_v35 = vld [vmem:[#allocation55_spill] sm:$0xff]  ;;  %v8481_v55 = vld [vmem:[#allocation69_spill] sm:$0xff] }
 0x6d0   :  { %v8484_v57 = vld [vmem:[#allocation72_spill] sm:$0xff] }
 0x6d1   :  { %5326 = vtanh.f32 %v6670_v32  ;;  %v2385_v63 = vsel %vm2384_vm10, %v5323_v48, %v2381_v2  ;;  %v8472_v48 = vld [vmem:[#allocation60_spill] sm:$0xff]  ;;  %v8482_v2 = vld [vmem:[#allocation70_spill] sm:$0xff] }
 0x6d2   :  { %v2390_v26 = vsel %vm2387_vm11, %v2389_v52, %v2385_v63  ;;  %v8485_v63 = vld [vmem:[#allocation73_spill] sm:$0xff]  ;;  %v8486_v52 = vld [vmem:[#allocation74_spill] sm:$0xff] }
 0x6d7   :  { %v5327_v40 = vpop.eup %5326 }
 0x6d8   :  { %v2397_v23 = vmul.f32 %v5327_v40, %v2390_v26  ;;  %v8487_v40 = vld [vmem:[#allocation75_spill] sm:$0xff]  ;;  %v8488_v26 = vld [vmem:[#allocation76_spill] sm:$0xff] }
 0x6da   :  { %v6673_v22 = vpack.c.bf16 %v2397_v23, %v2397_v23 }
 0x6dc   :  { %2407 = vmatmul.bf16.vlgmr.msrb.gmra.mxu0 %v6673_v22  ;;  %2420 = vmatmul.bf16.vlgmr.msrb.gmra.mxu1 %v6673_v22 }
 0x6dd   :  { %2433 = vmatmul.bf16.vlgmr.msrb.gmra.mxu2 %v6673_v22  ;;  %2446 = vmatmul.bf16.vlgmr.msrb.gmra.mxu3 %v6673_v22 }
 0x6de   :  { %2571 = vmatpush.bf16.msrb.mxu0 %v8249_v49  ;;  %2584 = vmatpush.bf16.msrb.mxu1 %v8250_v51 }
 0x6df   :  { %2597 = vmatpush.bf16.msrb.mxu2 %v8251_v59  ;;  %2610 = vmatpush.bf16.msrb.mxu3 %v8320_v25 }
 0x6e2   :  { %2572 = vmatpush.bf16.msrb.mxu0 %v8321_v19  ;;  %2585 = vmatpush.bf16.msrb.mxu1 %v8322_v29 }
 0x6e3   :  { %2598 = vmatpush.bf16.msrb.mxu2 %v8395_v15  ;;  %2611 = vmatpush.bf16.msrb.mxu3 %v8396_v27 }
 0x6e6   :  { %2573 = vmatpush.bf16.msrb.mxu0 %v8397_v47  ;;  %2586 = vmatpush.bf16.msrb.mxu1 %v8466_v12 }
 0x6e7   :  { %2599 = vmatpush.bf16.msrb.mxu2 %v8467_v35  ;;  %2612 = vmatpush.bf16.msrb.mxu3 %v8468_v30 }
 0x6ea   :  { %2574 = vmatpush.bf16.msrb.mxu0 %v8469_v60  ;;  %2587 = vmatpush.bf16.msrb.mxu1 %v8470_v41 }
 0x6eb   :  { %2600 = vmatpush.bf16.msrb.mxu2 %v8471_v10  ;;  %2613 = vmatpush.bf16.msrb.mxu3 %v8472_v48 }
 0x6ee   :  { %2575 = vmatpush.bf16.msrb.mxu0 %v8473_v44  ;;  %2588 = vmatpush.bf16.msrb.mxu1 %v8474_v39  ;;  %v8491_v39 = vld [vmem:[#allocation110_spill] sm:$0xff] }
 0x6ef   :  { %2601 = vmatpush.bf16.msrb.mxu2 %v8475_v7  ;;  %2614 = vmatpush.bf16.msrb.mxu3 %v8476_v46 }
 0x6f2   :  { %2576 = vmatpush.bf16.msrb.mxu0 %v8477_v33  ;;  %2589 = vmatpush.bf16.msrb.mxu1 %v8478_v20  ;;  %v8489_v20 = vld [vmem:[#allocation142_spill] sm:$0xff]  ;;  %v8490_v33 = vld [vmem:[#allocation143_spill] sm:$0xff] }
 0x6f3   :  { %2602 = vmatpush.bf16.msrb.mxu2 %v8479_v11  ;;  %2615 = vmatpush.bf16.msrb.mxu3 %v8480_v21 }
 0x6f6   :  { %2577 = vmatpush.bf16.msrb.mxu0 %v8481_v55  ;;  %2590 = vmatpush.bf16.msrb.mxu1 %v8482_v2 }
 0x6f7   :  { %2603 = vmatpush.bf16.msrb.mxu2 %v8483_v16  ;;  %2616 = vmatpush.bf16.msrb.mxu3 %v8484_v57 }
 0x6fa   :  { %2578 = vmatpush.bf16.msrb.mxu0 %v8485_v63  ;;  %2591 = vmatpush.bf16.msrb.mxu1 %v8486_v52 }
 0x6fb   :  { %2604 = vmatpush.bf16.msrb.mxu2 %v8487_v40  ;;  %2617 = vmatpush.bf16.msrb.mxu3 %v8488_v26 }
 0x759   :  { %v2408_v23 = vpop.f32.mrf.mxu0  ;;  %v2421_v11 = vpop.f32.mrf.mxu1 }
 0x75a   :  { %v2409_v21 = vadd.f32 %v2408_v23, %v6657_v50  ;;  %v2422_v55 = vadd.f32 %v2421_v11, %v6659_v6 }
 0x75c   :  { %v2451_v2 = vadd.f32 %v2409_v21, %v8489_v20  ;;  %v2452_v16 = vadd.f32 %v2422_v55, %v8490_v33 }
 0x75e   :  { %v5019_v46 = vmul.f32 -1.442695, %v2451_v2  ;;  %v5020_v57 = vmul.f32 -1.442695, %v2452_v16 }
 0x760   :  { %5328 = vpow2.f32 %v5019_v46  ;;  %v2434_v63 = vpop.f32.mrf.mxu2  ;;  %v2447_v7 = vpop.f32.mrf.mxu3 }
 0x761   :  { %5330 = vpow2.f32 %v5020_v57  ;;  %v2435_v40 = vadd.f32 %v2434_v63, %v6661_v37  ;;  %v2410_v52 = vpop.f32.mrf.mxu0  ;;  %v2423_v26 = vpop.f32.mrf.mxu1  ;;  %v2448_v46 = vadd.f32 %v2447_v7, %v6663_v34  ;;  %v8492_v37 = vld [vmem:[#allocation113_spill] sm:$0xff] }
 0x763   :  { %v2453_v44 = vadd.f32 %v2435_v40, %v8491_v39  ;;  %v2454_v63 = vadd.f32 %v2448_v46, %v8492_v37 }
 0x765   :  { %v5021_v48 = vmul.f32 -1.442695, %v2453_v44 }
 0x766   :  { %v5329_v50 = vpop.eup %5328 }
 0x767   :  { %v5331_v23 = vpop.eup %5330  ;;  %v2464_v6 = vadd.f32 1.0, %v5329_v50  ;;  %5332 = vpow2.f32 %v5021_v48 }
 0x768   :  { %v2465_v11 = vadd.f32 1.0, %v5331_v23  ;;  %v2436_v21 = vpop.f32.mrf.mxu2  ;;  %v2449_v55 = vpop.f32.mrf.mxu3 }
 0x769   :  { %5334 = vrcp.f32 %v2464_v6  ;;  %v2478_v50 = vand.u32 2147483648, %v2464_v6  ;;  %v2476_v21 = vand.u32 2147483647, %v2464_v6  ;;  %vm2472_vm14 = vweird.f32 %v2464_v6 }
 0x76a   :  { %5336 = vrcp.f32 %v2465_v11  ;;  %v2493_v48 = vand.u32 2147483648, %v2465_v11  ;;  %v2491_v34 = vand.u32 2147483647, %v2465_v11  ;;  %vm2487_vm15 = vweird.f32 %v2465_v11 }
 0x76b   :  { %v2479_v37 = vor.u32 1.1754944e-38, %v2478_v50  ;;  %vm2477_vm2 = vcmp.eq.f32.partialorder %v2476_v21, 8.507059e+37 }
 0x76c   :  { %vm2492_vm3 = vcmp.eq.f32.partialorder %v2491_v34, 8.507059e+37  ;;  %v8500_v34 = vld [vmem:[#allocation141_spill] sm:$0xff] }
 0x76d   :  { %v5333_v2 = vpop.eup %5332 }
 0x76e   :  { %v2466_v16 = vadd.f32 1.0, %v5333_v2 }
 0x76f   :  { %v5335_v57 = vpop.eup %5334 }
 0x770   :  { %v5337_v52 = vpop.eup %5336  ;;  %v2468_v26 = vmul.f32 %v5335_v57, %v2464_v6  ;;  %5338 = vrcp.f32 %v2466_v16  ;;  %vm2473_vm12 = vweird.f32 %v5335_v57  ;;  %v2508_v50 = vand.u32 2147483648, %v2466_v16 }
 0x771   :  { %v2483_v44 = vmul.f32 %v5337_v52, %v2465_v11  ;;  %5340 = vtanh.f32 %v2454_v63  ;;  %vm2488_vm13 = vweird.f32 %v5337_v52  ;;  %vm2474_vm0 = vmor %vm2472_vm14, %vm2473_vm12  ;;  %vm2502_vm5 = vweird.f32 %v2466_v16 }
 0x772   :  { %v2469_v40 = vsub.f32 1.0, %v2468_v26  ;;  %vm2489_vm1 = vmor %vm2487_vm15, %vm2488_vm13  ;;  %v2494_v26 = vor.u32 1.1754944e-38, %v2493_v48  ;;  %v2509_v21 = vor.u32 1.1754944e-38, %v2508_v50  ;;  %v8511_v50 = vld [vmem:[#allocation23_spill] sm:$0xff] }
 0x773   :  { %v2484_v39 = vsub.f32 1.0, %v2483_v44 }
 0x774   :  { %v2470_v23 = vmul.f32 %v5335_v57, %v2469_v40 }
 0x775   :  { %v2485_v55 = vmul.f32 %v5337_v52, %v2484_v39 }
 0x776   :  { %v5339_v7 = vpop.eup %5338  ;;  %v2471_v2 = vadd.f32 %v5335_v57, %v2470_v23 }
 0x777   :  { %v2498_v46 = vmul.f32 %v5339_v7, %v2466_v16  ;;  %v2486_v33 = vadd.f32 %v5337_v52, %v2485_v55  ;;  %v5341_v63 = vpop.eup %5340  ;;  %vm2503_vm4 = vweird.f32 %v5339_v7  ;;  %v8499_v55 = vld [vmem:[#allocation140_spill] sm:$0xff] }
 0x778   :  { %v2475_v44 = vsel %vm2474_vm0, %v5335_v57, %v2471_v2  ;;  %v2506_v57 = vand.u32 2147483647, %v2466_v16  ;;  %vm2504_vm6 = vmor %vm2502_vm5, %vm2503_vm4  ;;  %v8498_v16 = vld [vmem:[#allocation139_spill] sm:$0xff]  ;;  %v8502_v2 = vld [vmem:[#allocation14_spill] sm:$0xff] }
 0x779   :  { %v2499_v20 = vsub.f32 1.0, %v2498_v46  ;;  %v2480_v40 = vsel %vm2477_vm2, %v2479_v37, %v2475_v44  ;;  %v2490_v10 = vsel %vm2489_vm1, %v5337_v52, %v2486_v33  ;;  %v8503_v46 = vld [vmem:[#allocation15_spill] sm:$0xff]  ;;  %v8505_v44 = vld [vmem:[#allocation16_spill] sm:$0xff] }
 0x77a   :  { %v2495_v39 = vsel %vm2492_vm3, %v2494_v26, %v2490_v10  ;;  %v2514_v41 = vmul.f32 %v5341_v63, %v2480_v40  ;;  %vm2507_vm7 = vcmp.eq.f32.partialorder %v2506_v57, 8.507059e+37  ;;  %v8504_v26 = vld [vmem:[#allocation17_spill] sm:$0xff]  ;;  %v8506_v63 = vld [vmem:[#allocation18_spill] sm:$0xff]  ;;  %v8507_v40 = vld [vmem:[#allocation19_spill] sm:$0xff] }
 0x77b   :  { %v2500_v60 = vmul.f32 %v5339_v7, %v2499_v20  ;;  %v2513_v23 = vmul.f32 %v2495_v39, %v6586_v4  ;;  %v8493_v4 = vld [vmem:[#allocation134_spill] sm:$0xff]  ;;  %v8508_v39 = vld [vmem:[#allocation21_spill] sm:$0xff] }
 0x77c   :  { %v8497_v20 = vld [vmem:[#allocation138_spill] sm:$0xff]  ;;  %v8512_v57 = vld [vmem:[#allocation25_spill] sm:$0xff] }
 0x77d   :  { %v6720_v6 = vadd.f32 %v2514_v41, %v2513_v23  ;;  %v2501_v11 = vadd.f32 %v5339_v7, %v2500_v60  ;;  %v8494_v60 = vld [vmem:[#allocation135_spill] sm:$0xff]  ;;  %v8496_v41 = vld [vmem:[#allocation137_spill] sm:$0xff]  ;;  %v8509_v23 = vld [vmem:[#allocation20_spill] sm:$0xff] }
 0x77f   :  { %5342 = vtanh.f32 %v6720_v6  ;;  %v2505_v48 = vsel %vm2504_vm6, %v5339_v7, %v2501_v11  ;;  %v8501_v7 = vld [vmem:[#allocation13_spill] sm:$0xff]  ;;  %v8510_v11 = vld [vmem:[#allocation22_spill] sm:$0xff] }
 0x780   :  { %v2510_v37 = vsel %vm2507_vm7, %v2509_v21, %v2505_v48  ;;  %v8513_v48 = vld [vmem:[#allocation24_spill] sm:$0xff]  ;;  %v8514_v21 = vld [vmem:[#allocation26_spill] sm:$0xff] }
 0x785   :  { %v5343_v33 = vpop.eup %5342 }
 0x786   :  { %v2517_v10 = vmul.f32 %v5343_v33, %v2510_v37  ;;  %v8515_v33 = vld [vmem:[#allocation27_spill] sm:$0xff]  ;;  %v8516_v37 = vld [vmem:[#allocation29_spill] sm:$0xff] }
 0x788   :  { %v2518_v52 = vpack.c.bf16 %v2517_v10, %v2517_v10  ;;  %v8517_v10 = vld [vmem:[#allocation28_spill] sm:$0xff] }
 0x78a   :  { %2527 = vmatmul.bf16.vlgmr.msra.gmra.mxu0 %v2518_v52  ;;  %2540 = vmatmul.bf16.vlgmr.msra.gmra.mxu1 %v2518_v52 }
 0x78b   :  { %2553 = vmatmul.bf16.vlgmr.msra.gmra.mxu2 %v2518_v52  ;;  %2566 = vmatmul.bf16.vlgmr.msra.gmra.mxu3 %v2518_v52  ;;  %v8518_v52 = vld [vmem:[#allocation30_spill] sm:$0xff] }
 0x78c   :  { %2691 = vmatpush.bf16.msra.mxu0 %v8213_v24  ;;  %2704 = vmatpush.bf16.msra.mxu1 %v8214_v18 }
 0x78d   :  { %2717 = vmatpush.bf16.msra.mxu2 %v8215_v31  ;;  %2730 = vmatpush.bf16.msra.mxu3 %v8216_v54 }
 0x790   :  { %2692 = vmatpush.bf16.msra.mxu0 %v8217_v58  ;;  %2705 = vmatpush.bf16.msra.mxu1 %v8218_v1 }
 0x791   :  { %2718 = vmatpush.bf16.msra.mxu2 %v8219_v38  ;;  %2731 = vmatpush.bf16.msra.mxu3 %v8220_v36 }
 0x794   :  { %2693 = vmatpush.bf16.msra.mxu0 %v8221_v17  ;;  %2706 = vmatpush.bf16.msra.mxu1 %v8222_v13 }
 0x795   :  { %2719 = vmatpush.bf16.msra.mxu2 %v8223_v8  ;;  %2732 = vmatpush.bf16.msra.mxu3 %v8224_v43 }
 0x798   :  { %2694 = vmatpush.bf16.msra.mxu0 %v8225_v56  ;;  %2707 = vmatpush.bf16.msra.mxu1 %v8226_v9 }
 0x799   :  { %2720 = vmatpush.bf16.msra.mxu2 %v8227_v28  ;;  %2733 = vmatpush.bf16.msra.mxu3 %v6001_v62 }
 0x79a   :  { %2579 = vmatmul.bf16.vlgmr.msrb.gmra.mxu0 %v6673_v22  ;;  %2592 = vmatmul.bf16.vlgmr.msrb.gmra.mxu1 %v6673_v22 }
 0x79b   :  { %2605 = vmatmul.bf16.vlgmr.msrb.gmra.mxu2 %v6673_v22  ;;  %2618 = vmatmul.bf16.vlgmr.msrb.gmra.mxu3 %v6673_v22  ;;  %v8495_v22 = vld [vmem:[#allocation136_spill] sm:$0xff] }
 0x79c   :  { %2695 = vmatpush.bf16.msra.mxu0 %v6008_v45  ;;  %2708 = vmatpush.bf16.msra.mxu1 %v6012_v14 }
 0x79d   :  { %2721 = vmatpush.bf16.msra.mxu2 %v8228_v3  ;;  %2734 = vmatpush.bf16.msra.mxu3 %v8229_v53 }
 0x7a0   :  { %2696 = vmatpush.bf16.msra.mxu0 %v8230_v5  ;;  %2709 = vmatpush.bf16.msra.mxu1 %v6024_v42 }
 0x7a1   :  { %2722 = vmatpush.bf16.msra.mxu2 %v8231_v61  ;;  %2735 = vmatpush.bf16.msra.mxu3 %v8232_v0 }
 0x7a4   :  { %2697 = vmatpush.bf16.msra.mxu0 %v8493_v4  ;;  %2710 = vmatpush.bf16.msra.mxu1 %v8494_v60 }
 0x7a5   :  { %2723 = vmatpush.bf16.msra.mxu2 %v8495_v22  ;;  %2736 = vmatpush.bf16.msra.mxu3 %v8496_v41 }
 0x7a8   :  { %2698 = vmatpush.bf16.msra.mxu0 %v8497_v20  ;;  %2711 = vmatpush.bf16.msra.mxu1 %v8498_v16  ;;  %v8537_v20 = vld [vmem:[#allocation85_spill] sm:$0xff] }
 0x7a9   :  { %2724 = vmatpush.bf16.msra.mxu2 %v8499_v55  ;;  %2737 = vmatpush.bf16.msra.mxu3 %v8500_v34  ;;  %v8538_v34 = vld [vmem:[#allocation99_spill] sm:$0xff] }
 0x7aa   :  { %v437_v22 = vadd.f32 %v8538_v34, %v8537_v20 }
 0x7ac   :  { %2811 = vmatpush.bf16.msrb.mxu0 %v8501_v7  ;;  %2824 = vmatpush.bf16.msrb.mxu1 %v8502_v2 }
 0x7ad   :  { %2837 = vmatpush.bf16.msrb.mxu2 %v8503_v46  ;;  %2850 = vmatpush.bf16.msrb.mxu3 %v8504_v26  ;;  %v8519_v46 = vld [vmem:[#allocation31_spill] sm:$0xff] }
 0x7b0   :  { %2812 = vmatpush.bf16.msrb.mxu0 %v8505_v44  ;;  %2825 = vmatpush.bf16.msrb.mxu1 %v8506_v63  ;;  %v8536_v63 = vld [vmem:[#allocation98_spill] sm:$0xff] }
 0x7b1   :  { %2838 = vmatpush.bf16.msrb.mxu2 %v8507_v40  ;;  %2851 = vmatpush.bf16.msrb.mxu3 %v8508_v39  ;;  %v8520_v40 = vld [vmem:[#allocation32_spill] sm:$0xff] }
 0x7b4   :  { %2813 = vmatpush.bf16.msrb.mxu0 %v8509_v23  ;;  %2826 = vmatpush.bf16.msrb.mxu1 %v8510_v11  ;;  %v8521_v11 = vld [vmem:[#allocation33_spill] sm:$0xff]  ;;  %v8533_v23 = vld [vmem:[#allocation79_spill] sm:$0xff] }
 0x7b5   :  { %2839 = vmatpush.bf16.msrb.mxu2 %v8511_v50  ;;  %2852 = vmatpush.bf16.msrb.mxu3 %v8512_v57  ;;  %v8522_v50 = vld [vmem:[#allocation34_spill] sm:$0xff]  ;;  %v8523_v57 = vld [vmem:[#allocation35_spill] sm:$0xff] }
 0x7b8   :  { %2814 = vmatpush.bf16.msrb.mxu0 %v8513_v48  ;;  %2827 = vmatpush.bf16.msrb.mxu1 %v8514_v21  ;;  %v8524_v48 = vld [vmem:[#allocation36_spill] sm:$0xff]  ;;  %v8525_v21 = vld [vmem:[#allocation37_spill] sm:$0xff] }
 0x7b9   :  { %2840 = vmatpush.bf16.msrb.mxu2 %v8515_v33  ;;  %2853 = vmatpush.bf16.msrb.mxu3 %v8516_v37  ;;  %v8526_v33 = vld [vmem:[#allocation38_spill] sm:$0xff]  ;;  %v8527_v37 = vld [vmem:[#allocation39_spill] sm:$0xff] }
 0x7bc   :  { %2815 = vmatpush.bf16.msrb.mxu0 %v8517_v10  ;;  %2828 = vmatpush.bf16.msrb.mxu1 %v8518_v52  ;;  %v8528_v10 = vld [vmem:[#allocation40_spill] sm:$0xff]  ;;  %v8529_v52 = vld [vmem:[#allocation41_spill] sm:$0xff] }
 0x7bd   :  { %2841 = vmatpush.bf16.msrb.mxu2 %v8519_v46  ;;  %2854 = vmatpush.bf16.msrb.mxu3 %v8520_v40  ;;  %v8530_v46 = vld [vmem:[#allocation42_spill] sm:$0xff]  ;;  %v8531_v40 = vld [vmem:[#allocation45_spill] sm:$0xff] }
 0x7c0   :  { %2816 = vmatpush.bf16.msrb.mxu0 %v8521_v11  ;;  %2829 = vmatpush.bf16.msrb.mxu1 %v8522_v50  ;;  %v8532_v11 = vld [vmem:[#allocation46_spill] sm:$0xff] }
 0x7c1   :  { %2842 = vmatpush.bf16.msrb.mxu2 %v8523_v57  ;;  %2855 = vmatpush.bf16.msrb.mxu3 %v8524_v48 }
 0x7c4   :  { %2817 = vmatpush.bf16.msrb.mxu0 %v8525_v21  ;;  %2830 = vmatpush.bf16.msrb.mxu1 %v8526_v33 }
 0x7c5   :  { %2843 = vmatpush.bf16.msrb.mxu2 %v8527_v37  ;;  %2856 = vmatpush.bf16.msrb.mxu3 %v8528_v10  ;;  %v8534_v10 = vld [vmem:[#allocation96_spill] sm:$0xff] }
 0x7c6   :  { %v379_v39 = vadd.f32 %v8534_v10, %v8533_v23 }
 0x7c8   :  { %2818 = vmatpush.bf16.msrb.mxu0 %v8529_v52  ;;  %2831 = vmatpush.bf16.msrb.mxu1 %v8530_v46  ;;  %v8535_v52 = vld [vmem:[#allocation81_spill] sm:$0xff] }
 0x7c9   :  { %2844 = vmatpush.bf16.msrb.mxu2 %v8531_v40  ;;  %2857 = vmatpush.bf16.msrb.mxu3 %v8532_v11  ;;  %v408_v46 = vadd.f32 %v8536_v63, %v8535_v52 }
 0x807   :  { %v6791_v50 = vpop.f32.mrf.mxu0  ;;  %v6793_v57 = vpop.f32.mrf.mxu1 }
 0x80e   :  { %v6795_v48 = vpop.f32.mrf.mxu2  ;;  %v6797_v21 = vpop.f32.mrf.mxu3 }
 0x80f   :  { %v2530_v33 = vpop.f32.mrf.mxu0  ;;  %v2543_v37 = vpop.f32.mrf.mxu1 }
 0x816   :  { %v2556_v44 = vpop.f32.mrf.mxu2  ;;  %v2569_v40 = vpop.f32.mrf.mxu3 }
 0x817   :  { %v2580_v26 = vpop.f32.mrf.mxu0  ;;  %v2593_v11 = vpop.f32.mrf.mxu1 }
 0x818   :  { %v2623_v2 = vadd.f32 %v2580_v26, %v379_v39  ;;  %v2624_v7 = vadd.f32 %v2593_v11, %v408_v46  ;;  %v8539_v26 = vld [vmem:[#allocation86_spill] sm:$0xff]  ;;  %v8540_v39 = vld [vmem:[#allocation100_spill] sm:$0xff] }
 0x819   :  { %v466_v34 = vadd.f32 %v8540_v39, %v8539_v26 }
 0x81a   :  { %v5022_v55 = vmul.f32 -1.442695, %v2623_v2  ;;  %v5023_v16 = vmul.f32 -1.442695, %v2624_v7 }
 0x81c   :  { %5344 = vpow2.f32 %v5022_v55 }
 0x81d   :  { %5346 = vpow2.f32 %v5023_v16 }
 0x81e   :  { %v2606_v33 = vpop.f32.mrf.mxu2  ;;  %v2619_v37 = vpop.f32.mrf.mxu3 }
 0x81f   :  { %v2625_v60 = vadd.f32 %v2606_v33, %v437_v22  ;;  %v2582_v10 = vpop.f32.mrf.mxu0  ;;  %v2595_v23 = vpop.f32.mrf.mxu1  ;;  %v2626_v46 = vadd.f32 %v2619_v37, %v466_v34 }
 0x821   :  { %v5024_v4 = vmul.f32 -1.442695, %v2625_v60 }
 0x822   :  { %v5345_v63 = vpop.eup %5344 }
 0x823   :  { %v5347_v44 = vpop.eup %5346  ;;  %v2636_v40 = vadd.f32 1.0, %v5345_v63  ;;  %5348 = vpow2.f32 %v5024_v4 }
 0x824   :  { %v2637_v52 = vadd.f32 1.0, %v5347_v44 }
 0x825   :  { %5350 = vrcp.f32 %v2636_v40  ;;  %v2650_v63 = vand.u32 2147483648, %v2636_v40  ;;  %vm2644_vm10 = vweird.f32 %v2636_v40 }
 0x826   :  { %5352 = vrcp.f32 %v2637_v52  ;;  %v2608_v2 = vpop.f32.mrf.mxu2  ;;  %v2621_v7 = vpop.f32.mrf.mxu3  ;;  %v2665_v4 = vand.u32 2147483648, %v2637_v52  ;;  %v2663_v20 = vand.u32 2147483647, %v2637_v52  ;;  %vm2659_vm11 = vweird.f32 %v2637_v52 }
 0x827   :  { %v2648_v2 = vand.u32 2147483647, %v2636_v40 }
 0x828   :  { %vm2664_vm15 = vcmp.eq.f32.partialorder %v2663_v20, 8.507059e+37 }
 0x829   :  { %v5349_v55 = vpop.eup %5348  ;;  %vm2649_vm14 = vcmp.eq.f32.partialorder %v2648_v2, 8.507059e+37 }
 0x82a   :  { %v2638_v16 = vadd.f32 1.0, %v5349_v55  ;;  %v2651_v55 = vor.u32 1.1754944e-38, %v2650_v63 }
 0x82b   :  { %v5351_v11 = vpop.eup %5350 }
 0x82c   :  { %v5353_v22 = vpop.eup %5352  ;;  %v2640_v33 = vmul.f32 %v5351_v11, %v2636_v40  ;;  %5354 = vrcp.f32 %v2638_v16  ;;  %vm2645_vm8 = vweird.f32 %v5351_v11  ;;  %v2680_v63 = vand.u32 2147483648, %v2638_v16 }
 0x82d   :  { %v2655_v60 = vmul.f32 %v5353_v22, %v2637_v52  ;;  %5356 = vtanh.f32 %v2626_v46  ;;  %vm2660_vm9 = vweird.f32 %v5353_v22  ;;  %vm2646_vm12 = vmor %vm2644_vm10, %vm2645_vm8  ;;  %vm2674_vm1 = vweird.f32 %v2638_v16 }
 0x82e   :  { %v2641_v23 = vsub.f32 1.0, %v2640_v33  ;;  %vm2661_vm13 = vmor %vm2659_vm11, %vm2660_vm9  ;;  %v2666_v33 = vor.u32 1.1754944e-38, %v2665_v4  ;;  %v2681_v2 = vor.u32 1.1754944e-38, %v2680_v63  ;;  %v8558_v63 = vld [vmem:[#allocation74_spill] sm:$0xff] }
 0x82f   :  { %v2656_v10 = vsub.f32 1.0, %v2655_v60 }
 0x830   :  { %v2642_v44 = vmul.f32 %v5351_v11, %v2641_v23 }
 0x831   :  { %v2657_v7 = vmul.f32 %v5353_v22, %v2656_v10 }
 0x832   :  { %v5355_v41 = vpop.eup %5354  ;;  %v2643_v39 = vadd.f32 %v5351_v11, %v2642_v44 }
 0x833   :  { %v2670_v37 = vmul.f32 %v5355_v41, %v2638_v16  ;;  %v2658_v34 = vadd.f32 %v5353_v22, %v2657_v7  ;;  %v5357_v46 = vpop.eup %5356  ;;  %vm2675_vm0 = vweird.f32 %v5355_v41 }
 0x834   :  { %v2647_v60 = vsel %vm2646_vm12, %v5351_v11, %v2643_v39  ;;  %v2678_v11 = vand.u32 2147483647, %v2638_v16  ;;  %vm2676_vm2 = vmor %vm2674_vm1, %vm2675_vm0  ;;  %v8546_v16 = vld [vmem:[#allocation62_spill] sm:$0xff]  ;;  %v8547_v39 = vld [vmem:[#allocation63_spill] sm:$0xff] }
 0x835   :  { %v2671_v26 = vsub.f32 1.0, %v2670_v37  ;;  %v2652_v23 = vsel %vm2649_vm14, %v2651_v55, %v2647_v60  ;;  %v2662_v61 = vsel %vm2661_vm13, %v5353_v22, %v2658_v34  ;;  %v8548_v37 = vld [vmem:[#allocation64_spill] sm:$0xff]  ;;  %v8549_v55 = vld [vmem:[#allocation65_spill] sm:$0xff]  ;;  %v8550_v34 = vld [vmem:[#allocation66_spill] sm:$0xff] }
 0x836   :  { %v2667_v10 = vsel %vm2664_vm15, %v2666_v33, %v2662_v61  ;;  %v2686_v42 = vmul.f32 %v5357_v46, %v2652_v23  ;;  %vm2679_vm3 = vcmp.eq.f32.partialorder %v2678_v11, 8.507059e+37  ;;  %v8551_v33 = vld [vmem:[#allocation67_spill] sm:$0xff]  ;;  %v8552_v60 = vld [vmem:[#allocation68_spill] sm:$0xff]  ;;  %v8553_v46 = vld [vmem:[#allocation69_spill] sm:$0xff] }
 0x837   :  { %v2672_v5 = vmul.f32 %v5355_v41, %v2671_v26  ;;  %v2685_v44 = vmul.f32 %v2667_v10, %v6670_v32  ;;  %v8543_v32 = vld [vmem:[#allocation59_spill] sm:$0xff]  ;;  %v8545_v26 = vld [vmem:[#allocation61_spill] sm:$0xff]  ;;  %v8554_v23 = vld [vmem:[#allocation70_spill] sm:$0xff] }
 0x838   :  { %v8555_v10 = vld [vmem:[#allocation71_spill] sm:$0xff] }
 0x839   :  { %v6808_v40 = vadd.f32 %v2686_v42, %v2685_v44  ;;  %v2673_v52 = vadd.f32 %v5355_v41, %v2672_v5  ;;  %v8541_v42 = vld [vmem:[#allocation57_spill] sm:$0xff]  ;;  %v8542_v5 = vld [vmem:[#allocation58_spill] sm:$0xff]  ;;  %v8556_v44 = vld [vmem:[#allocation72_spill] sm:$0xff] }
 0x83a   :  { %v8559_v11 = vld [vmem:[#allocation75_spill] sm:$0xff] }
 0x83b   :  { %5358 = vtanh.f32 %v6808_v40  ;;  %v2677_v4 = vsel %vm2676_vm2, %v5355_v41, %v2673_v52  ;;  %v8544_v41 = vld [vmem:[#allocation60_spill] sm:$0xff]  ;;  %v8557_v52 = vld [vmem:[#allocation73_spill] sm:$0xff] }
 0x83c   :  { %v2682_v20 = vsel %vm2679_vm3, %v2681_v2, %v2677_v4  ;;  %v8560_v4 = vld [vmem:[#allocation76_spill] sm:$0xff] }
 0x841   :  { %v5359_v22 = vpop.eup %5358 }
 0x842   :  { %v2689_v61 = vmul.f32 %v5359_v22, %v2682_v20 }
 0x844   :  { %v6811_v7 = vpack.c.bf16 %v2689_v61, %v2689_v61 }
 0x846   :  { %2699 = vmatmul.bf16.vlgmr.msra.gmra.mxu0 %v6811_v7  ;;  %2712 = vmatmul.bf16.vlgmr.msra.gmra.mxu1 %v6811_v7 }
 0x847   :  { %2725 = vmatmul.bf16.vlgmr.msra.gmra.mxu2 %v6811_v7  ;;  %2738 = vmatmul.bf16.vlgmr.msra.gmra.mxu3 %v6811_v7 }
 0x848   :  { %2863 = vmatpush.bf16.msra.mxu0 %v8249_v49  ;;  %2876 = vmatpush.bf16.msra.mxu1 %v8250_v51 }
 0x849   :  { %2889 = vmatpush.bf16.msra.mxu2 %v8251_v59  ;;  %2902 = vmatpush.bf16.msra.mxu3 %v8320_v25 }
 0x84c   :  { %2864 = vmatpush.bf16.msra.mxu0 %v8321_v19  ;;  %2877 = vmatpush.bf16.msra.mxu1 %v8322_v29 }
 0x84d   :  { %2890 = vmatpush.bf16.msra.mxu2 %v8395_v15  ;;  %2903 = vmatpush.bf16.msra.mxu3 %v8396_v27 }
 0x850   :  { %2865 = vmatpush.bf16.msra.mxu0 %v8397_v47  ;;  %2878 = vmatpush.bf16.msra.mxu1 %v8466_v12 }
 0x851   :  { %2891 = vmatpush.bf16.msra.mxu2 %v8467_v35  ;;  %2904 = vmatpush.bf16.msra.mxu3 %v8468_v30 }
 0x854   :  { %2866 = vmatpush.bf16.msra.mxu0 %v8541_v42  ;;  %2879 = vmatpush.bf16.msra.mxu1 %v8542_v5 }
 0x855   :  { %2892 = vmatpush.bf16.msra.mxu2 %v8543_v32  ;;  %2905 = vmatpush.bf16.msra.mxu3 %v8544_v41 }
 0x858   :  { %2867 = vmatpush.bf16.msra.mxu0 %v8545_v26  ;;  %2880 = vmatpush.bf16.msra.mxu1 %v8546_v16  ;;  %v8563_v16 = vld [vmem:[#allocation110_spill] sm:$0xff] }
 0x859   :  { %2893 = vmatpush.bf16.msra.mxu2 %v8547_v39  ;;  %2906 = vmatpush.bf16.msra.mxu3 %v8548_v37 }
 0x85c   :  { %2868 = vmatpush.bf16.msra.mxu0 %v8549_v55  ;;  %2881 = vmatpush.bf16.msra.mxu1 %v8550_v34 }
 0x85d   :  { %2894 = vmatpush.bf16.msra.mxu2 %v8551_v33  ;;  %2907 = vmatpush.bf16.msra.mxu3 %v8552_v60  ;;  %v8561_v60 = vld [vmem:[#allocation142_spill] sm:$0xff]  ;;  %v8562_v33 = vld [vmem:[#allocation143_spill] sm:$0xff] }
 0x860   :  { %2869 = vmatpush.bf16.msra.mxu0 %v8553_v46  ;;  %2882 = vmatpush.bf16.msra.mxu1 %v8554_v23 }
 0x861   :  { %2895 = vmatpush.bf16.msra.mxu2 %v8555_v10  ;;  %2908 = vmatpush.bf16.msra.mxu3 %v8556_v44 }
 0x864   :  { %2870 = vmatpush.bf16.msra.mxu0 %v8557_v52  ;;  %2883 = vmatpush.bf16.msra.mxu1 %v8558_v63 }
 0x865   :  { %2896 = vmatpush.bf16.msra.mxu2 %v8559_v11  ;;  %2909 = vmatpush.bf16.msra.mxu3 %v8560_v4 }
 0x8c3   :  { %v2700_v2 = vpop.f32.mrf.mxu0  ;;  %v2713_v22 = vpop.f32.mrf.mxu1 }
 0x8c4   :  { %v2701_v20 = vadd.f32 %v2700_v2, %v6791_v50  ;;  %v2714_v61 = vadd.f32 %v2713_v22, %v6793_v57 }
 0x8c6   :  { %v2743_v23 = vadd.f32 %v2701_v20, %v8561_v60  ;;  %v2744_v10 = vadd.f32 %v2714_v61, %v8562_v33 }
 0x8c8   :  { %v5025_v34 = vmul.f32 -1.442695, %v2743_v23  ;;  %v5026_v44 = vmul.f32 -1.442695, %v2744_v10 }
 0x8ca   :  { %5360 = vpow2.f32 %v5025_v34  ;;  %v2726_v37 = vpop.f32.mrf.mxu2  ;;  %v2739_v39 = vpop.f32.mrf.mxu3 }
 0x8cb   :  { %5362 = vpow2.f32 %v5026_v44  ;;  %v2727_v11 = vadd.f32 %v2726_v37, %v6795_v48  ;;  %v2702_v63 = vpop.f32.mrf.mxu0  ;;  %v2715_v4 = vpop.f32.mrf.mxu1  ;;  %v2740_v34 = vadd.f32 %v2739_v39, %v6797_v21  ;;  %v8564_v48 = vld [vmem:[#allocation113_spill] sm:$0xff] }
 0x8cd   :  { %v2745_v41 = vadd.f32 %v2727_v11, %v8563_v16  ;;  %v2746_v37 = vadd.f32 %v2740_v34, %v8564_v48 }
 0x8cf   :  { %v5027_v32 = vmul.f32 -1.442695, %v2745_v41 }
 0x8d0   :  { %v5361_v50 = vpop.eup %5360 }
 0x8d1   :  { %v5363_v2 = vpop.eup %5362  ;;  %v2756_v57 = vadd.f32 1.0, %v5361_v50  ;;  %5364 = vpow2.f32 %v5027_v32 }
 0x8d2   :  { %v2757_v22 = vadd.f32 1.0, %v5363_v2  ;;  %v2728_v20 = vpop.f32.mrf.mxu2  ;;  %v2741_v61 = vpop.f32.mrf.mxu3 }
 0x8d3   :  { %5366 = vrcp.f32 %v2756_v57  ;;  %v2770_v50 = vand.u32 2147483648, %v2756_v57  ;;  %v2768_v20 = vand.u32 2147483647, %v2756_v57  ;;  %vm2764_vm6 = vweird.f32 %v2756_v57 }
 0x8d4   :  { %5368 = vrcp.f32 %v2757_v22  ;;  %v2785_v32 = vand.u32 2147483648, %v2757_v22  ;;  %v2783_v21 = vand.u32 2147483647, %v2757_v22  ;;  %vm2779_vm7 = vweird.f32 %v2757_v22 }
 0x8d5   :  { %v2771_v48 = vor.u32 1.1754944e-38, %v2770_v50  ;;  %vm2769_vm10 = vcmp.eq.f32.partialorder %v2768_v20, 8.507059e+37 }
 0x8d6   :  { %vm2784_vm11 = vcmp.eq.f32.partialorder %v2783_v21, 8.507059e+37  ;;  %v8577_v21 = vld [vmem:[#allocation14_spill] sm:$0xff] }
 0x8d7   :  { %v5365_v23 = vpop.eup %5364 }
 0x8d8   :  { %v2758_v10 = vadd.f32 1.0, %v5365_v23 }
 0x8d9   :  { %v5367_v44 = vpop.eup %5366 }
 0x8da   :  { %v5369_v63 = vpop.eup %5368  ;;  %v2760_v4 = vmul.f32 %v5367_v44, %v2756_v57  ;;  %5370 = vrcp.f32 %v2758_v10  ;;  %vm2765_vm4 = vweird.f32 %v5367_v44  ;;  %v2800_v50 = vand.u32 2147483648, %v2758_v10 }
 0x8db   :  { %v2775_v41 = vmul.f32 %v5369_v63, %v2757_v22  ;;  %5372 = vtanh.f32 %v2746_v37  ;;  %vm2780_vm5 = vweird.f32 %v5369_v63  ;;  %vm2766_vm8 = vmor %vm2764_vm6, %vm2765_vm4  ;;  %vm2794_vm13 = vweird.f32 %v2758_v10 }
 0x8dc   :  { %v2761_v11 = vsub.f32 1.0, %v2760_v4  ;;  %vm2781_vm9 = vmor %vm2779_vm7, %vm2780_vm5  ;;  %v2786_v4 = vor.u32 1.1754944e-38, %v2785_v32  ;;  %v2801_v20 = vor.u32 1.1754944e-38, %v2800_v50  ;;  %v8591_v50 = vld [vmem:[#allocation33_spill] sm:$0xff] }
 0x8dd   :  { %v2776_v16 = vsub.f32 1.0, %v2775_v41 }
 0x8de   :  { %v2762_v2 = vmul.f32 %v5367_v44, %v2761_v11 }
 0x8df   :  { %v2777_v61 = vmul.f32 %v5369_v63, %v2776_v16 }
 0x8e0   :  { %v5371_v39 = vpop.eup %5370  ;;  %v2763_v23 = vadd.f32 %v5367_v44, %v2762_v2 }
 0x8e1   :  { %v2790_v34 = vmul.f32 %v5371_v39, %v2758_v10  ;;  %v2778_v33 = vadd.f32 %v5369_v63, %v2777_v61  ;;  %v5373_v37 = vpop.eup %5372  ;;  %vm2795_vm12 = vweird.f32 %v5371_v39  ;;  %v8576_v61 = vld [vmem:[#allocation13_spill] sm:$0xff] }
 0x8e2   :  { %v2767_v41 = vsel %vm2766_vm8, %v5367_v44, %v2763_v23  ;;  %v2798_v44 = vand.u32 2147483647, %v2758_v10  ;;  %vm2796_vm14 = vmor %vm2794_vm13, %vm2795_vm12  ;;  %v8575_v10 = vld [vmem:[#allocation140_spill] sm:$0xff] }
 0x8e3   :  { %v2791_v60 = vsub.f32 1.0, %v2790_v34  ;;  %v2772_v11 = vsel %vm2769_vm10, %v2771_v48, %v2767_v41  ;;  %v2782_v5 = vsel %vm2781_vm9, %v5369_v63, %v2778_v33  ;;  %v8579_v23 = vld [vmem:[#allocation16_spill] sm:$0xff]  ;;  %v8580_v34 = vld [vmem:[#allocation18_spill] sm:$0xff] }
 0x8e4   :  { %v2787_v16 = vsel %vm2784_vm11, %v2786_v4, %v2782_v5  ;;  %v2806_v30 = vmul.f32 %v5373_v37, %v2772_v11  ;;  %vm2799_vm15 = vcmp.eq.f32.partialorder %v2798_v44, 8.507059e+37  ;;  %v8581_v4 = vld [vmem:[#allocation21_spill] sm:$0xff]  ;;  %v8583_v41 = vld [vmem:[#allocation22_spill] sm:$0xff]  ;;  %v8585_v11 = vld [vmem:[#allocation24_spill] sm:$0xff] }
 0x8e5   :  { %v2792_v35 = vmul.f32 %v5371_v39, %v2791_v60  ;;  %v2805_v2 = vmul.f32 %v2787_v16, %v6720_v6  ;;  %v8571_v6 = vld [vmem:[#allocation136_spill] sm:$0xff]  ;;  %v8573_v60 = vld [vmem:[#allocation138_spill] sm:$0xff]  ;;  %v8584_v37 = vld [vmem:[#allocation25_spill] sm:$0xff] }
 0x8e6   :  { %v8586_v16 = vld [vmem:[#allocation26_spill] sm:$0xff] }
 0x8e7   :  { %v6858_v57 = vadd.f32 %v2806_v30, %v2805_v2  ;;  %v2793_v22 = vadd.f32 %v5371_v39, %v2792_v35  ;;  %v8569_v35 = vld [vmem:[#allocation134_spill] sm:$0xff]  ;;  %v8570_v30 = vld [vmem:[#allocation135_spill] sm:$0xff]  ;;  %v8588_v2 = vld [vmem:[#allocation28_spill] sm:$0xff] }
 0x8e8   :  { %v8592_v44 = vld [vmem:[#allocation34_spill] sm:$0xff] }
 0x8e9   :  { %5374 = vtanh.f32 %v6858_v57  ;;  %v2797_v32 = vsel %vm2796_vm14, %v5371_v39, %v2793_v22  ;;  %v8578_v39 = vld [vmem:[#allocation17_spill] sm:$0xff]  ;;  %v8589_v22 = vld [vmem:[#allocation30_spill] sm:$0xff] }
 0x8ea   :  { %v2802_v48 = vsel %vm2799_vm15, %v2801_v20, %v2797_v32  ;;  %v8594_v32 = vld [vmem:[#allocation37_spill] sm:$0xff]  ;;  %v8595_v20 = vld [vmem:[#allocation38_spill] sm:$0xff] }
 0x8ef   :  { %v5375_v33 = vpop.eup %5374 }
 0x8f0   :  { %v2809_v5 = vmul.f32 %v5375_v33, %v2802_v48  ;;  %v8597_v33 = vld [vmem:[#allocation41_spill] sm:$0xff]  ;;  %v8598_v48 = vld [vmem:[#allocation42_spill] sm:$0xff] }
 0x8f2   :  { %v2810_v63 = vpack.c.bf16 %v2809_v5, %v2809_v5 }
 0x8f4   :  { %2819 = vmatmul.bf16.vlgmr.msrb.gmra.mxu0 %v2810_v63  ;;  %2832 = vmatmul.bf16.vlgmr.msrb.gmra.mxu1 %v2810_v63 }
 0x8f5   :  { %2845 = vmatmul.bf16.vlgmr.msrb.gmra.mxu2 %v2810_v63  ;;  %2858 = vmatmul.bf16.vlgmr.msrb.gmra.mxu3 %v2810_v63 }
 0x8f6   :  { %3022 = vmatpush.bf16.msrb.mxu3 %v8216_v54  ;;  %2983 = vmatpush.bf16.msrb.mxu0 %v8213_v24 }
 0x8f7   :  { %2996 = vmatpush.bf16.msrb.mxu1 %v8214_v18  ;;  %3009 = vmatpush.bf16.msrb.mxu2 %v8215_v31  ;;  %v8565_v31 = vld [vmem:[#allocation130_spill] sm:$0xff] }
 0x8fa   :  { %3023 = vmatpush.bf16.msrb.mxu3 %v8220_v36  ;;  %2984 = vmatpush.bf16.msrb.mxu0 %v8217_v58 }
 0x8fb   :  { %2997 = vmatpush.bf16.msrb.mxu1 %v8218_v1  ;;  %3010 = vmatpush.bf16.msrb.mxu2 %v8219_v38  ;;  %v8566_v38 = vld [vmem:[#allocation131_spill] sm:$0xff] }
 0x8fe   :  { %3024 = vmatpush.bf16.msrb.mxu3 %v8224_v43  ;;  %2985 = vmatpush.bf16.msrb.mxu0 %v8221_v17 }
 0x8ff   :  { %2998 = vmatpush.bf16.msrb.mxu1 %v8222_v13  ;;  %3011 = vmatpush.bf16.msrb.mxu2 %v8223_v8  ;;  %v8567_v8 = vld [vmem:[#allocation132_spill] sm:$0xff] }
 0x902   :  { %3025 = vmatpush.bf16.msrb.mxu3 %v6001_v62  ;;  %2986 = vmatpush.bf16.msrb.mxu0 %v8225_v56 }
 0x903   :  { %2999 = vmatpush.bf16.msrb.mxu1 %v8226_v9  ;;  %3012 = vmatpush.bf16.msrb.mxu2 %v8227_v28  ;;  %v8568_v28 = vld [vmem:[#allocation137_spill] sm:$0xff] }
 0x904   :  { %2871 = vmatmul.bf16.vlgmr.msra.gmra.mxu0 %v6811_v7  ;;  %2884 = vmatmul.bf16.vlgmr.msra.gmra.mxu1 %v6811_v7 }
 0x905   :  { %2897 = vmatmul.bf16.vlgmr.msra.gmra.mxu2 %v6811_v7  ;;  %2910 = vmatmul.bf16.vlgmr.msra.gmra.mxu3 %v6811_v7  ;;  %v8572_v7 = vld [vmem:[#allocation141_spill] sm:$0xff] }
 0x906   :  { %3026 = vmatpush.bf16.msrb.mxu3 %v8229_v53  ;;  %2987 = vmatpush.bf16.msrb.mxu0 %v6008_v45 }
 0x907   :  { %3000 = vmatpush.bf16.msrb.mxu1 %v6012_v14  ;;  %3013 = vmatpush.bf16.msrb.mxu2 %v8228_v3  ;;  %v8574_v3 = vld [vmem:[#allocation139_spill] sm:$0xff] }
 0x90a   :  { %3027 = vmatpush.bf16.msrb.mxu3 %v8232_v0  ;;  %2988 = vmatpush.bf16.msrb.mxu0 %v8565_v31 }
 0x90b   :  { %3001 = vmatpush.bf16.msrb.mxu1 %v8566_v38  ;;  %3014 = vmatpush.bf16.msrb.mxu2 %v8567_v8 }
 0x90e   :  { %3028 = vmatpush.bf16.msrb.mxu3 %v8568_v28  ;;  %2989 = vmatpush.bf16.msrb.mxu0 %v8569_v35 }
 0x90f   :  { %3002 = vmatpush.bf16.msrb.mxu1 %v8570_v30  ;;  %3015 = vmatpush.bf16.msrb.mxu2 %v8571_v6 }
 0x912   :  { %3029 = vmatpush.bf16.msrb.mxu3 %v8572_v7  ;;  %2990 = vmatpush.bf16.msrb.mxu0 %v8573_v60 }
 0x913   :  { %3003 = vmatpush.bf16.msrb.mxu1 %v8574_v3  ;;  %3016 = vmatpush.bf16.msrb.mxu2 %v8575_v10 }
 0x916   :  { %3142 = vmatpush.bf16.msra.mxu3 %v8249_v49  ;;  %3103 = vmatpush.bf16.msra.mxu0 %v8576_v61  ;;  %v8582_v49 = vld [vmem:[#allocation20_spill] sm:$0xff] }
 0x917   :  { %3116 = vmatpush.bf16.msra.mxu1 %v8577_v21  ;;  %3129 = vmatpush.bf16.msra.mxu2 %v8578_v39 }
 0x91a   :  { %3143 = vmatpush.bf16.msra.mxu3 %v8321_v19  ;;  %3104 = vmatpush.bf16.msra.mxu0 %v8579_v23  ;;  %v8587_v19 = vld [vmem:[#allocation29_spill] sm:$0xff] }
 0x91b   :  { %3117 = vmatpush.bf16.msra.mxu1 %v8580_v34  ;;  %3130 = vmatpush.bf16.msra.mxu2 %v8581_v4  ;;  %v8600_v23 = vld [vmem:[#allocation101_spill] sm:$0xff]  ;;  %v8601_v4 = vld [vmem:[#allocation102_spill] sm:$0xff] }
 0x91e   :  { %3144 = vmatpush.bf16.msra.mxu3 %v8397_v47  ;;  %3105 = vmatpush.bf16.msra.mxu0 %v8582_v49  ;;  %v8590_v47 = vld [vmem:[#allocation32_spill] sm:$0xff] }
 0x91f   :  { %3118 = vmatpush.bf16.msra.mxu1 %v8583_v41  ;;  %3131 = vmatpush.bf16.msra.mxu2 %v8584_v37 }
 0x922   :  { %3145 = vmatpush.bf16.msra.mxu3 %v8541_v42  ;;  %3106 = vmatpush.bf16.msra.mxu0 %v8585_v11  ;;  %v8593_v42 = vld [vmem:[#allocation36_spill] sm:$0xff] }
 0x923   :  { %3119 = vmatpush.bf16.msra.mxu1 %v8586_v16  ;;  %3132 = vmatpush.bf16.msra.mxu2 %v8587_v19  ;;  %v8602_v19 = vld [vmem:[#allocation103_spill] sm:$0xff] }
 0x926   :  { %3146 = vmatpush.bf16.msra.mxu3 %v8545_v26  ;;  %3107 = vmatpush.bf16.msra.mxu0 %v8588_v2  ;;  %v8596_v26 = vld [vmem:[#allocation40_spill] sm:$0xff] }
 0x927   :  { %3120 = vmatpush.bf16.msra.mxu1 %v8589_v22  ;;  %3133 = vmatpush.bf16.msra.mxu2 %v8590_v47 }
 0x92a   :  { %3147 = vmatpush.bf16.msra.mxu3 %v8549_v55  ;;  %3108 = vmatpush.bf16.msra.mxu0 %v8591_v50  ;;  %v8599_v55 = vld [vmem:[#allocation46_spill] sm:$0xff] }
 0x92b   :  { %3121 = vmatpush.bf16.msra.mxu1 %v8592_v44  ;;  %3134 = vmatpush.bf16.msra.mxu2 %v8593_v42 }
 0x92e   :  { %3148 = vmatpush.bf16.msra.mxu3 %v8553_v46  ;;  %3109 = vmatpush.bf16.msra.mxu0 %v8594_v32 }
 0x92f   :  { %3122 = vmatpush.bf16.msra.mxu1 %v8595_v20  ;;  %3135 = vmatpush.bf16.msra.mxu2 %v8596_v26 }
 0x932   :  { %3149 = vmatpush.bf16.msra.mxu3 %v8557_v52  ;;  %3110 = vmatpush.bf16.msra.mxu0 %v8597_v33 }
 0x933   :  { %3123 = vmatpush.bf16.msra.mxu1 %v8598_v48  ;;  %3136 = vmatpush.bf16.msra.mxu2 %v8599_v55 }
 0x971   :  { %v6929_v5 = vpop.f32.mrf.mxu0  ;;  %v6931_v63 = vpop.f32.mrf.mxu1 }
 0x978   :  { %v6933_v8 = vpop.f32.mrf.mxu2  ;;  %v6935_v46 = vpop.f32.mrf.mxu3 }
 0x979   :  { %v2822_v6 = vpop.f32.mrf.mxu0  ;;  %v2835_v10 = vpop.f32.mrf.mxu1 }
 0x97a   :  { %v8603_v10 = vld [vmem:[#allocation105_spill] sm:$0xff] }
 0x980   :  { %v2848_v61 = vpop.f32.mrf.mxu2  ;;  %v2861_v21 = vpop.f32.mrf.mxu3 }
 0x981   :  { %v2872_v39 = vpop.f32.mrf.mxu0  ;;  %v2885_v52 = vpop.f32.mrf.mxu1 }
 0x982   :  { %v2915_v34 = vadd.f32 %v2872_v39, %v8600_v23  ;;  %v2916_v49 = vadd.f32 %v2885_v52, %v8601_v4 }
 0x984   :  { %v5028_v41 = vmul.f32 -1.442695, %v2915_v34  ;;  %v5029_v37 = vmul.f32 -1.442695, %v2916_v49 }
 0x986   :  { %5376 = vpow2.f32 %v5028_v41 }
 0x987   :  { %5378 = vpow2.f32 %v5029_v37 }
 0x988   :  { %v2898_v11 = vpop.f32.mrf.mxu2  ;;  %v2911_v16 = vpop.f32.mrf.mxu3 }
 0x989   :  { %v2917_v2 = vadd.f32 %v2898_v11, %v8602_v19  ;;  %v2874_v22 = vpop.f32.mrf.mxu0  ;;  %v2887_v47 = vpop.f32.mrf.mxu1  ;;  %v2918_v61 = vadd.f32 %v2911_v16, %v8603_v10 }
 0x98b   :  { %v5030_v50 = vmul.f32 -1.442695, %v2917_v2 }
 0x98c   :  { %v5377_v44 = vpop.eup %5376 }
 0x98d   :  { %v5379_v42 = vpop.eup %5378  ;;  %v2928_v32 = vadd.f32 1.0, %v5377_v44  ;;  %5380 = vpow2.f32 %v5030_v50 }
 0x98e   :  { %v2929_v20 = vadd.f32 1.0, %v5379_v42 }
 0x98f   :  { %5382 = vrcp.f32 %v2928_v32  ;;  %v2942_v4 = vand.u32 2147483648, %v2928_v32  ;;  %v2940_v37 = vand.u32 2147483647, %v2928_v32  ;;  %vm2936_vm2 = vweird.f32 %v2928_v32 }
 0x990   :  { %5384 = vrcp.f32 %v2929_v20  ;;  %v2900_v26 = vpop.f32.mrf.mxu2  ;;  %v2913_v33 = vpop.f32.mrf.mxu3  ;;  %v2957_v49 = vand.u32 2147483648, %v2929_v20  ;;  %v2955_v19 = vand.u32 2147483647, %v2929_v20  ;;  %vm2951_vm3 = vweird.f32 %v2929_v20 }
 0x991   :  { %v2943_v47 = vor.u32 1.1754944e-38, %v2942_v4  ;;  %vm2941_vm6 = vcmp.eq.f32.partialorder %v2940_v37, 8.507059e+37 }
 0x992   :  { %v2958_v44 = vor.u32 1.1754944e-38, %v2957_v49  ;;  %vm2956_vm7 = vcmp.eq.f32.partialorder %v2955_v19, 8.507059e+37  ;;  %v8617_v19 = vld [vmem:[#allocation72_spill] sm:$0xff] }
 0x993   :  { %v5381_v48 = vpop.eup %5380 }
 0x994   :  { %v2930_v55 = vadd.f32 1.0, %v5381_v48 }
 0x995   :  { %v5383_v6 = vpop.eup %5382 }
 0x996   :  { %v5385_v21 = vpop.eup %5384  ;;  %v2932_v39 = vmul.f32 %v5383_v6, %v2928_v32  ;;  %5386 = vrcp.f32 %v2930_v55  ;;  %vm2937_vm0 = vweird.f32 %v5383_v6  ;;  %vm2966_vm9 = vweird.f32 %v2930_v55 }
 0x997   :  { %v2947_v52 = vmul.f32 %v5385_v21, %v2929_v20  ;;  %5388 = vtanh.f32 %v2918_v61  ;;  %vm2952_vm1 = vweird.f32 %v5385_v21  ;;  %vm2938_vm4 = vmor %vm2936_vm2, %vm2937_vm0 }
 0x998   :  { %v2933_v23 = vsub.f32 1.0, %v2932_v39  ;;  %vm2953_vm5 = vmor %vm2951_vm3, %vm2952_vm1 }
 0x999   :  { %v2948_v34 = vsub.f32 1.0, %v2947_v52 }
 0x99a   :  { %v2934_v41 = vmul.f32 %v5383_v6, %v2933_v23 }
 0x99b   :  { %v2949_v11 = vmul.f32 %v5385_v21, %v2948_v34  ;;  %v2972_v34 = vand.u32 2147483648, %v2930_v55 }
 0x99c   :  { %v5387_v2 = vpop.eup %5386  ;;  %v2935_v22 = vadd.f32 %v5383_v6, %v2934_v41 }
 0x99d   :  { %v2962_v16 = vmul.f32 %v5387_v2, %v2930_v55  ;;  %v2950_v50 = vadd.f32 %v5385_v21, %v2949_v11  ;;  %v5389_v26 = vpop.eup %5388  ;;  %vm2967_vm8 = vweird.f32 %v5387_v2  ;;  %v2973_v49 = vor.u32 1.1754944e-38, %v2972_v34 }
 0x99e   :  { %v2939_v42 = vsel %vm2938_vm4, %v5383_v6, %v2935_v22  ;;  %v2970_v6 = vand.u32 2147483647, %v2930_v55  ;;  %vm2968_vm10 = vmor %vm2966_vm9, %vm2967_vm8  ;;  %v8605_v55 = vld [vmem:[#allocation56_spill] sm:$0xff]  ;;  %v8619_v22 = vld [vmem:[#allocation75_spill] sm:$0xff] }
 0x99f   :  { %v2963_v33 = vsub.f32 1.0, %v2962_v16  ;;  %v2944_v48 = vsel %vm2941_vm6, %v2943_v47, %v2939_v42  ;;  %v2954_v10 = vsel %vm2953_vm5, %v5385_v21, %v2950_v50 }
 0x9a0   :  { %v2959_v61 = vsel %vm2956_vm7, %v2958_v44, %v2954_v10  ;;  %v2978_v39 = vmul.f32 %v5389_v26, %v2944_v48  ;;  %vm2971_vm11 = vcmp.eq.f32.partialorder %v2970_v6, 8.507059e+37  ;;  %v8621_v44 = vld [vmem:[#allocation142_spill] sm:$0xff]  ;;  %v8622_v26 = vld [vmem:[#allocation143_spill] sm:$0xff] }
 0x9a1   :  { %v2964_v52 = vmul.f32 %v5387_v2, %v2963_v33  ;;  %v2977_v23 = vmul.f32 %v2959_v61, %v6808_v40  ;;  %v8604_v40 = vld [vmem:[#allocation55_spill] sm:$0xff] }
 0x9a3   :  { %v6942_v32 = vadd.f32 %v2978_v39, %v2977_v23  ;;  %v2965_v20 = vadd.f32 %v5387_v2, %v2964_v52  ;;  %v8623_v23 = vld [vmem:[#allocation110_spill] sm:$0xff] }
 0x9a5   :  { %5390 = vtanh.f32 %v6942_v32  ;;  %v2969_v4 = vsel %vm2968_vm10, %v5387_v2, %v2965_v20  ;;  %v8618_v2 = vld [vmem:[#allocation74_spill] sm:$0xff] }
 0x9a6   :  { %v2974_v41 = vsel %vm2971_vm11, %v2973_v49, %v2969_v4 }
 0x9ab   :  { %v5391_v21 = vpop.eup %5390 }
 0x9ac   :  { %v2981_v37 = vmul.f32 %v5391_v21, %v2974_v41 }
 0x9ae   :  { %v6945_v11 = vpack.c.bf16 %v2981_v37, %v2981_v37 }
 0x9b0   :  { %2991 = vmatmul.bf16.vlgmr.msrb.gmra.mxu0 %v6945_v11  ;;  %3004 = vmatmul.bf16.vlgmr.msrb.gmra.mxu1 %v6945_v11 }
 0x9b1   :  { %3017 = vmatmul.bf16.vlgmr.msrb.gmra.mxu2 %v6945_v11  ;;  %3030 = vmatmul.bf16.vlgmr.msrb.gmra.mxu3 %v6945_v11 }
 0x9b2   :  { %3155 = vmatpush.bf16.msrb.mxu0 %v8250_v51  ;;  %3168 = vmatpush.bf16.msrb.mxu1 %v8251_v59  ;;  %v8606_v51 = vld [vmem:[#allocation58_spill] sm:$0xff]  ;;  %v8607_v59 = vld [vmem:[#allocation59_spill] sm:$0xff] }
 0x9b3   :  { %3181 = vmatpush.bf16.msrb.mxu2 %v8320_v25  ;;  %3262 = vmatpush.bf16.msrb.mxu3 %v8213_v24  ;;  %v8608_v24 = vld [vmem:[#allocation60_spill] sm:$0xff]  ;;  %v8609_v25 = vld [vmem:[#allocation62_spill] sm:$0xff] }
 0x9b6   :  { %3156 = vmatpush.bf16.msrb.mxu0 %v8322_v29  ;;  %3169 = vmatpush.bf16.msrb.mxu1 %v8395_v15  ;;  %v8611_v29 = vld [vmem:[#allocation64_spill] sm:$0xff]  ;;  %v8612_v15 = vld [vmem:[#allocation66_spill] sm:$0xff] }
 0x9b7   :  { %3182 = vmatpush.bf16.msrb.mxu2 %v8396_v27  ;;  %3263 = vmatpush.bf16.msrb.mxu3 %v8217_v58  ;;  %v8610_v58 = vld [vmem:[#allocation63_spill] sm:$0xff]  ;;  %v8614_v27 = vld [vmem:[#allocation68_spill] sm:$0xff] }
 0x9ba   :  { %3157 = vmatpush.bf16.msrb.mxu0 %v8466_v12  ;;  %3170 = vmatpush.bf16.msrb.mxu1 %v8604_v40  ;;  %v8615_v12 = vld [vmem:[#allocation70_spill] sm:$0xff] }
 0x9bb   :  { %3183 = vmatpush.bf16.msrb.mxu2 %v8605_v55  ;;  %3264 = vmatpush.bf16.msrb.mxu3 %v8221_v17  ;;  %v8613_v17 = vld [vmem:[#allocation67_spill] sm:$0xff] }
 0x9be   :  { %3158 = vmatpush.bf16.msrb.mxu0 %v8606_v51  ;;  %3171 = vmatpush.bf16.msrb.mxu1 %v8607_v59  ;;  %v8625_v51 = vld [vmem:[#allocation104_spill] sm:$0xff] }
 0x9bf   :  { %3184 = vmatpush.bf16.msrb.mxu2 %v8608_v24  ;;  %3265 = vmatpush.bf16.msrb.mxu3 %v8225_v56  ;;  %v8616_v56 = vld [vmem:[#allocation71_spill] sm:$0xff]  ;;  %v8626_v24 = vld [vmem:[#allocation113_spill] sm:$0xff] }
 0x9c1   :  { %3150 = vmatmul.bf16.vlgmr.msra.gmra.mxu3 %v6945_v11 }
 0x9c2   :  { %3159 = vmatpush.bf16.msrb.mxu0 %v8609_v25  ;;  %3172 = vmatpush.bf16.msrb.mxu1 %v8610_v58 }
 0x9c3   :  { %3185 = vmatpush.bf16.msrb.mxu2 %v8611_v29  ;;  %3266 = vmatpush.bf16.msrb.mxu3 %v6008_v45  ;;  %v8620_v45 = vld [vmem:[#allocation76_spill] sm:$0xff] }
 0x9c6   :  { %3160 = vmatpush.bf16.msrb.mxu0 %v8612_v15  ;;  %3173 = vmatpush.bf16.msrb.mxu1 %v8613_v17 }
 0x9c7   :  { %3186 = vmatpush.bf16.msrb.mxu2 %v8614_v27  ;;  %3267 = vmatpush.bf16.msrb.mxu3 %v8565_v31 }
 0x9ca   :  { %3161 = vmatpush.bf16.msrb.mxu0 %v8615_v12  ;;  %3174 = vmatpush.bf16.msrb.mxu1 %v8616_v56 }
 0x9cb   :  { %3187 = vmatpush.bf16.msrb.mxu2 %v8617_v19  ;;  %3268 = vmatpush.bf16.msrb.mxu3 %v8569_v35 }
 0x9ce   :  { %3162 = vmatpush.bf16.msrb.mxu0 %v8618_v2  ;;  %3175 = vmatpush.bf16.msrb.mxu1 %v8619_v22 }
 0x9cf   :  { %3188 = vmatpush.bf16.msrb.mxu2 %v8620_v45  ;;  %3269 = vmatpush.bf16.msrb.mxu3 %v8573_v60 }
 0xa2d   :  { %v2992_v16 = vpop.f32.mrf.mxu0  ;;  %v3005_v47 = vpop.f32.mrf.mxu1 }
 0xa2e   :  { %v2993_v31 = vadd.f32 %v2992_v16, %v6929_v5  ;;  %v3006_v50 = vadd.f32 %v3005_v47, %v6931_v63 }
 0xa30   :  { %v3035_v42 = vadd.f32 %v2993_v31, %v8621_v44  ;;  %v3036_v33 = vadd.f32 %v3006_v50, %v8622_v26 }
 0xa32   :  { %v5031_v48 = vmul.f32 -1.442695, %v3035_v42  ;;  %v5032_v35 = vmul.f32 -1.442695, %v3036_v33 }
 0xa34   :  { %5392 = vpow2.f32 %v5031_v48  ;;  %v3018_v10 = vpop.f32.mrf.mxu2  ;;  %v3031_v61 = vpop.f32.mrf.mxu3 }
 0xa35   :  { %5394 = vpow2.f32 %v5032_v35  ;;  %v3019_v39 = vadd.f32 %v3018_v10, %v6933_v8  ;;  %v2994_v52 = vpop.f32.mrf.mxu0  ;;  %v3007_v60 = vpop.f32.mrf.mxu1  ;;  %v3032_v41 = vadd.f32 %v3031_v61, %v6935_v46  ;;  %v8624_v8 = vld [vmem:[#allocation79_spill] sm:$0xff] }
 0xa36   :  { %v384_v59 = vadd.f32 %v8625_v51, %v8624_v8 }
 0xa37   :  { %v3037_v20 = vadd.f32 %v3019_v39, %v8623_v23  ;;  %v3038_v25 = vadd.f32 %v3032_v41, %v8626_v24 }
 0xa39   :  { %v5033_v34 = vmul.f32 -1.442695, %v3037_v20 }
 0xa3a   :  { %v5393_v5 = vpop.eup %5392 }
 0xa3b   :  { %v5395_v6 = vpop.eup %5394  ;;  %v3048_v63 = vadd.f32 1.0, %v5393_v5  ;;  %5396 = vpow2.f32 %v5033_v34 }
 0xa3c   :  { %v3049_v4 = vadd.f32 1.0, %v5395_v6  ;;  %v3020_v49 = vpop.f32.mrf.mxu2  ;;  %v3033_v21 = vpop.f32.mrf.mxu3 }
 0xa3d   :  { %5398 = vrcp.f32 %v3048_v63  ;;  %v3062_v19 = vand.u32 2147483648, %v3048_v63  ;;  %v3060_v22 = vand.u32 2147483647, %v3048_v63  ;;  %vm3056_vm14 = vweird.f32 %v3048_v63 }
 0xa3e   :  { %5400 = vrcp.f32 %v3049_v4  ;;  %v3077_v46 = vand.u32 2147483648, %v3049_v4  ;;  %v3075_v16 = vand.u32 2147483647, %v3049_v4  ;;  %vm3071_vm15 = vweird.f32 %v3049_v4 }
 0xa3f   :  { %v3063_v42 = vor.u32 1.1754944e-38, %v3062_v19  ;;  %vm3061_vm2 = vcmp.eq.f32.partialorder %v3060_v22, 8.507059e+37 }
 0xa40   :  { %v3078_v48 = vor.u32 1.1754944e-38, %v3077_v46  ;;  %vm3076_vm3 = vcmp.eq.f32.partialorder %v3075_v16, 8.507059e+37 }
 0xa41   :  { %v5397_v37 = vpop.eup %5396 }
 0xa42   :  { %v3050_v40 = vadd.f32 1.0, %v5397_v37 }
 0xa43   :  { %v5399_v55 = vpop.eup %5398 }
 0xa44   :  { %v5401_v58 = vpop.eup %5400  ;;  %v3052_v29 = vmul.f32 %v5399_v55, %v3048_v63  ;;  %5402 = vrcp.f32 %v3050_v40  ;;  %v3151_v15 = vpop.f32.mrf.mxu3  ;;  %vm3057_vm12 = vweird.f32 %v5399_v55  ;;  %vm3086_vm5 = vweird.f32 %v3050_v40 }
 0xa45   :  { %v3067_v17 = vmul.f32 %v5401_v58, %v3049_v4  ;;  %v6994_v27 = vadd.f32 %v3151_v15, %v384_v59  ;;  %5404 = vtanh.f32 %v3038_v25  ;;  %vm3072_vm13 = vweird.f32 %v5401_v58  ;;  %vm3058_vm0 = vmor %vm3056_vm14, %vm3057_vm12 }
 0xa46   :  { %v3053_v12 = vsub.f32 1.0, %v3052_v29  ;;  %vm3073_vm1 = vmor %vm3071_vm15, %vm3072_vm13  ;;  %v3092_v4 = vand.u32 2147483648, %v3050_v40  ;;  %v3090_v49 = vand.u32 2147483647, %v3050_v40 }
 0xa47   :  { %v3068_v56 = vsub.f32 1.0, %v3067_v17 }
 0xa48   :  { %v3054_v2 = vmul.f32 %v5399_v55, %v3053_v12  ;;  %v3093_v41 = vor.u32 1.1754944e-38, %v3092_v4  ;;  %vm3091_vm7 = vcmp.eq.f32.partialorder %v3090_v49, 8.507059e+37  ;;  %v8632_v12 = vld [vmem:[#allocation109_spill] sm:$0xff] }
 0xa49   :  { %v3069_v45 = vmul.f32 %v5401_v58, %v3068_v56 }
 0xa4a   :  { %v5403_v47 = vpop.eup %5402  ;;  %v3055_v31 = vadd.f32 %v5399_v55, %v3054_v2 }
 0xa4b   :  { %v3082_v50 = vmul.f32 %v5403_v47, %v3050_v40  ;;  %v3070_v33 = vadd.f32 %v5401_v58, %v3069_v45  ;;  %v5405_v61 = vpop.eup %5404  ;;  %vm3087_vm4 = vweird.f32 %v5403_v47 }
 0xa4c   :  { %v3059_v35 = vsel %vm3058_vm0, %v5399_v55, %v3055_v31  ;;  %v3153_v10 = vpop.f32.mrf.mxu3  ;;  %vm3088_vm6 = vmor %vm3086_vm5, %vm3087_vm4 }
 0xa4d   :  { %v3083_v39 = vsub.f32 1.0, %v3082_v50  ;;  %v3064_v52 = vsel %vm3061_vm2, %v3063_v42, %v3059_v35  ;;  %v3074_v60 = vsel %vm3073_vm1, %v5401_v58, %v3070_v33 }
 0xa4e   :  { %v3079_v23 = vsel %vm3076_vm3, %v3078_v48, %v3074_v60  ;;  %v3098_v20 = vmul.f32 %v5405_v61, %v3064_v52  ;;  %v3361_v61 = vld [vmem:[%s7838_s7 + $0x78] sm:$0xff]  ;;  %v3359_v52 = vld [vmem:[%s7838_s7 + $0x68] sm:$0xff] }
 0xa4f   :  { %v3084_v34 = vmul.f32 %v5403_v47, %v3083_v39  ;;  %v3097_v5 = vmul.f32 %v3079_v23, %v6858_v57  ;;  %v8628_v57 = vld [vmem:[#allocation106_spill] sm:$0xff]  ;;  %v3360_v39 = vld [vmem:[%s7838_s7 + $0x70] sm:$0xff]  ;;  %v7057_v49 = vand.u32 4294901760, %v3359_v52 }
 0xa51   :  { %v6997_v6 = vadd.f32 %v3098_v20, %v3097_v5  ;;  %v3085_v63 = vadd.f32 %v5403_v47, %v3084_v34  ;;  %v7047_v20 = vand.u32 4294901760, %v3361_v61  ;;  %v7049_v34 = vand.u32 4294901760, %v3360_v39  ;;  %v3358_v5 = vld [vmem:[%s7838_s7 + $0x60] sm:$0xff] }
 0xa53   :  { %5406 = vtanh.f32 %v6997_v6  ;;  %v3089_v21 = vsel %vm3088_vm6, %v5403_v47, %v3085_v63  ;;  %v3357_v63 = vld [vmem:[%s7838_s7 + $0x58] sm:$0xff] }
 0xa54   :  { %v3094_v55 = vsel %vm3091_vm7, %v3093_v41, %v3089_v21  ;;  %v7060_v21 = vsub.f32 %v3361_v61, %v7047_v20  ;;  %v7063_v41 = vsub.f32 %v3360_v39, %v7049_v34 }
 0xa59   :  { %v5407_v37 = vpop.eup %5406 }
 0xa5a   :  { %v3101_v8 = vmul.f32 %v5407_v37, %v3094_v55  ;;  %v7065_v37 = vand.u32 4294901760, %v3358_v5  ;;  %v7068_v55 = vand.u32 4294901760, %v3357_v63 }
 0xa5c   :  { %v3102_v51 = vpack.c.bf16 %v3101_v8, %v3101_v8  ;;  %v7072_v8 = vsub.f32 %v3359_v52, %v7057_v49  ;;  %v3356_v52 = vld [vmem:[%s7838_s7 + $0x50] sm:$0xff] }
 0xa5e   :  { %3111 = vmatmul.bf16.vlgmr.msra.gmra.mxu0 %v3102_v51  ;;  %3124 = vmatmul.bf16.vlgmr.msra.gmra.mxu1 %v3102_v51 }
 0xa5f   :  { %3137 = vmatmul.bf16.vlgmr.msra.gmra.mxu2 %v3102_v51  ;;  %3275 = vmatpush.bf16.msra.mxu0 %v8214_v18 }
 0xa60   :  { %3288 = vmatpush.bf16.msra.mxu1 %v8216_v54  ;;  %3367 = vmatpush.msra.mxu2 %v7047_v20 }
 0xa62   :  { %3369 = vmatpush.msra.mxu2 %v7049_v34 }
 0xa63   :  { %3276 = vmatpush.bf16.msra.mxu0 %v8218_v1 }
 0xa64   :  { %3289 = vmatpush.bf16.msra.mxu1 %v8220_v36  ;;  %3371 = vmatpush.msra.mxu2 %v7057_v49 }
 0xa66   :  { %3373 = vmatpush.msra.mxu2 %v7065_v37 }
 0xa67   :  { %3277 = vmatpush.bf16.msra.mxu0 %v8222_v13 }
 0xa68   :  { %3290 = vmatpush.bf16.msra.mxu1 %v8224_v43  ;;  %3375 = vmatpush.msra.mxu2 %v7068_v55 }
 0xa6b   :  { %3278 = vmatpush.bf16.msra.mxu0 %v8226_v9 }
 0xa6c   :  { %3291 = vmatpush.bf16.msra.mxu1 %v6001_v62  ;;  %v5034_v62 = vmul.f32 -1.442695, %v6994_v27  ;;  %v8631_v27 = vld [vmem:[#allocation86_spill] sm:$0xff] }
 0xa6d   :  { %v471_v56 = vadd.f32 %v8632_v12, %v8631_v27 }
 0xa6e   :  { %3163 = vmatmul.bf16.vlgmr.msrb.gmra.mxu0 %v6945_v11  ;;  %3176 = vmatmul.bf16.vlgmr.msrb.gmra.mxu1 %v6945_v11  ;;  %5408 = vpow2.f32 %v5034_v62  ;;  %v3409_v62 = vand.u32 4294901760, %v7060_v21 }
 0xa6f   :  { %3189 = vmatmul.bf16.vlgmr.msrb.gmra.mxu2 %v6945_v11  ;;  %3279 = vmatpush.bf16.msra.mxu0 %v6012_v14 }
 0xa70   :  { %3292 = vmatpush.bf16.msra.mxu1 %v8229_v53 }
 0xa73   :  { %3280 = vmatpush.bf16.msra.mxu0 %v8566_v38 }
 0xa74   :  { %3293 = vmatpush.bf16.msra.mxu1 %v8232_v0  ;;  %v5409_v18 = vpop.eup %5408  ;;  %v8627_v0 = vld [vmem:[#allocation81_spill] sm:$0xff] }
 0xa75   :  { %v3207_v54 = vadd.f32 1.0, %v5409_v18  ;;  %v413_v38 = vadd.f32 %v8628_v57, %v8627_v0  ;;  %v3415_v18 = vand.u32 4294901760, %v7063_v41  ;;  %v3410_v57 = vsub.f32 %v7060_v21, %v3409_v62 }
 0xa77   :  { %3281 = vmatpush.bf16.msra.mxu0 %v8570_v30  ;;  %5410 = vrcp.f32 %v3207_v54  ;;  %v8630_v30 = vld [vmem:[#allocation107_spill] sm:$0xff]  ;;  %v3221_v16 = vand.u32 2147483648, %v3207_v54  ;;  %vm3215_vm9 = vweird.f32 %v3207_v54  ;;  %v3219_v31 = vand.u32 2147483647, %v3207_v54 }
 0xa78   :  { %3294 = vmatpush.bf16.msra.mxu1 %v8568_v28  ;;  %v8629_v28 = vld [vmem:[#allocation85_spill] sm:$0xff] }
 0xa79   :  { %v3222_v35 = vor.u32 1.1754944e-38, %v3221_v16  ;;  %vm3220_vm11 = vcmp.eq.f32.partialorder %v3219_v31, 8.507059e+37 }
 0xa7b   :  { %3282 = vmatpush.bf16.msra.mxu0 %v8574_v3 }
 0xa7c   :  { %3295 = vmatpush.bf16.msra.mxu1 %v8572_v7  ;;  %v442_v7 = vadd.f32 %v8630_v30, %v8629_v28 }
 0xa7d   :  { %v5411_v9 = vpop.eup %5410 }
 0xa7e   :  { %v3211_v53 = vmul.f32 %v5411_v9, %v3207_v54  ;;  %vm3216_vm8 = vweird.f32 %v5411_v9  ;;  %v7077_v54 = vsub.f32 %v3358_v5, %v7065_v37 }
 0xa7f   :  { %vm3217_vm10 = vmor %vm3215_vm9, %vm3216_vm8  ;;  %3510 = vmatpush.msrb.mxu0 %v7060_v21 }
 0xa80   :  { %v3212_v59 = vsub.f32 1.0, %v3211_v53  ;;  %3563 = vmatpush.msrb.mxu1 %v7047_v20  ;;  %v3421_v53 = vand.u32 4294901760, %v7072_v8 }
 0xa81   :  { %3513 = vmatpush.msrb.mxu0 %v7063_v41 }
 0xa82   :  { %v3213_v17 = vmul.f32 %v5411_v9, %v3212_v59  ;;  %3565 = vmatpush.msrb.mxu1 %v7049_v34  ;;  %v3422_v30 = vsub.f32 %v7072_v8, %v3421_v53 }
 0xa83   :  { %3516 = vmatpush.msrb.mxu0 %v7072_v8 }
 0xa84   :  { %v3214_v45 = vadd.f32 %v5411_v9, %v3213_v17  ;;  %3567 = vmatpush.msrb.mxu1 %v7057_v49  ;;  %v3423_v17 = vand.u32 4294901760, %v3422_v30  ;;  %v3352_v30 = vld [vmem:[%s7838_s7 + $0x30] sm:$0xff] }
 0xa85   :  { %3519 = vmatpush.msrb.mxu0 %v7077_v54 }
 0xa86   :  { %v3218_v48 = vsel %vm3217_vm10, %v5411_v9, %v3214_v45  ;;  %3569 = vmatpush.msrb.mxu1 %v7065_v37 }
 0xa87   :  { %v3223_v23 = vsel %vm3220_vm11, %v3222_v35, %v3218_v48 }
 0xa88   :  { %3571 = vmatpush.msrb.mxu1 %v7068_v55 }
 0xadb   :  { %v7020_v14 = vpop.f32.mrf.mxu0  ;;  %v7022_v1 = vpop.f32.mrf.mxu1 }
 0xae2   :  { %v7024_v36 = vpop.f32.mrf.mxu2 }
 0xae3   :  { %v3114_v13 = vpop.f32.mrf.mxu0  ;;  %v3127_v43 = vpop.f32.mrf.mxu1 }
 0xae4   :  { %v7080_v13 = vsub.f32 %v3357_v63, %v7068_v55  ;;  %v3354_v63 = vld [vmem:[%s7838_s7 + $0x40] sm:$0xff] }
 0xae6   :  { %3522 = vmatpush.msrb.mxu0 %v7080_v13 }
 0xaea   :  { %v3140_v3 = vpop.f32.mrf.mxu2 }
 0xaeb   :  { %v3164_v11 = vpop.f32.mrf.mxu0  ;;  %v3177_v40 = vpop.f32.mrf.mxu1  ;;  %v3433_v3 = vand.u32 4294901760, %v7080_v13 }
 0xaec   :  { %v3195_v25 = vadd.f32 %v3164_v11, %v413_v38  ;;  %v3196_v58 = vadd.f32 %v3177_v40, %v442_v7  ;;  %v3416_v38 = vsub.f32 %v7063_v41, %v3415_v18  ;;  %v3427_v7 = vand.u32 4294901760, %v7077_v54 }
 0xaed   :  { %v3411_v40 = vand.u32 4294901760, %v3410_v57  ;;  %v3434_v27 = vsub.f32 %v7080_v13, %v3433_v3 }
 0xaee   :  { %v5035_v29 = vmul.f32 -1.442695, %v3195_v25  ;;  %v5036_v15 = vmul.f32 -1.442695, %v3196_v58  ;;  %v3417_v59 = vand.u32 4294901760, %v3416_v38 }
 0xaef   :  { %3412 = vmatpush.msra.mxu3 %v3411_v40  ;;  %v3435_v45 = vand.u32 4294901760, %v3434_v27 }
 0xaf0   :  { %5412 = vpow2.f32 %v5035_v29  ;;  %v3428_v29 = vsub.f32 %v7077_v54, %v3427_v7 }
 0xaf1   :  { %5414 = vpow2.f32 %v5036_v15  ;;  %3418 = vmatpush.msra.mxu3 %v3417_v59 }
 0xaf2   :  { %v3190_v19 = vpop.f32.mrf.mxu2 }
 0xaf3   :  { %v3197_v46 = vadd.f32 %v3190_v19, %v471_v56  ;;  %v3166_v2 = vpop.f32.mrf.mxu0  ;;  %v3179_v22 = vpop.f32.mrf.mxu1  ;;  %v3429_v19 = vand.u32 4294901760, %v3428_v29  ;;  %3424 = vmatpush.msra.mxu3 %v3423_v17  ;;  %v3351_v29 = vld [vmem:[%s7838_s7 + $0x28] sm:$0xff] }
 0xaf5   :  { %5416 = vtanh.f32 %v3197_v46  ;;  %3430 = vmatpush.msra.mxu3 %v3429_v19  ;;  %v3350_v19 = vld [vmem:[%s7838_s7 + $0x20] sm:$0xff] }
 0xaf6   :  { %v5413_v47 = vpop.eup %5412 }
 0xaf7   :  { %v5415_v50 = vpop.eup %5414  ;;  %v7032_v42 = vadd.f32 1.0, %v5413_v47  ;;  %3436 = vmatpush.msra.mxu3 %v3435_v45  ;;  %v7203_v45 = vand.u32 4294901760, %v3350_v19 }
 0xaf8   :  { %v7034_v33 = vadd.f32 1.0, %v5415_v50 }
 0xaf9   :  { %5418 = vrcp.f32 %v7032_v42  ;;  %v3236_v11 = vand.u32 2147483648, %v7032_v42  ;;  %v3234_v58 = vand.u32 2147483647, %v7032_v42  ;;  %vm3230_vm13 = vweird.f32 %v7032_v42 }
 0xafa   :  { %5420 = vrcp.f32 %v7034_v33  ;;  %v3192_v10 = vpop.f32.mrf.mxu2  ;;  %v3251_v50 = vand.u32 2147483648, %v7034_v33  ;;  %vm3245_vm1 = vweird.f32 %v7034_v33 }
 0xafb   :  { %v5417_v60 = vpop.eup %5416  ;;  %v3237_v56 = vor.u32 1.1754944e-38, %v3236_v11  ;;  %vm3235_vm15 = vcmp.eq.f32.partialorder %v3234_v58, 8.507059e+37  ;;  %v7176_v58 = vand.u32 4294901760, %v3352_v30 }
 0xafc   :  { %v3257_v4 = vmul.f32 %v5417_v60, %v3223_v23  ;;  %v3252_v35 = vor.u32 1.1754944e-38, %v3251_v50  ;;  %v7125_v60 = vand.u32 4294901760, %v3356_v52 }
 0xafe   :  { %v7131_v23 = vsub.f32 %v3356_v52, %v7125_v60  ;;  %3377 = vmatpush.msra.mxu2 %v7125_v60  ;;  %3573 = vmatpush.msrb.mxu1 %v7125_v60 }
 0xaff   :  { %v5419_v51 = vpop.eup %5418 }
 0xb00   :  { %v5421_v43 = vpop.eup %5420  ;;  %v3226_v9 = vmul.f32 %v5419_v51, %v7032_v42  ;;  %vm3231_vm12 = vweird.f32 %v5419_v51  ;;  %v3249_v42 = vand.u32 2147483647, %v7034_v33  ;;  %3525 = vmatpush.msrb.mxu0 %v7131_v23 }
 0xb01   :  { %v3241_v0 = vmul.f32 %v5421_v43, %v7034_v33  ;;  %vm3232_vm14 = vmor %vm3230_vm13, %vm3231_vm12  ;;  %vm3246_vm0 = vweird.f32 %v5421_v43  ;;  %v3355_v33 = vld [vmem:[%s7838_s7 + $0x48] sm:$0xff]  ;;  %vm4431_vm12 = vcmask 31744  }
 0xb02   :  { %v3227_v28 = vsub.f32 1.0, %v3226_v9  ;;  %vm3247_vm2 = vmor %vm3245_vm1, %vm3246_vm0  ;;  %vm3250_vm3 = vcmp.eq.f32.partialorder %v3249_v42, 8.507059e+37  ;;  %v7133_v5 = vand.u32 4294901760, %v3355_v33  ;;  %v3353_v9 = vld [vmem:[%s7838_s7 + $0x38] sm:$0xff]  ;;  %v7213_v42 = vsub.f32 %v3350_v19, %v7203_v45 }
 0xb03   :  { %v3242_v15 = vsub.f32 1.0, %v3241_v0 }
 0xb04   :  { %v3228_v25 = vmul.f32 %v5419_v51, %v3227_v28  ;;  %3379 = vmatpush.msra.mxu2 %v7133_v5  ;;  %3575 = vmatpush.msrb.mxu1 %v7133_v5  ;;  %v7159_v28 = vand.u32 4294901760, %v3353_v9 }
 0xb05   :  { %v3243_v2 = vmul.f32 %v5421_v43, %v3242_v15 }
 0xb06   :  { %v3229_v12 = vadd.f32 %v5419_v51, %v3228_v25  ;;  %v7172_v25 = vsub.f32 %v3353_v9, %v7159_v28 }
 0xb07   :  { %v3244_v31 = vadd.f32 %v5421_v43, %v3243_v2 }
 0xb08   :  { %v3233_v46 = vsel %vm3232_vm14, %v5419_v51, %v3229_v12  ;;  %v7142_v51 = vsub.f32 %v3355_v33, %v7133_v5  ;;  %v3457_v27 = vand.u32 4294901760, %v7172_v25  ;;  %v7186_v12 = vand.u32 4294901760, %v3351_v29 }
 0xb09   :  { %v3238_v22 = vsel %vm3235_vm15, %v3237_v56, %v3233_v46  ;;  %v3248_v48 = vsel %vm3247_vm2, %v5421_v43, %v3244_v31  ;;  %v7144_v43 = vand.u32 4294901760, %v3354_v63  ;;  %v7190_v56 = vsub.f32 %v3352_v30, %v7176_v58 }
 0xb0a   :  { %v3256_v16 = vmul.f32 %v3238_v22, %v6942_v32  ;;  %v3253_v61 = vsel %vm3250_vm3, %v3252_v35, %v3248_v48  ;;  %v3445_v57 = vand.u32 4294901760, %v7142_v51  ;;  %3528 = vmatpush.msrb.mxu0 %v7142_v51  ;;  %v3458_v2 = vsub.f32 %v7172_v25, %v3457_v27 }
 0xb0b   :  { %v7157_v38 = vsub.f32 %v3354_v63, %v7144_v43  ;;  %3381 = vmatpush.msra.mxu2 %v7144_v43  ;;  %3577 = vmatpush.msrb.mxu1 %v7144_v43  ;;  %v7201_v22 = vsub.f32 %v3351_v29, %v7186_v12  ;;  %v3347_v63 = vld [vmem:[%s7838_s7 + $0x8] sm:$0xff]  ;;  %v3346_v29 = vld [vmem:[%s7838_s7] sm:$0xff] }
 0xb0c   :  { %v3258_v47 = vadd.f32 %v3257_v4, %v3256_v16  ;;  %v3439_v4 = vand.u32 4294901760, %v7131_v23  ;;  %v3446_v40 = vsub.f32 %v7142_v51, %v3445_v57  ;;  %v3463_v16 = vand.u32 4294901760, %v7190_v56 }
 0xb0d   :  { %v3451_v59 = vand.u32 4294901760, %v7157_v38  ;;  %3383 = vmatpush.msra.mxu2 %v7159_v28  ;;  %3531 = vmatpush.msrb.mxu0 %v7157_v38  ;;  %v3459_v31 = vand.u32 4294901760, %v3458_v2  ;;  %v3469_v50 = vand.u32 4294901760, %v7201_v22 }
 0xb0e   :  { %5422 = vtanh.f32 %v3258_v47  ;;  %v3440_v0 = vsub.f32 %v7131_v23, %v3439_v4  ;;  %3579 = vmatpush.msrb.mxu1 %v7159_v28  ;;  %v3447_v15 = vand.u32 4294901760, %v3446_v40  ;;  %v3349_v47 = vld [vmem:[%s7838_s7 + $0x18] sm:$0xff]  ;;  %v3464_v35 = vsub.f32 %v7190_v56, %v3463_v16 }
 0xb0f   :  { %v3452_v17 = vsub.f32 %v7157_v38, %v3451_v59  ;;  %3534 = vmatpush.msrb.mxu0 %v7172_v25  ;;  %3385 = vmatpush.msra.mxu2 %v7176_v58  ;;  %v7215_v48 = vand.u32 4294901760, %v3349_v47  ;;  %v7249_v40 = vand.u32 4294901760, %v3347_v63  ;;  %v3723_v25 = vld [vmem:[#allocation9 + $0x78] sm:$0xff] }
 0xb10   :  { %v3441_v11 = vand.u32 4294901760, %v3440_v0  ;;  %3581 = vmatpush.msrb.mxu1 %v7176_v58  ;;  %v3465_v33 = vand.u32 4294901760, %v3464_v35 }
 0xb11   :  { %v3453_v46 = vand.u32 4294901760, %v3452_v17  ;;  %3387 = vmatpush.msra.mxu2 %v7186_v12  ;;  %3537 = vmatpush.msrb.mxu0 %v7190_v56  ;;  %v3492_v2 = vsub.f32 %v3347_v63, %v7249_v40 }
 0xb12   :  { %3442 = vmatpush.msra.mxu3 %v3441_v11  ;;  %3583 = vmatpush.msrb.mxu1 %v7186_v12 }
 0xb13   :  { %3389 = vmatpush.msra.mxu2 %v7203_v45  ;;  %3540 = vmatpush.msrb.mxu0 %v7201_v22 }
 0xb14   :  { %v5423_v10 = vpop.eup %5422  ;;  %3448 = vmatpush.msra.mxu3 %v3447_v15  ;;  %3585 = vmatpush.msrb.mxu1 %v7203_v45 }
 0xb15   :  { %v3260_v39 = vmul.f32 %v5423_v10, %v3253_v61  ;;  %v3348_v10 = vld [vmem:[%s7838_s7 + $0x10] sm:$0xff]  ;;  %v3470_v61 = vsub.f32 %v7201_v22, %v3469_v50  ;;  %3391 = vmatpush.msra.mxu2 %v7215_v48  ;;  %3543 = vmatpush.msrb.mxu0 %v7213_v42  ;;  %v7334_v22 = vand.u32 4294901760, %v3723_v25 }
 0xb16   :  { %3454 = vmatpush.msra.mxu3 %v3453_v46  ;;  %v7233_v52 = vand.u32 4294901760, %v3348_v10  ;;  %3587 = vmatpush.msrb.mxu1 %v7215_v48  ;;  %v7259_v46 = vand.u32 4294901760, %v3346_v29 }
 0xb17   :  { %v3261_v32 = vpack.c.bf16 %v3260_v39, %v3260_v39  ;;  %v3475_v39 = vand.u32 4294901760, %v7213_v42  ;;  %v3471_v9 = vand.u32 4294901760, %v3470_v61 }
 0xb18   :  { %3460 = vmatpush.msra.mxu3 %v3459_v31  ;;  %v7246_v11 = vsub.f32 %v3348_v10, %v7233_v52  ;;  %3393 = vmatpush.msra.mxu2 %v7233_v52  ;;  %v3498_v35 = vsub.f32 %v3346_v29, %v7259_v46  ;;  %v3493_v10 = vand.u32 4294901760, %v3492_v2 }
 0xb19   :  { %3270 = vmatmul.bf16.vlgmr.msrb.gmra.mxu3 %v3261_v32  ;;  %3283 = vmatmul.bf16.vlgmr.msra.gmra.mxu0 %v3261_v32  ;;  %v3476_v0 = vsub.f32 %v7213_v42, %v3475_v39  ;;  %v3719_v42 = vld [vmem:[#allocation9 + $0x58] sm:$0xff] }
 0xb1a   :  { %3296 = vmatmul.bf16.vlgmr.msra.gmra.mxu1 %v3261_v32  ;;  %v7231_v32 = vsub.f32 %v3349_v47, %v7215_v48  ;;  %3466 = vmatpush.msra.mxu3 %v3465_v33  ;;  %v3487_v19 = vand.u32 4294901760, %v7246_v11  ;;  %v3499_v33 = vand.u32 4294901760, %v3498_v35  ;;  %v3494_v63 = vsub.f32 %v3492_v2, %v3493_v10 }
 0xb1b   :  { %v3477_v15 = vand.u32 4294901760, %v3476_v0  ;;  %3589 = vmatpush.msrb.mxu1 %v7233_v52  ;;  %3395 = vmatpush.msra.mxu2 %v7249_v40 }
 0xb1c   :  { %v3481_v30 = vand.u32 4294901760, %v7231_v32  ;;  %3546 = vmatpush.msrb.mxu0 %v7231_v32  ;;  %3472 = vmatpush.msra.mxu3 %v3471_v9  ;;  %v3488_v31 = vsub.f32 %v7246_v11, %v3487_v19  ;;  %v3500_v9 = vsub.f32 %v3498_v35, %v3499_v33  ;;  %v3495_v0 = vand.u32 4294901760, %v3494_v63 }
 0xb1d   :  { %3591 = vmatpush.msrb.mxu1 %v7249_v40  ;;  %3397 = vmatpush.msra.mxu2 %v7259_v46 }
 0xb1e   :  { %v3482_v17 = vsub.f32 %v7231_v32, %v3481_v30  ;;  %3549 = vmatpush.msrb.mxu0 %v7246_v11  ;;  %3478 = vmatpush.msra.mxu3 %v3477_v15  ;;  %v3489_v61 = vand.u32 4294901760, %v3488_v31  ;;  %v3501_v11 = vand.u32 4294901760, %v3500_v9 }
 0xb1f   :  { %3604 = vmatpush.msrb.mxu2 %v3409_v62  ;;  %3593 = vmatpush.msrb.mxu1 %v7259_v46 }
 0xb20   :  { %v3483_v47 = vand.u32 4294901760, %v3482_v17  ;;  %3552 = vmatpush.msrb.mxu0 %v3492_v2  ;;  %v3717_v17 = vld [vmem:[#allocation9 + $0x48] sm:$0xff] }
 0xb21   :  { %3608 = vmatpush.msrb.mxu2 %v3415_v18 }
 0xb22   :  { %3484 = vmatpush.msra.mxu3 %v3483_v47  ;;  %3555 = vmatpush.msrb.mxu0 %v3498_v35 }
 0xb23   :  { %3612 = vmatpush.msrb.mxu2 %v3421_v53 }
 0xb24   :  { %3490 = vmatpush.msra.mxu3 %v3489_v61  ;;  %3729 = vmatpush.msra.mxu0 %v7334_v22 }
 0xb25   :  { %3616 = vmatpush.msrb.mxu2 %v3427_v7 }
 0xb26   :  { %3496 = vmatpush.msra.mxu3 %v3495_v0 }
 0xb27   :  { %3620 = vmatpush.msrb.mxu2 %v3433_v3 }
 0xb28   :  { %3502 = vmatpush.msra.mxu3 %v3501_v11  ;;  %v7372_v11 = vand.u32 4294901760, %v3717_v17 }
 0xb29   :  { %3624 = vmatpush.msrb.mxu2 %v3439_v4 }
 0xb2a   :  { %3671 = vmatpush.msrb.mxu3 %v7047_v20 }
 0xb2b   :  { %3628 = vmatpush.msrb.mxu2 %v3445_v57  ;;  %v3711_v57 = vld [vmem:[#allocation9 + $0x18] sm:$0xff] }
 0xb2c   :  { %3673 = vmatpush.msrb.mxu3 %v7049_v34 }
 0xb2d   :  { %3632 = vmatpush.msrb.mxu2 %v3451_v59 }
 0xb2e   :  { %3675 = vmatpush.msrb.mxu3 %v7057_v49 }
 0xb2f   :  { %3636 = vmatpush.msrb.mxu2 %v3457_v27  ;;  %v3721_v27 = vld [vmem:[#allocation9 + $0x68] sm:$0xff] }
 0xb30   :  { %3677 = vmatpush.msrb.mxu3 %v7065_v37 }
 0xb31   :  { %3640 = vmatpush.msrb.mxu2 %v3463_v16  ;;  %v7338_v16 = vand.u32 4294901760, %v3721_v27 }
 0xb32   :  { %3679 = vmatpush.msrb.mxu3 %v7068_v55 }
 0xb33   :  { %3644 = vmatpush.msrb.mxu2 %v3469_v50  ;;  %v3720_v50 = vld [vmem:[#allocation9 + $0x60] sm:$0xff]  ;;  %v7353_v15 = vsub.f32 %v3721_v27, %v7338_v16 }
 0xb34   :  { %3681 = vmatpush.msrb.mxu3 %v7125_v60  ;;  %v7342_v32 = vand.u32 4294901760, %v3720_v50 }
 0xb35   :  { %3648 = vmatpush.msrb.mxu2 %v3475_v39  ;;  %v3783_v61 = vand.u32 4294901760, %v7353_v15 }
 0xb36   :  { %3683 = vmatpush.msrb.mxu3 %v7133_v5  ;;  %v7359_v2 = vsub.f32 %v3720_v50, %v7342_v32 }
 0xb37   :  { %3652 = vmatpush.msrb.mxu2 %v3481_v30  ;;  %v3718_v30 = vld [vmem:[#allocation9 + $0x50] sm:$0xff] }
 0xb38   :  { %3685 = vmatpush.msrb.mxu3 %v7144_v43  ;;  %v3789_v9 = vand.u32 4294901760, %v7359_v2 }
 0xb39   :  { %3656 = vmatpush.msrb.mxu2 %v3487_v19 }
 0xb3a   :  { %3687 = vmatpush.msrb.mxu3 %v7159_v28 }
 0xb3b   :  { %3660 = vmatpush.msrb.mxu2 %v3493_v10 }
 0xb3c   :  { %3689 = vmatpush.msrb.mxu3 %v7176_v58  ;;  %v3722_v58 = vld [vmem:[#allocation9 + $0x70] sm:$0xff] }
 0xb3d   :  { %3664 = vmatpush.msrb.mxu2 %v3499_v33  ;;  %v7368_v33 = vand.u32 4294901760, %v3718_v30 }
 0xb3e   :  { %3691 = vmatpush.msrb.mxu3 %v7186_v12 }
 0xb40   :  { %3693 = vmatpush.msrb.mxu3 %v7203_v45  ;;  %v7336_v45 = vand.u32 4294901760, %v3722_v58 }
 0xb42   :  { %3695 = vmatpush.msrb.mxu3 %v7215_v48  ;;  %v7350_v29 = vsub.f32 %v3722_v58, %v7336_v45  ;;  %3731 = vmatpush.msra.mxu0 %v7336_v45 }
 0xb44   :  { %3697 = vmatpush.msrb.mxu3 %v7233_v52  ;;  %v7344_v52 = vand.u32 4294901760, %v3719_v42  ;;  %v3777_v10 = vand.u32 4294901760, %v7350_v29  ;;  %3733 = vmatpush.msra.mxu0 %v7338_v16 }
 0xb46   :  { %3699 = vmatpush.msrb.mxu3 %v7249_v40  ;;  %v7347_v40 = vsub.f32 %v3723_v25, %v7334_v22  ;;  %v7362_v47 = vsub.f32 %v3719_v42, %v7344_v52  ;;  %3735 = vmatpush.msra.mxu0 %v7342_v32 }
 0xb48   :  { %3701 = vmatpush.msrb.mxu3 %v7259_v46  ;;  %v3771_v35 = vand.u32 4294901760, %v7347_v40  ;;  %v3795_v0 = vand.u32 4294901760, %v7362_v47  ;;  %3737 = vmatpush.msra.mxu0 %v7344_v52 }
 0xb4a   :  { %3739 = vmatpush.msra.mxu0 %v7368_v33 }
 0xb4c   :  { %3741 = vmatpush.msra.mxu0 %v7372_v11 }
 0xb96   :  { %v3284_v21 = vpop.f32.mrf.mxu0 }
 0xb97   :  { %v3285_v20 = vadd.f32 %v3284_v21, %v7022_v1  ;;  %v3297_v41 = vpop.f32.mrf.mxu1  ;;  %v3772_v21 = vsub.f32 %v7347_v40, %v3771_v35 }
 0xb98   :  { %v3298_v13 = vadd.f32 %v3297_v41, %v7024_v36  ;;  %v3784_v41 = vsub.f32 %v7353_v15, %v3783_v61 }
 0xb99   :  { %v3302_v34 = vadd.f32 %v3285_v20, %v8622_v26  ;;  %v3778_v20 = vsub.f32 %v7350_v29, %v3777_v10 }
 0xb9a   :  { %v3303_v5 = vadd.f32 %v3298_v13, %v8626_v24 }
 0xb9b   :  { %v5038_v49 = vmul.f32 -1.442695, %v3302_v34  ;;  %v7387_v34 = vsub.f32 %v3718_v30, %v7368_v33 }
 0xb9c   :  { %v3271_v1 = vpop.f32.mrf.mxu3 }
 0xb9d   :  { %5424 = vpow2.f32 %v5038_v49  ;;  %v3272_v37 = vadd.f32 %v3271_v1, %v7020_v14  ;;  %v3790_v1 = vsub.f32 %v7359_v2, %v3789_v9 }
 0xb9e   :  { %v3286_v26 = vpop.f32.mrf.mxu0 }
 0xb9f   :  { %v3301_v55 = vadd.f32 %v3272_v37, %v8621_v44  ;;  %v3299_v8 = vpop.f32.mrf.mxu1  ;;  %v7394_v37 = vsub.f32 %v3717_v17, %v7372_v11  ;;  %v3716_v26 = vld [vmem:[#allocation9 + $0x40] sm:$0xff] }
 0xba0   :  { %v3714_v8 = vld [vmem:[#allocation9 + $0x30] sm:$0xff] }
 0xba1   :  { %v5037_v62 = vmul.f32 -1.442695, %v3301_v55  ;;  %v3715_v55 = vld [vmem:[#allocation9 + $0x38] sm:$0xff] }
 0xba3   :  { %v5425_v18 = vpop.eup %5424  ;;  %5426 = vpow2.f32 %v5037_v62 }
 0xba4   :  { %v3311_v14 = vadd.f32 1.0, %v5425_v18  ;;  %v3273_v54 = vpop.f32.mrf.mxu3 }
 0xba5   :  { %v3779_v54 = vand.u32 4294901760, %v3778_v20 }
 0xba6   :  { %5428 = vrcp.f32 %v3311_v14  ;;  %v3336_v60 = vand.u32 2147483647, %v3311_v14  ;;  %v3338_v23 = vand.u32 2147483648, %v3311_v14  ;;  %vm3332_vm5 = vweird.f32 %v3311_v14 }
 0xba8   :  { %vm7323_vm6 = vcmp.eq.f32.partialorder %v3336_v60, 8.507059e+37  ;;  %v3339_v38 = vor.u32 1.1754944e-38, %v3338_v23  ;;  %v3712_v60 = vld [vmem:[#allocation9 + $0x20] sm:$0xff]  ;;  %v3807_v23 = vand.u32 4294901760, %v7394_v37 }
 0xba9   :  { %v5427_v44 = vpop.eup %5426 }
 0xbaa   :  { %v7316_v53 = vadd.f32 1.0, %v5427_v44  ;;  %v3713_v44 = vld [vmem:[#allocation9 + $0x28] sm:$0xff]  ;;  %v3808_v27 = vsub.f32 %v7394_v37, %v3807_v23 }
 0xbac   :  { %v5429_v7 = vpop.eup %5428  ;;  %5430 = vrcp.f32 %v7316_v53  ;;  %v3323_v51 = vand.u32 2147483648, %v7316_v53  ;;  %vm3317_vm7 = vweird.f32 %v7316_v53  ;;  %v3321_v24 = vand.u32 2147483647, %v7316_v53 }
 0xbad   :  { %v3328_v3 = vmul.f32 %v5429_v7, %v3311_v14  ;;  %vm3333_vm4 = vweird.f32 %v5429_v7  ;;  %5432 = vtanh.f32 %v3303_v5  ;;  %v3773_v14 = vand.u32 4294901760, %v3772_v21 }
 0xbae   :  { %vm7330_vm8 = vmor %vm3332_vm5, %vm3333_vm4  ;;  %v3324_v56 = vor.u32 1.1754944e-38, %v3323_v51  ;;  %vm3322_vm11 = vcmp.eq.f32.partialorder %v3321_v24, 8.507059e+37  ;;  %v7403_v5 = vand.u32 4294901760, %v3716_v26  ;;  %v7422_v24 = vand.u32 4294901760, %v3712_v60 }
 0xbaf   :  { %v3329_v4 = vsub.f32 1.0, %v3328_v3  ;;  %v3801_v3 = vand.u32 4294901760, %v7387_v34  ;;  %3774 = vmatpush.msra.mxu1 %v3773_v14 }
 0xbb0   :  { %3743 = vmatpush.msra.mxu0 %v7403_v5 }
 0xbb1   :  { %v3330_v43 = vmul.f32 %v5429_v7, %v3329_v4  ;;  %v7408_v4 = vand.u32 4294901760, %v3714_v8  ;;  %3780 = vmatpush.msra.mxu1 %v3779_v54 }
 0xbb2   :  { %v5431_v36 = vpop.eup %5430 }
 0xbb3   :  { %v3331_v28 = vadd.f32 %v5429_v7, %v3330_v43  ;;  %v3313_v59 = vmul.f32 %v5431_v36, %v7316_v53  ;;  %vm3318_vm9 = vweird.f32 %v5431_v36  ;;  %v5433_v31 = vpop.eup %5432  ;;  %v3785_v53 = vand.u32 4294901760, %v3784_v41 }
 0xbb4   :  { %vm3319_vm10 = vmor %vm3317_vm7, %vm3318_vm9  ;;  %v3791_v43 = vand.u32 4294901760, %v3790_v1  ;;  %v7428_v12 = vsub.f32 %v3714_v8, %v7408_v4 }
 0xbb5   :  { %v3314_v48 = vsub.f32 1.0, %v3313_v59  ;;  %v3335_v39 = vsel %vm7330_vm8, %v5429_v7, %v3331_v28  ;;  %v3796_v7 = vsub.f32 %v7362_v47, %v3795_v0  ;;  %v7416_v28 = vsub.f32 %v3716_v26, %v7403_v5  ;;  %3786 = vmatpush.msra.mxu1 %v3785_v53 }
 0xbb6   :  { %v3340_v46 = vsel %vm7323_vm6, %v3339_v38, %v3335_v39  ;;  %v3802_v38 = vsub.f32 %v7387_v34, %v3801_v3 }
 0xbb7   :  { %v3315_v19 = vmul.f32 %v5431_v36, %v3314_v48  ;;  %v3343_v18 = vmul.f32 %v3340_v46, %v6997_v6  ;;  %v7406_v6 = vand.u32 4294901760, %v3715_v55  ;;  %v3797_v58 = vand.u32 4294901760, %v3796_v7  ;;  %3792 = vmatpush.msra.mxu1 %v3791_v43 }
 0xbb8   :  { %v7436_v48 = vand.u32 4294901760, %v3711_v57  ;;  %v3803_v30 = vand.u32 4294901760, %v3802_v38  ;;  %v7444_v46 = vsub.f32 %v3712_v60, %v7422_v24 }
 0xbb9   :  { %v3316_v63 = vadd.f32 %v5431_v36, %v3315_v19  ;;  %v7419_v59 = vsub.f32 %v3715_v55, %v7406_v6  ;;  %v3825_v19 = vand.u32 4294901760, %v7428_v12  ;;  %3798 = vmatpush.msra.mxu1 %v3797_v58  ;;  %3745 = vmatpush.msra.mxu0 %v7406_v6  ;;  %v3708_v58 = vld [vmem:[#allocation9] sm:$0xff] }
 0xbba   :  { %v7453_v41 = vsub.f32 %v3711_v57, %v7436_v48  ;;  %v3837_v55 = vand.u32 4294901760, %v7444_v46  ;;  %v3709_v57 = vld [vmem:[#allocation9 + $0x8] sm:$0xff] }
 0xbbb   :  { %v3320_v49 = vsel %vm3319_vm10, %v5431_v36, %v3316_v63  ;;  %v7410_v36 = vand.u32 4294901760, %v3713_v44  ;;  %v3819_v50 = vand.u32 4294901760, %v7419_v59  ;;  %v3809_v63 = vand.u32 4294901760, %v3808_v27  ;;  %3804 = vmatpush.msra.mxu1 %v3803_v30  ;;  %3747 = vmatpush.msra.mxu0 %v7408_v4 }
 0xbbc   :  { %v3325_v62 = vsel %vm3322_vm11, %v3324_v56, %v3320_v49  ;;  %v3813_v56 = vand.u32 4294901760, %v7416_v28  ;;  %v3826_v26 = vsub.f32 %v7428_v12, %v3825_v19  ;;  %v3843_v14 = vand.u32 4294901760, %v7453_v41 }
 0xbbd   :  { %v3344_v13 = vmul.f32 %v5433_v31, %v3325_v62  ;;  %v7434_v42 = vsub.f32 %v3713_v44, %v7410_v36  ;;  %v3820_v21 = vsub.f32 %v7419_v59, %v3819_v50  ;;  %3810 = vmatpush.msra.mxu1 %v3809_v63  ;;  %3749 = vmatpush.msra.mxu0 %v7410_v36  ;;  %v3758_v30 = vand.u32 4294901760, %v3708_v58 }
 0xbbe   :  { %v3814_v17 = vsub.f32 %v7416_v28, %v3813_v56  ;;  %v3827_v54 = vand.u32 4294901760, %v3826_v26  ;;  %v3838_v44 = vsub.f32 %v7444_v46, %v3837_v55  ;;  %v3844_v53 = vsub.f32 %v7453_v41, %v3843_v14 }
 0xbbf   :  { %v3345_v51 = vadd.f32 %v3344_v13, %v3343_v18  ;;  %v3831_v20 = vand.u32 4294901760, %v7434_v42  ;;  %v3821_v62 = vand.u32 4294901760, %v3820_v21  ;;  %3751 = vmatpush.msra.mxu0 %v7422_v24  ;;  %v3860_v63 = vsub.f32 %v3708_v58, %v3758_v30 }
 0xbc0   :  { %v3815_v1 = vand.u32 4294901760, %v3814_v17  ;;  %v3839_v7 = vand.u32 4294901760, %v3838_v44  ;;  %v3845_v60 = vand.u32 4294901760, %v3844_v53  ;;  %v4077_v53 = vld [vmem:[%s7842_s11 + $0x38] sm:$0xff] }
 0xbc1   :  { %v3398_v25 = vand.u32 4294901760, %v3345_v51  ;;  %v3832_v18 = vsub.f32 %v7434_v42, %v3831_v20  ;;  %3753 = vmatpush.msra.mxu0 %v7436_v48 }
 0xbc2   :  { %3816 = vmatpush.msra.mxu1 %v3815_v1  ;;  %v3861_v1 = vand.u32 4294901760, %v3860_v63 }
 0xbc3   :  { %3504 = vmatmul.f32.vlgmr.msra.gmra.mxu3 %v3398_v25  ;;  %v3399_v39 = vsub.f32 %v3345_v51, %v3398_v25  ;;  %v3833_v13 = vand.u32 4294901760, %v3832_v18  ;;  %v3710_v51 = vld [vmem:[#allocation9 + $0x10] sm:$0xff] }
 0xbc4   :  { %3925 = vmatpush.msra.mxu3 %v7334_v22  ;;  %3822 = vmatpush.msra.mxu1 %v3821_v62  ;;  %v3754_v43 = vand.u32 4294901760, %v3710_v51 }
 0xbc5   :  { %3558 = vmatmul.f32.vlgmr.msrb.gmra.mxu0 %v3399_v39  ;;  %v3400_v31 = vand.u32 4294901760, %v3399_v39 }
 0xbc6   :  { %3927 = vmatpush.msra.mxu3 %v7336_v45  ;;  %3828 = vmatpush.msra.mxu1 %v3827_v54  ;;  %v3848_v38 = vsub.f32 %v3710_v51, %v3754_v43 }
 0xbc7   :  { %3597 = vmatmul.f32.vlgmr.msrb.gmra.mxu1 %v3400_v31  ;;  %v3401_v49 = vsub.f32 %v3399_v39, %v3400_v31  ;;  %3755 = vmatpush.msra.mxu0 %v3754_v43 }
 0xbc8   :  { %3929 = vmatpush.msra.mxu3 %v7338_v16  ;;  %3834 = vmatpush.msra.mxu1 %v3833_v13  ;;  %v3849_v27 = vand.u32 4294901760, %v3848_v38  ;;  %v4078_v13 = vld [vmem:[%s7842_s11 + $0x40] sm:$0xff] }
 0xbc9   :  { %v3402_v8 = vand.u32 4294901760, %v3401_v49 }
 0xbca   :  { %3931 = vmatpush.msra.mxu3 %v7342_v32  ;;  %3840 = vmatpush.msra.mxu1 %v3839_v7  ;;  %v3850_v17 = vsub.f32 %v3848_v38, %v3849_v27  ;;  %v4076_v7 = vld [vmem:[%s7842_s11 + $0x30] sm:$0xff] }
 0xbcb   :  { %3403 = vmatmul.f32.vlgmr.msra.gmra.mxu2 %v3402_v8  ;;  %3703 = vmatmul.f32.vlgmr.msrb.gmra.mxu3 %v3398_v25  ;;  %v3862_v8 = vsub.f32 %v3860_v63, %v3861_v1 }
 0xbcc   :  { %3872 = vmatpush.msra.mxu2 %v7347_v40  ;;  %3933 = vmatpush.msra.mxu3 %v7344_v52  ;;  %v3851_v21 = vand.u32 4294901760, %v3850_v17  ;;  %v4084_v40 = vld [vmem:[%s7842_s11 + $0x70] sm:$0xff]  ;;  %v7640_v17 = vand.u32 4294901760, %v4077_v53 }
 0xbcd   :  { %3846 = vmatpush.msra.mxu1 %v3845_v60  ;;  %v3863_v62 = vand.u32 4294901760, %v3862_v8 }
 0xbce   :  { %3875 = vmatpush.msra.mxu2 %v7350_v29  ;;  %3935 = vmatpush.msra.mxu3 %v7368_v33  ;;  %v4083_v29 = vld [vmem:[%s7842_s11 + $0x68] sm:$0xff] }
 0xbcf   :  { %3852 = vmatpush.msra.mxu1 %v3851_v21 }
 0xbd0   :  { %3878 = vmatpush.msra.mxu2 %v7353_v15  ;;  %3937 = vmatpush.msra.mxu3 %v7372_v11 }
 0xbd2   :  { %3881 = vmatpush.msra.mxu2 %v7359_v2  ;;  %3939 = vmatpush.msra.mxu3 %v7403_v5  ;;  %v7551_v2 = vand.u32 4294901760, %v4084_v40 }
 0xbd3   :  { %3666 = vmatmul.f32.vlgmr.msrb.gmra.mxu2 %v3398_v25  ;;  %v3756_v25 = vand.u32 4294901760, %v3709_v57 }
 0xbd4   :  { %3884 = vmatpush.msra.mxu2 %v7362_v47  ;;  %3941 = vmatpush.msra.mxu3 %v7406_v6  ;;  %v7553_v47 = vand.u32 4294901760, %v4083_v29 }
 0xbd5   :  { %v3854_v39 = vsub.f32 %v3709_v57, %v3756_v25  ;;  %3757 = vmatpush.msra.mxu0 %v3756_v25  ;;  %v4075_v57 = vld [vmem:[%s7842_s11 + $0x28] sm:$0xff] }
 0xbd6   :  { %3887 = vmatpush.msra.mxu2 %v7387_v34  ;;  %3943 = vmatpush.msra.mxu3 %v7408_v4  ;;  %v4079_v34 = vld [vmem:[%s7842_s11 + $0x48] sm:$0xff] }
 0xbd7   :  { %v3855_v31 = vand.u32 4294901760, %v3854_v39  ;;  %3759 = vmatpush.msra.mxu0 %v3758_v30 }
 0xbd8   :  { %3890 = vmatpush.msra.mxu2 %v7394_v37  ;;  %3945 = vmatpush.msra.mxu3 %v7410_v36 }
 0xbd9   :  { %3966 = vmatpush.msrb.mxu0 %v3771_v35  ;;  %v3856_v49 = vsub.f32 %v3854_v39, %v3855_v31  ;;  %v4082_v35 = vld [vmem:[%s7842_s11 + $0x60] sm:$0xff] }
 0xbda   :  { %3893 = vmatpush.msra.mxu2 %v7416_v28  ;;  %3947 = vmatpush.msra.mxu3 %v7422_v24 }
 0xbdb   :  { %3970 = vmatpush.msrb.mxu0 %v3777_v10  ;;  %v3857_v26 = vand.u32 4294901760, %v3856_v49  ;;  %v4081_v10 = vld [vmem:[%s7842_s11 + $0x58] sm:$0xff] }
 0xbdc   :  { %3896 = vmatpush.msra.mxu2 %v7419_v59  ;;  %3949 = vmatpush.msra.mxu3 %v7436_v48 }
 0xbdd   :  { %3974 = vmatpush.msrb.mxu0 %v3783_v61  ;;  %3858 = vmatpush.msra.mxu1 %v3857_v26  ;;  %v4080_v61 = vld [vmem:[%s7842_s11 + $0x50] sm:$0xff]  ;;  %v4073_v26 = vld [vmem:[%s7842_s11 + $0x18] sm:$0xff] }
 0xbde   :  { %3899 = vmatpush.msra.mxu2 %v7428_v12  ;;  %3951 = vmatpush.msra.mxu3 %v3754_v43 }
 0xbdf   :  { %3978 = vmatpush.msrb.mxu0 %v3789_v9  ;;  %3864 = vmatpush.msra.mxu1 %v3863_v62  ;;  %v7564_v9 = vand.u32 4294901760, %v4082_v35  ;;  %v7656_v62 = vsub.f32 %v4077_v53, %v7640_v17 }
 0xbe0   :  { %3902 = vmatpush.msra.mxu2 %v7434_v42  ;;  %3953 = vmatpush.msra.mxu3 %v3756_v25 }
 0xbe1   :  { %4033 = vmatpush.msrb.mxu1 %v7334_v22  ;;  %3982 = vmatpush.msrb.mxu0 %v3795_v0  ;;  %v5181_v22 = vld [vmem:[%s7839_s8] ss:$0 sm:$0xff]  ;;  %v7566_v0 = vand.u32 4294901760, %v4081_v10 }
 0xbe2   :  { %3905 = vmatpush.msra.mxu2 %v7444_v46  ;;  %3955 = vmatpush.msra.mxu3 %v3758_v30 }
 0xbe3   :  { %4035 = vmatpush.msrb.mxu1 %v7336_v45  ;;  %3986 = vmatpush.msrb.mxu0 %v3801_v3  ;;  %v7589_v28 = vsub.f32 %v4081_v10, %v7566_v0 }
 0xbe4   :  { %3908 = vmatpush.msra.mxu2 %v7453_v41 }
 0xbe5   :  { %4037 = vmatpush.msrb.mxu1 %v7338_v16  ;;  %3990 = vmatpush.msrb.mxu0 %v3807_v23  ;;  %v7577_v23 = vsub.f32 %v4084_v40, %v7551_v2 }
 0xbe6   :  { %3911 = vmatpush.msra.mxu2 %v3848_v38 }
 0xbe7   :  { %4039 = vmatpush.msrb.mxu1 %v7342_v32  ;;  %3994 = vmatpush.msrb.mxu0 %v3813_v56  ;;  %v4139_v56 = vand.u32 4294901760, %v7577_v23 }
 0xbe8   :  { %3914 = vmatpush.msra.mxu2 %v3854_v39 }
 0xbe9   :  { %4041 = vmatpush.msrb.mxu1 %v7344_v52  ;;  %3998 = vmatpush.msrb.mxu0 %v3819_v50  ;;  %v4085_v52 = vld [vmem:[%s7842_s11 + $0x78] sm:$0xff] }
 0xbea   :  { %3917 = vmatpush.msra.mxu2 %v3860_v63  ;;  %v7549_v15 = vand.u32 4294901760, %v4085_v52 }
 0xbeb   :  { %4043 = vmatpush.msrb.mxu1 %v7368_v33  ;;  %4002 = vmatpush.msrb.mxu0 %v3825_v19  ;;  %v4157_v19 = vand.u32 4294901760, %v7589_v28 }
 0xbec   :  { %v7574_v3 = vsub.f32 %v4085_v52, %v7549_v15  ;;  %4091 = vmatpush.msrb.mxu2 %v7549_v15 }
 0xbed   :  { %4045 = vmatpush.msrb.mxu1 %v7372_v11  ;;  %4006 = vmatpush.msrb.mxu0 %v3831_v20  ;;  %v7568_v11 = vand.u32 4294901760, %v4080_v61 }
 0xbee   :  { %v4133_v12 = vand.u32 4294901760, %v7574_v3  ;;  %4093 = vmatpush.msrb.mxu2 %v7551_v2 }
 0xbef   :  { %4047 = vmatpush.msrb.mxu1 %v7403_v5  ;;  %4010 = vmatpush.msrb.mxu0 %v3837_v55  ;;  %v7580_v5 = vsub.f32 %v4083_v29, %v7553_v47  ;;  %v7592_v59 = vsub.f32 %v4080_v61, %v7568_v11  ;;  %v4140_v55 = vsub.f32 %v7577_v23, %v4139_v56  ;;  %v7678_v61 = vand.u32 4294901760, %v4073_v26 }
 0xbf0   :  { %v4134_v41 = vsub.f32 %v7574_v3, %v4133_v12  ;;  %4095 = vmatpush.msrb.mxu2 %v7553_v47 }
 0xbf1   :  { %4049 = vmatpush.msrb.mxu1 %v7406_v6  ;;  %4014 = vmatpush.msrb.mxu0 %v3843_v14  ;;  %v7583_v6 = vand.u32 4294901760, %v4079_v34  ;;  %v4145_v50 = vand.u32 4294901760, %v7580_v5  ;;  %v4163_v44 = vand.u32 4294901760, %v7592_v59 }
 0xbf2   :  { %v4135_v51 = vand.u32 4294901760, %v4134_v41  ;;  %4097 = vmatpush.msrb.mxu2 %v7564_v9  ;;  %v4071_v41 = vld [vmem:[%s7842_s11 + $0x8] sm:$0xff] }
 0xbf3   :  { %4051 = vmatpush.msrb.mxu1 %v7408_v4  ;;  %4018 = vmatpush.msrb.mxu0 %v3849_v27  ;;  %v7601_v46 = vsub.f32 %v4079_v34, %v7583_v6  ;;  %v4146_v18 = vsub.f32 %v7580_v5, %v4145_v50  ;;  %v4074_v27 = vld [vmem:[%s7842_s11 + $0x20] sm:$0xff]  ;;  %v4164_v49 = vsub.f32 %v7592_v59, %v4163_v44 }
 0xbf4   :  { %4136 = vmatpush.msrb.mxu3 %v4135_v51  ;;  %4099 = vmatpush.msrb.mxu2 %v7566_v0 }
 0xbf5   :  { %4053 = vmatpush.msrb.mxu1 %v7410_v36  ;;  %4022 = vmatpush.msrb.mxu0 %v3855_v31  ;;  %v7586_v36 = vsub.f32 %v4082_v35, %v7564_v9  ;;  %v4169_v58 = vand.u32 4294901760, %v7601_v46  ;;  %v4147_v39 = vand.u32 4294901760, %v4146_v18  ;;  %v7642_v31 = vand.u32 4294901760, %v4076_v7 }
 0xbf6   :  { %4101 = vmatpush.msrb.mxu2 %v7568_v11  ;;  %v4181_v35 = vand.u32 4294901760, %v7656_v62 }
 0xbf7   :  { %4055 = vmatpush.msrb.mxu1 %v7422_v24  ;;  %4026 = vmatpush.msrb.mxu0 %v3861_v1  ;;  %v7647_v1 = vand.u32 4294901760, %v4075_v57  ;;  %v4170_v40 = vsub.f32 %v7601_v46, %v4169_v58 }
 0xbf8   :  { %4103 = vmatpush.msrb.mxu2 %v7583_v6  ;;  %v4182_v18 = vsub.f32 %v7656_v62, %v4181_v35 }
 0xbf9   :  { %4057 = vmatpush.msrb.mxu1 %v7436_v48  ;;  %v4151_v48 = vand.u32 4294901760, %v7586_v36  ;;  %v7676_v10 = vsub.f32 %v4075_v57, %v7647_v1 }
 0xbfb   :  { %4059 = vmatpush.msrb.mxu1 %v3754_v43  ;;  %v4152_v54 = vsub.f32 %v7586_v36, %v4151_v48  ;;  %v4141_v43 = vand.u32 4294901760, %v4140_v55  ;;  %v4171_v55 = vand.u32 4294901760, %v4170_v40 }
 0xbfd   :  { %4061 = vmatpush.msrb.mxu1 %v3756_v25  ;;  %v4158_v25 = vsub.f32 %v7589_v28, %v4157_v19  ;;  %v4153_v21 = vand.u32 4294901760, %v4152_v54  ;;  %4142 = vmatpush.msrb.mxu3 %v4141_v43  ;;  %v7702_v54 = vsub.f32 %v4073_v26, %v7678_v61  ;;  %v7713_v43 = vand.u32 4294901760, %v4071_v41 }
 0xbff   :  { %4063 = vmatpush.msrb.mxu1 %v3758_v30  ;;  %v7637_v30 = vand.u32 4294901760, %v4078_v13  ;;  %v4159_v52 = vand.u32 4294901760, %v4158_v25  ;;  %4148 = vmatpush.msrb.mxu3 %v4147_v39  ;;  %v7722_v39 = vsub.f32 %v4071_v41, %v7713_v43 }
 0xc01   :  { %v7653_v8 = vsub.f32 %v4078_v13, %v7637_v30  ;;  %4154 = vmatpush.msrb.mxu3 %v4153_v21  ;;  %4105 = vmatpush.msrb.mxu2 %v7637_v30 }
 0xc03   :  { %v4175_v29 = vand.u32 4294901760, %v7653_v8  ;;  %4160 = vmatpush.msrb.mxu3 %v4159_v52  ;;  %4107 = vmatpush.msrb.mxu2 %v7640_v17  ;;  %v4217_v52 = vand.u32 4294901760, %v7722_v39 }
 0xc05   :  { %4109 = vmatpush.msrb.mxu2 %v7642_v31 }
 0xc07   :  { %4111 = vmatpush.msrb.mxu2 %v7647_v1 }
 0xc42   :  { %v3559_v37 = vpop.f32.mrf.mxu0 }
 0xc44   :  { %v3598_v24 = vpop.f32.mrf.mxu1 }
 0xc46   :  { %v3505_v45 = vpop.f32.mrf.mxu3 }
 0xc4e   :  { %v3404_v16 = vpop.f32.mrf.mxu2  ;;  %v3704_v60 = vpop.f32.mrf.mxu3 }
 0xc4f   :  { %v3405_v32 = vadd.f32 %v5181_v22, %v3404_v16  ;;  %v7660_v22 = vsub.f32 %v4076_v7, %v7642_v31  ;;  %v4072_v16 = vld [vmem:[%s7842_s11 + $0x10] sm:$0xff] }
 0xc50   :  { %v7682_v34 = vand.u32 4294901760, %v4072_v16 }
 0xc51   :  { %v3506_v33 = vadd.f32 %v3505_v45, %v3405_v32  ;;  %v7662_v45 = vand.u32 4294901760, %v4074_v27 }
 0xc52   :  { %v7705_v53 = vsub.f32 %v4072_v16, %v7682_v34 }
 0xc53   :  { %v3560_v4 = vadd.f32 %v3559_v37, %v3506_v33  ;;  %v4165_v37 = vand.u32 4294901760, %v4164_v49  ;;  %4113 = vmatpush.msrb.mxu2 %v7662_v45 }
 0xc54   :  { %v4211_v49 = vand.u32 4294901760, %v7705_v53 }
 0xc55   :  { %v3599_v42 = vadd.f32 %v3598_v24, %v3560_v4  ;;  %v4176_v4 = vsub.f32 %v7653_v8, %v4175_v29  ;;  %v4187_v24 = vand.u32 4294901760, %v7660_v22  ;;  %4166 = vmatpush.msrb.mxu3 %v4165_v37  ;;  %4115 = vmatpush.msrb.mxu2 %v7678_v61 }
 0xc56   :  { %v3667_v20 = vpop.f32.mrf.mxu2 }
 0xc57   :  { %v3668_v14 = vadd.f32 %v3667_v20, %v3599_v42  ;;  %v7690_v42 = vsub.f32 %v4074_v27, %v7662_v45  ;;  %v4177_v7 = vand.u32 4294901760, %v4176_v4  ;;  %4172 = vmatpush.msrb.mxu3 %v4171_v55  ;;  %v4205_v27 = vand.u32 4294901760, %v7702_v54  ;;  %4117 = vmatpush.msrb.mxu2 %v7682_v34 }
 0xc58   :  { %v4218_v4 = vsub.f32 %v7722_v39, %v4217_v52 }
 0xc59   :  { %v3705_v38 = vadd.f32 %v3704_v60, %v3668_v14  ;;  %v4193_v14 = vand.u32 4294901760, %v7676_v10  ;;  %v4188_v60 = vsub.f32 %v7660_v22, %v4187_v24  ;;  %v4199_v51 = vand.u32 4294901760, %v7690_v42  ;;  %4178 = vmatpush.msrb.mxu3 %v4177_v7  ;;  %4119 = vmatpush.msrb.mxu2 %v7713_v43 }
 0xc5a   :  { %v4206_v16 = vsub.f32 %v7702_v54, %v4205_v27  ;;  %v4219_v41 = vand.u32 4294901760, %v4218_v4 }
 0xc5b   :  { %v3707_v63 = vmax.f32 %v3705_v38, 0.0  ;;  %v4183_v38 = vand.u32 4294901760, %v4182_v18  ;;  %v4194_v25 = vsub.f32 %v7676_v10, %v4193_v14  ;;  %v4200_v21 = vsub.f32 %v7690_v42, %v4199_v51 }
 0xc5c   :  { %v4207_v37 = vand.u32 4294901760, %v4206_v16 }
 0xc5d   :  { %v7667_v32 = vand.u32 4294901760, %v3707_v63  ;;  %4184 = vmatpush.msrb.mxu3 %v4183_v38  ;;  %v4195_v26 = vand.u32 4294901760, %v4194_v25  ;;  %v4201_v40 = vand.u32 4294901760, %v4200_v21 }
 0xc5f   :  { %v3761_v33 = vsub.f32 %v3707_v63, %v7667_v32  ;;  %3866 = vmatmul.f32.vlgmr.msra.gmra.mxu1 %v7667_v32  ;;  %v4189_v63 = vand.u32 4294901760, %v4188_v60 }
 0xc60   :  { %4287 = vmatpush.msra.mxu1 %v7549_v15 }
 0xc61   :  { %v3762_v20 = vand.u32 4294901760, %v3761_v33  ;;  %3920 = vmatmul.f32.vlgmr.msra.gmra.mxu2 %v3761_v33  ;;  %4190 = vmatpush.msrb.mxu3 %v4189_v63 }
 0xc62   :  { %4289 = vmatpush.msra.mxu1 %v7551_v2 }
 0xc63   :  { %v3763_v13 = vsub.f32 %v3761_v33, %v3762_v20  ;;  %3959 = vmatmul.f32.vlgmr.msra.gmra.mxu3 %v3762_v20  ;;  %v4212_v33 = vsub.f32 %v7705_v53, %v4211_v49 }
 0xc64   :  { %4291 = vmatpush.msra.mxu1 %v7553_v47  ;;  %4196 = vmatpush.msrb.mxu3 %v4195_v26 }
 0xc65   :  { %v3764_v57 = vand.u32 4294901760, %v3763_v13  ;;  %v4213_v20 = vand.u32 4294901760, %v4212_v33 }
 0xc66   :  { %4293 = vmatpush.msra.mxu1 %v7564_v9  ;;  %4202 = vmatpush.msrb.mxu3 %v4201_v40 }
 0xc67   :  { %3765 = vmatmul.f32.vlgmr.msra.gmra.mxu0 %v3764_v57  ;;  %4065 = vmatmul.f32.vlgmr.msrb.gmra.mxu1 %v7667_v32 }
 0xc68   :  { %4234 = vmatpush.msra.mxu0 %v7574_v3  ;;  %4295 = vmatpush.msra.mxu1 %v7566_v0 }
 0xc69   :  { %4208 = vmatpush.msrb.mxu3 %v4207_v37 }
 0xc6a   :  { %4237 = vmatpush.msra.mxu0 %v7577_v23  ;;  %4297 = vmatpush.msra.mxu1 %v7568_v11 }
 0xc6b   :  { %4214 = vmatpush.msrb.mxu3 %v4213_v20 }
 0xc6c   :  { %4240 = vmatpush.msra.mxu0 %v7580_v5  ;;  %4299 = vmatpush.msra.mxu1 %v7583_v6 }
 0xc6d   :  { %4220 = vmatpush.msrb.mxu3 %v4219_v41 }
 0xc6e   :  { %4243 = vmatpush.msra.mxu0 %v7586_v36  ;;  %4301 = vmatpush.msra.mxu1 %v7637_v30 }
 0xc6f   :  { %4028 = vmatmul.f32.vlgmr.msrb.gmra.mxu0 %v7667_v32  ;;  %v4070_v32 = vld [vmem:[%s7842_s11] sm:$0xff] }
 0xc70   :  { %4246 = vmatpush.msra.mxu0 %v7589_v28  ;;  %4303 = vmatpush.msra.mxu1 %v7640_v17  ;;  %v4120_v55 = vand.u32 4294901760, %v4070_v32 }
 0xc72   :  { %4249 = vmatpush.msra.mxu0 %v7592_v59  ;;  %4305 = vmatpush.msra.mxu1 %v7642_v31  ;;  %v4222_v18 = vsub.f32 %v4070_v32, %v4120_v55 }
 0xc73   :  { %4121 = vmatpush.msrb.mxu2 %v4120_v55 }
 0xc74   :  { %4252 = vmatpush.msra.mxu0 %v7601_v46  ;;  %4307 = vmatpush.msra.mxu1 %v7647_v1  ;;  %v4223_v13 = vand.u32 4294901760, %v4222_v18 }
 0xc75   :  { %4328 = vmatpush.msra.mxu2 %v4133_v12 }
 0xc76   :  { %4255 = vmatpush.msra.mxu0 %v7653_v8  ;;  %4309 = vmatpush.msra.mxu1 %v7662_v45  ;;  %v4224_v7 = vsub.f32 %v4222_v18, %v4223_v13 }
 0xc77   :  { %4332 = vmatpush.msra.mxu2 %v4139_v56 }
 0xc78   :  { %4258 = vmatpush.msra.mxu0 %v7656_v62  ;;  %4311 = vmatpush.msra.mxu1 %v7678_v61  ;;  %v4225_v60 = vand.u32 4294901760, %v4224_v7 }
 0xc79   :  { %4336 = vmatpush.msra.mxu2 %v4145_v50 }
 0xc7a   :  { %4261 = vmatpush.msra.mxu0 %v7660_v22  ;;  %4313 = vmatpush.msra.mxu1 %v7682_v34 }
 0xc7b   :  { %4340 = vmatpush.msra.mxu2 %v4151_v48  ;;  %4226 = vmatpush.msrb.mxu3 %v4225_v60 }
 0xc7c   :  { %4264 = vmatpush.msra.mxu0 %v7676_v10  ;;  %4315 = vmatpush.msra.mxu1 %v7713_v43 }
 0xc7d   :  { %4395 = vmatpush.msra.mxu3 %v7549_v15  ;;  %4344 = vmatpush.msra.mxu2 %v4157_v19  ;;  %v5182_v15 = vld [vmem:[%s7841_s10] ss:$0 sm:$0xff] }
 0xc7e   :  { %4267 = vmatpush.msra.mxu0 %v7690_v42  ;;  %4317 = vmatpush.msra.mxu1 %v4120_v55 }
 0xc7f   :  { %4397 = vmatpush.msra.mxu3 %v7551_v2  ;;  %4348 = vmatpush.msra.mxu2 %v4163_v44  ;;  %v5183_v44 = vld [vmem:[%s7843_s12] ss:$0 sm:$0xff] }
 0xc80   :  { %4270 = vmatpush.msra.mxu0 %v7702_v54 }
 0xc81   :  { %4399 = vmatpush.msra.mxu3 %v7553_v47  ;;  %4352 = vmatpush.msra.mxu2 %v4169_v58 }
 0xc82   :  { %4273 = vmatpush.msra.mxu0 %v7705_v53 }
 0xc83   :  { %4401 = vmatpush.msra.mxu3 %v7564_v9  ;;  %4356 = vmatpush.msra.mxu2 %v4175_v29 }
 0xc84   :  { %4276 = vmatpush.msra.mxu0 %v7722_v39 }
 0xc85   :  { %4403 = vmatpush.msra.mxu3 %v7566_v0  ;;  %4360 = vmatpush.msra.mxu2 %v4181_v35 }
 0xc86   :  { %4279 = vmatpush.msra.mxu0 %v4222_v18 }
 0xc87   :  { %4405 = vmatpush.msra.mxu3 %v7568_v11  ;;  %4364 = vmatpush.msra.mxu2 %v4187_v24 }
 0xc89   :  { %4407 = vmatpush.msra.mxu3 %v7583_v6  ;;  %4368 = vmatpush.msra.mxu2 %v4193_v14 }
 0xc8b   :  { %4409 = vmatpush.msra.mxu3 %v7637_v30  ;;  %4372 = vmatpush.msra.mxu2 %v4199_v51 }
 0xc8d   :  { %4411 = vmatpush.msra.mxu3 %v7640_v17  ;;  %4376 = vmatpush.msra.mxu2 %v4205_v27 }
 0xc8f   :  { %4413 = vmatpush.msra.mxu3 %v7642_v31  ;;  %4380 = vmatpush.msra.mxu2 %v4211_v49 }
 0xc91   :  { %4415 = vmatpush.msra.mxu3 %v7647_v1  ;;  %4384 = vmatpush.msra.mxu2 %v4217_v52 }
 0xc93   :  { %4417 = vmatpush.msra.mxu3 %v7662_v45  ;;  %4388 = vmatpush.msra.mxu2 %v4223_v13 }
 0xc95   :  { %4419 = vmatpush.msra.mxu3 %v7678_v61 }
 0xc97   :  { %4421 = vmatpush.msra.mxu3 %v7682_v34 }
 0xc99   :  { %4423 = vmatpush.msra.mxu3 %v7713_v43 }
 0xc9b   :  { %4425 = vmatpush.msra.mxu3 %v4120_v55 }
 0xcdc   :  { %v3867_v2 = vpop.f32.mrf.mxu1 }
 0xce4   :  { %v3766_v47 = vpop.f32.mrf.mxu0  ;;  %v3921_v11 = vpop.f32.mrf.mxu2 }
 0xce5   :  { %v3767_v9 = vadd.f32 %v5182_v15, %v3766_v47  ;;  %v4066_v28 = vpop.f32.mrf.mxu1 }
 0xce6   :  { %v3960_v23 = vpop.f32.mrf.mxu3 }
 0xce7   :  { %v3868_v0 = vadd.f32 %v3867_v2, %v3767_v9 }
 0xce9   :  { %v3922_v3 = vadd.f32 %v3921_v11, %v3868_v0 }
 0xceb   :  { %v3961_v5 = vadd.f32 %v3960_v23, %v3922_v3 }
 0xcec   :  { %v4029_v6 = vpop.f32.mrf.mxu0 }
 0xced   :  { %v4030_v36 = vadd.f32 %v4029_v6, %v3961_v5 }
 0xcef   :  { %v4067_v59 = vadd.f32 %v4066_v28, %v4030_v36 }
 0xcf1   :  { %v4069_v12 = vmax.f32 %v4067_v59, 0.0 }
 0xcf3   :  { %v4122_v56 = vand.u32 4294901760, %v4069_v12 }
 0xcf5   :  { %v4123_v50 = vsub.f32 %v4069_v12, %v4122_v56  ;;  %4228 = vmatmul.f32.vlgmr.msrb.gmra.mxu3 %v4122_v56 }
 0xcf7   :  { %v4124_v48 = vand.u32 4294901760, %v4123_v50  ;;  %4282 = vmatmul.f32.vlgmr.msra.gmra.mxu0 %v4123_v50 }
 0xcf9   :  { %v4125_v19 = vsub.f32 %v4123_v50, %v4124_v48  ;;  %4321 = vmatmul.f32.vlgmr.msra.gmra.mxu1 %v4124_v48 }
 0xcfb   :  { %v4126_v46 = vand.u32 4294901760, %v4125_v19 }
 0xcfd   :  { %4127 = vmatmul.f32.vlgmr.msrb.gmra.mxu2 %v4126_v46  ;;  %4427 = vmatmul.f32.vlgmr.msra.gmra.mxu3 %v4122_v56 }
 0xd05   :  { %4390 = vmatmul.f32.vlgmr.msra.gmra.mxu2 %v4122_v56 }
 0xd74   :  { %v4283_v1 = vpop.f32.mrf.mxu0 }
 0xd76   :  { %v4322_v62 = vpop.f32.mrf.mxu1 }
 0xd78   :  { %v4229_v58 = vpop.f32.mrf.mxu3 }
 0xd80   :  { %v4128_v30 = vpop.f32.mrf.mxu2  ;;  %v4428_v35 = vpop.f32.mrf.mxu3 }
 0xd81   :  { %v4129_v17 = vadd.f32 %v5183_v44, %v4128_v30 }
 0xd83   :  { %v4230_v31 = vadd.f32 %v4229_v58, %v4129_v17 }
 0xd85   :  { %v4284_v8 = vadd.f32 %v4283_v1, %v4230_v31 }
 0xd87   :  { %v4323_v22 = vadd.f32 %v4322_v62, %v4284_v8 }
 0xd88   :  { %v4391_v45 = vpop.f32.mrf.mxu2 }
 0xd89   :  { %v4392_v29 = vadd.f32 %v4391_v45, %v4323_v22 }
 0xd8b   :  { %v4429_v10 = vadd.f32 %v4428_v35, %v4392_v29 }
 0xd8d   :  { %v4432_v61 = vsel %vm4431_vm12, %v4429_v10, -inf }
 0xd8e   :  { %4433 = vmax.xlane.f32.xlu0 %v4432_v61 }
 0xe01   :  { %v4434_v34 = vpop.xlane.xlu0 %4433 }
 0xe02   :  { %v4435_v24 = vsub.f32 %v4429_v10, %v4434_v34 }
 0xe04   :  { %v4436_v42 = vmul.f32 1.442695, %v4435_v24 }
 0xe06   :  { %5434 = vpow2.f32 %v4436_v42 }
 0xe0c   :  { %v5435_v14 = vpop.eup %5434 }
 0xe0d   :  { %v4438_v54 = vsel %vm4431_vm12, %v5435_v14, 0.0 }
 0xe0e   :  { %4439 = vadd.xlane.f32.xlu0 %v4438_v54 }
 0xe81   :  { %v4440_v53 = vpop.xlane.xlu0 %4439 }
 0xe82   :  { %5436 = vrcp.f32 %v4440_v53  ;;  %v4452_v38 = vand.u32 2147483648, %v4440_v53  ;;  %v4450_v27 = vand.u32 2147483647, %v4440_v53  ;;  %vm4446_vm14 = vweird.f32 %v4440_v53 }
 0xe84   :  { %v4453_v63 = vor.u32 1.1754944e-38, %v4452_v38  ;;  %vm4451_vm0 = vcmp.eq.f32.partialorder %v4450_v27, 8.507059e+37 }
 0xe88   :  { %v5437_v51 = vpop.eup %5436 }
 0xe89   :  { %v4442_v43 = vmul.f32 %v5437_v51, %v4440_v53  ;;  %vm4447_vm13 = vweird.f32 %v5437_v51 }
 0xe8a   :  { %vm4448_vm15 = vmor %vm4446_vm14, %vm4447_vm13 }
 0xe8b   :  { %v4443_v57 = vsub.f32 1.0, %v4442_v43 }
 0xe8d   :  { %v4444_v25 = vmul.f32 %v5437_v51, %v4443_v57 }
 0xe8f   :  { %v4445_v39 = vadd.f32 %v5437_v51, %v4444_v25 }
 0xe91   :  { %v4449_v21 = vsel %vm4448_vm15, %v5437_v51, %v4445_v39 }
 0xe92   :  { %v4454_v49 = vsel %vm4451_vm0, %v4453_v63, %v4449_v21 }
 0xe93   :  { %v4455_v26 = vmul.f32 %v5435_v14, %v4454_v49 }
 0xe95   :  { %4456 = vst.msk [vmem:[%s7844_s13] sm:$0xff] %vm4431_vm12, %v4455_v26 }
 0xe96   :  { %4461 = vsyncpa [#allocation3], 1 }
 0xe97   :  { %4462 = vsyncpa [#allocation5], 1 }
 0xe98   :  { %4463 = vsyncpa [#allocation8], 1 }

</bundles_post_ra>
